<compile_context>
chip_gen: v6e
topology: v6e:2x2x1
jax: 0.10.0
libtpu: 0.0.40
codegen_flags: <defaults>
</compile_context>

<pallas_src>
import math

import jax
import jax.numpy as jnp
from jax import lax
from jax.experimental import pallas as pl
from jax.experimental.pallas import tpu as pltpu


# ---------------------------------------------------------------------------
# Kernel: one (batch-chunk, seq-chunk) grid step.
# ---------------------------------------------------------------------------
def _cell_attention_kernel(
    xs_ref, w1_ref, b1_ref, w2_ref, b2_ref, wih_ref, whh_ref, bias_ref,   # in
    hseq_ref, h_out_ref, c_out_ref,                                       # out
    xf_sc, a2_sc, m_sc, gm_sc, num_sc, den_sc, mmax_sc, h_sc, c_sc):      # scratch
  Ts, Bb, F = xs_ref.shape
  HS = whh_ref.shape[0]
  r = w2_ref.shape[1]
  inv_r = 1.0 / float(r)
  t_chunk = pl.program_id(1)

  # ---- new batch chunk: reset all state carried across seq chunks --------
  @pl.when(t_chunk == 0)
  def _():
    num_sc[...] = jnp.zeros_like(num_sc)
    den_sc[...] = jnp.zeros_like(den_sc)
    mmax_sc[...] = jnp.full(mmax_sc.shape, -jnp.inf, mmax_sc.dtype)
    h_sc[...] = jnp.zeros_like(h_sc)
    c_sc[...] = jnp.zeros_like(c_sc)

  # ---- stage the x chunk once in f32 (reused in both passes, no re-cast) --
  xf_sc[...] = xs_ref[...].astype(jnp.float32)

  # ---- attention projection for the whole chunk: two MXU matmuls ---------
  # Operands cast to the weight dtype (bf16 fast path when requested);
  # accumulation stays f32 via preferred_element_type.
  x2 = xf_sc[...].reshape(Ts * Bb, F)
  a1 = jnp.tanh(
      jnp.dot(x2.astype(w1_ref.dtype), w1_ref[...],
              preferred_element_type=jnp.float32) + b1_ref[...])
  a2 = (jnp.dot(a1.astype(w2_ref.dtype), w2_ref[...],
                preferred_element_type=jnp.float32) + b2_ref[...])
  a2_sc[...] = a2.reshape(Ts, Bb, r)

  # ---- pass 1: online-softmax prefix sums -> M_t for every step ----------
  #   den_t = sum_{s<=t} e[s],  num_t = sum_{s<=t} e[s]*x[s]  (rescaled by the
  #   running max, so early steps never underflow to a zero denominator)
  #   M_t   = (1/r) * sum_j num_t[:, j, :] / den_t[:, j]
  def m_body(t, carry):
    a2_t = a2_sc[t]                                   # (Bb, r)
    m_old = mmax_sc[...]
    m_new = jnp.maximum(m_old, a2_t)
    rescale = jnp.exp(m_old - m_new)
    e_t = jnp.exp(a2_t - m_new)
    den = den_sc[...] * rescale + e_t                              # (Bb, r)
    num = (num_sc[...] * rescale[:, :, None]
           + e_t[:, :, None] * xf_sc[t][:, None, :])               # (Bb, r, F)
    mmax_sc[...] = m_new
    den_sc[...] = den
    num_sc[...] = num
    inv_den = 1.0 / den         # only Bb*r exact divides; wide tensor uses mul
    m_sc[t] = jnp.sum(num * inv_den[:, :, None], axis=1) * inv_r   # (Bb, F)
    return carry

  lax.fori_loop(0, Ts, m_body, 0, unroll=True)

  # ---- input-side gate pre-activations: ONE chunk-wide MXU matmul ---------
  gm = (jnp.dot(m_sc[...].reshape(Ts * Bb, F).astype(wih_ref.dtype),
                wih_ref[...], preferred_element_type=jnp.float32)
        + bias_ref[...])
  gm_sc[...] = gm.reshape(Ts, Bb, 4 * HS)

  # ---- pass 2: the genuinely sequential LSTM recurrence -------------------
  # Gate columns were reordered to [i, f, o, g] in the wrapper: one sigmoid
  # over the first 3*HS lanes + one tanh over the trailing HS lanes.
  def cell_body(t, carry):
    h, c = carry
    gates = gm_sc[t] + jnp.dot(h.astype(whh_ref.dtype), whh_ref[...],
                               preferred_element_type=jnp.float32)
    sig = jax.nn.sigmoid(gates[:, :3 * HS])
    i_t = sig[:, 0 * HS:1 * HS]
    f_t = sig[:, 1 * HS:2 * HS]
    o_t = sig[:, 2 * HS:3 * HS]
    g_t = jnp.tanh(gates[:, 3 * HS:])
    c = f_t * c + i_t * g_t
    h = o_t * jnp.tanh(c)
    hseq_ref[t] = h.astype(hseq_ref.dtype)
    return h, c

  h_f, c_f = lax.fori_loop(0, Ts, cell_body, (h_sc[...], c_sc[...]),
                           unroll=True)
  h_sc[...] = h_f
  c_sc[...] = c_f
  # Constant block index across the seq axis -> flushed once per batch chunk.
  h_out_ref[...] = h_f.astype(h_out_ref.dtype)
  c_out_ref[...] = c_f.astype(c_out_ref.dtype)


# ---------------------------------------------------------------------------
# VMEM budgeting helpers ((8,128)-padded, for vmem_limit_bytes)
# ---------------------------------------------------------------------------
def _round_up(x, m):
  return -(-x // m) * m


def _padded_bytes(shape, dtype=jnp.float32):
  shape = (1, 1) + tuple(shape)
  lead = 1
  for d in shape[:-2]:
    lead *= d
  return (lead * _round_up(shape[-2], 8) * _round_up(shape[-1], 128)
          * jnp.dtype(dtype).itemsize)


def _vmem_limit_bytes(Ts, Bb, F, HS, d_a, r, x_dtype):
  b = 2 * _padded_bytes((Ts, Bb, F), x_dtype)            # x chunk (double buf)
  b += 2 * _padded_bytes((Ts, Bb, HS), x_dtype)          # hidden_seq chunk
  b += 2 * 2 * _padded_bytes((Bb, HS), x_dtype)          # h_T, c_T
  for shp in ((F, d_a), (1, d_a), (d_a, r), (1, r),
              (F, 4 * HS), (HS, 4 * HS), (1, 4 * HS)):   # weights (upper bound)
    b += 2 * _padded_bytes(shp, jnp.float32)
  for shp in ((Ts, Bb, F), (Ts, Bb, r), (Ts, Bb, F), (Ts, Bb, 4 * HS),
              (Bb, r, F), (Bb, r), (Bb, r), (Bb, HS), (Bb, HS)):   # scratch
    b += _padded_bytes(shp, jnp.float32)
  # 2x headroom + slack for Mosaic-internal scratch; cap at v7x's 64 MiB
  # (re-derive chunk sizes rather than the cap when targeting v7x at scale).
  return int(min(max(2 * b + (2 << 20), 8 << 20), 64 << 20))


# ---------------------------------------------------------------------------
# Wrapper
# ---------------------------------------------------------------------------
def input_cell_attention(x, params, *, hidden_sz, r, seq_block=None,
                         batch_block=None, matmul_dtype=jnp.float32):
  """x: (batch, seq, feature) -> (hidden_seq (B, S, H), (h_T, c_T))."""
  B, S, F = x.shape
  HS = hidden_sz
  d_a = params["w1"].shape[1]
  seq_block = S if seq_block is None else seq_block
  batch_block = B if batch_block is None else batch_block
  assert S % seq_block == 0, "seq_block must divide the sequence length"
  assert B % batch_block == 0, "batch_block must divide the batch size"
  assert batch_block == B or batch_block % 8 == 0, (
      "batch_block must be the full batch or a multiple of 8 (sublane align)")

  # Gate columns [i, f, g, o] -> [i, f, o, g] so sigmoid/tanh are contiguous.
  def _reorder_gates(w):
    return jnp.concatenate(
        [w[..., :2 * HS], w[..., 3 * HS:], w[..., 2 * HS:3 * HS]], axis=-1)

  w1 = params["w1"].astype(matmul_dtype)
  w2 = params["w2"].astype(matmul_dtype)
  b1 = params["b1"].astype(jnp.float32)
  b2 = params["b2"].astype(jnp.float32)
  w_ih = _reorder_gates(params["w_iBarh"]).astype(matmul_dtype)
  w_hh = _reorder_gates(params["w_hh"]).astype(matmul_dtype)
  bias = _reorder_gates(params["bias"]).astype(jnp.float32)

  xs = jnp.transpose(x, (1, 0, 2))                 # (S, B, F): time-major
  grid = (B // batch_block, S // seq_block)        # (parallel, arbitrary)
  vmem_bytes = _vmem_limit_bytes(seq_block, batch_block, F, HS, d_a, r, x.dtype)

  def _run(single_buffer_weights):
    def wspec(shape):
      if single_buffer_weights:
        # Constant index map -> fetched once; no benefit from double buffering.
        return pl.BlockSpec(shape, lambda b, t: (0, 0),
                            pipeline_mode=pl.Buffered(1))
      return pl.BlockSpec(shape, lambda b, t: (0, 0))

    call = pl.pallas_call(
        _cell_attention_kernel,
        out_shape=(
            jax.ShapeDtypeStruct((S, B, HS), x.dtype),   # hidden_seq (time-major)
            jax.ShapeDtypeStruct((B, HS), x.dtype),      # final h
            jax.ShapeDtypeStruct((B, HS), x.dtype),      # final c
        ),
        grid_spec=pltpu.PrefetchScalarGridSpec(
            num_scalar_prefetch=0,
            grid=grid,
            in_specs=[
                pl.BlockSpec((seq_block, batch_block, F),
                             lambda b, t: (t, b, 0)),     # x, streamed
                wspec((F, d_a)),                          # linear_first.W^T
                wspec((1, d_a)),                          # linear_first.b
                wspec((d_a, r)),                          # linear_second.W^T
                wspec((1, r)),                            # linear_second.b
                wspec((F, 4 * HS)),                       # weight_iBarh (reordered)
                wspec((HS, 4 * HS)),                      # weight_hh (reordered)
                wspec((1, 4 * HS)),                       # bias (reordered)
            ],
            out_specs=(
                pl.BlockSpec((seq_block, batch_block, HS),
                             lambda b, t: (t, b, 0)),     # hidden_seq, streamed
                pl.BlockSpec((batch_block, HS), lambda b, t: (b, 0)),
                pl.BlockSpec((batch_block, HS), lambda b, t: (b, 0)),
            ),
            scratch_shapes=[
                pltpu.VMEM((seq_block, batch_block, F), jnp.float32),       # x chunk f32
                pltpu.VMEM((seq_block, batch_block, r), jnp.float32),       # scores
                pltpu.VMEM((seq_block, batch_block, F), jnp.float32),       # M_t chunk
                pltpu.VMEM((seq_block, batch_block, 4 * HS), jnp.float32),  # gate preact
                pltpu.VMEM((batch_block, r, F), jnp.float32),               # prefix num
                pltpu.VMEM((batch_block, r), jnp.float32),                  # prefix den
                pltpu.VMEM((batch_block, r), jnp.float32),                  # running max
                pltpu.VMEM((batch_block, HS), jnp.float32),                 # h carry
                pltpu.VMEM((batch_block, HS), jnp.float32),                 # c carry
            ],
        ),
        compiler_params=pltpu.CompilerParams(
            dimension_semantics=("parallel", "arbitrary"),
            vmem_limit_bytes=vmem_bytes),
    )
    out = call(xs, w1, b1, w2, b2, w_ih, w_hh, bias)
    return jax.block_until_ready(out)

  try:
    hseq, h_t, c_t = _run(single_buffer_weights=True)
  except Exception:
    # pipeline_mode=pl.Buffered(1) unsupported on this jax build: retry with
    # default double-buffered weight blocks (a few KiB of extra VMEM only).
    hseq, h_t, c_t = _run(single_buffer_weights=False)

  hidden_seq = jnp.transpose(hseq, (1, 0, 2))      # (B, seq, hidden)
  # TODO(synk): optional `init_states` of the PyTorch module not plumbed; zeros used.
  return hidden_seq, (h_t, c_t)


# ---------------------------------------------------------------------------
# Parameters + pure-JAX reference (intended semantics of the PyTorch forward)
# ---------------------------------------------------------------------------
def _xavier_uniform(key, shape):
  bound = math.sqrt(6.0 / (shape[0] + shape[1]))
  return jax.random.uniform(key, shape, jnp.float32, -bound, bound)


def make_params(key, input_sz, hidden_sz, d_a, r):
  k1, k2, k3, k4 = jax.random.split(key, 4)
  return {
      "w_iBarh": _xavier_uniform(k1, (input_sz, 4 * hidden_sz)),
      "w_hh": _xavier_uniform(k2, (hidden_sz, 4 * hidden_sz)),
      "bias": jnp.zeros((1, 4 * hidden_sz), jnp.float32),   # init_weights -> zeros
      "w1": _xavier_uniform(k3, (input_sz, d_a)),            # linear_first.weight^T
      "b1": jnp.zeros((1, d_a), jnp.float32),
      "w2": _xavier_uniform(k4, (d_a, r)),                   # linear_second.weight^T
      "b2": jnp.zeros((1, r), jnp.float32),
  }


def reference_forward(x, params, hidden_sz, r):
  B, S, F = x.shape
  h = jnp.zeros((hidden_sz,), jnp.float32)
  c = jnp.zeros((hidden_sz,), jnp.float32)
  outs = []
  for t in range(S):
    H = x[:, :t + 1, :]
    a1 = jnp.tanh(H @ params["w1"] + params["b1"][0])
    a2 = a1 @ params["w2"] + params["b2"][0]                # (B, t+1, r)
    att = jax.nn.softmax(a2, axis=1)
    Mm = jnp.einsum("bsr,bsf->brf", att, H)
    M = jnp.sum(Mm, axis=1) / r
    gates = M @ params["w_iBarh"] + h @ params["w_hh"] + params["bias"][0]
    i_t = jax.nn.sigmoid(gates[:, :hidden_sz])
    f_t = jax.nn.sigmoid(gates[:, hidden_sz:2 * hidden_sz])
    g_t = jnp.tanh(gates[:, 2 * hidden_sz:3 * hidden_sz])
    o_t = jax.nn.sigmoid(gates[:, 3 * hidden_sz:])
    c = f_t * c + i_t * g_t
    h = o_t * jnp.tanh(c)
    outs.append(h)
  return jnp.stack(outs, axis=1), (h, c)


if __name__ == "__main__":
  B, S, INPUT, HIDDEN, D_A, R = 16, 8, 16, 32, 8, 4
  SEQ_BLOCK, BATCH_BLOCK = 4, 8          # grid = (2 batch chunks, 2 seq chunks)

  key = jax.random.PRNGKey(0)
  kx, kp = jax.random.split(key)
  x = jax.random.normal(kx, (B, S, INPUT), jnp.float32)
  params = make_params(kp, INPUT, HIDDEN, D_A, R)

  ref_seq, (ref_h, ref_c) = reference_forward(x, params, HIDDEN, R)

  # f32 MXU operands: tight check against the reference.
  hs, (h_t, c_t) = input_cell_attention(
      x, params, hidden_sz=HIDDEN, r=R,
      seq_block=SEQ_BLOCK, batch_block=BATCH_BLOCK, matmul_dtype=jnp.float32)
  jax.block_until_ready((hs, h_t, c_t))
  assert hs.shape == (B, S, HIDDEN)
  assert h_t.shape == (B, HIDDEN) and c_t.shape == (B, HIDDEN)
  assert jnp.allclose(hs, ref_seq, atol=2e-5, rtol=1e-4)
  assert jnp.allclose(h_t, ref_h, atol=2e-5, rtol=1e-4)
  assert jnp.allclose(c_t, ref_c, atol=2e-5, rtol=1e-4)

  # bf16 MXU operands / f32 accumulation: native-MXU fast path, looser check.
  hs16, (h16, c16) = input_cell_attention(
      x, params, hidden_sz=HIDDEN, r=R,
      seq_block=SEQ_BLOCK, batch_block=BATCH_BLOCK, matmul_dtype=jnp.bfloat16)
  jax.block_until_ready((hs16, h16, c16))
  assert jnp.allclose(hs16, ref_seq, atol=5e-2, rtol=5e-2)
  assert jnp.allclose(h16, ref_h, atol=5e-2, rtol=5e-2)
  assert jnp.allclose(c16, ref_c, atol=5e-2, rtol=5e-2)

  print("KERNEL_OK")
</pallas_src>

<mosaic_0001>
module attributes {stable_mosaic.version = 11 : i64} {
  func.func @_cell_attention_kernel(%arg0: i32, %arg1: i32, %arg2: memref<4x8x16xf32, #tpu.memory_space<vmem>>, %arg3: memref<16x8xf32, #tpu.memory_space<vmem>>, %arg4: memref<1x8xf32, #tpu.memory_space<vmem>>, %arg5: memref<8x4xf32, #tpu.memory_space<vmem>>, %arg6: memref<1x4xf32, #tpu.memory_space<vmem>>, %arg7: memref<16x128xf32, #tpu.memory_space<vmem>>, %arg8: memref<32x128xf32, #tpu.memory_space<vmem>>, %arg9: memref<1x128xf32, #tpu.memory_space<vmem>>, %arg10: memref<4x8x32xf32, #tpu.memory_space<vmem>>, %arg11: memref<8x32xf32, #tpu.memory_space<vmem>>, %arg12: memref<8x32xf32, #tpu.memory_space<vmem>>, %arg13: memref<4x8x16xf32, #tpu.memory_space<vmem>>, %arg14: memref<4x8x4xf32, #tpu.memory_space<vmem>>, %arg15: memref<4x8x16xf32, #tpu.memory_space<vmem>>, %arg16: memref<4x8x128xf32, #tpu.memory_space<vmem>>, %arg17: memref<8x4x16xf32, #tpu.memory_space<vmem>>, %arg18: memref<8x4xf32, #tpu.memory_space<vmem>>, %arg19: memref<8x4xf32, #tpu.memory_space<vmem>>, %arg20: memref<8x32xf32, #tpu.memory_space<vmem>>, %arg21: memref<8x32xf32, #tpu.memory_space<vmem>>) attributes {dimension_semantics = [#tpu.dimension_semantics<parallel>, #tpu.dimension_semantics<arbitrary>], iteration_bounds = array<i64: 2, 2>, scalar_prefetch = 0 : i64, scratch_operands = 9 : i64, tpu.core_type = #tpu.core_type<tc>, window_params = [{transform_indices = @transform_0, window_bounds = array<i64: 4, 8, 16>}, {pipeline_mode = #tpu.pipeline_mode<synchronous>, transform_indices = @transform_1, window_bounds = array<i64: 16, 8>}, {pipeline_mode = #tpu.pipeline_mode<synchronous>, transform_indices = @transform_2, window_bounds = array<i64: 1, 8>}, {pipeline_mode = #tpu.pipeline_mode<synchronous>, transform_indices = @transform_3, window_bounds = array<i64: 8, 4>}, {pipeline_mode = #tpu.pipeline_mode<synchronous>, transform_indices = @transform_4, window_bounds = array<i64: 1, 4>}, {pipeline_mode = #tpu.pipeline_mode<synchronous>, transform_indices = @transform_5, window_bounds = array<i64: 16, 128>}, {pipeline_mode = #tpu.pipeline_mode<synchronous>, transform_indices = @transform_6, window_bounds = array<i64: 32, 128>}, {pipeline_mode = #tpu.pipeline_mode<synchronous>, transform_indices = @transform_7, window_bounds = array<i64: 1, 128>}, {transform_indices = @transform_8, window_bounds = array<i64: 4, 8, 32>}, {transform_indices = @transform_9, window_bounds = array<i64: 8, 32>}, {transform_indices = @transform_10, window_bounds = array<i64: 8, 32>}]} {
    %c0_i32 = arith.constant 0 : i32
    %0 = arith.cmpi eq, %arg1, %c0_i32 : i32
    %1 = arith.extui %0 : i1 to i32
    %c0_i32_0 = arith.constant 0 : i32
    %2 = arith.cmpi ne, %1, %c0_i32_0 : i32
    scf.if %2 {
      %cst_174 = arith.constant 0.000000e+00 : f32
      %299 = vector.broadcast %cst_174 : f32 to vector<8x4x16xf32>
      %c0_175 = arith.constant 0 : index
      %c0_176 = arith.constant 0 : index
      %c0_177 = arith.constant 0 : index
      %300 = vector.load %arg17[%c0_175, %c0_176, %c0_177] : memref<8x4x16xf32, #tpu.memory_space<vmem>>, vector<8x4x16xf32>
      tpu.vector_store %arg17[%c0_175, %c0_176, %c0_177], %299 {strides = array<i32>} : memref<8x4x16xf32, #tpu.memory_space<vmem>>, vector<8x4x16xf32>,
      %cst_178 = arith.constant 0.000000e+00 : f32
      %301 = vector.broadcast %cst_178 : f32 to vector<8x4xf32>
      %c0_179 = arith.constant 0 : index
      %c0_180 = arith.constant 0 : index
      %302 = vector.load %arg18[%c0_179, %c0_180] : memref<8x4xf32, #tpu.memory_space<vmem>>, vector<8x4xf32>
      tpu.vector_store %arg18[%c0_179, %c0_180], %301 {strides = array<i32>} : memref<8x4xf32, #tpu.memory_space<vmem>>, vector<8x4xf32>,
      %cst_181 = arith.constant 0xFF800000 : f32
      %303 = vector.broadcast %cst_181 : f32 to vector<8x4xf32>
      %c0_182 = arith.constant 0 : index
      %c0_183 = arith.constant 0 : index
      %304 = vector.load %arg19[%c0_182, %c0_183] : memref<8x4xf32, #tpu.memory_space<vmem>>, vector<8x4xf32>
      tpu.vector_store %arg19[%c0_182, %c0_183], %303 {strides = array<i32>} : memref<8x4xf32, #tpu.memory_space<vmem>>, vector<8x4xf32>,
      %cst_184 = arith.constant 0.000000e+00 : f32
      %305 = vector.broadcast %cst_184 : f32 to vector<8x32xf32>
      %c0_185 = arith.constant 0 : index
      %c0_186 = arith.constant 0 : index
      %306 = vector.load %arg20[%c0_185, %c0_186] : memref<8x32xf32, #tpu.memory_space<vmem>>, vector<8x32xf32>
      tpu.vector_store %arg20[%c0_185, %c0_186], %305 {strides = array<i32>} : memref<8x32xf32, #tpu.memory_space<vmem>>, vector<8x32xf32>,
      %cst_187 = arith.constant 0.000000e+00 : f32
      %307 = vector.broadcast %cst_187 : f32 to vector<8x32xf32>
      %c0_188 = arith.constant 0 : index
      %c0_189 = arith.constant 0 : index
      %308 = vector.load %arg21[%c0_188, %c0_189] : memref<8x32xf32, #tpu.memory_space<vmem>>, vector<8x32xf32>
      tpu.vector_store %arg21[%c0_188, %c0_189], %307 {strides = array<i32>} : memref<8x32xf32, #tpu.memory_space<vmem>>, vector<8x32xf32>,
    } else {
    }
    %c0 = arith.constant 0 : index
    %c0_1 = arith.constant 0 : index
    %c0_2 = arith.constant 0 : index
    %3 = vector.load %arg2[%c0, %c0_1, %c0_2] : memref<4x8x16xf32, #tpu.memory_space<vmem>>, vector<4x8x16xf32>
    %c0_3 = arith.constant 0 : index
    %c0_4 = arith.constant 0 : index
    %c0_5 = arith.constant 0 : index
    %4 = vector.load %arg13[%c0_3, %c0_4, %c0_5] : memref<4x8x16xf32, #tpu.memory_space<vmem>>, vector<4x8x16xf32>
    tpu.vector_store %arg13[%c0_3, %c0_4, %c0_5], %3 {strides = array<i32>} : memref<4x8x16xf32, #tpu.memory_space<vmem>>, vector<4x8x16xf32>,
    %c0_6 = arith.constant 0 : index
    %c0_7 = arith.constant 0 : index
    %c0_8 = arith.constant 0 : index
    %5 = vector.load %arg13[%c0_6, %c0_7, %c0_8] : memref<4x8x16xf32, #tpu.memory_space<vmem>>, vector<4x8x16xf32>
    %6 = vector.shape_cast %5 : vector<4x8x16xf32> to vector<32x16xf32>
    %c0_9 = arith.constant 0 : index
    %c0_10 = arith.constant 0 : index
    %7 = vector.load %arg3[%c0_9, %c0_10] : memref<16x8xf32, #tpu.memory_space<vmem>>, vector<16x8xf32>
    %cst = arith.constant dense<0.000000e+00> : vector<32x8xf32>
    %8 = tpu.matmul %6, %7, %cst {dimension_numbers = #tpu.dot_dimension_numbers<[1], [0], [0], [1], [0, 0, 1, 1], [], []>} : vector<32x16xf32>, vector<16x8xf32>, vector<32x8xf32> -> vector<32x8xf32>
    %c0_11 = arith.constant 0 : index
    %c0_12 = arith.constant 0 : index
    %9 = vector.load %arg4[%c0_11, %c0_12] : memref<1x8xf32, #tpu.memory_space<vmem>>, vector<1x8xf32>
    %10 = vector.broadcast %9 : vector<1x8xf32> to vector<32x8xf32>
    %11 = arith.addf %8, %10 : vector<32x8xf32>
    %12 = math.tanh %11 : vector<32x8xf32>
    %c0_13 = arith.constant 0 : index
    %c0_14 = arith.constant 0 : index
    %13 = vector.load %arg5[%c0_13, %c0_14] : memref<8x4xf32, #tpu.memory_space<vmem>>, vector<8x4xf32>
    %cst_15 = arith.constant dense<0.000000e+00> : vector<32x4xf32>
    %14 = tpu.matmul %12, %13, %cst_15 {dimension_numbers = #tpu.dot_dimension_numbers<[1], [0], [0], [1], [0, 0, 1, 1], [], []>} : vector<32x8xf32>, vector<8x4xf32>, vector<32x4xf32> -> vector<32x4xf32>
    %c0_16 = arith.constant 0 : index
    %c0_17 = arith.constant 0 : index
    %15 = vector.load %arg6[%c0_16, %c0_17] : memref<1x4xf32, #tpu.memory_space<vmem>>, vector<1x4xf32>
    %16 = vector.broadcast %15 : vector<1x4xf32> to vector<32x4xf32>
    %17 = arith.addf %14, %16 : vector<32x4xf32>
    %18 = vector.shape_cast %17 : vector<32x4xf32> to vector<4x8x4xf32>
    %c0_18 = arith.constant 0 : index
    %c0_19 = arith.constant 0 : index
    %c0_20 = arith.constant 0 : index
    %19 = vector.load %arg14[%c0_18, %c0_19, %c0_20] : memref<4x8x4xf32, #tpu.memory_space<vmem>>, vector<4x8x4xf32>
    tpu.vector_store %arg14[%c0_18, %c0_19, %c0_20], %18 {strides = array<i32>} : memref<4x8x4xf32, #tpu.memory_space<vmem>>, vector<4x8x4xf32>,
    %c0_i32_21 = arith.constant 0 : i32
    %20 = arith.index_cast %c0_i32_21 : i32 to index
    %c0_22 = arith.constant 0 : index
    %c0_23 = arith.constant 0 : index
    %21 = vector.load %arg14[%20, %c0_22, %c0_23] : memref<4x8x4xf32, #tpu.memory_space<vmem>>, vector<1x8x4xf32>
    %22 = vector.shape_cast %21 : vector<1x8x4xf32> to vector<8x4xf32>
    %c0_24 = arith.constant 0 : index
    %c0_25 = arith.constant 0 : index
    %23 = vector.load %arg19[%c0_24, %c0_25] : memref<8x4xf32, #tpu.memory_space<vmem>>, vector<8x4xf32>
    %24 = arith.maximumf %23, %22 : vector<8x4xf32>
    %25 = arith.subf %23, %24 : vector<8x4xf32>
    %26 = math.exp %25 : vector<8x4xf32>
    %27 = arith.subf %22, %24 : vector<8x4xf32>
    %28 = math.exp %27 : vector<8x4xf32>
    %c0_26 = arith.constant 0 : index
    %c0_27 = arith.constant 0 : index
    %29 = vector.load %arg18[%c0_26, %c0_27] : memref<8x4xf32, #tpu.memory_space<vmem>>, vector<8x4xf32>
    %30 = arith.mulf %29, %26 : vector<8x4xf32>
    %31 = arith.addf %30, %28 : vector<8x4xf32>
    %c0_28 = arith.constant 0 : index
    %c0_29 = arith.constant 0 : index
    %c0_30 = arith.constant 0 : index
    %32 = vector.load %arg17[%c0_28, %c0_29, %c0_30] : memref<8x4x16xf32, #tpu.memory_space<vmem>>, vector<8x4x16xf32>
    %33 = vector.shape_cast %26 : vector<8x4xf32> to vector<8x4x1xf32>
    %34 = vector.broadcast %33 : vector<8x4x1xf32> to vector<8x4x16xf32>
    %35 = arith.mulf %32, %34 : vector<8x4x16xf32>
    %36 = vector.shape_cast %28 : vector<8x4xf32> to vector<8x4x1xf32>
    %37 = arith.index_cast %c0_i32_21 : i32 to index
    %c0_31 = arith.constant 0 : index
    %c0_32 = arith.constant 0 : index
    %38 = vector.load %arg13[%37, %c0_31, %c0_32] : memref<4x8x16xf32, #tpu.memory_space<vmem>>, vector<1x8x16xf32>
    %39 = vector.shape_cast %38 : vector<1x8x16xf32> to vector<8x16xf32>
    %40 = vector.shape_cast %39 : vector<8x16xf32> to vector<8x1x16xf32>
    %41 = vector.broadcast %36 : vector<8x4x1xf32> to vector<8x4x16xf32>
    %42 = vector.broadcast %40 : vector<8x1x16xf32> to vector<8x4x16xf32>
    %43 = arith.mulf %41, %42 : vector<8x4x16xf32>
    %44 = arith.addf %35, %43 : vector<8x4x16xf32>
    %c0_33 = arith.constant 0 : index
    %c0_34 = arith.constant 0 : index
    %45 = vector.load %arg19[%c0_33, %c0_34] : memref<8x4xf32, #tpu.memory_space<vmem>>, vector<8x4xf32>
    tpu.vector_store %arg19[%c0_33, %c0_34], %24 {strides = array<i32>} : memref<8x4xf32, #tpu.memory_space<vmem>>, vector<8x4xf32>,
    %c0_35 = arith.constant 0 : index
    %c0_36 = arith.constant 0 : index
    %46 = vector.load %arg18[%c0_35, %c0_36] : memref<8x4xf32, #tpu.memory_space<vmem>>, vector<8x4xf32>
    tpu.vector_store %arg18[%c0_35, %c0_36], %31 {strides = array<i32>} : memref<8x4xf32, #tpu.memory_space<vmem>>, vector<8x4xf32>,
    %c0_37 = arith.constant 0 : index
    %c0_38 = arith.constant 0 : index
    %c0_39 = arith.constant 0 : index
    %47 = vector.load %arg17[%c0_37, %c0_38, %c0_39] : memref<8x4x16xf32, #tpu.memory_space<vmem>>, vector<8x4x16xf32>
    tpu.vector_store %arg17[%c0_37, %c0_38, %c0_39], %44 {strides = array<i32>} : memref<8x4x16xf32, #tpu.memory_space<vmem>>, vector<8x4x16xf32>,
    %cst_40 = arith.constant 1.000000e+00 : f32
    %48 = vector.broadcast %cst_40 : f32 to vector<8x4xf32>
    %49 = arith.divf %48, %31 : vector<8x4xf32>
    %50 = vector.shape_cast %49 : vector<8x4xf32> to vector<8x4x1xf32>
    %51 = vector.broadcast %50 : vector<8x4x1xf32> to vector<8x4x16xf32>
    %52 = arith.mulf %44, %51 : vector<8x4x16xf32>
    %cst_41 = arith.constant dense<0.000000e+00> : vector<8x16xf32>
    %53 = vector.multi_reduction <add>, %52, %cst_41 [1] : vector<8x4x16xf32> to vector<8x16xf32>
    %cst_42 = arith.constant 2.500000e-01 : f32
    %54 = vector.broadcast %cst_42 : f32 to vector<8x16xf32>
    %55 = arith.mulf %53, %54 : vector<8x16xf32>
    %56 = arith.index_cast %c0_i32_21 : i32 to index
    %c0_43 = arith.constant 0 : index
    %c0_44 = arith.constant 0 : index
    %57 = vector.load %arg15[%56, %c0_43, %c0_44] : memref<4x8x16xf32, #tpu.memory_space<vmem>>, vector<1x8x16xf32>
    %58 = vector.shape_cast %57 : vector<1x8x16xf32> to vector<8x16xf32>
    %59 = vector.shape_cast %55 : vector<8x16xf32> to vector<1x8x16xf32>
    tpu.vector_store %arg15[%56, %c0_43, %c0_44], %59 {strides = array<i32>} : memref<4x8x16xf32, #tpu.memory_space<vmem>>, vector<1x8x16xf32>,
    %c1_i32 = arith.constant 1 : i32
    %60 = arith.index_cast %c1_i32 : i32 to index
    %c0_45 = arith.constant 0 : index
    %c0_46 = arith.constant 0 : index
    %61 = vector.load %arg14[%60, %c0_45, %c0_46] : memref<4x8x4xf32, #tpu.memory_space<vmem>>, vector<1x8x4xf32>
    %62 = vector.shape_cast %61 : vector<1x8x4xf32> to vector<8x4xf32>
    %c0_47 = arith.constant 0 : index
    %c0_48 = arith.constant 0 : index
    %63 = vector.load %arg19[%c0_47, %c0_48] : memref<8x4xf32, #tpu.memory_space<vmem>>, vector<8x4xf32>
    %64 = arith.maximumf %63, %62 : vector<8x4xf32>
    %65 = arith.subf %63, %64 : vector<8x4xf32>
    %66 = math.exp %65 : vector<8x4xf32>
    %67 = arith.subf %62, %64 : vector<8x4xf32>
    %68 = math.exp %67 : vector<8x4xf32>
    %c0_49 = arith.constant 0 : index
    %c0_50 = arith.constant 0 : index
    %69 = vector.load %arg18[%c0_49, %c0_50] : memref<8x4xf32, #tpu.memory_space<vmem>>, vector<8x4xf32>
    %70 = arith.mulf %69, %66 : vector<8x4xf32>
    %71 = arith.addf %70, %68 : vector<8x4xf32>
    %c0_51 = arith.constant 0 : index
    %c0_52 = arith.constant 0 : index
    %c0_53 = arith.constant 0 : index
    %72 = vector.load %arg17[%c0_51, %c0_52, %c0_53] : memref<8x4x16xf32, #tpu.memory_space<vmem>>, vector<8x4x16xf32>
    %73 = vector.shape_cast %66 : vector<8x4xf32> to vector<8x4x1xf32>
    %74 = vector.broadcast %73 : vector<8x4x1xf32> to vector<8x4x16xf32>
    %75 = arith.mulf %72, %74 : vector<8x4x16xf32>
    %76 = vector.shape_cast %68 : vector<8x4xf32> to vector<8x4x1xf32>
    %77 = arith.index_cast %c1_i32 : i32 to index
    %c0_54 = arith.constant 0 : index
    %c0_55 = arith.constant 0 : index
    %78 = vector.load %arg13[%77, %c0_54, %c0_55] : memref<4x8x16xf32, #tpu.memory_space<vmem>>, vector<1x8x16xf32>
    %79 = vector.shape_cast %78 : vector<1x8x16xf32> to vector<8x16xf32>
    %80 = vector.shape_cast %79 : vector<8x16xf32> to vector<8x1x16xf32>
    %81 = vector.broadcast %76 : vector<8x4x1xf32> to vector<8x4x16xf32>
    %82 = vector.broadcast %80 : vector<8x1x16xf32> to vector<8x4x16xf32>
    %83 = arith.mulf %81, %82 : vector<8x4x16xf32>
    %84 = arith.addf %75, %83 : vector<8x4x16xf32>
    %c0_56 = arith.constant 0 : index
    %c0_57 = arith.constant 0 : index
    %85 = vector.load %arg19[%c0_56, %c0_57] : memref<8x4xf32, #tpu.memory_space<vmem>>, vector<8x4xf32>
    tpu.vector_store %arg19[%c0_56, %c0_57], %64 {strides = array<i32>} : memref<8x4xf32, #tpu.memory_space<vmem>>, vector<8x4xf32>,
    %c0_58 = arith.constant 0 : index
    %c0_59 = arith.constant 0 : index
    %86 = vector.load %arg18[%c0_58, %c0_59] : memref<8x4xf32, #tpu.memory_space<vmem>>, vector<8x4xf32>
    tpu.vector_store %arg18[%c0_58, %c0_59], %71 {strides = array<i32>} : memref<8x4xf32, #tpu.memory_space<vmem>>, vector<8x4xf32>,
    %c0_60 = arith.constant 0 : index
    %c0_61 = arith.constant 0 : index
    %c0_62 = arith.constant 0 : index
    %87 = vector.load %arg17[%c0_60, %c0_61, %c0_62] : memref<8x4x16xf32, #tpu.memory_space<vmem>>, vector<8x4x16xf32>
    tpu.vector_store %arg17[%c0_60, %c0_61, %c0_62], %84 {strides = array<i32>} : memref<8x4x16xf32, #tpu.memory_space<vmem>>, vector<8x4x16xf32>,
    %cst_63 = arith.constant 1.000000e+00 : f32
    %88 = vector.broadcast %cst_63 : f32 to vector<8x4xf32>
    %89 = arith.divf %88, %71 : vector<8x4xf32>
    %90 = vector.shape_cast %89 : vector<8x4xf32> to vector<8x4x1xf32>
    %91 = vector.broadcast %90 : vector<8x4x1xf32> to vector<8x4x16xf32>
    %92 = arith.mulf %84, %91 : vector<8x4x16xf32>
    %cst_64 = arith.constant dense<0.000000e+00> : vector<8x16xf32>
    %93 = vector.multi_reduction <add>, %92, %cst_64 [1] : vector<8x4x16xf32> to vector<8x16xf32>
    %cst_65 = arith.constant 2.500000e-01 : f32
    %94 = vector.broadcast %cst_65 : f32 to vector<8x16xf32>
    %95 = arith.mulf %93, %94 : vector<8x16xf32>
    %96 = arith.index_cast %c1_i32 : i32 to index
    %c0_66 = arith.constant 0 : index
    %c0_67 = arith.constant 0 : index
    %97 = vector.load %arg15[%96, %c0_66, %c0_67] : memref<4x8x16xf32, #tpu.memory_space<vmem>>, vector<1x8x16xf32>
    %98 = vector.shape_cast %97 : vector<1x8x16xf32> to vector<8x16xf32>
    %99 = vector.shape_cast %95 : vector<8x16xf32> to vector<1x8x16xf32>
    tpu.vector_store %arg15[%96, %c0_66, %c0_67], %99 {strides = array<i32>} : memref<4x8x16xf32, #tpu.memory_space<vmem>>, vector<1x8x16xf32>,
    %c2_i32 = arith.constant 2 : i32
    %100 = arith.index_cast %c2_i32 : i32 to index
    %c0_68 = arith.constant 0 : index
    %c0_69 = arith.constant 0 : index
    %101 = vector.load %arg14[%100, %c0_68, %c0_69] : memref<4x8x4xf32, #tpu.memory_space<vmem>>, vector<1x8x4xf32>
    %102 = vector.shape_cast %101 : vector<1x8x4xf32> to vector<8x4xf32>
    %c0_70 = arith.constant 0 : index
    %c0_71 = arith.constant 0 : index
    %103 = vector.load %arg19[%c0_70, %c0_71] : memref<8x4xf32, #tpu.memory_space<vmem>>, vector<8x4xf32>
    %104 = arith.maximumf %103, %102 : vector<8x4xf32>
    %105 = arith.subf %103, %104 : vector<8x4xf32>
    %106 = math.exp %105 : vector<8x4xf32>
    %107 = arith.subf %102, %104 : vector<8x4xf32>
    %108 = math.exp %107 : vector<8x4xf32>
    %c0_72 = arith.constant 0 : index
    %c0_73 = arith.constant 0 : index
    %109 = vector.load %arg18[%c0_72, %c0_73] : memref<8x4xf32, #tpu.memory_space<vmem>>, vector<8x4xf32>
    %110 = arith.mulf %109, %106 : vector<8x4xf32>
    %111 = arith.addf %110, %108 : vector<8x4xf32>
    %c0_74 = arith.constant 0 : index
    %c0_75 = arith.constant 0 : index
    %c0_76 = arith.constant 0 : index
    %112 = vector.load %arg17[%c0_74, %c0_75, %c0_76] : memref<8x4x16xf32, #tpu.memory_space<vmem>>, vector<8x4x16xf32>
    %113 = vector.shape_cast %106 : vector<8x4xf32> to vector<8x4x1xf32>
    %114 = vector.broadcast %113 : vector<8x4x1xf32> to vector<8x4x16xf32>
    %115 = arith.mulf %112, %114 : vector<8x4x16xf32>
    %116 = vector.shape_cast %108 : vector<8x4xf32> to vector<8x4x1xf32>
    %117 = arith.index_cast %c2_i32 : i32 to index
    %c0_77 = arith.constant 0 : index
    %c0_78 = arith.constant 0 : index
    %118 = vector.load %arg13[%117, %c0_77, %c0_78] : memref<4x8x16xf32, #tpu.memory_space<vmem>>, vector<1x8x16xf32>
    %119 = vector.shape_cast %118 : vector<1x8x16xf32> to vector<8x16xf32>
    %120 = vector.shape_cast %119 : vector<8x16xf32> to vector<8x1x16xf32>
    %121 = vector.broadcast %116 : vector<8x4x1xf32> to vector<8x4x16xf32>
    %122 = vector.broadcast %120 : vector<8x1x16xf32> to vector<8x4x16xf32>
    %123 = arith.mulf %121, %122 : vector<8x4x16xf32>
    %124 = arith.addf %115, %123 : vector<8x4x16xf32>
    %c0_79 = arith.constant 0 : index
    %c0_80 = arith.constant 0 : index
    %125 = vector.load %arg19[%c0_79, %c0_80] : memref<8x4xf32, #tpu.memory_space<vmem>>, vector<8x4xf32>
    tpu.vector_store %arg19[%c0_79, %c0_80], %104 {strides = array<i32>} : memref<8x4xf32, #tpu.memory_space<vmem>>, vector<8x4xf32>,
    %c0_81 = arith.constant 0 : index
    %c0_82 = arith.constant 0 : index
    %126 = vector.load %arg18[%c0_81, %c0_82] : memref<8x4xf32, #tpu.memory_space<vmem>>, vector<8x4xf32>
    tpu.vector_store %arg18[%c0_81, %c0_82], %111 {strides = array<i32>} : memref<8x4xf32, #tpu.memory_space<vmem>>, vector<8x4xf32>,
    %c0_83 = arith.constant 0 : index
    %c0_84 = arith.constant 0 : index
    %c0_85 = arith.constant 0 : index
    %127 = vector.load %arg17[%c0_83, %c0_84, %c0_85] : memref<8x4x16xf32, #tpu.memory_space<vmem>>, vector<8x4x16xf32>
    tpu.vector_store %arg17[%c0_83, %c0_84, %c0_85], %124 {strides = array<i32>} : memref<8x4x16xf32, #tpu.memory_space<vmem>>, vector<8x4x16xf32>,
    %cst_86 = arith.constant 1.000000e+00 : f32
    %128 = vector.broadcast %cst_86 : f32 to vector<8x4xf32>
    %129 = arith.divf %128, %111 : vector<8x4xf32>
    %130 = vector.shape_cast %129 : vector<8x4xf32> to vector<8x4x1xf32>
    %131 = vector.broadcast %130 : vector<8x4x1xf32> to vector<8x4x16xf32>
    %132 = arith.mulf %124, %131 : vector<8x4x16xf32>
    %cst_87 = arith.constant dense<0.000000e+00> : vector<8x16xf32>
    %133 = vector.multi_reduction <add>, %132, %cst_87 [1] : vector<8x4x16xf32> to vector<8x16xf32>
    %cst_88 = arith.constant 2.500000e-01 : f32
    %134 = vector.broadcast %cst_88 : f32 to vector<8x16xf32>
    %135 = arith.mulf %133, %134 : vector<8x16xf32>
    %136 = arith.index_cast %c2_i32 : i32 to index
    %c0_89 = arith.constant 0 : index
    %c0_90 = arith.constant 0 : index
    %137 = vector.load %arg15[%136, %c0_89, %c0_90] : memref<4x8x16xf32, #tpu.memory_space<vmem>>, vector<1x8x16xf32>
    %138 = vector.shape_cast %137 : vector<1x8x16xf32> to vector<8x16xf32>
    %139 = vector.shape_cast %135 : vector<8x16xf32> to vector<1x8x16xf32>
    tpu.vector_store %arg15[%136, %c0_89, %c0_90], %139 {strides = array<i32>} : memref<4x8x16xf32, #tpu.memory_space<vmem>>, vector<1x8x16xf32>,
    %c3_i32 = arith.constant 3 : i32
    %140 = arith.index_cast %c3_i32 : i32 to index
    %c0_91 = arith.constant 0 : index
    %c0_92 = arith.constant 0 : index
    %141 = vector.load %arg14[%140, %c0_91, %c0_92] : memref<4x8x4xf32, #tpu.memory_space<vmem>>, vector<1x8x4xf32>
    %142 = vector.shape_cast %141 : vector<1x8x4xf32> to vector<8x4xf32>
    %c0_93 = arith.constant 0 : index
    %c0_94 = arith.constant 0 : index
    %143 = vector.load %arg19[%c0_93, %c0_94] : memref<8x4xf32, #tpu.memory_space<vmem>>, vector<8x4xf32>
    %144 = arith.maximumf %143, %142 : vector<8x4xf32>
    %145 = arith.subf %143, %144 : vector<8x4xf32>
    %146 = math.exp %145 : vector<8x4xf32>
    %147 = arith.subf %142, %144 : vector<8x4xf32>
    %148 = math.exp %147 : vector<8x4xf32>
    %c0_95 = arith.constant 0 : index
    %c0_96 = arith.constant 0 : index
    %149 = vector.load %arg18[%c0_95, %c0_96] : memref<8x4xf32, #tpu.memory_space<vmem>>, vector<8x4xf32>
    %150 = arith.mulf %149, %146 : vector<8x4xf32>
    %151 = arith.addf %150, %148 : vector<8x4xf32>
    %c0_97 = arith.constant 0 : index
    %c0_98 = arith.constant 0 : index
    %c0_99 = arith.constant 0 : index
    %152 = vector.load %arg17[%c0_97, %c0_98, %c0_99] : memref<8x4x16xf32, #tpu.memory_space<vmem>>, vector<8x4x16xf32>
    %153 = vector.shape_cast %146 : vector<8x4xf32> to vector<8x4x1xf32>
    %154 = vector.broadcast %153 : vector<8x4x1xf32> to vector<8x4x16xf32>
    %155 = arith.mulf %152, %154 : vector<8x4x16xf32>
    %156 = vector.shape_cast %148 : vector<8x4xf32> to vector<8x4x1xf32>
    %157 = arith.index_cast %c3_i32 : i32 to index
    %c0_100 = arith.constant 0 : index
    %c0_101 = arith.constant 0 : index
    %158 = vector.load %arg13[%157, %c0_100, %c0_101] : memref<4x8x16xf32, #tpu.memory_space<vmem>>, vector<1x8x16xf32>
    %159 = vector.shape_cast %158 : vector<1x8x16xf32> to vector<8x16xf32>
    %160 = vector.shape_cast %159 : vector<8x16xf32> to vector<8x1x16xf32>
    %161 = vector.broadcast %156 : vector<8x4x1xf32> to vector<8x4x16xf32>
    %162 = vector.broadcast %160 : vector<8x1x16xf32> to vector<8x4x16xf32>
    %163 = arith.mulf %161, %162 : vector<8x4x16xf32>
    %164 = arith.addf %155, %163 : vector<8x4x16xf32>
    %c0_102 = arith.constant 0 : index
    %c0_103 = arith.constant 0 : index
    %165 = vector.load %arg19[%c0_102, %c0_103] : memref<8x4xf32, #tpu.memory_space<vmem>>, vector<8x4xf32>
    tpu.vector_store %arg19[%c0_102, %c0_103], %144 {strides = array<i32>} : memref<8x4xf32, #tpu.memory_space<vmem>>, vector<8x4xf32>,
    %c0_104 = arith.constant 0 : index
    %c0_105 = arith.constant 0 : index
    %166 = vector.load %arg18[%c0_104, %c0_105] : memref<8x4xf32, #tpu.memory_space<vmem>>, vector<8x4xf32>
    tpu.vector_store %arg18[%c0_104, %c0_105], %151 {strides = array<i32>} : memref<8x4xf32, #tpu.memory_space<vmem>>, vector<8x4xf32>,
    %c0_106 = arith.constant 0 : index
    %c0_107 = arith.constant 0 : index
    %c0_108 = arith.constant 0 : index
    %167 = vector.load %arg17[%c0_106, %c0_107, %c0_108] : memref<8x4x16xf32, #tpu.memory_space<vmem>>, vector<8x4x16xf32>
    tpu.vector_store %arg17[%c0_106, %c0_107, %c0_108], %164 {strides = array<i32>} : memref<8x4x16xf32, #tpu.memory_space<vmem>>, vector<8x4x16xf32>,
    %cst_109 = arith.constant 1.000000e+00 : f32
    %168 = vector.broadcast %cst_109 : f32 to vector<8x4xf32>
    %169 = arith.divf %168, %151 : vector<8x4xf32>
    %170 = vector.shape_cast %169 : vector<8x4xf32> to vector<8x4x1xf32>
    %171 = vector.broadcast %170 : vector<8x4x1xf32> to vector<8x4x16xf32>
    %172 = arith.mulf %164, %171 : vector<8x4x16xf32>
    %cst_110 = arith.constant dense<0.000000e+00> : vector<8x16xf32>
    %173 = vector.multi_reduction <add>, %172, %cst_110 [1] : vector<8x4x16xf32> to vector<8x16xf32>
    %cst_111 = arith.constant 2.500000e-01 : f32
    %174 = vector.broadcast %cst_111 : f32 to vector<8x16xf32>
    %175 = arith.mulf %173, %174 : vector<8x16xf32>
    %176 = arith.index_cast %c3_i32 : i32 to index
    %c0_112 = arith.constant 0 : index
    %c0_113 = arith.constant 0 : index
    %177 = vector.load %arg15[%176, %c0_112, %c0_113] : memref<4x8x16xf32, #tpu.memory_space<vmem>>, vector<1x8x16xf32>
    %178 = vector.shape_cast %177 : vector<1x8x16xf32> to vector<8x16xf32>
    %179 = vector.shape_cast %175 : vector<8x16xf32> to vector<1x8x16xf32>
    tpu.vector_store %arg15[%176, %c0_112, %c0_113], %179 {strides = array<i32>} : memref<4x8x16xf32, #tpu.memory_space<vmem>>, vector<1x8x16xf32>,
    %c4_i32 = arith.constant 4 : i32
    %c0_114 = arith.constant 0 : index
    %c0_115 = arith.constant 0 : index
    %c0_116 = arith.constant 0 : index
    %180 = vector.load %arg15[%c0_114, %c0_115, %c0_116] : memref<4x8x16xf32, #tpu.memory_space<vmem>>, vector<4x8x16xf32>
    %181 = vector.shape_cast %180 : vector<4x8x16xf32> to vector<32x16xf32>
    %c0_117 = arith.constant 0 : index
    %c0_118 = arith.constant 0 : index
    %182 = vector.load %arg7[%c0_117, %c0_118] : memref<16x128xf32, #tpu.memory_space<vmem>>, vector<16x128xf32>
    %cst_119 = arith.constant dense<0.000000e+00> : vector<32x128xf32>
    %183 = tpu.matmul %181, %182, %cst_119 {dimension_numbers = #tpu.dot_dimension_numbers<[1], [0], [0], [1], [0, 0, 1, 1], [], []>} : vector<32x16xf32>, vector<16x128xf32>, vector<32x128xf32> -> vector<32x128xf32>
    %c0_120 = arith.constant 0 : index
    %c0_121 = arith.constant 0 : index
    %184 = vector.load %arg9[%c0_120, %c0_121] : memref<1x128xf32, #tpu.memory_space<vmem>>, vector<1x128xf32>
    %185 = vector.broadcast %184 : vector<1x128xf32> to vector<32x128xf32>
    %186 = arith.addf %183, %185 : vector<32x128xf32>
    %187 = vector.shape_cast %186 : vector<32x128xf32> to vector<4x8x128xf32>
    %c0_122 = arith.constant 0 : index
    %c0_123 = arith.constant 0 : index
    %c0_124 = arith.constant 0 : index
    %188 = vector.load %arg16[%c0_122, %c0_123, %c0_124] : memref<4x8x128xf32, #tpu.memory_space<vmem>>, vector<4x8x128xf32>
    tpu.vector_store %arg16[%c0_122, %c0_123, %c0_124], %187 {strides = array<i32>} : memref<4x8x128xf32, #tpu.memory_space<vmem>>, vector<4x8x128xf32>,
    %c0_125 = arith.constant 0 : index
    %c0_126 = arith.constant 0 : index
    %189 = vector.load %arg20[%c0_125, %c0_126] : memref<8x32xf32, #tpu.memory_space<vmem>>, vector<8x32xf32>
    %c0_127 = arith.constant 0 : index
    %c0_128 = arith.constant 0 : index
    %190 = vector.load %arg21[%c0_127, %c0_128] : memref<8x32xf32, #tpu.memory_space<vmem>>, vector<8x32xf32>
    %c0_i32_129 = arith.constant 0 : i32
    %191 = arith.index_cast %c0_i32_129 : i32 to index
    %c0_130 = arith.constant 0 : index
    %c0_131 = arith.constant 0 : index
    %192 = vector.load %arg16[%191, %c0_130, %c0_131] : memref<4x8x128xf32, #tpu.memory_space<vmem>>, vector<1x8x128xf32>
    %193 = vector.shape_cast %192 : vector<1x8x128xf32> to vector<8x128xf32>
    %c0_132 = arith.constant 0 : index
    %c0_133 = arith.constant 0 : index
    %194 = vector.load %arg8[%c0_132, %c0_133] : memref<32x128xf32, #tpu.memory_space<vmem>>, vector<32x128xf32>
    %cst_134 = arith.constant dense<0.000000e+00> : vector<8x128xf32>
    %195 = tpu.matmul %189, %194, %cst_134 {dimension_numbers = #tpu.dot_dimension_numbers<[1], [0], [0], [1], [0, 0, 1, 1], [], []>} : vector<8x32xf32>, vector<32x128xf32>, vector<8x128xf32> -> vector<8x128xf32>
    %196 = arith.addf %193, %195 : vector<8x128xf32>
    %197 = vector.extract_strided_slice %196 {offsets = [0, 0], sizes = [8, 96], strides = [1, 1]} : vector<8x128xf32> to vector<8x96xf32>
    %198 = arith.negf %197 : vector<8x96xf32>
    %199 = math.exp %198 : vector<8x96xf32>
    %cst_135 = arith.constant 1.000000e+00 : f32
    %200 = vector.broadcast %cst_135 : f32 to vector<8x96xf32>
    %201 = arith.addf %200, %199 : vector<8x96xf32>
    %202 = arith.divf %200, %201 : vector<8x96xf32>
    %203 = vector.extract_strided_slice %202 {offsets = [0, 0], sizes = [8, 32], strides = [1, 1]} : vector<8x96xf32> to vector<8x32xf32>
    %204 = vector.extract_strided_slice %202 {offsets = [0, 32], sizes = [8, 32], strides = [1, 1]} : vector<8x96xf32> to vector<8x32xf32>
    %205 = vector.extract_strided_slice %202 {offsets = [0, 64], sizes = [8, 32], strides = [1, 1]} : vector<8x96xf32> to vector<8x32xf32>
    %206 = vector.extract_strided_slice %196 {offsets = [0, 96], sizes = [8, 32], strides = [1, 1]} : vector<8x128xf32> to vector<8x32xf32>
    %207 = math.tanh %206 : vector<8x32xf32>
    %208 = arith.mulf %204, %190 : vector<8x32xf32>
    %209 = arith.mulf %203, %207 : vector<8x32xf32>
    %210 = arith.addf %208, %209 : vector<8x32xf32>
    %211 = math.tanh %210 : vector<8x32xf32>
    %212 = arith.mulf %205, %211 : vector<8x32xf32>
    %213 = arith.index_cast %c0_i32_129 : i32 to index
    %c0_136 = arith.constant 0 : index
    %c0_137 = arith.constant 0 : index
    %214 = vector.load %arg10[%213, %c0_136, %c0_137] : memref<4x8x32xf32, #tpu.memory_space<vmem>>, vector<1x8x32xf32>
    %215 = vector.shape_cast %214 : vector<1x8x32xf32> to vector<8x32xf32>
    %216 = vector.shape_cast %212 : vector<8x32xf32> to vector<1x8x32xf32>
    tpu.vector_store %arg10[%213, %c0_136, %c0_137], %216 {strides = array<i32>} : memref<4x8x32xf32, #tpu.memory_space<vmem>>, vector<1x8x32xf32>,
    %c1_i32_138 = arith.constant 1 : i32
    %217 = arith.index_cast %c1_i32_138 : i32 to index
    %c0_139 = arith.constant 0 : index
    %c0_140 = arith.constant 0 : index
    %218 = vector.load %arg16[%217, %c0_139, %c0_140] : memref<4x8x128xf32, #tpu.memory_space<vmem>>, vector<1x8x128xf32>
    %219 = vector.shape_cast %218 : vector<1x8x128xf32> to vector<8x128xf32>
    %c0_141 = arith.constant 0 : index
    %c0_142 = arith.constant 0 : index
    %220 = vector.load %arg8[%c0_141, %c0_142] : memref<32x128xf32, #tpu.memory_space<vmem>>, vector<32x128xf32>
    %cst_143 = arith.constant dense<0.000000e+00> : vector<8x128xf32>
    %221 = tpu.matmul %212, %220, %cst_143 {dimension_numbers = #tpu.dot_dimension_numbers<[1], [0], [0], [1], [0, 0, 1, 1], [], []>} : vector<8x32xf32>, vector<32x128xf32>, vector<8x128xf32> -> vector<8x128xf32>
    %222 = arith.addf %219, %221 : vector<8x128xf32>
    %223 = vector.extract_strided_slice %222 {offsets = [0, 0], sizes = [8, 96], strides = [1, 1]} : vector<8x128xf32> to vector<8x96xf32>
    %224 = arith.negf %223 : vector<8x96xf32>
    %225 = math.exp %224 : vector<8x96xf32>
    %cst_144 = arith.constant 1.000000e+00 : f32
    %226 = vector.broadcast %cst_144 : f32 to vector<8x96xf32>
    %227 = arith.addf %226, %225 : vector<8x96xf32>
    %228 = arith.divf %226, %227 : vector<8x96xf32>
    %229 = vector.extract_strided_slice %228 {offsets = [0, 0], sizes = [8, 32], strides = [1, 1]} : vector<8x96xf32> to vector<8x32xf32>
    %230 = vector.extract_strided_slice %228 {offsets = [0, 32], sizes = [8, 32], strides = [1, 1]} : vector<8x96xf32> to vector<8x32xf32>
    %231 = vector.extract_strided_slice %228 {offsets = [0, 64], sizes = [8, 32], strides = [1, 1]} : vector<8x96xf32> to vector<8x32xf32>
    %232 = vector.extract_strided_slice %222 {offsets = [0, 96], sizes = [8, 32], strides = [1, 1]} : vector<8x128xf32> to vector<8x32xf32>
    %233 = math.tanh %232 : vector<8x32xf32>
    %234 = arith.mulf %230, %210 : vector<8x32xf32>
    %235 = arith.mulf %229, %233 : vector<8x32xf32>
    %236 = arith.addf %234, %235 : vector<8x32xf32>
    %237 = math.tanh %236 : vector<8x32xf32>
    %238 = arith.mulf %231, %237 : vector<8x32xf32>
    %239 = arith.index_cast %c1_i32_138 : i32 to index
    %c0_145 = arith.constant 0 : index
    %c0_146 = arith.constant 0 : index
    %240 = vector.load %arg10[%239, %c0_145, %c0_146] : memref<4x8x32xf32, #tpu.memory_space<vmem>>, vector<1x8x32xf32>
    %241 = vector.shape_cast %240 : vector<1x8x32xf32> to vector<8x32xf32>
    %242 = vector.shape_cast %238 : vector<8x32xf32> to vector<1x8x32xf32>
    tpu.vector_store %arg10[%239, %c0_145, %c0_146], %242 {strides = array<i32>} : memref<4x8x32xf32, #tpu.memory_space<vmem>>, vector<1x8x32xf32>,
    %c2_i32_147 = arith.constant 2 : i32
    %243 = arith.index_cast %c2_i32_147 : i32 to index
    %c0_148 = arith.constant 0 : index
    %c0_149 = arith.constant 0 : index
    %244 = vector.load %arg16[%243, %c0_148, %c0_149] : memref<4x8x128xf32, #tpu.memory_space<vmem>>, vector<1x8x128xf32>
    %245 = vector.shape_cast %244 : vector<1x8x128xf32> to vector<8x128xf32>
    %c0_150 = arith.constant 0 : index
    %c0_151 = arith.constant 0 : index
    %246 = vector.load %arg8[%c0_150, %c0_151] : memref<32x128xf32, #tpu.memory_space<vmem>>, vector<32x128xf32>
    %cst_152 = arith.constant dense<0.000000e+00> : vector<8x128xf32>
    %247 = tpu.matmul %238, %246, %cst_152 {dimension_numbers = #tpu.dot_dimension_numbers<[1], [0], [0], [1], [0, 0, 1, 1], [], []>} : vector<8x32xf32>, vector<32x128xf32>, vector<8x128xf32> -> vector<8x128xf32>
    %248 = arith.addf %245, %247 : vector<8x128xf32>
    %249 = vector.extract_strided_slice %248 {offsets = [0, 0], sizes = [8, 96], strides = [1, 1]} : vector<8x128xf32> to vector<8x96xf32>
    %250 = arith.negf %249 : vector<8x96xf32>
    %251 = math.exp %250 : vector<8x96xf32>
    %cst_153 = arith.constant 1.000000e+00 : f32
    %252 = vector.broadcast %cst_153 : f32 to vector<8x96xf32>
    %253 = arith.addf %252, %251 : vector<8x96xf32>
    %254 = arith.divf %252, %253 : vector<8x96xf32>
    %255 = vector.extract_strided_slice %254 {offsets = [0, 0], sizes = [8, 32], strides = [1, 1]} : vector<8x96xf32> to vector<8x32xf32>
    %256 = vector.extract_strided_slice %254 {offsets = [0, 32], sizes = [8, 32], strides = [1, 1]} : vector<8x96xf32> to vector<8x32xf32>
    %257 = vector.extract_strided_slice %254 {offsets = [0, 64], sizes = [8, 32], strides = [1, 1]} : vector<8x96xf32> to vector<8x32xf32>
    %258 = vector.extract_strided_slice %248 {offsets = [0, 96], sizes = [8, 32], strides = [1, 1]} : vector<8x128xf32> to vector<8x32xf32>
    %259 = math.tanh %258 : vector<8x32xf32>
    %260 = arith.mulf %256, %236 : vector<8x32xf32>
    %261 = arith.mulf %255, %259 : vector<8x32xf32>
    %262 = arith.addf %260, %261 : vector<8x32xf32>
    %263 = math.tanh %262 : vector<8x32xf32>
    %264 = arith.mulf %257, %263 : vector<8x32xf32>
    %265 = arith.index_cast %c2_i32_147 : i32 to index
    %c0_154 = arith.constant 0 : index
    %c0_155 = arith.constant 0 : index
    %266 = vector.load %arg10[%265, %c0_154, %c0_155] : memref<4x8x32xf32, #tpu.memory_space<vmem>>, vector<1x8x32xf32>
    %267 = vector.shape_cast %266 : vector<1x8x32xf32> to vector<8x32xf32>
    %268 = vector.shape_cast %264 : vector<8x32xf32> to vector<1x8x32xf32>
    tpu.vector_store %arg10[%265, %c0_154, %c0_155], %268 {strides = array<i32>} : memref<4x8x32xf32, #tpu.memory_space<vmem>>, vector<1x8x32xf32>,
    %c3_i32_156 = arith.constant 3 : i32
    %269 = arith.index_cast %c3_i32_156 : i32 to index
    %c0_157 = arith.constant 0 : index
    %c0_158 = arith.constant 0 : index
    %270 = vector.load %arg16[%269, %c0_157, %c0_158] : memref<4x8x128xf32, #tpu.memory_space<vmem>>, vector<1x8x128xf32>
    %271 = vector.shape_cast %270 : vector<1x8x128xf32> to vector<8x128xf32>
    %c0_159 = arith.constant 0 : index
    %c0_160 = arith.constant 0 : index
    %272 = vector.load %arg8[%c0_159, %c0_160] : memref<32x128xf32, #tpu.memory_space<vmem>>, vector<32x128xf32>
    %cst_161 = arith.constant dense<0.000000e+00> : vector<8x128xf32>
    %273 = tpu.matmul %264, %272, %cst_161 {dimension_numbers = #tpu.dot_dimension_numbers<[1], [0], [0], [1], [0, 0, 1, 1], [], []>} : vector<8x32xf32>, vector<32x128xf32>, vector<8x128xf32> -> vector<8x128xf32>
    %274 = arith.addf %271, %273 : vector<8x128xf32>
    %275 = vector.extract_strided_slice %274 {offsets = [0, 0], sizes = [8, 96], strides = [1, 1]} : vector<8x128xf32> to vector<8x96xf32>
    %276 = arith.negf %275 : vector<8x96xf32>
    %277 = math.exp %276 : vector<8x96xf32>
    %cst_162 = arith.constant 1.000000e+00 : f32
    %278 = vector.broadcast %cst_162 : f32 to vector<8x96xf32>
    %279 = arith.addf %278, %277 : vector<8x96xf32>
    %280 = arith.divf %278, %279 : vector<8x96xf32>
    %281 = vector.extract_strided_slice %280 {offsets = [0, 0], sizes = [8, 32], strides = [1, 1]} : vector<8x96xf32> to vector<8x32xf32>
    %282 = vector.extract_strided_slice %280 {offsets = [0, 32], sizes = [8, 32], strides = [1, 1]} : vector<8x96xf32> to vector<8x32xf32>
    %283 = vector.extract_strided_slice %280 {offsets = [0, 64], sizes = [8, 32], strides = [1, 1]} : vector<8x96xf32> to vector<8x32xf32>
    %284 = vector.extract_strided_slice %274 {offsets = [0, 96], sizes = [8, 32], strides = [1, 1]} : vector<8x128xf32> to vector<8x32xf32>
    %285 = math.tanh %284 : vector<8x32xf32>
    %286 = arith.mulf %282, %262 : vector<8x32xf32>
    %287 = arith.mulf %281, %285 : vector<8x32xf32>
    %288 = arith.addf %286, %287 : vector<8x32xf32>
    %289 = math.tanh %288 : vector<8x32xf32>
    %290 = arith.mulf %283, %289 : vector<8x32xf32>
    %291 = arith.index_cast %c3_i32_156 : i32 to index
    %c0_163 = arith.constant 0 : index
    %c0_164 = arith.constant 0 : index
    %292 = vector.load %arg10[%291, %c0_163, %c0_164] : memref<4x8x32xf32, #tpu.memory_space<vmem>>, vector<1x8x32xf32>
    %293 = vector.shape_cast %292 : vector<1x8x32xf32> to vector<8x32xf32>
    %294 = vector.shape_cast %290 : vector<8x32xf32> to vector<1x8x32xf32>
    tpu.vector_store %arg10[%291, %c0_163, %c0_164], %294 {strides = array<i32>} : memref<4x8x32xf32, #tpu.memory_space<vmem>>, vector<1x8x32xf32>,
    %c4_i32_165 = arith.constant 4 : i32
    %c0_166 = arith.constant 0 : index
    %c0_167 = arith.constant 0 : index
    %295 = vector.load %arg20[%c0_166, %c0_167] : memref<8x32xf32, #tpu.memory_space<vmem>>, vector<8x32xf32>
    tpu.vector_store %arg20[%c0_166, %c0_167], %290 {strides = array<i32>} : memref<8x32xf32, #tpu.memory_space<vmem>>, vector<8x32xf32>,
    %c0_168 = arith.constant 0 : index
    %c0_169 = arith.constant 0 : index
    %296 = vector.load %arg21[%c0_168, %c0_169] : memref<8x32xf32, #tpu.memory_space<vmem>>, vector<8x32xf32>
    tpu.vector_store %arg21[%c0_168, %c0_169], %288 {strides = array<i32>} : memref<8x32xf32, #tpu.memory_space<vmem>>, vector<8x32xf32>,
    %c0_170 = arith.constant 0 : index
    %c0_171 = arith.constant 0 : index
    %297 = vector.load %arg11[%c0_170, %c0_171] : memref<8x32xf32, #tpu.memory_space<vmem>>, vector<8x32xf32>
    tpu.vector_store %arg11[%c0_170, %c0_171], %290 {strides = array<i32>} : memref<8x32xf32, #tpu.memory_space<vmem>>, vector<8x32xf32>,
    %c0_172 = arith.constant 0 : index
    %c0_173 = arith.constant 0 : index
    %298 = vector.load %arg12[%c0_172, %c0_173] : memref<8x32xf32, #tpu.memory_space<vmem>>, vector<8x32xf32>
    tpu.vector_store %arg12[%c0_172, %c0_173], %288 {strides = array<i32>} : memref<8x32xf32, #tpu.memory_space<vmem>>, vector<8x32xf32>,
    return
  }
  func.func @transform_0(%arg0: i32, %arg1: i32) -> (i32, i32, i32) {
    %c0_i32 = arith.constant 0 : i32
    %c0_i32_0 = arith.constant 0 : i32
    return %arg1, %arg0, %c0_i32 : i32, i32, i32
  }
  func.func @transform_1(%arg0: i32, %arg1: i32) -> (i32, i32) {
    %c0_i32 = arith.constant 0 : i32
    %c0_i32_0 = arith.constant 0 : i32
    %c0_i32_1 = arith.constant 0 : i32
    return %c0_i32, %c0_i32_0 : i32, i32
  }
  func.func @transform_2(%arg0: i32, %arg1: i32) -> (i32, i32) {
    %c0_i32 = arith.constant 0 : i32
    %c0_i32_0 = arith.constant 0 : i32
    %c0_i32_1 = arith.constant 0 : i32
    return %c0_i32, %c0_i32_0 : i32, i32
  }
  func.func @transform_3(%arg0: i32, %arg1: i32) -> (i32, i32) {
    %c0_i32 = arith.constant 0 : i32
    %c0_i32_0 = arith.constant 0 : i32
    %c0_i32_1 = arith.constant 0 : i32
    return %c0_i32, %c0_i32_0 : i32, i32
  }
  func.func @transform_4(%arg0: i32, %arg1: i32) -> (i32, i32) {
    %c0_i32 = arith.constant 0 : i32
    %c0_i32_0 = arith.constant 0 : i32
    %c0_i32_1 = arith.constant 0 : i32
    return %c0_i32, %c0_i32_0 : i32, i32
  }
  func.func @transform_5(%arg0: i32, %arg1: i32) -> (i32, i32) {
    %c0_i32 = arith.constant 0 : i32
    %c0_i32_0 = arith.constant 0 : i32
    %c0_i32_1 = arith.constant 0 : i32
    return %c0_i32, %c0_i32_0 : i32, i32
  }
  func.func @transform_6(%arg0: i32, %arg1: i32) -> (i32, i32) {
    %c0_i32 = arith.constant 0 : i32
    %c0_i32_0 = arith.constant 0 : i32
    %c0_i32_1 = arith.constant 0 : i32
    return %c0_i32, %c0_i32_0 : i32, i32
  }
  func.func @transform_7(%arg0: i32, %arg1: i32) -> (i32, i32) {
    %c0_i32 = arith.constant 0 : i32
    %c0_i32_0 = arith.constant 0 : i32
    %c0_i32_1 = arith.constant 0 : i32
    return %c0_i32, %c0_i32_0 : i32, i32
  }
  func.func @transform_8(%arg0: i32, %arg1: i32) -> (i32, i32, i32) {
    %c0_i32 = arith.constant 0 : i32
    %c0_i32_0 = arith.constant 0 : i32
    return %arg1, %arg0, %c0_i32 : i32, i32, i32
  }
  func.func @transform_9(%arg0: i32, %arg1: i32) -> (i32, i32) {
    %c0_i32 = arith.constant 0 : i32
    %c0_i32_0 = arith.constant 0 : i32
    return %arg0, %c0_i32 : i32, i32
  }
  func.func @transform_10(%arg0: i32, %arg1: i32) -> (i32, i32) {
    %c0_i32 = arith.constant 0 : i32
    %c0_i32_0 = arith.constant 0 : i32
    return %arg0, %c0_i32 : i32, i32
  }
}

module attributes {stable_mosaic.version = 11 : i64} {
  func.func @_cell_attention_kernel(%arg0: i32, %arg1: i32, %arg2: memref<4x8x16xf32, #tpu.memory_space<vmem>>, %arg3: memref<16x8xf32, #tpu.memory_space<vmem>>, %arg4: memref<1x8xf32, #tpu.memory_space<vmem>>, %arg5: memref<8x4xf32, #tpu.memory_space<vmem>>, %arg6: memref<1x4xf32, #tpu.memory_space<vmem>>, %arg7: memref<16x128xf32, #tpu.memory_space<vmem>>, %arg8: memref<32x128xf32, #tpu.memory_space<vmem>>, %arg9: memref<1x128xf32, #tpu.memory_space<vmem>>, %arg10: memref<4x8x32xf32, #tpu.memory_space<vmem>>, %arg11: memref<8x32xf32, #tpu.memory_space<vmem>>, %arg12: memref<8x32xf32, #tpu.memory_space<vmem>>, %arg13: memref<4x8x16xf32, #tpu.memory_space<vmem>>, %arg14: memref<4x8x4xf32, #tpu.memory_space<vmem>>, %arg15: memref<4x8x16xf32, #tpu.memory_space<vmem>>, %arg16: memref<4x8x128xf32, #tpu.memory_space<vmem>>, %arg17: memref<8x4x16xf32, #tpu.memory_space<vmem>>, %arg18: memref<8x4xf32, #tpu.memory_space<vmem>>, %arg19: memref<8x4xf32, #tpu.memory_space<vmem>>, %arg20: memref<8x32xf32, #tpu.memory_space<vmem>>, %arg21: memref<8x32xf32, #tpu.memory_space<vmem>>) attributes {dimension_semantics = [#tpu.dimension_semantics<parallel>, #tpu.dimension_semantics<arbitrary>], iteration_bounds = array<i64: 2, 2>, scalar_prefetch = 0 : i64, scratch_operands = 9 : i64, tpu.core_type = #tpu.core_type<tc>, window_params = [{transform_indices = @transform_0, window_bounds = array<i64: 4, 8, 16>}, {pipeline_mode = #tpu.pipeline_mode<synchronous>, transform_indices = @transform_1, window_bounds = array<i64: 16, 8>}, {pipeline_mode = #tpu.pipeline_mode<synchronous>, transform_indices = @transform_2, window_bounds = array<i64: 1, 8>}, {pipeline_mode = #tpu.pipeline_mode<synchronous>, transform_indices = @transform_3, window_bounds = array<i64: 8, 4>}, {pipeline_mode = #tpu.pipeline_mode<synchronous>, transform_indices = @transform_4, window_bounds = array<i64: 1, 4>}, {pipeline_mode = #tpu.pipeline_mode<synchronous>, transform_indices = @transform_5, window_bounds = array<i64: 16, 128>}, {pipeline_mode = #tpu.pipeline_mode<synchronous>, transform_indices = @transform_6, window_bounds = array<i64: 32, 128>}, {pipeline_mode = #tpu.pipeline_mode<synchronous>, transform_indices = @transform_7, window_bounds = array<i64: 1, 128>}, {transform_indices = @transform_8, window_bounds = array<i64: 4, 8, 32>}, {transform_indices = @transform_9, window_bounds = array<i64: 8, 32>}, {transform_indices = @transform_10, window_bounds = array<i64: 8, 32>}]} {
    %c0_i32 = arith.constant 0 : i32
    %0 = arith.cmpi eq, %arg1, %c0_i32 : i32
    %1 = arith.extui %0 : i1 to i32
    %c0_i32_0 = arith.constant 0 : i32
    %2 = arith.cmpi ne, %1, %c0_i32_0 : i32
    scf.if %2 {
      %cst_174 = arith.constant 0.000000e+00 : f32
      %299 = vector.broadcast %cst_174 : f32 to vector<8x4x16xf32>
      %c0_175 = arith.constant 0 : index
      %c0_176 = arith.constant 0 : index
      %c0_177 = arith.constant 0 : index
      %300 = vector.load %arg17[%c0_175, %c0_176, %c0_177] : memref<8x4x16xf32, #tpu.memory_space<vmem>>, vector<8x4x16xf32>
      tpu.vector_store %arg17[%c0_175, %c0_176, %c0_177], %299 {strides = array<i32>} : memref<8x4x16xf32, #tpu.memory_space<vmem>>, vector<8x4x16xf32>,
      %cst_178 = arith.constant 0.000000e+00 : f32
      %301 = vector.broadcast %cst_178 : f32 to vector<8x4xf32>
      %c0_179 = arith.constant 0 : index
      %c0_180 = arith.constant 0 : index
      %302 = vector.load %arg18[%c0_179, %c0_180] : memref<8x4xf32, #tpu.memory_space<vmem>>, vector<8x4xf32>
      tpu.vector_store %arg18[%c0_179, %c0_180], %301 {strides = array<i32>} : memref<8x4xf32, #tpu.memory_space<vmem>>, vector<8x4xf32>,
      %cst_181 = arith.constant 0xFF800000 : f32
      %303 = vector.broadcast %cst_181 : f32 to vector<8x4xf32>
      %c0_182 = arith.constant 0 : index
      %c0_183 = arith.constant 0 : index
      %304 = vector.load %arg19[%c0_182, %c0_183] : memref<8x4xf32, #tpu.memory_space<vmem>>, vector<8x4xf32>
      tpu.vector_store %arg19[%c0_182, %c0_183], %303 {strides = array<i32>} : memref<8x4xf32, #tpu.memory_space<vmem>>, vector<8x4xf32>,
      %cst_184 = arith.constant 0.000000e+00 : f32
      %305 = vector.broadcast %cst_184 : f32 to vector<8x32xf32>
      %c0_185 = arith.constant 0 : index
      %c0_186 = arith.constant 0 : index
      %306 = vector.load %arg20[%c0_185, %c0_186] : memref<8x32xf32, #tpu.memory_space<vmem>>, vector<8x32xf32>
      tpu.vector_store %arg20[%c0_185, %c0_186], %305 {strides = array<i32>} : memref<8x32xf32, #tpu.memory_space<vmem>>, vector<8x32xf32>,
      %cst_187 = arith.constant 0.000000e+00 : f32
      %307 = vector.broadcast %cst_187 : f32 to vector<8x32xf32>
      %c0_188 = arith.constant 0 : index
      %c0_189 = arith.constant 0 : index
      %308 = vector.load %arg21[%c0_188, %c0_189] : memref<8x32xf32, #tpu.memory_space<vmem>>, vector<8x32xf32>
      tpu.vector_store %arg21[%c0_188, %c0_189], %307 {strides = array<i32>} : memref<8x32xf32, #tpu.memory_space<vmem>>, vector<8x32xf32>,
    } else {
    }
    %c0 = arith.constant 0 : index
    %c0_1 = arith.constant 0 : index
    %c0_2 = arith.constant 0 : index
    %3 = vector.load %arg2[%c0, %c0_1, %c0_2] : memref<4x8x16xf32, #tpu.memory_space<vmem>>, vector<4x8x16xf32>
    %c0_3 = arith.constant 0 : index
    %c0_4 = arith.constant 0 : index
    %c0_5 = arith.constant 0 : index
    %4 = vector.load %arg13[%c0_3, %c0_4, %c0_5] : memref<4x8x16xf32, #tpu.memory_space<vmem>>, vector<4x8x16xf32>
    tpu.vector_store %arg13[%c0_3, %c0_4, %c0_5], %3 {strides = array<i32>} : memref<4x8x16xf32, #tpu.memory_space<vmem>>, vector<4x8x16xf32>,
    %c0_6 = arith.constant 0 : index
    %c0_7 = arith.constant 0 : index
    %c0_8 = arith.constant 0 : index
    %5 = vector.load %arg13[%c0_6, %c0_7, %c0_8] : memref<4x8x16xf32, #tpu.memory_space<vmem>>, vector<4x8x16xf32>
    %6 = vector.shape_cast %5 : vector<4x8x16xf32> to vector<32x16xf32>
    %c0_9 = arith.constant 0 : index
    %c0_10 = arith.constant 0 : index
    %7 = vector.load %arg3[%c0_9, %c0_10] : memref<16x8xf32, #tpu.memory_space<vmem>>, vector<16x8xf32>
    %cst = arith.constant dense<0.000000e+00> : vector<32x8xf32>
    %8 = tpu.matmul %6, %7, %cst {dimension_numbers = #tpu.dot_dimension_numbers<[1], [0], [0], [1], [0, 0, 1, 1], [], []>} : vector<32x16xf32>, vector<16x8xf32>, vector<32x8xf32> -> vector<32x8xf32>
    %c0_11 = arith.constant 0 : index
    %c0_12 = arith.constant 0 : index
    %9 = vector.load %arg4[%c0_11, %c0_12] : memref<1x8xf32, #tpu.memory_space<vmem>>, vector<1x8xf32>
    %10 = vector.broadcast %9 : vector<1x8xf32> to vector<32x8xf32>
    %11 = arith.addf %8, %10 : vector<32x8xf32>
    %12 = math.tanh %11 : vector<32x8xf32>
    %c0_13 = arith.constant 0 : index
    %c0_14 = arith.constant 0 : index
    %13 = vector.load %arg5[%c0_13, %c0_14] : memref<8x4xf32, #tpu.memory_space<vmem>>, vector<8x4xf32>
    %cst_15 = arith.constant dense<0.000000e+00> : vector<32x4xf32>
    %14 = tpu.matmul %12, %13, %cst_15 {dimension_numbers = #tpu.dot_dimension_numbers<[1], [0], [0], [1], [0, 0, 1, 1], [], []>} : vector<32x8xf32>, vector<8x4xf32>, vector<32x4xf32> -> vector<32x4xf32>
    %c0_16 = arith.constant 0 : index
    %c0_17 = arith.constant 0 : index
    %15 = vector.load %arg6[%c0_16, %c0_17] : memref<1x4xf32, #tpu.memory_space<vmem>>, vector<1x4xf32>
    %16 = vector.broadcast %15 : vector<1x4xf32> to vector<32x4xf32>
    %17 = arith.addf %14, %16 : vector<32x4xf32>
    %18 = vector.shape_cast %17 : vector<32x4xf32> to vector<4x8x4xf32>
    %c0_18 = arith.constant 0 : index
    %c0_19 = arith.constant 0 : index
    %c0_20 = arith.constant 0 : index
    %19 = vector.load %arg14[%c0_18, %c0_19, %c0_20] : memref<4x8x4xf32, #tpu.memory_space<vmem>>, vector<4x8x4xf32>
    tpu.vector_store %arg14[%c0_18, %c0_19, %c0_20], %18 {strides = array<i32>} : memref<4x8x4xf32, #tpu.memory_space<vmem>>, vector<4x8x4xf32>,
    %c0_i32_21 = arith.constant 0 : i32
    %20 = arith.index_cast %c0_i32_21 : i32 to index
    %c0_22 = arith.constant 0 : index
    %c0_23 = arith.constant 0 : index
    %21 = vector.load %arg14[%20, %c0_22, %c0_23] : memref<4x8x4xf32, #tpu.memory_space<vmem>>, vector<1x8x4xf32>
    %22 = vector.shape_cast %21 : vector<1x8x4xf32> to vector<8x4xf32>
    %c0_24 = arith.constant 0 : index
    %c0_25 = arith.constant 0 : index
    %23 = vector.load %arg19[%c0_24, %c0_25] : memref<8x4xf32, #tpu.memory_space<vmem>>, vector<8x4xf32>
    %24 = arith.maximumf %23, %22 : vector<8x4xf32>
    %25 = arith.subf %23, %24 : vector<8x4xf32>
    %26 = math.exp %25 : vector<8x4xf32>
    %27 = arith.subf %22, %24 : vector<8x4xf32>
    %28 = math.exp %27 : vector<8x4xf32>
    %c0_26 = arith.constant 0 : index
    %c0_27 = arith.constant 0 : index
    %29 = vector.load %arg18[%c0_26, %c0_27] : memref<8x4xf32, #tpu.memory_space<vmem>>, vector<8x4xf32>
    %30 = arith.mulf %29, %26 : vector<8x4xf32>
    %31 = arith.addf %30, %28 : vector<8x4xf32>
    %c0_28 = arith.constant 0 : index
    %c0_29 = arith.constant 0 : index
    %c0_30 = arith.constant 0 : index
    %32 = vector.load %arg17[%c0_28, %c0_29, %c0_30] : memref<8x4x16xf32, #tpu.memory_space<vmem>>, vector<8x4x16xf32>
    %33 = vector.shape_cast %26 : vector<8x4xf32> to vector<8x4x1xf32>
    %34 = vector.broadcast %33 : vector<8x4x1xf32> to vector<8x4x16xf32>
    %35 = arith.mulf %32, %34 : vector<8x4x16xf32>
    %36 = vector.shape_cast %28 : vector<8x4xf32> to vector<8x4x1xf32>
    %37 = arith.index_cast %c0_i32_21 : i32 to index
    %c0_31 = arith.constant 0 : index
    %c0_32 = arith.constant 0 : index
    %38 = vector.load %arg13[%37, %c0_31, %c0_32] : memref<4x8x16xf32, #tpu.memory_space<vmem>>, vector<1x8x16xf32>
    %39 = vector.shape_cast %38 : vector<1x8x16xf32> to vector<8x16xf32>
    %40 = vector.shape_cast %39 : vector<8x16xf32> to vector<8x1x16xf32>
    %41 = vector.broadcast %36 : vector<8x4x1xf32> to vector<8x4x16xf32>
    %42 = vector.broadcast %40 : vector<8x1x16xf32> to vector<8x4x16xf32>
    %43 = arith.mulf %41, %42 : vector<8x4x16xf32>
    %44 = arith.addf %35, %43 : vector<8x4x16xf32>
    %c0_33 = arith.constant 0 : index
    %c0_34 = arith.constant 0 : index
    %45 = vector.load %arg19[%c0_33, %c0_34] : memref<8x4xf32, #tpu.memory_space<vmem>>, vector<8x4xf32>
    tpu.vector_store %arg19[%c0_33, %c0_34], %24 {strides = array<i32>} : memref<8x4xf32, #tpu.memory_space<vmem>>, vector<8x4xf32>,
    %c0_35 = arith.constant 0 : index
    %c0_36 = arith.constant 0 : index
    %46 = vector.load %arg18[%c0_35, %c0_36] : memref<8x4xf32, #tpu.memory_space<vmem>>, vector<8x4xf32>
    tpu.vector_store %arg18[%c0_35, %c0_36], %31 {strides = array<i32>} : memref<8x4xf32, #tpu.memory_space<vmem>>, vector<8x4xf32>,
    %c0_37 = arith.constant 0 : index
    %c0_38 = arith.constant 0 : index
    %c0_39 = arith.constant 0 : index
    %47 = vector.load %arg17[%c0_37, %c0_38, %c0_39] : memref<8x4x16xf32, #tpu.memory_space<vmem>>, vector<8x4x16xf32>
    tpu.vector_store %arg17[%c0_37, %c0_38, %c0_39], %44 {strides = array<i32>} : memref<8x4x16xf32, #tpu.memory_space<vmem>>, vector<8x4x16xf32>,
    %cst_40 = arith.constant 1.000000e+00 : f32
    %48 = vector.broadcast %cst_40 : f32 to vector<8x4xf32>
    %49 = arith.divf %48, %31 : vector<8x4xf32>
    %50 = vector.shape_cast %49 : vector<8x4xf32> to vector<8x4x1xf32>
    %51 = vector.broadcast %50 : vector<8x4x1xf32> to vector<8x4x16xf32>
    %52 = arith.mulf %44, %51 : vector<8x4x16xf32>
    %cst_41 = arith.constant dense<0.000000e+00> : vector<8x16xf32>
    %53 = vector.multi_reduction <add>, %52, %cst_41 [1] : vector<8x4x16xf32> to vector<8x16xf32>
    %cst_42 = arith.constant 2.500000e-01 : f32
    %54 = vector.broadcast %cst_42 : f32 to vector<8x16xf32>
    %55 = arith.mulf %53, %54 : vector<8x16xf32>
    %56 = arith.index_cast %c0_i32_21 : i32 to index
    %c0_43 = arith.constant 0 : index
    %c0_44 = arith.constant 0 : index
    %57 = vector.load %arg15[%56, %c0_43, %c0_44] : memref<4x8x16xf32, #tpu.memory_space<vmem>>, vector<1x8x16xf32>
    %58 = vector.shape_cast %57 : vector<1x8x16xf32> to vector<8x16xf32>
    %59 = vector.shape_cast %55 : vector<8x16xf32> to vector<1x8x16xf32>
    tpu.vector_store %arg15[%56, %c0_43, %c0_44], %59 {strides = array<i32>} : memref<4x8x16xf32, #tpu.memory_space<vmem>>, vector<1x8x16xf32>,
    %c1_i32 = arith.constant 1 : i32
    %60 = arith.index_cast %c1_i32 : i32 to index
    %c0_45 = arith.constant 0 : index
    %c0_46 = arith.constant 0 : index
    %61 = vector.load %arg14[%60, %c0_45, %c0_46] : memref<4x8x4xf32, #tpu.memory_space<vmem>>, vector<1x8x4xf32>
    %62 = vector.shape_cast %61 : vector<1x8x4xf32> to vector<8x4xf32>
    %c0_47 = arith.constant 0 : index
    %c0_48 = arith.constant 0 : index
    %63 = vector.load %arg19[%c0_47, %c0_48] : memref<8x4xf32, #tpu.memory_space<vmem>>, vector<8x4xf32>
    %64 = arith.maximumf %63, %62 : vector<8x4xf32>
    %65 = arith.subf %63, %64 : vector<8x4xf32>
    %66 = math.exp %65 : vector<8x4xf32>
    %67 = arith.subf %62, %64 : vector<8x4xf32>
    %68 = math.exp %67 : vector<8x4xf32>
    %c0_49 = arith.constant 0 : index
    %c0_50 = arith.constant 0 : index
    %69 = vector.load %arg18[%c0_49, %c0_50] : memref<8x4xf32, #tpu.memory_space<vmem>>, vector<8x4xf32>
    %70 = arith.mulf %69, %66 : vector<8x4xf32>
    %71 = arith.addf %70, %68 : vector<8x4xf32>
    %c0_51 = arith.constant 0 : index
    %c0_52 = arith.constant 0 : index
    %c0_53 = arith.constant 0 : index
    %72 = vector.load %arg17[%c0_51, %c0_52, %c0_53] : memref<8x4x16xf32, #tpu.memory_space<vmem>>, vector<8x4x16xf32>
    %73 = vector.shape_cast %66 : vector<8x4xf32> to vector<8x4x1xf32>
    %74 = vector.broadcast %73 : vector<8x4x1xf32> to vector<8x4x16xf32>
    %75 = arith.mulf %72, %74 : vector<8x4x16xf32>
    %76 = vector.shape_cast %68 : vector<8x4xf32> to vector<8x4x1xf32>
    %77 = arith.index_cast %c1_i32 : i32 to index
    %c0_54 = arith.constant 0 : index
    %c0_55 = arith.constant 0 : index
    %78 = vector.load %arg13[%77, %c0_54, %c0_55] : memref<4x8x16xf32, #tpu.memory_space<vmem>>, vector<1x8x16xf32>
    %79 = vector.shape_cast %78 : vector<1x8x16xf32> to vector<8x16xf32>
    %80 = vector.shape_cast %79 : vector<8x16xf32> to vector<8x1x16xf32>
    %81 = vector.broadcast %76 : vector<8x4x1xf32> to vector<8x4x16xf32>
    %82 = vector.broadcast %80 : vector<8x1x16xf32> to vector<8x4x16xf32>
    %83 = arith.mulf %81, %82 : vector<8x4x16xf32>
    %84 = arith.addf %75, %83 : vector<8x4x16xf32>
    %c0_56 = arith.constant 0 : index
    %c0_57 = arith.constant 0 : index
    %85 = vector.load %arg19[%c0_56, %c0_57] : memref<8x4xf32, #tpu.memory_space<vmem>>, vector<8x4xf32>
    tpu.vector_store %arg19[%c0_56, %c0_57], %64 {strides = array<i32>} : memref<8x4xf32, #tpu.memory_space<vmem>>, vector<8x4xf32>,
    %c0_58 = arith.constant 0 : index
    %c0_59 = arith.constant 0 : index
    %86 = vector.load %arg18[%c0_58, %c0_59] : memref<8x4xf32, #tpu.memory_space<vmem>>, vector<8x4xf32>
    tpu.vector_store %arg18[%c0_58, %c0_59], %71 {strides = array<i32>} : memref<8x4xf32, #tpu.memory_space<vmem>>, vector<8x4xf32>,
    %c0_60 = arith.constant 0 : index
    %c0_61 = arith.constant 0 : index
    %c0_62 = arith.constant 0 : index
    %87 = vector.load %arg17[%c0_60, %c0_61, %c0_62] : memref<8x4x16xf32, #tpu.memory_space<vmem>>, vector<8x4x16xf32>
    tpu.vector_store %arg17[%c0_60, %c0_61, %c0_62], %84 {strides = array<i32>} : memref<8x4x16xf32, #tpu.memory_space<vmem>>, vector<8x4x16xf32>,
    %cst_63 = arith.constant 1.000000e+00 : f32
    %88 = vector.broadcast %cst_63 : f32 to vector<8x4xf32>
    %89 = arith.divf %88, %71 : vector<8x4xf32>
    %90 = vector.shape_cast %89 : vector<8x4xf32> to vector<8x4x1xf32>
    %91 = vector.broadcast %90 : vector<8x4x1xf32> to vector<8x4x16xf32>
    %92 = arith.mulf %84, %91 : vector<8x4x16xf32>
    %cst_64 = arith.constant dense<0.000000e+00> : vector<8x16xf32>
    %93 = vector.multi_reduction <add>, %92, %cst_64 [1] : vector<8x4x16xf32> to vector<8x16xf32>
    %cst_65 = arith.constant 2.500000e-01 : f32
    %94 = vector.broadcast %cst_65 : f32 to vector<8x16xf32>
    %95 = arith.mulf %93, %94 : vector<8x16xf32>
    %96 = arith.index_cast %c1_i32 : i32 to index
    %c0_66 = arith.constant 0 : index
    %c0_67 = arith.constant 0 : index
    %97 = vector.load %arg15[%96, %c0_66, %c0_67] : memref<4x8x16xf32, #tpu.memory_space<vmem>>, vector<1x8x16xf32>
    %98 = vector.shape_cast %97 : vector<1x8x16xf32> to vector<8x16xf32>
    %99 = vector.shape_cast %95 : vector<8x16xf32> to vector<1x8x16xf32>
    tpu.vector_store %arg15[%96, %c0_66, %c0_67], %99 {strides = array<i32>} : memref<4x8x16xf32, #tpu.memory_space<vmem>>, vector<1x8x16xf32>,
    %c2_i32 = arith.constant 2 : i32
    %100 = arith.index_cast %c2_i32 : i32 to index
    %c0_68 = arith.constant 0 : index
    %c0_69 = arith.constant 0 : index
    %101 = vector.load %arg14[%100, %c0_68, %c0_69] : memref<4x8x4xf32, #tpu.memory_space<vmem>>, vector<1x8x4xf32>
    %102 = vector.shape_cast %101 : vector<1x8x4xf32> to vector<8x4xf32>
    %c0_70 = arith.constant 0 : index
    %c0_71 = arith.constant 0 : index
    %103 = vector.load %arg19[%c0_70, %c0_71] : memref<8x4xf32, #tpu.memory_space<vmem>>, vector<8x4xf32>
    %104 = arith.maximumf %103, %102 : vector<8x4xf32>
    %105 = arith.subf %103, %104 : vector<8x4xf32>
    %106 = math.exp %105 : vector<8x4xf32>
    %107 = arith.subf %102, %104 : vector<8x4xf32>
    %108 = math.exp %107 : vector<8x4xf32>
    %c0_72 = arith.constant 0 : index
    %c0_73 = arith.constant 0 : index
    %109 = vector.load %arg18[%c0_72, %c0_73] : memref<8x4xf32, #tpu.memory_space<vmem>>, vector<8x4xf32>
    %110 = arith.mulf %109, %106 : vector<8x4xf32>
    %111 = arith.addf %110, %108 : vector<8x4xf32>
    %c0_74 = arith.constant 0 : index
    %c0_75 = arith.constant 0 : index
    %c0_76 = arith.constant 0 : index
    %112 = vector.load %arg17[%c0_74, %c0_75, %c0_76] : memref<8x4x16xf32, #tpu.memory_space<vmem>>, vector<8x4x16xf32>
    %113 = vector.shape_cast %106 : vector<8x4xf32> to vector<8x4x1xf32>
    %114 = vector.broadcast %113 : vector<8x4x1xf32> to vector<8x4x16xf32>
    %115 = arith.mulf %112, %114 : vector<8x4x16xf32>
    %116 = vector.shape_cast %108 : vector<8x4xf32> to vector<8x4x1xf32>
    %117 = arith.index_cast %c2_i32 : i32 to index
    %c0_77 = arith.constant 0 : index
    %c0_78 = arith.constant 0 : index
    %118 = vector.load %arg13[%117, %c0_77, %c0_78] : memref<4x8x16xf32, #tpu.memory_space<vmem>>, vector<1x8x16xf32>
    %119 = vector.shape_cast %118 : vector<1x8x16xf32> to vector<8x16xf32>
    %120 = vector.shape_cast %119 : vector<8x16xf32> to vector<8x1x16xf32>
    %121 = vector.broadcast %116 : vector<8x4x1xf32> to vector<8x4x16xf32>
    %122 = vector.broadcast %120 : vector<8x1x16xf32> to vector<8x4x16xf32>
    %123 = arith.mulf %121, %122 : vector<8x4x16xf32>
    %124 = arith.addf %115, %123 : vector<8x4x16xf32>
    %c0_79 = arith.constant 0 : index
    %c0_80 = arith.constant 0 : index
    %125 = vector.load %arg19[%c0_79, %c0_80] : memref<8x4xf32, #tpu.memory_space<vmem>>, vector<8x4xf32>
    tpu.vector_store %arg19[%c0_79, %c0_80], %104 {strides = array<i32>} : memref<8x4xf32, #tpu.memory_space<vmem>>, vector<8x4xf32>,
    %c0_81 = arith.constant 0 : index
    %c0_82 = arith.constant 0 : index
    %126 = vector.load %arg18[%c0_81, %c0_82] : memref<8x4xf32, #tpu.memory_space<vmem>>, vector<8x4xf32>
    tpu.vector_store %arg18[%c0_81, %c0_82], %111 {strides = array<i32>} : memref<8x4xf32, #tpu.memory_space<vmem>>, vector<8x4xf32>,
    %c0_83 = arith.constant 0 : index
    %c0_84 = arith.constant 0 : index
    %c0_85 = arith.constant 0 : index
    %127 = vector.load %arg17[%c0_83, %c0_84, %c0_85] : memref<8x4x16xf32, #tpu.memory_space<vmem>>, vector<8x4x16xf32>
    tpu.vector_store %arg17[%c0_83, %c0_84, %c0_85], %124 {strides = array<i32>} : memref<8x4x16xf32, #tpu.memory_space<vmem>>, vector<8x4x16xf32>,
    %cst_86 = arith.constant 1.000000e+00 : f32
    %128 = vector.broadcast %cst_86 : f32 to vector<8x4xf32>
    %129 = arith.divf %128, %111 : vector<8x4xf32>
    %130 = vector.shape_cast %129 : vector<8x4xf32> to vector<8x4x1xf32>
    %131 = vector.broadcast %130 : vector<8x4x1xf32> to vector<8x4x16xf32>
    %132 = arith.mulf %124, %131 : vector<8x4x16xf32>
    %cst_87 = arith.constant dense<0.000000e+00> : vector<8x16xf32>
    %133 = vector.multi_reduction <add>, %132, %cst_87 [1] : vector<8x4x16xf32> to vector<8x16xf32>
    %cst_88 = arith.constant 2.500000e-01 : f32
    %134 = vector.broadcast %cst_88 : f32 to vector<8x16xf32>
    %135 = arith.mulf %133, %134 : vector<8x16xf32>
    %136 = arith.index_cast %c2_i32 : i32 to index
    %c0_89 = arith.constant 0 : index
    %c0_90 = arith.constant 0 : index
    %137 = vector.load %arg15[%136, %c0_89, %c0_90] : memref<4x8x16xf32, #tpu.memory_space<vmem>>, vector<1x8x16xf32>
    %138 = vector.shape_cast %137 : vector<1x8x16xf32> to vector<8x16xf32>
    %139 = vector.shape_cast %135 : vector<8x16xf32> to vector<1x8x16xf32>
    tpu.vector_store %arg15[%136, %c0_89, %c0_90], %139 {strides = array<i32>} : memref<4x8x16xf32, #tpu.memory_space<vmem>>, vector<1x8x16xf32>,
    %c3_i32 = arith.constant 3 : i32
    %140 = arith.index_cast %c3_i32 : i32 to index
    %c0_91 = arith.constant 0 : index
    %c0_92 = arith.constant 0 : index
    %141 = vector.load %arg14[%140, %c0_91, %c0_92] : memref<4x8x4xf32, #tpu.memory_space<vmem>>, vector<1x8x4xf32>
    %142 = vector.shape_cast %141 : vector<1x8x4xf32> to vector<8x4xf32>
    %c0_93 = arith.constant 0 : index
    %c0_94 = arith.constant 0 : index
    %143 = vector.load %arg19[%c0_93, %c0_94] : memref<8x4xf32, #tpu.memory_space<vmem>>, vector<8x4xf32>
    %144 = arith.maximumf %143, %142 : vector<8x4xf32>
    %145 = arith.subf %143, %144 : vector<8x4xf32>
    %146 = math.exp %145 : vector<8x4xf32>
    %147 = arith.subf %142, %144 : vector<8x4xf32>
    %148 = math.exp %147 : vector<8x4xf32>
    %c0_95 = arith.constant 0 : index
    %c0_96 = arith.constant 0 : index
    %149 = vector.load %arg18[%c0_95, %c0_96] : memref<8x4xf32, #tpu.memory_space<vmem>>, vector<8x4xf32>
    %150 = arith.mulf %149, %146 : vector<8x4xf32>
    %151 = arith.addf %150, %148 : vector<8x4xf32>
    %c0_97 = arith.constant 0 : index
    %c0_98 = arith.constant 0 : index
    %c0_99 = arith.constant 0 : index
    %152 = vector.load %arg17[%c0_97, %c0_98, %c0_99] : memref<8x4x16xf32, #tpu.memory_space<vmem>>, vector<8x4x16xf32>
    %153 = vector.shape_cast %146 : vector<8x4xf32> to vector<8x4x1xf32>
    %154 = vector.broadcast %153 : vector<8x4x1xf32> to vector<8x4x16xf32>
    %155 = arith.mulf %152, %154 : vector<8x4x16xf32>
    %156 = vector.shape_cast %148 : vector<8x4xf32> to vector<8x4x1xf32>
    %157 = arith.index_cast %c3_i32 : i32 to index
    %c0_100 = arith.constant 0 : index
    %c0_101 = arith.constant 0 : index
    %158 = vector.load %arg13[%157, %c0_100, %c0_101] : memref<4x8x16xf32, #tpu.memory_space<vmem>>, vector<1x8x16xf32>
    %159 = vector.shape_cast %158 : vector<1x8x16xf32> to vector<8x16xf32>
    %160 = vector.shape_cast %159 : vector<8x16xf32> to vector<8x1x16xf32>
    %161 = vector.broadcast %156 : vector<8x4x1xf32> to vector<8x4x16xf32>
    %162 = vector.broadcast %160 : vector<8x1x16xf32> to vector<8x4x16xf32>
    %163 = arith.mulf %161, %162 : vector<8x4x16xf32>
    %164 = arith.addf %155, %163 : vector<8x4x16xf32>
    %c0_102 = arith.constant 0 : index
    %c0_103 = arith.constant 0 : index
    %165 = vector.load %arg19[%c0_102, %c0_103] : memref<8x4xf32, #tpu.memory_space<vmem>>, vector<8x4xf32>
    tpu.vector_store %arg19[%c0_102, %c0_103], %144 {strides = array<i32>} : memref<8x4xf32, #tpu.memory_space<vmem>>, vector<8x4xf32>,
    %c0_104 = arith.constant 0 : index
    %c0_105 = arith.constant 0 : index
    %166 = vector.load %arg18[%c0_104, %c0_105] : memref<8x4xf32, #tpu.memory_space<vmem>>, vector<8x4xf32>
    tpu.vector_store %arg18[%c0_104, %c0_105], %151 {strides = array<i32>} : memref<8x4xf32, #tpu.memory_space<vmem>>, vector<8x4xf32>,
    %c0_106 = arith.constant 0 : index
    %c0_107 = arith.constant 0 : index
    %c0_108 = arith.constant 0 : index
    %167 = vector.load %arg17[%c0_106, %c0_107, %c0_108] : memref<8x4x16xf32, #tpu.memory_space<vmem>>, vector<8x4x16xf32>
    tpu.vector_store %arg17[%c0_106, %c0_107, %c0_108], %164 {strides = array<i32>} : memref<8x4x16xf32, #tpu.memory_space<vmem>>, vector<8x4x16xf32>,
    %cst_109 = arith.constant 1.000000e+00 : f32
    %168 = vector.broadcast %cst_109 : f32 to vector<8x4xf32>
    %169 = arith.divf %168, %151 : vector<8x4xf32>
    %170 = vector.shape_cast %169 : vector<8x4xf32> to vector<8x4x1xf32>
    %171 = vector.broadcast %170 : vector<8x4x1xf32> to vector<8x4x16xf32>
    %172 = arith.mulf %164, %171 : vector<8x4x16xf32>
    %cst_110 = arith.constant dense<0.000000e+00> : vector<8x16xf32>
    %173 = vector.multi_reduction <add>, %172, %cst_110 [1] : vector<8x4x16xf32> to vector<8x16xf32>
    %cst_111 = arith.constant 2.500000e-01 : f32
    %174 = vector.broadcast %cst_111 : f32 to vector<8x16xf32>
    %175 = arith.mulf %173, %174 : vector<8x16xf32>
    %176 = arith.index_cast %c3_i32 : i32 to index
    %c0_112 = arith.constant 0 : index
    %c0_113 = arith.constant 0 : index
    %177 = vector.load %arg15[%176, %c0_112, %c0_113] : memref<4x8x16xf32, #tpu.memory_space<vmem>>, vector<1x8x16xf32>
    %178 = vector.shape_cast %177 : vector<1x8x16xf32> to vector<8x16xf32>
    %179 = vector.shape_cast %175 : vector<8x16xf32> to vector<1x8x16xf32>
    tpu.vector_store %arg15[%176, %c0_112, %c0_113], %179 {strides = array<i32>} : memref<4x8x16xf32, #tpu.memory_space<vmem>>, vector<1x8x16xf32>,
    %c4_i32 = arith.constant 4 : i32
    %c0_114 = arith.constant 0 : index
    %c0_115 = arith.constant 0 : index
    %c0_116 = arith.constant 0 : index
    %180 = vector.load %arg15[%c0_114, %c0_115, %c0_116] : memref<4x8x16xf32, #tpu.memory_space<vmem>>, vector<4x8x16xf32>
    %181 = vector.shape_cast %180 : vector<4x8x16xf32> to vector<32x16xf32>
    %c0_117 = arith.constant 0 : index
    %c0_118 = arith.constant 0 : index
    %182 = vector.load %arg7[%c0_117, %c0_118] : memref<16x128xf32, #tpu.memory_space<vmem>>, vector<16x128xf32>
    %cst_119 = arith.constant dense<0.000000e+00> : vector<32x128xf32>
    %183 = tpu.matmul %181, %182, %cst_119 {dimension_numbers = #tpu.dot_dimension_numbers<[1], [0], [0], [1], [0, 0, 1, 1], [], []>} : vector<32x16xf32>, vector<16x128xf32>, vector<32x128xf32> -> vector<32x128xf32>
    %c0_120 = arith.constant 0 : index
    %c0_121 = arith.constant 0 : index
    %184 = vector.load %arg9[%c0_120, %c0_121] : memref<1x128xf32, #tpu.memory_space<vmem>>, vector<1x128xf32>
    %185 = vector.broadcast %184 : vector<1x128xf32> to vector<32x128xf32>
    %186 = arith.addf %183, %185 : vector<32x128xf32>
    %187 = vector.shape_cast %186 : vector<32x128xf32> to vector<4x8x128xf32>
    %c0_122 = arith.constant 0 : index
    %c0_123 = arith.constant 0 : index
    %c0_124 = arith.constant 0 : index
    %188 = vector.load %arg16[%c0_122, %c0_123, %c0_124] : memref<4x8x128xf32, #tpu.memory_space<vmem>>, vector<4x8x128xf32>
    tpu.vector_store %arg16[%c0_122, %c0_123, %c0_124], %187 {strides = array<i32>} : memref<4x8x128xf32, #tpu.memory_space<vmem>>, vector<4x8x128xf32>,
    %c0_125 = arith.constant 0 : index
    %c0_126 = arith.constant 0 : index
    %189 = vector.load %arg20[%c0_125, %c0_126] : memref<8x32xf32, #tpu.memory_space<vmem>>, vector<8x32xf32>
    %c0_127 = arith.constant 0 : index
    %c0_128 = arith.constant 0 : index
    %190 = vector.load %arg21[%c0_127, %c0_128] : memref<8x32xf32, #tpu.memory_space<vmem>>, vector<8x32xf32>
    %c0_i32_129 = arith.constant 0 : i32
    %191 = arith.index_cast %c0_i32_129 : i32 to index
    %c0_130 = arith.constant 0 : index
    %c0_131 = arith.constant 0 : index
    %192 = vector.load %arg16[%191, %c0_130, %c0_131] : memref<4x8x128xf32, #tpu.memory_space<vmem>>, vector<1x8x128xf32>
    %193 = vector.shape_cast %192 : vector<1x8x128xf32> to vector<8x128xf32>
    %c0_132 = arith.constant 0 : index
    %c0_133 = arith.constant 0 : index
    %194 = vector.load %arg8[%c0_132, %c0_133] : memref<32x128xf32, #tpu.memory_space<vmem>>, vector<32x128xf32>
    %cst_134 = arith.constant dense<0.000000e+00> : vector<8x128xf32>
    %195 = tpu.matmul %189, %194, %cst_134 {dimension_numbers = #tpu.dot_dimension_numbers<[1], [0], [0], [1], [0, 0, 1, 1], [], []>} : vector<8x32xf32>, vector<32x128xf32>, vector<8x128xf32> -> vector<8x128xf32>
    %196 = arith.addf %193, %195 : vector<8x128xf32>
    %197 = vector.extract_strided_slice %196 {offsets = [0, 0], sizes = [8, 96], strides = [1, 1]} : vector<8x128xf32> to vector<8x96xf32>
    %198 = arith.negf %197 : vector<8x96xf32>
    %199 = math.exp %198 : vector<8x96xf32>
    %cst_135 = arith.constant 1.000000e+00 : f32
    %200 = vector.broadcast %cst_135 : f32 to vector<8x96xf32>
    %201 = arith.addf %200, %199 : vector<8x96xf32>
    %202 = arith.divf %200, %201 : vector<8x96xf32>
    %203 = vector.extract_strided_slice %202 {offsets = [0, 0], sizes = [8, 32], strides = [1, 1]} : vector<8x96xf32> to vector<8x32xf32>
    %204 = vector.extract_strided_slice %202 {offsets = [0, 32], sizes = [8, 32], strides = [1, 1]} : vector<8x96xf32> to vector<8x32xf32>
    %205 = vector.extract_strided_slice %202 {offsets = [0, 64], sizes = [8, 32], strides = [1, 1]} : vector<8x96xf32> to vector<8x32xf32>
    %206 = vector.extract_strided_slice %196 {offsets = [0, 96], sizes = [8, 32], strides = [1, 1]} : vector<8x128xf32> to vector<8x32xf32>
    %207 = math.tanh %206 : vector<8x32xf32>
    %208 = arith.mulf %204, %190 : vector<8x32xf32>
    %209 = arith.mulf %203, %207 : vector<8x32xf32>
    %210 = arith.addf %208, %209 : vector<8x32xf32>
    %211 = math.tanh %210 : vector<8x32xf32>
    %212 = arith.mulf %205, %211 : vector<8x32xf32>
    %213 = arith.index_cast %c0_i32_129 : i32 to index
    %c0_136 = arith.constant 0 : index
    %c0_137 = arith.constant 0 : index
    %214 = vector.load %arg10[%213, %c0_136, %c0_137] : memref<4x8x32xf32, #tpu.memory_space<vmem>>, vector<1x8x32xf32>
    %215 = vector.shape_cast %214 : vector<1x8x32xf32> to vector<8x32xf32>
    %216 = vector.shape_cast %212 : vector<8x32xf32> to vector<1x8x32xf32>
    tpu.vector_store %arg10[%213, %c0_136, %c0_137], %216 {strides = array<i32>} : memref<4x8x32xf32, #tpu.memory_space<vmem>>, vector<1x8x32xf32>,
    %c1_i32_138 = arith.constant 1 : i32
    %217 = arith.index_cast %c1_i32_138 : i32 to index
    %c0_139 = arith.constant 0 : index
    %c0_140 = arith.constant 0 : index
    %218 = vector.load %arg16[%217, %c0_139, %c0_140] : memref<4x8x128xf32, #tpu.memory_space<vmem>>, vector<1x8x128xf32>
    %219 = vector.shape_cast %218 : vector<1x8x128xf32> to vector<8x128xf32>
    %c0_141 = arith.constant 0 : index
    %c0_142 = arith.constant 0 : index
    %220 = vector.load %arg8[%c0_141, %c0_142] : memref<32x128xf32, #tpu.memory_space<vmem>>, vector<32x128xf32>
    %cst_143 = arith.constant dense<0.000000e+00> : vector<8x128xf32>
    %221 = tpu.matmul %212, %220, %cst_143 {dimension_numbers = #tpu.dot_dimension_numbers<[1], [0], [0], [1], [0, 0, 1, 1], [], []>} : vector<8x32xf32>, vector<32x128xf32>, vector<8x128xf32> -> vector<8x128xf32>
    %222 = arith.addf %219, %221 : vector<8x128xf32>
    %223 = vector.extract_strided_slice %222 {offsets = [0, 0], sizes = [8, 96], strides = [1, 1]} : vector<8x128xf32> to vector<8x96xf32>
    %224 = arith.negf %223 : vector<8x96xf32>
    %225 = math.exp %224 : vector<8x96xf32>
    %cst_144 = arith.constant 1.000000e+00 : f32
    %226 = vector.broadcast %cst_144 : f32 to vector<8x96xf32>
    %227 = arith.addf %226, %225 : vector<8x96xf32>
    %228 = arith.divf %226, %227 : vector<8x96xf32>
    %229 = vector.extract_strided_slice %228 {offsets = [0, 0], sizes = [8, 32], strides = [1, 1]} : vector<8x96xf32> to vector<8x32xf32>
    %230 = vector.extract_strided_slice %228 {offsets = [0, 32], sizes = [8, 32], strides = [1, 1]} : vector<8x96xf32> to vector<8x32xf32>
    %231 = vector.extract_strided_slice %228 {offsets = [0, 64], sizes = [8, 32], strides = [1, 1]} : vector<8x96xf32> to vector<8x32xf32>
    %232 = vector.extract_strided_slice %222 {offsets = [0, 96], sizes = [8, 32], strides = [1, 1]} : vector<8x128xf32> to vector<8x32xf32>
    %233 = math.tanh %232 : vector<8x32xf32>
    %234 = arith.mulf %230, %210 : vector<8x32xf32>
    %235 = arith.mulf %229, %233 : vector<8x32xf32>
    %236 = arith.addf %234, %235 : vector<8x32xf32>
    %237 = math.tanh %236 : vector<8x32xf32>
    %238 = arith.mulf %231, %237 : vector<8x32xf32>
    %239 = arith.index_cast %c1_i32_138 : i32 to index
    %c0_145 = arith.constant 0 : index
    %c0_146 = arith.constant 0 : index
    %240 = vector.load %arg10[%239, %c0_145, %c0_146] : memref<4x8x32xf32, #tpu.memory_space<vmem>>, vector<1x8x32xf32>
    %241 = vector.shape_cast %240 : vector<1x8x32xf32> to vector<8x32xf32>
    %242 = vector.shape_cast %238 : vector<8x32xf32> to vector<1x8x32xf32>
    tpu.vector_store %arg10[%239, %c0_145, %c0_146], %242 {strides = array<i32>} : memref<4x8x32xf32, #tpu.memory_space<vmem>>, vector<1x8x32xf32>,
    %c2_i32_147 = arith.constant 2 : i32
    %243 = arith.index_cast %c2_i32_147 : i32 to index
    %c0_148 = arith.constant 0 : index
    %c0_149 = arith.constant 0 : index
    %244 = vector.load %arg16[%243, %c0_148, %c0_149] : memref<4x8x128xf32, #tpu.memory_space<vmem>>, vector<1x8x128xf32>
    %245 = vector.shape_cast %244 : vector<1x8x128xf32> to vector<8x128xf32>
    %c0_150 = arith.constant 0 : index
    %c0_151 = arith.constant 0 : index
    %246 = vector.load %arg8[%c0_150, %c0_151] : memref<32x128xf32, #tpu.memory_space<vmem>>, vector<32x128xf32>
    %cst_152 = arith.constant dense<0.000000e+00> : vector<8x128xf32>
    %247 = tpu.matmul %238, %246, %cst_152 {dimension_numbers = #tpu.dot_dimension_numbers<[1], [0], [0], [1], [0, 0, 1, 1], [], []>} : vector<8x32xf32>, vector<32x128xf32>, vector<8x128xf32> -> vector<8x128xf32>
    %248 = arith.addf %245, %247 : vector<8x128xf32>
    %249 = vector.extract_strided_slice %248 {offsets = [0, 0], sizes = [8, 96], strides = [1, 1]} : vector<8x128xf32> to vector<8x96xf32>
    %250 = arith.negf %249 : vector<8x96xf32>
    %251 = math.exp %250 : vector<8x96xf32>
    %cst_153 = arith.constant 1.000000e+00 : f32
    %252 = vector.broadcast %cst_153 : f32 to vector<8x96xf32>
    %253 = arith.addf %252, %251 : vector<8x96xf32>
    %254 = arith.divf %252, %253 : vector<8x96xf32>
    %255 = vector.extract_strided_slice %254 {offsets = [0, 0], sizes = [8, 32], strides = [1, 1]} : vector<8x96xf32> to vector<8x32xf32>
    %256 = vector.extract_strided_slice %254 {offsets = [0, 32], sizes = [8, 32], strides = [1, 1]} : vector<8x96xf32> to vector<8x32xf32>
    %257 = vector.extract_strided_slice %254 {offsets = [0, 64], sizes = [8, 32], strides = [1, 1]} : vector<8x96xf32> to vector<8x32xf32>
    %258 = vector.extract_strided_slice %248 {offsets = [0, 96], sizes = [8, 32], strides = [1, 1]} : vector<8x128xf32> to vector<8x32xf32>
    %259 = math.tanh %258 : vector<8x32xf32>
    %260 = arith.mulf %256, %236 : vector<8x32xf32>
    %261 = arith.mulf %255, %259 : vector<8x32xf32>
    %262 = arith.addf %260, %261 : vector<8x32xf32>
    %263 = math.tanh %262 : vector<8x32xf32>
    %264 = arith.mulf %257, %263 : vector<8x32xf32>
    %265 = arith.index_cast %c2_i32_147 : i32 to index
    %c0_154 = arith.constant 0 : index
    %c0_155 = arith.constant 0 : index
    %266 = vector.load %arg10[%265, %c0_154, %c0_155] : memref<4x8x32xf32, #tpu.memory_space<vmem>>, vector<1x8x32xf32>
    %267 = vector.shape_cast %266 : vector<1x8x32xf32> to vector<8x32xf32>
    %268 = vector.shape_cast %264 : vector<8x32xf32> to vector<1x8x32xf32>
    tpu.vector_store %arg10[%265, %c0_154, %c0_155], %268 {strides = array<i32>} : memref<4x8x32xf32, #tpu.memory_space<vmem>>, vector<1x8x32xf32>,
    %c3_i32_156 = arith.constant 3 : i32
    %269 = arith.index_cast %c3_i32_156 : i32 to index
    %c0_157 = arith.constant 0 : index
    %c0_158 = arith.constant 0 : index
    %270 = vector.load %arg16[%269, %c0_157, %c0_158] : memref<4x8x128xf32, #tpu.memory_space<vmem>>, vector<1x8x128xf32>
    %271 = vector.shape_cast %270 : vector<1x8x128xf32> to vector<8x128xf32>
    %c0_159 = arith.constant 0 : index
    %c0_160 = arith.constant 0 : index
    %272 = vector.load %arg8[%c0_159, %c0_160] : memref<32x128xf32, #tpu.memory_space<vmem>>, vector<32x128xf32>
    %cst_161 = arith.constant dense<0.000000e+00> : vector<8x128xf32>
    %273 = tpu.matmul %264, %272, %cst_161 {dimension_numbers = #tpu.dot_dimension_numbers<[1], [0], [0], [1], [0, 0, 1, 1], [], []>} : vector<8x32xf32>, vector<32x128xf32>, vector<8x128xf32> -> vector<8x128xf32>
    %274 = arith.addf %271, %273 : vector<8x128xf32>
    %275 = vector.extract_strided_slice %274 {offsets = [0, 0], sizes = [8, 96], strides = [1, 1]} : vector<8x128xf32> to vector<8x96xf32>
    %276 = arith.negf %275 : vector<8x96xf32>
    %277 = math.exp %276 : vector<8x96xf32>
    %cst_162 = arith.constant 1.000000e+00 : f32
    %278 = vector.broadcast %cst_162 : f32 to vector<8x96xf32>
    %279 = arith.addf %278, %277 : vector<8x96xf32>
    %280 = arith.divf %278, %279 : vector<8x96xf32>
    %281 = vector.extract_strided_slice %280 {offsets = [0, 0], sizes = [8, 32], strides = [1, 1]} : vector<8x96xf32> to vector<8x32xf32>
    %282 = vector.extract_strided_slice %280 {offsets = [0, 32], sizes = [8, 32], strides = [1, 1]} : vector<8x96xf32> to vector<8x32xf32>
    %283 = vector.extract_strided_slice %280 {offsets = [0, 64], sizes = [8, 32], strides = [1, 1]} : vector<8x96xf32> to vector<8x32xf32>
    %284 = vector.extract_strided_slice %274 {offsets = [0, 96], sizes = [8, 32], strides = [1, 1]} : vector<8x128xf32> to vector<8x32xf32>
    %285 = math.tanh %284 : vector<8x32xf32>
    %286 = arith.mulf %282, %262 : vector<8x32xf32>
    %287 = arith.mulf %281, %285 : vector<8x32xf32>
    %288 = arith.addf %286, %287 : vector<8x32xf32>
    %289 = math.tanh %288 : vector<8x32xf32>
    %290 = arith.mulf %283, %289 : vector<8x32xf32>
    %291 = arith.index_cast %c3_i32_156 : i32 to index
    %c0_163 = arith.constant 0 : index
    %c0_164 = arith.constant 0 : index
    %292 = vector.load %arg10[%291, %c0_163, %c0_164] : memref<4x8x32xf32, #tpu.memory_space<vmem>>, vector<1x8x32xf32>
    %293 = vector.shape_cast %292 : vector<1x8x32xf32> to vector<8x32xf32>
    %294 = vector.shape_cast %290 : vector<8x32xf32> to vector<1x8x32xf32>
    tpu.vector_store %arg10[%291, %c0_163, %c0_164], %294 {strides = array<i32>} : memref<4x8x32xf32, #tpu.memory_space<vmem>>, vector<1x8x32xf32>,
    %c4_i32_165 = arith.constant 4 : i32
    %c0_166 = arith.constant 0 : index
    %c0_167 = arith.constant 0 : index
    %295 = vector.load %arg20[%c0_166, %c0_167] : memref<8x32xf32, #tpu.memory_space<vmem>>, vector<8x32xf32>
    tpu.vector_store %arg20[%c0_166, %c0_167], %290 {strides = array<i32>} : memref<8x32xf32, #tpu.memory_space<vmem>>, vector<8x32xf32>,
    %c0_168 = arith.constant 0 : index
    %c0_169 = arith.constant 0 : index
    %296 = vector.load %arg21[%c0_168, %c0_169] : memref<8x32xf32, #tpu.memory_space<vmem>>, vector<8x32xf32>
    tpu.vector_store %arg21[%c0_168, %c0_169], %288 {strides = array<i32>} : memref<8x32xf32, #tpu.memory_space<vmem>>, vector<8x32xf32>,
    %c0_170 = arith.constant 0 : index
    %c0_171 = arith.constant 0 : index
    %297 = vector.load %arg11[%c0_170, %c0_171] : memref<8x32xf32, #tpu.memory_space<vmem>>, vector<8x32xf32>
    tpu.vector_store %arg11[%c0_170, %c0_171], %290 {strides = array<i32>} : memref<8x32xf32, #tpu.memory_space<vmem>>, vector<8x32xf32>,
    %c0_172 = arith.constant 0 : index
    %c0_173 = arith.constant 0 : index
    %298 = vector.load %arg12[%c0_172, %c0_173] : memref<8x32xf32, #tpu.memory_space<vmem>>, vector<8x32xf32>
    tpu.vector_store %arg12[%c0_172, %c0_173], %288 {strides = array<i32>} : memref<8x32xf32, #tpu.memory_space<vmem>>, vector<8x32xf32>,
    return
  }
  func.func @transform_0(%arg0: i32, %arg1: i32) -> (i32, i32, i32) {
    %c0_i32 = arith.constant 0 : i32
    %c0_i32_0 = arith.constant 0 : i32
    return %arg1, %arg0, %c0_i32 : i32, i32, i32
  }
  func.func @transform_1(%arg0: i32, %arg1: i32) -> (i32, i32) {
    %c0_i32 = arith.constant 0 : i32
    %c0_i32_0 = arith.constant 0 : i32
    %c0_i32_1 = arith.constant 0 : i32
    return %c0_i32, %c0_i32_0 : i32, i32
  }
  func.func @transform_2(%arg0: i32, %arg1: i32) -> (i32, i32) {
    %c0_i32 = arith.constant 0 : i32
    %c0_i32_0 = arith.constant 0 : i32
    %c0_i32_1 = arith.constant 0 : i32
    return %c0_i32, %c0_i32_0 : i32, i32
  }
  func.func @transform_3(%arg0: i32, %arg1: i32) -> (i32, i32) {
    %c0_i32 = arith.constant 0 : i32
    %c0_i32_0 = arith.constant 0 : i32
    %c0_i32_1 = arith.constant 0 : i32
    return %c0_i32, %c0_i32_0 : i32, i32
  }
  func.func @transform_4(%arg0: i32, %arg1: i32) -> (i32, i32) {
    %c0_i32 = arith.constant 0 : i32
    %c0_i32_0 = arith.constant 0 : i32
    %c0_i32_1 = arith.constant 0 : i32
    return %c0_i32, %c0_i32_0 : i32, i32
  }
  func.func @transform_5(%arg0: i32, %arg1: i32) -> (i32, i32) {
    %c0_i32 = arith.constant 0 : i32
    %c0_i32_0 = arith.constant 0 : i32
    %c0_i32_1 = arith.constant 0 : i32
    return %c0_i32, %c0_i32_0 : i32, i32
  }
  func.func @transform_6(%arg0: i32, %arg1: i32) -> (i32, i32) {
    %c0_i32 = arith.constant 0 : i32
    %c0_i32_0 = arith.constant 0 : i32
    %c0_i32_1 = arith.constant 0 : i32
    return %c0_i32, %c0_i32_0 : i32, i32
  }
  func.func @transform_7(%arg0: i32, %arg1: i32) -> (i32, i32) {
    %c0_i32 = arith.constant 0 : i32
    %c0_i32_0 = arith.constant 0 : i32
    %c0_i32_1 = arith.constant 0 : i32
    return %c0_i32, %c0_i32_0 : i32, i32
  }
  func.func @transform_8(%arg0: i32, %arg1: i32) -> (i32, i32, i32) {
    %c0_i32 = arith.constant 0 : i32
    %c0_i32_0 = arith.constant 0 : i32
    return %arg1, %arg0, %c0_i32 : i32, i32, i32
  }
  func.func @transform_9(%arg0: i32, %arg1: i32) -> (i32, i32) {
    %c0_i32 = arith.constant 0 : i32
    %c0_i32_0 = arith.constant 0 : i32
    return %arg0, %c0_i32 : i32, i32
  }
  func.func @transform_10(%arg0: i32, %arg1: i32) -> (i32, i32) {
    %c0_i32 = arith.constant 0 : i32
    %c0_i32_0 = arith.constant 0 : i32
    return %arg0, %c0_i32 : i32, i32
  }
}

</mosaic_0001>

<bundles_post_ra>
// kernel: tpu_custom_call.1
= control target key start
LH: loop header
LB: loop body
LE: loop exit
PB: predicated region body
PF: predicated region fallthrough
CT: control target
= control target key end

     0   :  { %s5004_s0 = inlined_call_operand.hbm [shape: f32[8,16,16], index: 0, kind: input, shape index: {}]   ;;  %s5005_s1 = inlined_call_operand.vmem [shape: f32[16,8], index: 1, kind: input, shape index: {}]   ;;  %s5006_s2 = inlined_call_operand.vmem [shape: f32[1,8], index: 2, kind: input, shape index: {}]   ;;  %s5007_s3 = inlined_call_operand.vmem [shape: f32[8,4], index: 3, kind: input, shape index: {}]   ;;  %s5008_s4 = inlined_call_operand.vmem [shape: f32[1,4], index: 4, kind: input, shape index: {}]   ;;  %s5009_s5 = inlined_call_operand.hbm [shape: f32[16,128], index: 5, kind: input, shape index: {}]   ;;  %s5010_s6 = inlined_call_operand.vmem [shape: f32[32,128], index: 6, kind: input, shape index: {}]   ;;  %s5011_s7 = inlined_call_operand.vmem [shape: f32[1,128], index: 7, kind: input, shape index: {}]   ;;  %s5012_s8 = inlined_call_operand.hbm [shape: f32[8,16,32], index: 8, kind: output, shape index: {0}]   ;;  %s5013_s9 = inlined_call_operand.hbm [shape: f32[16,32], index: 9, kind: output, shape index: {1}]   ;;  %s5014_s10 = inlined_call_operand.hbm [shape: f32[16,32], index: 10, kind: output, shape index: {2}]  }
   0x1   :  { %5040 = sst [smem:[#allocation34_spill]] %s5004_s0 }
   0x2   :  { %5041 = sst [smem:[#allocation35_spill]] %s5005_s1 }
   0x3   :  { %5042 = sst [smem:[#allocation36_spill]] %s5006_s2 }
   0x4   :  { %5043 = sst [smem:[#allocation37_spill]] %s5008_s4 }
   0x5   :  { %5044 = sst [smem:[#allocation38_spill]] %s5009_s5 }
   0x6   :  { %5045 = sst [smem:[#allocation39_spill]] %s5010_s6 }
   0x7   :  { %5046 = sst [smem:[#allocation40_spill]] %s5011_s7 }
   0x8   :  { %5047 = sst [smem:[#allocation41_spill]] %s5012_s8 }
   0x9   :  { %5048 = sst [smem:[#allocation42_spill]] %s5013_s9 }
   0xa   :  { %5049 = sst [smem:[#allocation43_spill]] %s5014_s10 }
   0xb   :  { %16 = vsyncpa [#allocation12], 0 }
   0xc   :  { %18 = vsyncpa [#allocation12 + $0x1], 0 }
   0xd   :  { %19 = vsyncpa [#allocation15], 0 }
   0xe   :  { %20 = vsyncpa [#allocation13], 0 }
   0xf   :  { %22 = vsyncpa [#allocation13 + $0x1], 0 }
  0x10   :  { %23 = vsyncpa [#allocation18], 0 }
  0x11   :  { %25 = vsyncpa [#allocation18 + $0x1], 0  ;;  %s3771_s13 = smov 0   ;;  %s3773_s14 = smov 0  }
  0x12   :  { %s3775_s15 = smov 0   ;;  %s3777_s16 = smov 0  }
  0x13   :  { %s3779_s17 = smov 0   ;;  %s3781_s18 = smov 0  }
  0x14   :  { %s3783_s19 = smov 0   ;;  %s3785_s20 = smov 0  }
  0x15   :  { %s3787_s21 = smov 0   ;;  %s3789_s22 = smov 0  }
  0x16   :  { %s3791_s23 = smov 0  }
  0x17 LB: > { %5050 = sst [smem:[#allocation24_spill]] %s3667_s16  ;;  %s3827_s24 = sadd.s32 4294967295, %s3695_s23   ;;  %s3695_s23 = sphi %s3791_s23, %s31_s23   ;;  %s3691_s22 = sphi %s3789_s22, %s5136_s22   ;;  %s3687_s21 = sphi %s3787_s21, %s5127_s21   ;;  %s3683_s20 = sphi %s3785_s20, %s5135_s20   ;;  %s3679_s19 = sphi %s3783_s19, %s5126_s19   ;;  %s3675_s18 = sphi %s3781_s18, %s5134_s18   ;;  %s3671_s17 = sphi %s3779_s17, %s5133_s17   ;;  %s3667_s16 = sphi %s3777_s16, %s5132_s16   ;;  %s3663_s15 = sphi %s3775_s15, %s5131_s15   ;;  %s3659_s14 = sphi %s3773_s14, %s5130_s14   ;;  %s3655_s13 = sphi %s3771_s13, %s5129_s13  }
  0x18   : > { %5051 = sst [smem:[#allocation25_spill]] %s3683_s20  ;;  %s5016_s25 = sadd.s32 4294967294, %s3695_s23  }
  0x19   : > { %5052 = sst [smem:[#allocation26_spill]] %s3687_s21  ;;  %p59_p0 = scmp.ne.s32.totalorder %s3675_s18, %s3671_s17 }
  0x1a   : > { %5053 = sst [smem:[#allocation27_spill]] %s3695_s23  ;;  %p60_p1 = scmp.eq.s32.totalorder %s3695_s23, 0 }
  0x1b   : > { %p65_p2 = scmp.ne.s32.totalorder %s3671_s17, %s3667_s16  ;;  %p5015_p3 = scmp.eq.s32.totalorder %s3827_s24, 0 }
  0x1c   : > { %p238_p4 = scmp.eq.s32.totalorder %s3827_s24, 3  ;;  %p3838_p5 = por %p60_p1, %p59_p0 }
  0x1d   : > { %p244_p6 = scmp.eq.s32.totalorder %s5016_s25, 3  ;;  %p3846_p7 = por %p5015_p3, %p65_p2 }
  0x1e   : > { %p3850_p8 = por %p238_p4, %p59_p0  ;;  %p263_p10 = scmp.ne.s32.totalorder %s3663_s15, %s3659_s14 }
  0x1f   : > { %s5055_s28 = scalar_select %p3846_p7, 1, 0 }
  0x20   : > { %s5056_s29 = scalar_select %p3850_p8, 1, 0 }
  0x21   : > { %p3854_p9 = por %p244_p6, %p65_p2  ;;  %p269_p11 = scmp.ne.s32.totalorder %s3659_s14, %s3655_s13 }
  0x22   : > { %5057 = sst [smem:[#allocation28_spill]] %s5056_s29  ;;  %p3094_p12 = scmp.ge.s32.totalorder %s3695_s23, 1 }
  0x23   : > { %s5058_s30 = scalar_select %p3854_p9, 1, 0 }
  0x24   : > { %p303_p13 = scmp.lt.s32.totalorder %s3695_s23, 5  ;;  %p3865_p1 = por %p263_p10, %p238_p4 }
  0x25   : > { %5059 = sst [smem:[#allocation29_spill]] %s5058_s30  ;;  %p3869_p3 = por %p269_p11, %p244_p6 }
  0x26   : > { %s5060_s12 = scalar_select %p3865_p1, 1, 0 }
  0x27   : > { %s5062_s25 = scalar_select %p3869_p3, 1, 0 }
  0x28   : > { %5061 = sst [smem:[#allocation30_spill]] %s5060_s12  ;;  %p3873_p0 = pnand %p3094_p12, %p303_p13 }
  0x29   : > { %5063 = sst [smem:[#allocation31_spill]] %s5062_s25  ;;  %s3697_s11 = smov [#allocation14]  }
  0x2a   : > { %p3267_p2 = pneg %p3873_p0  ;;  %s327_s30 = sshll.u32 %s3697_s11, 4  ;;  %s328_s30 = int_to_ptr.vmem [resolvable:$true] %s327_s30 }
  0x2b   : > { %p5065_p9 = scmp.eq.s32.totalorder %s3827_s24, 0  ;;  %p3286_p4 = scmp.lt.s32.totalorder %s3695_s23, 4 }
  0x2c   : > { %s3472_s25 = scalar_lea.vmem %s328_s30, 256  ;;  %p3480_p13 = scmp.lt.s32.totalorder %s328_s30, %s328_s30 }
  0x2d   : > { %p3881_p8 = pnand %p3267_p2, %p5065_p9  ;;  %p3473_p10 = scmp.ne.s32.totalorder %s328_s30, %s3472_s25 }
  0x2e   : > { %p3481_p3 = scmp.lt.s32.totalorder %s3472_s25, %s3472_s25 }
  0x2f   : > { %p3463_p6 = pneg %p3881_p8 }
  0x30   : > { %p3482_p1 = por %p3481_p3, %p3480_p13 }
  0x31   : > { %p3475_p11 = pnand %p3473_p10, %p3463_p6 }
  0x33   : > { %p3476_p12 = pneg %p3475_p11 }
  0x35   : > { %p3483_p7 = pnand %p3482_p1, %p3476_p12 }
  0x37   : > { %3486 = shalt.err (!%p3483_p7)
}
  0x38   : > { %s5031_s11 = smov 128   ;;  %s5032_s16 = smov 8  }
  0x39   : > { %s5067_s5 = sld [smem:[#allocation38_spill]]  ;;  %p3900_p3 = pnand %p3286_p4, %p3838_p5 }
  0x3a   : > { %s43_s8 = sadd.s32 1, %s3691_s22  ;;  %s40_s12 = sadd.s32 1, %s3687_s21 }
  0x3b   : > { %p41_p7 = scmp.ge.s32.totalorder %s40_s12, 2  ;;  %s347_s9 = sand.u32 1, %s3675_s18  }
  0x3c   : > { %s3097_s20 = sshll.u32 %s347_s9, 5  ;;  %s3144_s29 = sshll.u32 %s3687_s21, 3 }
  0x3d   : > { %s5138_s12 = smov (%p41_p7, %s40_s12), 0  ;;  %s5140_s8 = smov (!%p41_p7, %s43_s8), %s3691_s22 }
  0x3e   : > { %5069 = sst [smem:[#allocation32_spill]] %s5138_s12  ;;  %s47_s27 = ssub.s32 %s3687_s21, %s5138_s12 }
  0x3f   : > { %3270 = dma.hbm_to_vmem [thread:$0]  (!%p3881_p8), %s5067_s5, 256, %s328_s30, [#allocation15], %s5031_s11, %s5031_s11, %s5032_s16  }
  0x40   : > { %p45_p8 = scmp.ge.s32.totalorder %s5140_s8, 2  ;;  %s357_s30 = sadd.s32 %s3691_s22, %s3144_s29 }
  0x41   : > { %s351_s13 = scalar_lea.vmem [#allocation11], %s3097_s20  ;;  %s3100_s11 = sshll.u32 %s357_s30, 7 }
  0x42   : > { %s360_s25 = sshll.u32 %s351_s13, 4  ;;  %s5142_s8 = smov (%p45_p8, %s5140_s8), 0  ;;  %s361_s25 = int_to_ptr.vmem [resolvable:$true] %s360_s25 }
  0x43   : > { %5070 = sst [smem:[#allocation33_spill]] %s5142_s8  ;;  %s48_s16 = ssub.s32 %s3691_s22, %s5142_s8 }
  0x44   : > { %s5071_s0 = sld [smem:[#allocation34_spill]]  ;;  %s49_s6 = sor.u32 %s48_s16, %s47_s27 }
  0x45   : > { %p251_p5 = scmp.eq.s32.totalorder %s48_s16, 0  ;;  %p50_p9 = scmp.eq.s32.totalorder %s49_s6, 0 }
  0x46   : > { %s5072_s12 = sadd.s32 1, %s3663_s15  ;;  %s5073_s21 = sadd.s32 1, %s3675_s18 }
  0x47   : > { %s3924_s4 = scalar_select %p251_p5, %s3663_s15, %s5072_s12  }
  0x48   : > { %s3929_s29 = scalar_select %p50_p9, %s3675_s18, %s5073_s21  }
  0x49   : > { %s348_s20 = scalar_lea.sflag [#allocation12], %s347_s9  ;;  %p3489_p1 = pneg %p3900_p3 }
  0x4a   : > { %s359_s7 = scalar_lea.hbm %s5071_s0, %s3100_s11  ;;  %s3500_s13 = scalar_lea.vmem %s361_s25, 512 }
  0x4b   : > { %p3501_p2 = scmp.ne.s32.totalorder %s361_s25, %s3500_s13  ;;  %s3700_s30 = smov [#allocation11]  }
  0x4c   : > { %s3505_s8 = sshll.u32 %s3700_s30, 4  ;;  %s3506_s8 = int_to_ptr.vmem [resolvable:$false] %s3505_s8 }
  0x4d   : > { %p3503_p4 = pnand %p3501_p2, %p3489_p1  ;;  %s3507_s5 = scalar_lea.vmem %s3506_s8, 1024 }
  0x4e   : > { %p3508_p10 = scmp.lt.s32.totalorder %s361_s25, %s3506_s8  ;;  %p3509_p11 = scmp.lt.s32.totalorder %s3507_s5, %s3500_s13 }
  0x4f   : > { %p3504_p6 = pneg %p3503_p4 }
  0x50   : > { %p3510_p12 = por %p3509_p11, %p3508_p10 }
  0x52   : > { %p3511_p13 = pnand %p3510_p12, %p3504_p6 }
  0x54   : > { %3514 = shalt.err (!%p3511_p13)
}
  0x55   : > { %s3701_s6 = smov 256   ;;  %s5074_s16 = smov 8  }
  0x56   : > { %s5075_s9 = smov 128   ;;  %372 = sbr.rel (%p3873_p0) target bundleno = 3627 (0xe2b), region = 52 }
  0x57   : > { %3274 = dma.hbm_to_vmem [thread:$0]  (!%p3900_p3), %s359_s7, 512, %s361_s25, %s348_s20, %s3701_s6, %s5075_s9, %s5074_s16  }
  0x58   : > { %s3940_s21 = sand.u32 (!%p3873_p0), 1, %s3671_s17   ;;  %p5076_p7 = scmp.ne.s32.totalorder (!%p3873_p0), %s5055_s28, 0 }
  0x59   : > { %s3102_s8 = sshll.u32 (!%p3873_p0), %s3940_s21, 5  ;;  %s375_s23 = scalar_lea.sflag (!%p3873_p0), [#allocation12], %s3940_s21 }
  0x5a   : > { %s3944_s12 = scalar_lea.vmem (!%p3873_p0), [#allocation11], %s3102_s8 }
  0x5b   : > { %3638 = dma.done.wait (%p5076_p7), %s375_s23, 512  }
  0x5c   : > { %3640 = vsyncadd (%p5076_p7), %s375_s23, 4294966784  ;;  %p5077_p3 = scmp.eq.s32.totalorder %s3827_s24, 0 }
  0x5e   : > { %3642 = dma.done.wait (%p5077_p3), [#allocation15], 256   ;;  %p5078_p0 = pmov %p5077_p3 }
  0x5f   : > { %s419_s7 = sand.u32 1, %s3659_s14   ;;  %s3957_s26 = scalar_lea.vmem [#allocation16], %s3102_s8 }
  0x60   : > { %3644 = vsyncadd (%p5078_p0), [#allocation15], 4294967040  ;;  %s3955_s10 = sshll.u32 %s419_s7, 3  ;;  %p3107_p8 = scmp.ne.s32.totalorder %s3679_s19, 0 }
  0x61   : > { %s5039_s11 = scalar_lea.vmem [#allocation17], %s3955_s10  ;;  %s428_s27 = scalar_lea.vmem [#allocation19], %s3955_s10 }
  0x62   : > { %434 = sbr.rel (%p3107_p8) target bundleno = 110 (0x6e), region = 64 }
  0x67   : > { %vm435_vm0 = vcmask 125952   ;;  %vm444_vm1 = vcmask 31744   ;;  %v3702_v0 = vmov 0.0   ;;  %v3703_v1 = vmov -inf  }
  0x68   : > { %436 = vst.msk [vmem:[#allocation6] sm:$0xf] %vm435_vm0, %v3702_v0  ;;  %437 = vst.msk [vmem:[#allocation6 + $0x4] sm:$0xf] %vm435_vm0, %v3702_v0  ;;  %vm447_vm2 = vcmask 261120  }
  0x69   : > { %438 = vst.msk [vmem:[#allocation6 + $0x8] sm:$0xf] %vm435_vm0, %v3702_v0  ;;  %439 = vst.msk [vmem:[#allocation6 + $0xc] sm:$0xf] %vm435_vm0, %v3702_v0 }
  0x6a   : > { %440 = vst.msk [vmem:[#allocation6 + $0x10] sm:$0xf] %vm435_vm0, %v3702_v0  ;;  %441 = vst.msk [vmem:[#allocation6 + $0x14] sm:$0xf] %vm435_vm0, %v3702_v0 }
  0x6b   : > { %442 = vst.msk [vmem:[#allocation6 + $0x18] sm:$0xf] %vm435_vm0, %v3702_v0  ;;  %443 = vst.msk [vmem:[#allocation6 + $0x1c] sm:$0xf] %vm435_vm0, %v3702_v0 }
  0x6c   : > { %445 = vst.msk [vmem:[#allocation7] sm:$0xff] %vm444_vm1, %v3702_v0  ;;  %446 = vst.msk [vmem:[#allocation8] sm:$0xff] %vm444_vm1, %v3703_v1 }
  0x6d   : > { %448 = vst.msk [vmem:[#allocation9] sm:$0xff] %vm447_vm2, %v3702_v0  ;;  %449 = vst.msk [vmem:[#allocation10] sm:$0xff] %vm447_vm2, %v3702_v0 }
  0x6e PF: > { %s5079_s1 = sld [smem:[#allocation35_spill]]  ;;  %v450_v4 = vld [vmem:[%s3944_s12] sm:$0xff]  ;;  %vm454_vm3 = vcmask 130048   ;;  %v451_v5 = vld [vmem:[%s3944_s12 + $0x8] sm:$0xff]  ;;  %v452_v6 = vld [vmem:[%s3944_s12 + $0x10] sm:$0xff]  ;;  %vm581_vm4 = vcmask 64512   ;;  %v704_v42 = vlaneseq }
  0x6f   : > { %455 = vst.msk [vmem:[#allocation2] sm:$0xff] %vm454_vm3, %v450_v4  ;;  %v453_v7 = vld [vmem:[%s3944_s12 + $0x18] sm:$0xff]  ;;  %456 = vst.msk [vmem:[#allocation2 + $0x8] sm:$0xff] %vm454_vm3, %v451_v5  ;;  %v573_v12 = vld [vmem:[%s5007_s3] sm:$0xff]  ;;  %s5080_s2 = sld [smem:[#allocation36_spill]]  ;;  %vm679_vm5 = vcmask 31744  }
  0x70   : > { %457 = vst.msk [vmem:[#allocation2 + $0x10] sm:$0xff] %vm454_vm3, %v452_v6  ;;  %458 = vst.msk [vmem:[#allocation2 + $0x18] sm:$0xff] %vm454_vm3, %v453_v7  ;;  %3193 = vmatprep.subr.mxu1 %v573_v12  ;;  %s5081_s23 = sld [smem:[#allocation37_spill]]  ;;  %v4001_v46 = vshrl.u32 %v704_v42, 7  ;;  %s3705_s12 = smov 32   ;;  %vm3707_vm6 = vmmov 0  }
  0x71   : > { %3194 = vmatpush3.msra.mxu1 %v573_v12  ;;  %s5082_s25 = sld [smem:[#allocation39_spill]]  ;;  %vm2438_vm7 = vcmask 261120   ;;  %vm933_vm8 = vcmask 125952   ;;  %vm1080_vm9 = vcmask 1041409   ;;  %vm1082_vm10 = vcmask 1042434   ;;  %s3708_s7 = smov 64  }
  0x72   : > { %v4004_v48 = vsub.s32 0, %v4001_v46  ;;  %v4013_v57 = vsub.s32 1, %v4001_v46  ;;  %vm1084_vm11 = vcmask 1043459   ;;  %vm1086_vm12 = vcmask 1044484   ;;  %s5110_s8 = sld [smem:[#allocation25_spill]]  ;;  %s3145_s28 = sshll.u32 %s3679_s19, 3 }
  0x73   : > { %v685_v35 = vld [vmem:[#allocation8] sm:$0xff]  ;;  %v693_v62 = vld [vmem:[#allocation7] sm:$0xff]  ;;  %vm1088_vm13 = vcmask 1045509   ;;  %vm1090_vm14 = vcmask 1046534   ;;  %vm1092_vm15 = vcmask 1047559   ;;  %s2886_s20 = sand.u32 1, %s3827_s24  }
  0x74   : > { %v464_v2 = vld [vmem:[%s5079_s1 + $0x8] sm:$0xff]  ;;  %v463_v3 = vld [vmem:[%s5079_s1] sm:$0xff]  ;;  %s2907_s5 = sshll.u32 %s3957_s26, 4  ;;  %s5111_s9 = sld [smem:[#allocation42_spill]]  ;;  %s4874_s5 = int_to_ptr.vmem [resolvable:$true] %s2907_s5 }
  0x75   : > { %3183 = vmatprep.subr.mxu0 %v464_v2  ;;  %v3108_v13 = vld [vmem:[%s5080_s2] ss:$0 sm:$0xff]  ;;  %s2936_s19 = sshll.u32 %s428_s27, 4  ;;  %s5115_s1 = sld [smem:[#allocation43_spill]]  ;;  %s4894_s19 = int_to_ptr.vmem [resolvable:$true] %s2936_s19 }
  0x76   : > { %3184 = vmatpush3.msra.mxu0 %v464_v2  ;;  %v3976_v8 = vld [vmem:[#allocation2] sm:$0xff]  ;;  %v3980_v9 = vld [vmem:[#allocation2 + $0x8] sm:$0xff]  ;;  %v4021_v2 = vsub.s32 2, %v4001_v46 }
  0x77   : > { %3185 = vmatprep.subr.mxu0 %v463_v3  ;;  %3187 = vmatprep.mubr.msk.f32.mxu0 %vm454_vm3, %v3976_v8  ;;  %v461_v10 = vld [vmem:[#allocation2 + $0x10] sm:$0xff]  ;;  %v462_v11 = vld [vmem:[#allocation2 + $0x18] sm:$0xff]  ;;  %v3113_v26 = vld [vmem:[%s5081_s23] ss:$0 sm:$0xff]  ;;  %s5083_s23 = sld [smem:[#allocation40_spill]] }
  0x78   : > { %3186 = vmatpush3.msra.mxu0 %v463_v3  ;;  %s3140_s13 = sshll.u32 %s5110_s8, 7  ;;  %s2904_s30 = sadd.s32 %s5110_s8, %s3145_s28 }
  0x79   : > { %3188 = vmatmul.mubr.msk.f32.vlgmr.msra.gmra.mxu0 %vm454_vm3, %v3980_v9  ;;  %s3139_s0 = sshll.u32 %s2904_s30, 7  ;;  %s5113_s28 = sld [smem:[#allocation41_spill]] }
  0x7a   : > { %3190 = vmatprep.mubr.msk.f32.mxu0 %vm454_vm3, %v461_v10  ;;  %v4032_v10 = vsub.s32 3, %v4001_v46  ;;  %s5114_s30 = scalar_lea.vmem [#allocation17], %s3955_s10 }
  0x7b   : > { %s4892_s2 = scalar_lea.hbm %s5115_s1, %s3140_s13 }
  0x7d   : > { %3191 = vmatmul.mubr.msk.f32.gmra.mxu0 %vm454_vm3, %v462_v11 }
 0x139   : > { %v3189_v14 = vpop.f32.mrf.mxu0 }
 0x13a   : > { %v556_v15 = vadd.f32 %v3189_v14, %v3108_v13 }
 0x13b   : > { %v550_v16 = vpop.f32.mrf.mxu0 }
 0x13c   : > { %v551_v17 = vadd.f32 %v3108_v13, %v550_v16 }
 0x13d   : > { %v3192_v18 = vpop.f32.mrf.mxu0 }
 0x13e   : > { %3393 = vtanh.f32 %v551_v17  ;;  %v566_v19 = vadd.f32 %v3192_v18, %v3108_v13  ;;  %v4042_v17 = vsub.s32 4, %v4001_v46 }
 0x13f   : > { %3395 = vtanh.f32 %v556_v15  ;;  %v560_v20 = vpop.f32.mrf.mxu0 }
 0x140   : > { %v561_v21 = vadd.f32 %v3108_v13, %v560_v20  ;;  %3397 = vtanh.f32 %v566_v19 }
 0x142   : > { %3399 = vtanh.f32 %v561_v21 }
 0x14b   : > { %v3394_v22 = vpop.eup %3393 }
 0x14c   : > { %v3396_v23 = vpop.eup %3395  ;;  %3195 = vmatprep.mubr.msk.f32.mxu1 %vm581_vm4, %v3394_v22 }
 0x14d   : > { %3196 = vmatmul.mubr.msk.f32.vlgmr.msra.gmra.mxu1 %vm581_vm4, %v3396_v23  ;;  %v3398_v24 = vpop.eup %3397  ;;  %v4051_v23 = vsub.s32 5, %v4001_v46 }
 0x14f   : > { %v3400_v25 = vpop.eup %3399 }
 0x150   : > { %3198 = vmatprep.mubr.msk.f32.mxu1 %vm581_vm4, %v3400_v25 }
 0x151   : > { %3199 = vmatmul.mubr.msk.f32.gmra.mxu1 %vm581_vm4, %v3398_v24 }
 0x20d   : > { %v3197_v27 = vpop.f32.mrf.mxu1 }
 0x20e   : > { %v666_v28 = vadd.f32 %v3197_v27, %v3113_v26 }
 0x20f   : > { %v660_v29 = vpop.f32.mrf.mxu1 }
 0x210   : > { %681 = vst.msk [vmem:[#allocation3 + $0x8] sm:$0xff] %vm679_vm5, %v666_v28  ;;  %v661_v30 = vadd.f32 %v3113_v26, %v660_v29  ;;  %v4061_v29 = vsub.s32 6, %v4001_v46 }
 0x211   : > { %v3200_v31 = vpop.f32.mrf.mxu1 }
 0x212   : > { %680 = vst.msk [vmem:[#allocation3] sm:$0xff] %vm679_vm5, %v661_v30  ;;  %v676_v32 = vadd.f32 %v3200_v31, %v3113_v26 }
 0x213   : > { %v670_v33 = vpop.f32.mrf.mxu1 }
 0x214   : > { %683 = vst.msk [vmem:[#allocation3 + $0x18] sm:$0xff] %vm679_vm5, %v676_v32  ;;  %v671_v34 = vadd.f32 %v3113_v26, %v670_v33  ;;  %v4071_v33 = vsub.s32 7, %v4001_v46 }
 0x216   : > { %682 = vst.msk [vmem:[#allocation3 + $0x10] sm:$0xff] %vm679_vm5, %v671_v34 }
 0x217   : > { %v1097_v43 = vld [vmem:[#allocation3 + $0x8] sm:$0xff] }
 0x219   : > { %v684_v36 = vld [vmem:[#allocation3] sm:$0xff] }
 0x21a   : > { %v686_v37 = vmax.f32 %v685_v35, %v684_v36 }
 0x21b   : > { %v1911_v5 = vld [vmem:[#allocation3 + $0x18] sm:$0xff] }
 0x21c   : > { %v687_v38 = vsub.f32 %v685_v35, %v686_v37  ;;  %v690_v39 = vsub.f32 %v684_v36, %v686_v37  ;;  %931 = vst.msk [vmem:[#allocation8] sm:$0xff] %vm679_vm5, %v686_v37 }
 0x21d   : > { %v1504_v50 = vld [vmem:[#allocation3 + $0x10] sm:$0xff] }
 0x21e   : > { %v688_v40 = vmul.f32 1.442695, %v687_v38  ;;  %v691_v41 = vmul.f32 1.442695, %v690_v39 }
 0x220   : > { %3401 = vpow2.f32 %v688_v40 }
 0x221   : > { %3403 = vpow2.f32 %v691_v41 }
 0x223   : > { %v1098_v44 = vld [vmem:[#allocation8] sm:$0xff] }
 0x224   : > { %v1099_v45 = vmax.f32 %v1098_v44, %v1097_v43 }
 0x226   : > { %1345 = vst.msk [vmem:[#allocation8] sm:$0xff] %vm679_vm5, %v1099_v45  ;;  %v1100_v47 = vsub.f32 %v1098_v44, %v1099_v45  ;;  %v1103_v49 = vsub.f32 %v1097_v43, %v1099_v45 }
 0x228   : > { %v1101_v52 = vmul.f32 1.442695, %v1100_v47  ;;  %v1104_v58 = vmul.f32 1.442695, %v1103_v49 }
 0x22a   : > { %3405 = vpow2.f32 %v1101_v52 }
 0x22b   : > { %3407 = vpow2.f32 %v1104_v58 }
 0x22d   : > { %v4006_v51 = vpop.eup %3401  ;;  %v1505_v53 = vld [vmem:[#allocation8] sm:$0xff] }
 0x22e   : > { %v4008_v54 = vpop.eup %3403  ;;  %v1506_v55 = vmax.f32 %v1505_v53, %v1504_v50  ;;  %v707_v56 = vrot.slane %v4006_v51, %v4004_v48  ;;  %v714_v1 = vrot.slane %v4006_v51, %v4013_v57  ;;  %v694_v4 = vmul.f32 %v4006_v51, %v693_v62 }
 0x22f   : > { %v771_v59 = vrot.slane %v4008_v54, %v4004_v48  ;;  %v778_v3 = vrot.slane %v4008_v54, %v4013_v57  ;;  %v721_v7 = vrot.slane %v4006_v51, %v4021_v2  ;;  %v785_v12 = vrot.slane %v4008_v54, %v4021_v2 }
 0x230   : > { %v1507_v60 = vsub.f32 %v1505_v53, %v1506_v55  ;;  %v1510_v61 = vsub.f32 %v1504_v50, %v1506_v55  ;;  %1752 = vst.msk [vmem:[#allocation8] sm:$0xff] %vm679_vm5, %v1506_v55  ;;  %709 = vbcast.lane.b32.xlu0 %v707_v56, 256  ;;  %v4027_v6 = vadd.f32 %v4008_v54, %v694_v4 }
 0x231   : > { %773 = vbcast.lane.b32.xlu1 %v771_v59, 256  ;;  %v728_v16 = vrot.slane %v4006_v51, %v4032_v10  ;;  %v792_v18 = vrot.slane %v4008_v54, %v4032_v10  ;;  %v735_v22 = vrot.slane %v4006_v51, %v4042_v17  ;;  %v799_v25 = vrot.slane %v4008_v54, %v4042_v17 }
 0x232   : > { %v1508_v63 = vmul.f32 1.442695, %v1507_v60  ;;  %v1511_v0 = vmul.f32 1.442695, %v1510_v61  ;;  %932 = vst.msk [vmem:[#allocation7] sm:$0xff] %vm679_vm5, %v4027_v6  ;;  %v742_v32 = vrot.slane %v4006_v51, %v4051_v23  ;;  %v806_v36 = vrot.slane %v4008_v54, %v4051_v23 }
 0x233   : > { %v749_v44 = vrot.slane %v4006_v51, %v4061_v29  ;;  %v813_v45 = vrot.slane %v4008_v54, %v4061_v29  ;;  %v756_v55 = vrot.slane %v4006_v51, %v4071_v33  ;;  %v820_v59 = vrot.slane %v4008_v54, %v4071_v33 }
 0x234   : > { %3409 = vpow2.f32 %v1508_v63  ;;  %716 = vbcast.lane.b32.xlu0 %v714_v1, 256 }
 0x235   : > { %3411 = vpow2.f32 %v1511_v0  ;;  %780 = vbcast.lane.b32.xlu1 %v778_v3, 256 }
 0x237   : > { %v1912_v11 = vld [vmem:[#allocation8] sm:$0xff]  ;;  %v4046_v21 = vpop.eup %3405 }
 0x238   : > { %v1913_v13 = vmax.f32 %v1912_v11, %v1911_v5  ;;  %723 = vbcast.lane.b32.xlu0 %v721_v7, 256  ;;  %v4056_v27 = vpop.eup %3407  ;;  %v1120_v4 = vrot.slane %v4046_v21, %v4004_v48  ;;  %v1127_v7 = vrot.slane %v4046_v21, %v4013_v57 }
 0x239   : > { %787 = vbcast.lane.b32.xlu1 %v785_v12, 256  ;;  %v1106_v24 = vld [vmem:[#allocation7] sm:$0xff] }
 0x23a   : > { %v1914_v14 = vsub.f32 %v1912_v11, %v1913_v13  ;;  %v1917_v15 = vsub.f32 %v1911_v5, %v1913_v13  ;;  %2159 = vst.msk [vmem:[#allocation8] sm:$0xff] %vm679_vm5, %v1913_v13  ;;  %v1107_v26 = vmul.f32 %v4046_v21, %v1106_v24 }
 0x23c   : > { %v1915_v19 = vmul.f32 1.442695, %v1914_v14  ;;  %v1918_v20 = vmul.f32 1.442695, %v1917_v15  ;;  %730 = vbcast.lane.b32.xlu0 %v728_v16, 256  ;;  %v4064_v30 = vadd.f32 %v4056_v27, %v1107_v26  ;;  %v1184_v16 = vrot.slane %v4056_v27, %v4004_v48 }
 0x23d   : > { %794 = vbcast.lane.b32.xlu1 %v792_v18, 256  ;;  %v1191_v18 = vrot.slane %v4056_v27, %v4013_v57 }
 0x23e   : > { %3413 = vpow2.f32 %v1915_v19  ;;  %1346 = vst.msk [vmem:[#allocation7] sm:$0xff] %vm679_vm5, %v4064_v30 }
 0x23f   : > { %3415 = vpow2.f32 %v1918_v20 }
 0x240   : > { %737 = vbcast.lane.b32.xlu0 %v735_v22, 256  ;;  %v1134_v22 = vrot.slane %v4046_v21, %v4021_v2 }
 0x241   : > { %v4058_v28 = vpop.eup %3409  ;;  %801 = vbcast.lane.b32.xlu1 %v799_v25, 256  ;;  %v1198_v25 = vrot.slane %v4056_v27, %v4021_v2 }
 0x242   : > { %v4066_v31 = vpop.eup %3411  ;;  %v1534_v34 = vrot.slane %v4058_v28, %v4013_v57  ;;  %v1541_v35 = vrot.slane %v4058_v28, %v4021_v2 }
 0x243   : > { %v1598_v37 = vrot.slane %v4066_v31, %v4013_v57  ;;  %v1605_v38 = vrot.slane %v4066_v31, %v4021_v2  ;;  %v1612_v39 = vrot.slane %v4066_v31, %v4032_v10  ;;  %v1619_v40 = vrot.slane %v4066_v31, %v4042_v17 }
 0x244   : > { %744 = vbcast.lane.b32.xlu0 %v742_v32, 256  ;;  %v1626_v41 = vrot.slane %v4066_v31, %v4051_v23  ;;  %v1633_v42 = vrot.slane %v4066_v31, %v4061_v29  ;;  %v1640_v43 = vrot.slane %v4066_v31, %v4071_v33 }
 0x245   : > { %808 = vbcast.lane.b32.xlu1 %v806_v36, 256  ;;  %v1513_v56 = vld [vmem:[#allocation7] sm:$0xff]  ;;  %v1141_v36 = vrot.slane %v4046_v21, %v4032_v10 }
 0x246   : > { %v1514_v60 = vmul.f32 %v4058_v28, %v1513_v56 }
 0x248   : > { %751 = vbcast.lane.b32.xlu0 %v749_v44, 256  ;;  %v1515_v3 = vadd.f32 %v4066_v31, %v1514_v60  ;;  %v1205_v44 = vrot.slane %v4056_v27, %v4032_v10  ;;  %v1148_v60 = vrot.slane %v4046_v21, %v4042_v17 }
 0x249   : > { %815 = vbcast.lane.b32.xlu1 %v813_v45, 256 }
 0x24a   : > { %3417 = vrcp.f32 %v1515_v3  ;;  %1753 = vst.msk [vmem:[#allocation7] sm:$0xff] %vm679_vm5, %v1515_v3 }
 0x24b   : > { %v4111_v58 = vpop.eup %3413 }
 0x24c   : > { %v4116_v61 = vpop.eup %3415  ;;  %758 = vbcast.lane.b32.xlu0 %v756_v55, 256  ;;  %v1941_v62 = vrot.slane %v4111_v58, %v4013_v57  ;;  %v1969_v63 = vrot.slane %v4111_v58, %v4051_v23 }
 0x24d   : > { %822 = vbcast.lane.b32.xlu1 %v820_v59, 256  ;;  %v2005_v0 = vrot.slane %v4116_v61, %v4013_v57  ;;  %v2012_v54 = vrot.slane %v4116_v61, %v4021_v2  ;;  %v2019_v1 = vrot.slane %v4116_v61, %v4032_v10  ;;  %v2026_v5 = vrot.slane %v4116_v61, %v4042_v17  ;;  %v697_v59 = vld [vmem:[#allocation6 + $0x4] sm:$0xf] }
 0x250   : > { %1122 = vbcast.lane.b32.xlu0 %v1120_v4, 256 }
 0x251   : > { %1129 = vbcast.lane.b32.xlu1 %v1127_v7, 256  ;;  %v1920_v24 = vld [vmem:[#allocation7] sm:$0xff]  ;;  %v1212_v7 = vrot.slane %v4056_v27, %v4042_v17 }
 0x252   : > { %v1921_v26 = vmul.f32 %v4111_v58, %v1920_v24  ;;  %v1162_v24 = vrot.slane %v4046_v21, %v4061_v29 }
 0x254   : > { %1186 = vbcast.lane.b32.xlu0 %v1184_v16, 256  ;;  %v1922_v32 = vadd.f32 %v4116_v61, %v1921_v26 }
 0x255   : > { %1193 = vbcast.lane.b32.xlu1 %v1191_v18, 256  ;;  %v1219_v18 = vrot.slane %v4056_v27, %v4051_v23 }
 0x256   : > { %3419 = vrcp.f32 %v1922_v32  ;;  %2160 = vst.msk [vmem:[#allocation7] sm:$0xff] %vm679_vm5, %v1922_v32  ;;  %v1169_v32 = vrot.slane %v4046_v21, %v4071_v33 }
 0x257   : > { %v4167_v45 = vpop.eup %3417  ;;  %3421 = vrcp.f32 %v4027_v6 }
 0x258   : > { %1136 = vbcast.lane.b32.xlu0 %v1134_v22, 256  ;;  %v1774_v55 = vrot.slane %v4167_v45, %v4013_v57  ;;  %v1155_v22 = vrot.slane %v4046_v21, %v4051_v23  ;;  %3423 = vrcp.f32 %v4064_v30 }
 0x259   : > { %1200 = vbcast.lane.b32.xlu1 %v1198_v25, 256  ;;  %v1226_v25 = vrot.slane %v4056_v27, %v4061_v29 }
 0x25c   : > { %1143 = vbcast.lane.b32.xlu0 %v1141_v36, 256 }
 0x25d   : > { %1207 = vbcast.lane.b32.xlu1 %v1205_v44, 256 }
 0x260   : > { %1150 = vbcast.lane.b32.xlu0 %v1148_v60, 256 }
 0x261   : > { %1214 = vbcast.lane.b32.xlu1 %v1212_v7, 256 }
 0x263   : > { %v4197_v26 = vpop.eup %3419 }
 0x264   : > { %1221 = vbcast.lane.b32.xlu0 %v1219_v18, 256  ;;  %v3422_v30 = vpop.eup %3421 }
 0x265   : > { %1157 = vbcast.lane.b32.xlu1 %v1155_v22, 256  ;;  %v954_v16 = vrot.slane %v3422_v30, %v4013_v57  ;;  %v961_v6 = vrot.slane %v3422_v30, %v4021_v2  ;;  %v3424_v4 = vpop.eup %3423  ;;  %v968_v20 = vrot.slane %v3422_v30, %v4032_v10  ;;  %v975_v3 = vrot.slane %v3422_v30, %v4042_v17 }
 0x266   : > { %v1367_v21 = vrot.slane %v3424_v4, %v4013_v57 }
 0x268   : > { %1164 = vbcast.lane.b32.xlu0 %v1162_v24, 256  ;;  %v1233_v24 = vrot.slane %v4056_v27, %v4071_v33  ;;  %v1374_v27 = vrot.slane %v3424_v4, %v4021_v2 }
 0x269   : > { %1228 = vbcast.lane.b32.xlu1 %v1226_v25, 256  ;;  %v947_v25 = vrot.slane %v3422_v30, %v4004_v48 }
 0x26c   : > { %1171 = vbcast.lane.b32.xlu0 %v1169_v32, 256  ;;  %v982_v32 = vrot.slane %v3422_v30, %v4051_v23 }
 0x26d   : > { %1235 = vbcast.lane.b32.xlu1 %v1233_v24, 256  ;;  %v989_v24 = vrot.slane %v3422_v30, %v4061_v29 }
 0x270   : > { %949 = vbcast.lane.b32.xlu0 %v947_v25, 256  ;;  %v1402_v25 = vrot.slane %v3424_v4, %v4061_v29 }
 0x271   : > { %956 = vbcast.lane.b32.xlu1 %v954_v16, 256  ;;  %v1381_v16 = vrot.slane %v3424_v4, %v4032_v10 }
 0x274   : > { %963 = vbcast.lane.b32.xlu0 %v961_v6, 256  ;;  %v1360_v6 = vrot.slane %v3424_v4, %v4004_v48 }
 0x275   : > { %970 = vbcast.lane.b32.xlu1 %v968_v20, 256  ;;  %v1388_v20 = vrot.slane %v3424_v4, %v4042_v17 }
 0x278   : > { %1369 = vbcast.lane.b32.xlu0 %v1367_v21, 256  ;;  %v996_v21 = vrot.slane %v3422_v30, %v4071_v33  ;;  %v2322_v30 = vld [vmem:[#allocation14 + $0x8] sm:$0xff] }
 0x279   : > { %977 = vbcast.lane.b32.xlu1 %v975_v3, 256  ;;  %v1395_v3 = vrot.slane %v3424_v4, %v4051_v23  ;;  %3201 = vmatprep.subr.mxu1 %v2322_v30 }
 0x27a   : > { %3202 = vmatpush3.msra.mxu1 %v2322_v30 }
 0x27c   : > { %1376 = vbcast.lane.b32.xlu0 %v1374_v27, 256  ;;  %v1409_v27 = vrot.slane %v3424_v4, %v4071_v33  ;;  %v3706_v4 = vmov 0.0  }
 0x27d   : > { %984 = vbcast.lane.b32.xlu1 %v982_v32, 256  ;;  %v3704_v32 = vmov 1966171168   ;;  %3211 = vmatprep.subr.mxu0 %v3706_v4 }
 0x27e   : > { %3219 = vmatprep.mubr.msk.f32.mxu0 %vm3707_vm6, %v3706_v4 }
 0x280   : > { %1383 = vbcast.lane.b32.xlu0 %v1381_v16, 256  ;;  %v828_v16 = vunpack.c.l.s4 %v3704_v32 }
 0x281   : > { %991 = vbcast.lane.b32.xlu1 %v989_v24, 256  ;;  %v2432_v24 = vld [vmem:[#allocation10] sm:$0xff] }
 0x282   : > { %v829_v19 = vunpack.c.0.s8 %v828_v16 }
 0x284   : > { %1390 = vbcast.lane.b32.xlu0 %v1388_v20, 256  ;;  %v4235_v20 = vsub.s32 %v829_v19, %v4001_v46  ;;  %v4249_v46 = vld [vmem:[%s5082_s25 + $0x18] sm:$0xff] }
 0x285   : > { %1362 = vbcast.lane.b32.xlu1 %v1360_v6, 256  ;;  %v2321_v6 = vld [vmem:[#allocation14] sm:$0xff]  ;;  %3212 = vmatpush3.msra.mxu0 %v4249_v46 }
 0x286   : > { %3203 = vmatprep.subr.mxu1 %v2321_v6  ;;  %3213 = vmatprep.subr.mxu0 %v3706_v4 }
 0x287   : > { %3204 = vmatpush3.msra.mxu1 %v2321_v6 }
 0x288   : > { %1397 = vbcast.lane.b32.xlu0 %v1395_v3, 256  ;;  %v833_v3 = vrot.slane %v3976_v8, %v4235_v20  ;;  %3222 = vmatprep.subr.mxu1 %v3706_v4 }
 0x289   : > { %998 = vbcast.lane.b32.xlu1 %v996_v21, 256 }
 0x28a   : > { %v849_v19 = vrot.slane %v833_v3, %v4235_v20  ;;  %v841_v21 = vcombine.high %v833_v3, %v833_v3 }
 0x28c   : > { %1404 = vbcast.lane.b32.xlu0 %v1402_v25, 256  ;;  %v4273_v25 = vld [vmem:[%s5082_s25] sm:$0xff]  ;;  %v878_v32 = vrot.slane %v849_v19, %v4004_v48  ;;  %v863_v16 = vrot.slane %v841_v21, %v4235_v20  ;;  %v871_v22 = vcombine.high %v849_v19, %v849_v19 }
 0x28d   : > { %1411 = vbcast.lane.b32.xlu1 %v1409_v27, 256  ;;  %v2431_v27 = vld [vmem:[#allocation9] sm:$0xff] }
 0x28e   : > { %v882_v21 = vrot.slane %v863_v16, %v4004_v48  ;;  %v886_v19 = vrot.slane %v871_v22, %v4004_v48  ;;  %v873_v18 = vcombine.high %v863_v16, %v863_v16 }
 0x290   : > { %v890_v16 = vrot.slane %v873_v18, %v4004_v48  ;;  %v700_v18 = vld [vmem:[#allocation6 + $0x10] sm:$0xf] }
 0x291   : > { %2521 = vrot.lane.b32.xlu1 %v2432_v24, %s3705_s12 }
 0x295   : > { %1536 = vbcast.lane.b32.xlu1 %v1534_v34, 256  ;;  %v4254_v34 = vld [vmem:[%s5082_s25 + $0x10] sm:$0xff] }
 0x296   : > { %3214 = vmatpush3.msra.mxu0 %v4254_v34 }
 0x297   : > { %3215 = vmatprep.subr.mxu0 %v3706_v4 }
 0x299   : > { %1600 = vbcast.lane.b32.xlu1 %v1598_v37, 256  ;;  %v4263_v37 = vld [vmem:[%s5082_s25 + $0x8] sm:$0xff] }
 0x29a   : > { %3216 = vmatpush3.msra.mxu0 %v4263_v37 }
 0x29b   : > { %3217 = vmatprep.subr.mxu0 %v3706_v4 }
 0x29c   : > { %3218 = vmatpush3.msra.mxu0 %v4273_v25 }
 0x29d   : > { %1607 = vbcast.lane.b32.xlu1 %v1605_v38, 256  ;;  %v696_v38 = vld [vmem:[#allocation6] sm:$0xf]  ;;  %3220 = vmatmul.mubr.msk.f32.vlgmr.msra.gmra.mxu0 %vm2438_vm7, %v2431_v27 }
 0x29e   : > { %3233 = vmatprep.subr.mxu0 %v3706_v4  ;;  %3241 = vmatprep.mubr.msk.f32.mxu0 %vm3707_vm6, %v3706_v4 }
 0x29f   : > { %3234 = vmatpush3.msra.mxu0 %v4249_v46 }
 0x2a0   : > { %3235 = vmatprep.subr.mxu0 %v3706_v4 }
 0x2a1   : > { %1614 = vbcast.lane.b32.xlu1 %v1612_v39, 256  ;;  %v826_v39 = vcombine.high %v3976_v8, %v3976_v8  ;;  %3236 = vmatpush3.msra.mxu0 %v4254_v34 }
 0x2a2   : > { %v710_v24 = vpop.permute.xlu0 %709  ;;  %3237 = vmatprep.subr.mxu0 %v3706_v4 }
 0x2a3   : > { %v774_v30 = vpop.permute.xlu1 %773  ;;  %v760_v6 = vmul.f32 %v710_v24, %v696_v38  ;;  %3238 = vmatpush3.msra.mxu0 %v4263_v37 }
 0x2a4   : > { %v915_v3 = vmul.f32 %v878_v32, %v774_v30  ;;  %v698_v30 = vld [vmem:[#allocation6 + $0x8] sm:$0xf]  ;;  %3239 = vmatprep.subr.mxu0 %v3706_v4 }
 0x2a5   : > { %1621 = vbcast.lane.b32.xlu1 %v1619_v40, 256  ;;  %v840_v40 = vrot.slane %v826_v39, %v4235_v20  ;;  %3240 = vmatpush3.msra.mxu0 %v4273_v25 }
 0x2a6   : > { %v4298_v27 = vadd.f32 %v915_v3, %v760_v6  ;;  %v717_v38 = vpop.permute.xlu0 %716 }
 0x2a7   : > { %v781_v32 = vpop.permute.xlu1 %780  ;;  %v761_v24 = vmul.f32 %v717_v38, %v697_v59  ;;  %v856_v39 = vrot.slane %v840_v40, %v4235_v20 }
 0x2a8   : > { %934 = vst.msk [vmem:[#allocation6] sm:$0xf] %vm933_vm8, %v4298_v27  ;;  %v916_v8 = vmul.f32 %v882_v21, %v781_v32  ;;  %v699_v21 = vld [vmem:[#allocation6 + $0xc] sm:$0xf]  ;;  %v842_v32 = vcombine.high %v840_v40, %v840_v40 }
 0x2a9   : > { %1628 = vbcast.lane.b32.xlu1 %v1626_v41, 256 }
 0x2aa   : > { %v4311_v59 = vadd.f32 %v916_v8, %v761_v24  ;;  %v724_v6 = vpop.permute.xlu0 %723 }
 0x2ab   : > { %v788_v3 = vpop.permute.xlu1 %787  ;;  %v762_v38 = vmul.f32 %v724_v6, %v698_v30  ;;  %v870_v6 = vrot.slane %v842_v32, %v4235_v20 }
 0x2ac   : > { %935 = vst.msk [vmem:[#allocation6 + $0x4] sm:$0xf] %vm933_vm8, %v4311_v59  ;;  %v917_v22 = vmul.f32 %v886_v19, %v788_v3  ;;  %v894_v19 = vrot.slane %v856_v39, %v4004_v48 }
 0x2ad   : > { %1635 = vbcast.lane.b32.xlu1 %v1633_v42, 256 }
 0x2ae   : > { %v4320_v41 = vadd.f32 %v917_v22, %v762_v38  ;;  %v731_v24 = vpop.permute.xlu0 %730 }
 0x2af   : > { %v795_v8 = vpop.permute.xlu1 %794  ;;  %v763_v7 = vmul.f32 %v731_v24, %v699_v21  ;;  %v701_v21 = vld [vmem:[#allocation6 + $0x14] sm:$0xf]  ;;  %v872_v24 = vcombine.high %v856_v39, %v856_v39  ;;  %v1247_v39 = vrot.slane %v3980_v9, %v4235_v20 }
 0x2b0   : > { %936 = vst.msk [vmem:[#allocation6 + $0x8] sm:$0xf] %vm933_vm8, %v4320_v41  ;;  %v918_v30 = vmul.f32 %v890_v16, %v795_v8  ;;  %v898_v16 = vrot.slane %v870_v6, %v4004_v48 }
 0x2b1   : > { %1642 = vbcast.lane.b32.xlu1 %v1640_v43, 256 }
 0x2b2   : > { %v4329_v40 = vadd.f32 %v918_v30, %v763_v7  ;;  %v738_v42 = vpop.permute.xlu0 %737 }
 0x2b3   : > { %v802_v3 = vpop.permute.xlu1 %801  ;;  %v764_v38 = vmul.f32 %v738_v42, %v700_v18  ;;  %v902_v18 = vrot.slane %v872_v24, %v4004_v48  ;;  %v874_v42 = vcombine.high %v870_v6, %v870_v6  ;;  %v703_v24 = vld [vmem:[#allocation6 + $0x1c] sm:$0xf]  ;;  %v1255_v6 = vcombine.high %v1247_v39, %v1247_v39 }
 0x2b4   : > { %937 = vst.msk [vmem:[#allocation6 + $0xc] sm:$0xf] %vm933_vm8, %v4329_v40  ;;  %v919_v22 = vmul.f32 %v894_v19, %v802_v3  ;;  %v702_v19 = vld [vmem:[#allocation6 + $0x18] sm:$0xf] }
 0x2b5   : > { %1943 = vbcast.lane.b32.xlu1 %v1941_v62, 256 }
 0x2b6   : > { %v4337_v32 = vadd.f32 %v919_v22, %v764_v38  ;;  %v745_v43 = vpop.permute.xlu0 %744 }
 0x2b7   : > { %v809_v7 = vpop.permute.xlu1 %808  ;;  %v765_v8 = vmul.f32 %v745_v43, %v701_v21  ;;  %v906_v21 = vrot.slane %v874_v42, %v4004_v48 }
 0x2b8   : > { %938 = vst.msk [vmem:[#allocation6 + $0x10] sm:$0xf] %vm933_vm8, %v4337_v32  ;;  %v920_v30 = vmul.f32 %v898_v16, %v809_v7 }
 0x2b9   : > { %2007 = vbcast.lane.b32.xlu1 %v2005_v0, 256 }
 0x2ba   : > { %v4347_v62 = vadd.f32 %v920_v30, %v765_v8  ;;  %v752_v3 = vpop.permute.xlu0 %751  ;;  %v1263_v30 = vrot.slane %v1247_v39, %v4235_v20 }
 0x2bb   : > { %v816_v38 = vpop.permute.xlu1 %815  ;;  %v766_v22 = vmul.f32 %v752_v3, %v702_v19 }
 0x2bc   : > { %939 = vst.msk [vmem:[#allocation6 + $0x14] sm:$0xf] %vm933_vm8, %v4347_v62  ;;  %v921_v16 = vmul.f32 %v902_v18, %v816_v38  ;;  %v1277_v18 = vrot.slane %v1255_v6, %v4235_v20  ;;  %v1292_v38 = vrot.slane %v1263_v30, %v4004_v48 }
 0x2bd   : > { %2014 = vbcast.lane.b32.xlu1 %v2012_v54, 256 }
 0x2be   : > { %v4355_v43 = vadd.f32 %v921_v16, %v766_v22  ;;  %v759_v0 = vpop.permute.xlu0 %758  ;;  %v1285_v22 = vcombine.high %v1263_v30, %v1263_v30  ;;  %v1296_v39 = vrot.slane %v1277_v18, %v4004_v48  ;;  %v1240_v16 = vcombine.high %v3980_v9, %v3980_v9 }
 0x2bf   : > { %v823_v7 = vpop.permute.xlu1 %822  ;;  %v767_v8 = vmul.f32 %v759_v0, %v703_v24  ;;  %v1110_v24 = vld [vmem:[#allocation6 + $0x4] sm:$0xf]  ;;  %v1287_v60 = vcombine.high %v1277_v18, %v1277_v18 }
 0x2c0   : > { %940 = vst.msk [vmem:[#allocation6 + $0x18] sm:$0xf] %vm933_vm8, %v4355_v43  ;;  %v922_v19 = vmul.f32 %v906_v21, %v823_v7  ;;  %v1254_v15 = vrot.slane %v1240_v16, %v4235_v20 }
 0x2c1   : > { %2021 = vbcast.lane.b32.xlu1 %v2019_v1, 256  ;;  %v1109_v1 = vld [vmem:[#allocation6] sm:$0xf]  ;;  %v1304_v18 = vrot.slane %v1287_v60, %v4004_v48 }
 0x2c2   : > { %v4364_v42 = vadd.f32 %v922_v19, %v767_v8  ;;  %v1123_v54 = vpop.permute.xlu0 %1122  ;;  %v1300_v8 = vrot.slane %v1285_v22, %v4004_v48  ;;  %v1270_v22 = vrot.slane %v1254_v15, %v4235_v20 }
 0x2c3   : > { %v1130_v3 = vpop.permute.xlu1 %1129  ;;  %v1173_v6 = vmul.f32 %v1123_v54, %v1109_v1 }
 0x2c4   : > { %941 = vst.msk [vmem:[#allocation6 + $0x1c] sm:$0xf] %vm933_vm8, %v4364_v42  ;;  %v1174_v30 = vmul.f32 %v1130_v3, %v1110_v24  ;;  %v2174_v24 = vrot.slane %v4197_v26, %v4004_v48 }
 0x2c5   : > { %1776 = vbcast.lane.b32.xlu1 %v1774_v55, 256  ;;  %v1111_v55 = vld [vmem:[#allocation6 + $0x8] sm:$0xf] }
 0x2c6   : > { %v1187_v21 = vpop.permute.xlu0 %1186 }
 0x2c7   : > { %v1194_v0 = vpop.permute.xlu1 %1193  ;;  %v1329_v7 = vmul.f32 %v1292_v38, %v1187_v21  ;;  %v1256_v38 = vcombine.high %v1254_v15, %v1254_v15  ;;  %v1308_v15 = vrot.slane %v1270_v22, %v4004_v48 }
 0x2c8   : > { %v1330_v19 = vmul.f32 %v1296_v39, %v1194_v0  ;;  %v1113_v0 = vld [vmem:[#allocation6 + $0x10] sm:$0xf] }
 0x2c9   : > { %2028 = vbcast.lane.b32.xlu1 %v2026_v5, 256  ;;  %v4380_v9 = vadd.f32 %v1329_v7, %v1173_v6  ;;  %v1112_v5 = vld [vmem:[#allocation6 + $0xc] sm:$0xf]  ;;  %v1284_v60 = vrot.slane %v1256_v38, %v4235_v20 }
 0x2ca   : > { %v1137_v44 = vpop.permute.xlu0 %1136  ;;  %v4382_v14 = vadd.f32 %v1330_v19, %v1174_v30 }
 0x2cb   : > { %v1201_v54 = vpop.permute.xlu1 %1200  ;;  %v1175_v1 = vmul.f32 %v1137_v44, %v1111_v55  ;;  %1347 = vst.msk [vmem:[#allocation6] sm:$0xf] %vm933_vm8, %v4380_v9  ;;  %v1312_v19 = vrot.slane %v1284_v60, %v4004_v48 }
 0x2cc   : > { %v1331_v3 = vmul.f32 %v1300_v8, %v1201_v54  ;;  %1348 = vst.msk [vmem:[#allocation6 + $0x4] sm:$0xf] %vm933_vm8, %v4382_v14  ;;  %v1286_v54 = vcombine.high %v1270_v22, %v1270_v22 }
 0x2cd   : > { %1971 = vbcast.lane.b32.xlu1 %v1969_v63, 256 }
 0x2ce   : > { %v1144_v39 = vpop.permute.xlu0 %1143  ;;  %v4393_v16 = vadd.f32 %v1331_v3, %v1175_v1 }
 0x2cf   : > { %v1208_v44 = vpop.permute.xlu1 %1207  ;;  %v1176_v21 = vmul.f32 %v1144_v39, %v1112_v5 }
 0x2d0   : > { %v1332_v6 = vmul.f32 %v1304_v18, %v1208_v44  ;;  %1349 = vst.msk [vmem:[#allocation6 + $0x8] sm:$0xf] %vm933_vm8, %v4393_v16  ;;  %v1114_v18 = vld [vmem:[#allocation6 + $0x14] sm:$0xf]  ;;  %v1316_v44 = vrot.slane %v1286_v54, %v4004_v48 }
 0x2d1   : > { %2176 = vbcast.lane.b32.xlu1 %v2174_v24, 256  ;;  %v1115_v24 = vld [vmem:[#allocation6 + $0x18] sm:$0xf] }
 0x2d2   : > { %v1151_v63 = vpop.permute.xlu0 %1150  ;;  %v4401_v7 = vadd.f32 %v1332_v6, %v1176_v21  ;;  %v1288_v21 = vcombine.high %v1284_v60, %v1284_v60 }
 0x2d3   : > { %v1215_v8 = vpop.permute.xlu1 %1214  ;;  %v1177_v30 = vmul.f32 %v1151_v63, %v1113_v0 }
 0x2d4   : > { %v1333_v55 = vmul.f32 %v1308_v15, %v1215_v8  ;;  %1350 = vst.msk [vmem:[#allocation6 + $0xc] sm:$0xf] %vm933_vm8, %v4401_v7  ;;  %v1320_v8 = vrot.slane %v1288_v21, %v4004_v48 }
 0x2d6   : > { %v1222_v1 = vpop.permute.xlu0 %1221  ;;  %v4406_v38 = vadd.f32 %v1333_v55, %v1177_v30  ;;  %v4416_v30 = vld [vmem:[#allocation2 + $0x10] sm:$0xff] }
 0x2d7   : > { %v1158_v3 = vpop.permute.xlu1 %1157  ;;  %v1334_v5 = vmul.f32 %v1312_v19, %v1222_v1  ;;  %v1116_v19 = vld [vmem:[#allocation6 + $0x1c] sm:$0xf] }
 0x2d8   : > { %v1178_v39 = vmul.f32 %v1158_v3, %v1114_v18  ;;  %1351 = vst.msk [vmem:[#allocation6 + $0x10] sm:$0xf] %vm933_vm8, %v4406_v38  ;;  %v1654_v18 = vrot.slane %v4416_v30, %v4235_v20 }
 0x2da   : > { %v1165_v6 = vpop.permute.xlu0 %1164  ;;  %v4411_v15 = vadd.f32 %v1334_v5, %v1178_v39 }
 0x2db   : > { %v1229_v22 = vpop.permute.xlu1 %1228  ;;  %v1179_v0 = vmul.f32 %v1165_v6, %v1115_v24  ;;  %v1662_v6 = vcombine.high %v1654_v18, %v1654_v18 }
 0x2dc   : > { %v1335_v63 = vmul.f32 %v1316_v44, %v1229_v22  ;;  %1352 = vst.msk [vmem:[#allocation6 + $0x14] sm:$0xf] %vm933_vm8, %v4411_v15 }
 0x2de   : > { %v1172_v55 = vpop.permute.xlu0 %1171  ;;  %v4418_v60 = vadd.f32 %v1335_v63, %v1179_v0 }
 0x2df   : > { %v1236_v54 = vpop.permute.xlu1 %1235  ;;  %v1180_v1 = vmul.f32 %v1172_v55, %v1116_v19 }
 0x2e0   : > { %v1336_v3 = vmul.f32 %v1320_v8, %v1236_v54  ;;  %1353 = vst.msk [vmem:[#allocation6 + $0x18] sm:$0xf] %vm933_vm8, %v4418_v60 }
 0x2e2   : > { %v950_v5 = vpop.permute.xlu0 %949  ;;  %v4424_v39 = vadd.f32 %v1336_v3, %v1180_v1 }
 0x2e3   : > { %v957_v44 = vpop.permute.xlu1 %956  ;;  %v1000_v21 = vmul.f32 %v950_v5, %v4298_v27  ;;  %v4435_v27 = vrot.slane %v1662_v6, %v4235_v20 }
 0x2e4   : > { %v1001_v24 = vmul.f32 %v957_v44, %v4311_v59  ;;  %1354 = vst.msk [vmem:[#allocation6 + $0x1c] sm:$0xf] %vm933_vm8, %v4424_v39 }
 0x2e5   : > { %v1008_v22 = vsel %vm933_vm8, %v1000_v21, 0.0  ;;  %v1703_v6 = vrot.slane %v4435_v27, %v4004_v48 }
 0x2e6   : > { %v1015_v0 = vsel %vm933_vm8, %v1001_v24, 0.0  ;;  %v1009_v63 = vrot.slane %v1008_v22, 4  ;;  %v964_v8 = vpop.permute.xlu0 %963 }
 0x2e7   : > { %v1016_v19 = vrot.slane %v1015_v0, 4  ;;  %v971_v55 = vpop.permute.xlu1 %970  ;;  %v1002_v54 = vmul.f32 %v964_v8, %v4320_v41 }
 0x2e8   : > { %v1010_v1 = vadd.f32 %v1009_v63, %v1008_v22  ;;  %v1003_v3 = vmul.f32 %v971_v55, %v4329_v40  ;;  %v4445_v55 = vrot.slane %v1654_v18, %v4235_v20 }
 0x2e9   : > { %v1017_v59 = vadd.f32 %v1016_v19, %v1015_v0  ;;  %v1022_v5 = vsel %vm933_vm8, %v1002_v54, 0.0 }
 0x2ea   : > { %v1011_v44 = vrot.slane %v1010_v1, 2  ;;  %v1029_v21 = vsel %vm933_vm8, %v1003_v3, 0.0  ;;  %v1023_v36 = vrot.slane %v1022_v5, 4  ;;  %v1370_v24 = vpop.permute.xlu0 %1369  ;;  %v1692_v49 = vcombine.high %v4445_v55, %v4445_v55 }
 0x2eb   : > { %v1018_v13 = vrot.slane %v1017_v59, 2  ;;  %v1030_v56 = vrot.slane %v1029_v21, 4  ;;  %v978_v12 = vpop.permute.xlu1 %977  ;;  %v1414_v41 = vmul.f32 %v1370_v24, %v4382_v14 }
 0x2ec   : > { %v1012_v22 = vadd.f32 %v1011_v44, %v1010_v1  ;;  %v1024_v63 = vadd.f32 %v1023_v36, %v1022_v5  ;;  %v1004_v40 = vmul.f32 %v978_v12, %v4337_v32 }
 0x2ed   : > { %v1019_v0 = vadd.f32 %v1018_v13, %v1017_v59  ;;  %v1031_v8 = vadd.f32 %v1030_v56, %v1029_v21  ;;  %v1428_v19 = vsel %vm933_vm8, %v1414_v41, 0.0 }
 0x2ee   : > { %v1013_v54 = vrot.slane %v1012_v22, 1  ;;  %v1025_v3 = vrot.slane %v1024_v63, 2  ;;  %v1036_v14 = vsel %vm933_vm8, %v1004_v40, 0.0  ;;  %v1429_v1 = vrot.slane %v1428_v19, 4  ;;  %v1377_v36 = vpop.permute.xlu0 %1376 }
 0x2ef   : > { %v1020_v5 = vrot.slane %v1019_v0, 1  ;;  %v1032_v12 = vrot.slane %v1031_v8, 2  ;;  %v1037_v32 = vrot.slane %v1036_v14, 4  ;;  %v985_v44 = vpop.permute.xlu1 %984  ;;  %v1415_v13 = vmul.f32 %v1377_v36, %v4393_v16 }
 0x2f0   : > { %v1014_v56 = vadd.f32 %v1013_v54, %v1012_v22  ;;  %v1026_v59 = vadd.f32 %v1025_v3, %v1024_v63  ;;  %v1430_v21 = vadd.f32 %v1429_v1, %v1428_v19  ;;  %v1005_v24 = vmul.f32 %v985_v44, %v4347_v62 }
 0x2f1   : > { %v1021_v18 = vadd.f32 %v1020_v5, %v1019_v0  ;;  %v1033_v41 = vadd.f32 %v1032_v12, %v1031_v8  ;;  %v1038_v11 = vadd.f32 %v1037_v32, %v1036_v14  ;;  %v1435_v51 = vsel %vm933_vm8, %v1415_v13, 0.0 }
 0x2f2   : > { %v1064_v53 = vmul.f32 0.25, %v1014_v56  ;;  %v1027_v40 = vrot.slane %v1026_v59, 1  ;;  %v1043_v52 = vsel %vm933_vm8, %v1005_v24, 0.0  ;;  %v1384_v50 = vpop.permute.xlu0 %1383  ;;  %v1431_v0 = vrot.slane %v1430_v21, 2 }
 0x2f3   : > { %v1065_v16 = vmul.f32 0.25, %v1021_v18  ;;  %v1034_v22 = vrot.slane %v1033_v41, 1  ;;  %v1039_v63 = vrot.slane %v1038_v11, 2  ;;  %v1044_v19 = vrot.slane %v1043_v52, 4  ;;  %v992_v54 = vpop.permute.xlu1 %991 }
 0x2f4   : > { %v1028_v62 = vadd.f32 %v1027_v40, %v1026_v59  ;;  %v1436_v8 = vrot.slane %v1435_v51, 4  ;;  %v1006_v3 = vmul.f32 %v992_v54, %v4355_v43  ;;  %v1647_v56 = vcombine.high %v4416_v30, %v4416_v30 }
 0x2f5   : > { %v1081_v14 = vsel %vm1080_vm9, %v1065_v16, %v1064_v53  ;;  %v1035_v1 = vadd.f32 %v1034_v22, %v1033_v41  ;;  %v1040_v36 = vadd.f32 %v1039_v63, %v1038_v11  ;;  %v1045_v5 = vadd.f32 %v1044_v19, %v1043_v52 }
 0x2f6   : > { %v1066_v12 = vmul.f32 0.25, %v1028_v62  ;;  %v1437_v32 = vadd.f32 %v1436_v8, %v1435_v51  ;;  %v1050_v44 = vsel %vm933_vm8, %v1006_v3, 0.0  ;;  %v1391_v13 = vpop.permute.xlu0 %1390  ;;  %v1432_v53 = vadd.f32 %v1431_v0, %v1430_v21 }
 0x2f7   : > { %v1067_v24 = vmul.f32 0.25, %v1035_v1  ;;  %v1041_v59 = vrot.slane %v1040_v36, 1  ;;  %v1046_v18 = vrot.slane %v1045_v5, 2  ;;  %v1051_v40 = vrot.slane %v1050_v44, 4  ;;  %v1363_v47 = vpop.permute.xlu1 %1362 }
 0x2f8   : > { %v1083_v43 = vsel %vm1082_vm10, %v1066_v12, %v1081_v14  ;;  %v1416_v11 = vmul.f32 %v1384_v50, %v4401_v7  ;;  %v1694_v52 = vcombine.high %v4435_v27, %v4435_v27  ;;  %v1438_v63 = vrot.slane %v1437_v32, 2 }
 0x2f9   : > { %v1042_v51 = vadd.f32 %v1041_v59, %v1040_v36  ;;  %v1085_v41 = vsel %vm1084_vm11, %v1067_v24, %v1083_v43  ;;  %v1047_v16 = vadd.f32 %v1046_v18, %v1045_v5  ;;  %v1052_v22 = vadd.f32 %v1051_v40, %v1050_v44 }
 0x2fa   : > { %v1442_v30 = vsel %vm933_vm8, %v1416_v11, 0.0  ;;  %v1417_v19 = vmul.f32 %v1391_v13, %v4406_v38  ;;  %v1398_v54 = vpop.permute.xlu0 %1397  ;;  %v4467_v62 = vrot.slane %v1647_v56, %v4235_v20  ;;  %v1433_v3 = vrot.slane %v1432_v53, 1 }
 0x2fb   : > { %v1068_v21 = vmul.f32 0.25, %v1042_v51  ;;  %v1048_v50 = vrot.slane %v1047_v16, 1  ;;  %v1053_v7 = vrot.slane %v1052_v22, 2  ;;  %v1443_v0 = vrot.slane %v1442_v30, 4  ;;  %v999_v8 = vpop.permute.xlu1 %998 }
 0x2fc   : > { %v1449_v14 = vsel %vm933_vm8, %v1417_v19, 0.0  ;;  %v1413_v1 = vmul.f32 %v1363_v47, %v4380_v9  ;;  %v1418_v36 = vmul.f32 %v1398_v54, %v4411_v15  ;;  %v1439_v13 = vadd.f32 %v1438_v63, %v1437_v32 }
 0x2fd   : > { %v1087_v5 = vsel %vm1086_vm12, %v1068_v21, %v1085_v41  ;;  %v1049_v12 = vadd.f32 %v1048_v50, %v1047_v16  ;;  %v1054_v38 = vadd.f32 %v1053_v7, %v1052_v22  ;;  %v1444_v44 = vadd.f32 %v1443_v0, %v1442_v30 }
 0x2fe   : > { %v1450_v56 = vrot.slane %v1449_v14, 4  ;;  %v1421_v24 = vsel %vm933_vm8, %v1413_v1, 0.0  ;;  %v1456_v59 = vsel %vm933_vm8, %v1418_v36, 0.0  ;;  %v1405_v51 = vpop.permute.xlu0 %1404  ;;  %v1434_v47 = vadd.f32 %v1433_v3, %v1432_v53 }
 0x2ff   : > { %v1069_v18 = vmul.f32 0.25, %v1049_v12  ;;  %v1055_v40 = vrot.slane %v1054_v38, 1  ;;  %v1445_v43 = vrot.slane %v1444_v44, 2  ;;  %v1422_v11 = vrot.slane %v1421_v24, 4  ;;  %v1412_v19 = vpop.permute.xlu1 %1411 }
 0x300   : > { %v1451_v9 = vadd.f32 %v1450_v56, %v1449_v14  ;;  %v1457_v15 = vrot.slane %v1456_v59, 4  ;;  %v1007_v41 = vmul.f32 %v999_v8, %v4364_v42  ;;  %v1419_v50 = vmul.f32 %v1405_v51, %v4418_v60 }
 0x301   : > { %v1089_v16 = vsel %vm1088_vm13, %v1069_v18, %v1087_v5  ;;  %v1056_v22 = vadd.f32 %v1055_v40, %v1054_v38  ;;  %v1446_v32 = vadd.f32 %v1445_v43, %v1444_v44  ;;  %v1423_v63 = vadd.f32 %v1422_v11, %v1421_v24 }
 0x302   : > { %v1452_v30 = vrot.slane %v1451_v9, 2  ;;  %v1458_v54 = vadd.f32 %v1457_v15, %v1456_v59  ;;  %v1057_v21 = vsel %vm933_vm8, %v1007_v41, 0.0  ;;  %v1440_v7 = vrot.slane %v1439_v13, 1 }
 0x303   : > { %v1070_v0 = vmul.f32 0.25, %v1056_v22  ;;  %v1424_v1 = vrot.slane %v1423_v63, 2  ;;  %v1058_v36 = vrot.slane %v1057_v21, 4  ;;  %v4479_v53 = vpop.permute.xlu1 %2521  ;;  %v1463_v42 = vsel %vm933_vm8, %v1419_v50, 0.0 }
 0x304   : > { %v1453_v3 = vadd.f32 %v1452_v30, %v1451_v9  ;;  %v1459_v14 = vrot.slane %v1458_v54, 2  ;;  %v1420_v8 = vmul.f32 %v1412_v19, %v4424_v39  ;;  %v1447_v12 = vrot.slane %v1446_v32, 1 }
 0x305   : > { %v1091_v5 = vsel %vm1090_vm14, %v1070_v0, %v1089_v16  ;;  %v1425_v38 = vadd.f32 %v1424_v1, %v1423_v63  ;;  %v1059_v44 = vadd.f32 %v1058_v36, %v1057_v21  ;;  %v1464_v60 = vrot.slane %v1463_v42, 4  ;;  %v1517_v1 = vld [vmem:[#allocation6 + $0x4] sm:$0xf] }
 0x306   : > { %v1454_v56 = vrot.slane %v1453_v3, 1  ;;  %v1460_v24 = vadd.f32 %v1459_v14, %v1458_v54  ;;  %v1470_v59 = vsel %vm933_vm8, %v1420_v8, 0.0  ;;  %v1707_v39 = vrot.slane %v1692_v49, %v4004_v48 }
 0x307   : > { %v1426_v18 = vrot.slane %v1425_v38, 1  ;;  %v1060_v40 = vrot.slane %v1059_v44, 2  ;;  %v1471_v43 = vrot.slane %v1470_v59, 4  ;;  %v1537_v11 = vpop.permute.xlu1 %1536  ;;  %v1441_v51 = vadd.f32 %v1440_v7, %v1439_v13 }
 0x308   : > { %v1461_v19 = vrot.slane %v1460_v24, 1  ;;  %v1465_v9 = vadd.f32 %v1464_v60, %v1463_v42  ;;  %v1711_v15 = vrot.slane %v1694_v52, %v4004_v48  ;;  %v1448_v41 = vadd.f32 %v1447_v12, %v1446_v32 }
 0x309   : > { %v1427_v16 = vadd.f32 %v1426_v18, %v1425_v38  ;;  %v1061_v22 = vadd.f32 %v1060_v40, %v1059_v44  ;;  %v1472_v63 = vadd.f32 %v1471_v43, %v1470_v59  ;;  %v1478_v30 = vmul.f32 0.25, %v1434_v47 }
 0x30a   : > { %v1455_v54 = vadd.f32 %v1454_v56, %v1453_v3  ;;  %v1466_v21 = vrot.slane %v1465_v9, 2  ;;  %v1677_v50 = vrot.slane %v4467_v62, %v4235_v20  ;;  %v1462_v49 = vadd.f32 %v1461_v19, %v1460_v24 }
 0x30b   : > { %v1477_v0 = vmul.f32 0.25, %v1427_v16  ;;  %v1062_v13 = vrot.slane %v1061_v22, 1  ;;  %v1473_v7 = vrot.slane %v1472_v63, 2  ;;  %v1601_v36 = vpop.permute.xlu1 %1600  ;;  %v1479_v14 = vmul.f32 0.25, %v1441_v51 }
 0x30c   : > { %v1467_v42 = vadd.f32 %v1466_v21, %v1465_v9  ;;  %v1581_v8 = vmul.f32 %v1537_v11, %v1517_v1  ;;  %v1737_v52 = vmul.f32 %v1703_v6, %v1601_v36  ;;  %v1480_v32 = vmul.f32 0.25, %v1448_v41  ;;  %v4523_v1 = vld [vmem:[#allocation2 + $0x18] sm:$0xff] }
 0x30d   : > { %v1493_v47 = vsel %vm1080_vm9, %v1478_v30, %v1477_v0  ;;  %v1063_v3 = vadd.f32 %v1062_v13, %v1061_v22  ;;  %v1474_v12 = vadd.f32 %v1473_v7, %v1472_v63  ;;  %v1481_v38 = vmul.f32 0.25, %v1455_v54 }
 0x30e   : > { %v1494_v44 = vsel %vm1082_vm10, %v1479_v14, %v1493_v47  ;;  %v1468_v56 = vrot.slane %v1467_v42, 1  ;;  %v4500_v24 = vadd.f32 %v1737_v52, %v1581_v8  ;;  %v1482_v60 = vmul.f32 0.25, %v1462_v49 }
 0x30f   : > { %v1495_v59 = vsel %vm1084_vm11, %v1480_v32, %v1494_v44  ;;  %v1071_v18 = vmul.f32 0.25, %v1063_v3  ;;  %v1475_v40 = vrot.slane %v1474_v12, 1  ;;  %v1608_v43 = vpop.permute.xlu1 %1607  ;;  %v1663_v51 = vcombine.high %v4467_v62, %v4467_v62 }
 0x310   : > { %v1496_v27 = vsel %vm1086_vm12, %v1481_v38, %v1495_v59  ;;  %v1469_v6 = vadd.f32 %v1468_v56, %v1467_v42  ;;  %1755 = vst.msk [vmem:[#allocation6 + $0x4] sm:$0xf] %vm933_vm8, %v4500_v24  ;;  %v4506_v11 = vmul.f32 %v1707_v39, %v1608_v43  ;;  %v1715_v39 = vrot.slane %v1677_v50, %v4004_v48 }
 0x311   : > { %v1093_v19 = vsel %vm1092_vm15, %v1071_v18, %v1091_v5  ;;  %v1476_v9 = vadd.f32 %v1475_v40, %v1474_v12  ;;  %v1497_v16 = vsel %vm1088_vm13, %v1482_v60, %v1496_v27  ;;  %v1691_v21 = vrot.slane %v1663_v51, %v4235_v20 }
 0x312   : > { %1095 = vst.msk [vmem:[#allocation4] sm:$0xff] %vm454_vm3, %v1093_v19  ;;  %v1483_v41 = vmul.f32 0.25, %v1469_v6  ;;  %v1693_v13 = vcombine.high %v1677_v50, %v1677_v50  ;;  %v4531_v8 = vrot.slane %v4523_v1, %v4235_v20 }
 0x313   : > { %v1484_v22 = vmul.f32 0.25, %v1476_v9  ;;  %v1615_v63 = vpop.permute.xlu1 %1614  ;;  %v1719_v49 = vrot.slane %v1691_v21, %v4004_v48  ;;  %v1695_v42 = vcombine.high %v1691_v21, %v1691_v21  ;;  %v4570_v9 = vld [vmem:[%s5083_s23] ss:$0 sm:$0xff]  ;;  %s3709_s23 = smov 96  }
 0x314   : > { %v1498_v30 = vsel %vm1090_vm14, %v1483_v41, %v1497_v16  ;;  %v4514_v54 = vmul.f32 %v1711_v15, %v1615_v63  ;;  %v1723_v14 = vrot.slane %v1693_v13, %v4004_v48  ;;  %v2069_v3 = vcombine.high %v4531_v8, %v4531_v8 }
 0x315   : > { %v1499_v62 = vsel %vm1092_vm15, %v1484_v22, %v1498_v30  ;;  %v1727_v47 = vrot.slane %v1695_v42, %v4004_v48  ;;  %v1591_v13 = vrot.slane %v4066_v31, %v4004_v48  ;;  %v5087_v31 = vrot.slane %v4058_v28, %v4061_v29 }
 0x316   : > { %1502 = vst.msk [vmem:[#allocation4 + $0x8] sm:$0xff] %vm454_vm3, %v1499_v62  ;;  %v5088_v42 = vrot.slane %v4058_v28, %v4071_v33 }
 0x317   : > { %v1622_v5 = vpop.permute.xlu1 %1621  ;;  %v1924_v56 = vld [vmem:[#allocation6 + $0x4] sm:$0xf] }
 0x318   : > { %v4520_v0 = vmul.f32 %v1715_v39, %v1622_v5 }
 0x319   : > { %v2317_v7 = vld [vmem:[#allocation4] sm:$0xff] }
 0x31a   : > { %3205 = vmatprep.mubr.msk.f32.mxu1 %vm454_vm3, %v2317_v7  ;;  %v5084_v7 = vrot.slane %v4058_v28, %v4032_v10 }
 0x31b   : > { %v1629_v15 = vpop.permute.xlu1 %1628 }
 0x31c   : > { %v4526_v36 = vmul.f32 %v1719_v49, %v1629_v15  ;;  %v1527_v49 = vrot.slane %v4058_v28, %v4004_v48  ;;  %v5085_v15 = vrot.slane %v4058_v28, %v4042_v17 }
 0x31d   : > { %v2318_v52 = vld [vmem:[#allocation4 + $0x8] sm:$0xff] }
 0x31e   : > { %3206 = vmatmul.mubr.msk.f32.vlgmr.msra.gmra.mxu1 %vm454_vm3, %v2318_v52  ;;  %v1998_v52 = vrot.slane %v4116_v61, %v4004_v48 }
 0x31f   : > { %v1636_v32 = vpop.permute.xlu1 %1635  ;;  %3223 = vmatpush3.msra.mxu1 %v4249_v46  ;;  %v4547_v46 = vrot.slane %v2069_v3, %v4235_v20  ;;  %v5091_v3 = vrot.slane %v4111_v58, %v4042_v17 }
 0x320   : > { %v4535_v50 = vmul.f32 %v1723_v14, %v1636_v32  ;;  %3224 = vmatprep.subr.mxu1 %v3706_v4  ;;  %v5086_v14 = vrot.slane %v4058_v28, %v4051_v23  ;;  %v5089_v32 = vrot.slane %v4111_v58, %v4021_v2  ;;  %v1767_v28 = vrot.slane %v4167_v45, %v4004_v48 }
 0x321   : > { %3225 = vmatpush3.msra.mxu1 %v4254_v34  ;;  %v2110_v34 = vrot.slane %v4547_v46, %v4004_v48 }
 0x322   : > { %3226 = vmatprep.subr.mxu1 %v3706_v4 }
 0x323   : > { %v1643_v12 = vpop.permute.xlu1 %1642  ;;  %3227 = vmatpush3.msra.mxu1 %v4263_v37 }
 0x324   : > { %v4544_v38 = vmul.f32 %v1727_v47, %v1643_v12  ;;  %3228 = vmatprep.subr.mxu1 %v3706_v4  ;;  %v5090_v47 = vrot.slane %v4111_v58, %v4032_v10  ;;  %v5092_v12 = vrot.slane %v4167_v45, %v4021_v2 }
 0x325   : > { %3229 = vmatpush3.msra.mxu1 %v4273_v25 }
 0x326   : > { %3244 = vmatprep.subr.mxu1 %v3706_v4 }
 0x327   : > { %v1944_v44 = vpop.permute.xlu1 %1943 }
 0x328   : > { %v1988_v59 = vmul.f32 %v1944_v44, %v1924_v56  ;;  %v5093_v44 = vrot.slane %v4116_v61, %v4051_v23  ;;  %v5095_v56 = vrot.slane %v4111_v58, %v4061_v29 }
 0x32b   : > { %v2008_v60 = vpop.permute.xlu1 %2007 }
 0x32c   : > { %v2144_v18 = vmul.f32 %v2110_v34, %v2008_v60  ;;  %v5094_v34 = vrot.slane %v4197_v26, %v4013_v57  ;;  %v5096_v60 = vrot.slane %v4197_v26, %v4021_v2  ;;  %v5099_v57 = vrot.slane %v4197_v26, %v4042_v17 }
 0x32d   : > { %v5101_v2 = vrot.slane %v4197_v26, %v4061_v29 }
 0x32e   : > { %v4554_v37 = vadd.f32 %v2144_v18, %v1988_v59  ;;  %v5097_v59 = vrot.slane %v4111_v58, %v4071_v33  ;;  %v5098_v18 = vrot.slane %v4197_v26, %v4032_v10 }
 0x32f   : > { %v4556_v40 = vpop.permute.xlu1 %2014 }
 0x330   : > { %2162 = vst.msk [vmem:[#allocation6 + $0x4] sm:$0xf] %vm933_vm8, %v4554_v37 }
 0x333   : > { %v4560_v43 = vpop.permute.xlu1 %2021 }
 0x337   : > { %v1777_v25 = vpop.permute.xlu1 %1776 }
 0x338   : > { %v4563_v27 = vmul.f32 %v1777_v25, %v4500_v24  ;;  %v5100_v25 = vrot.slane %v4197_v26, %v4051_v23 }
 0x35d   : > { %v2508_v6 = vpop.f32.mrf.mxu0 }
 0x35f   : > { %v3221_v51 = vpop.f32.mrf.mxu0 }
 0x3de   : > { %v4565_v19 = vpop.f32.mrf.mxu1 }
 0x3e0   : > { %v2408_v41 = vpop.f32.mrf.mxu1 }
 0x3e1   : > { %v2409_v16 = vadd.f32 %v4570_v9, %v2408_v41 }
 0x3e3   : > { %v2512_v22 = vadd.f32 %v2508_v6, %v2409_v16  ;;  %v1699_v16 = vrot.slane %v4445_v55, %v4004_v48 }
 0x3e5   : > { %3425 = vtanh.f32 %v2512_v22  ;;  %v3124_v30 = vmul.f32 -1.442695, %v2512_v22  ;;  %v1516_v22 = vld [vmem:[#allocation6] sm:$0xf] }
 0x3e7   : > { %3427 = vpow2.f32 %v3124_v30 }
 0x3f2   : > { %v3426_v63 = vpop.eup %3425 }
 0x3f3   : > { %2526 = vrot.lane.b32.xlu0 %v3426_v63, %s3705_s12 }
 0x3f4   : > { %v3428_v24 = vpop.eup %3427 }
 0x3f5   : > { %v2516_v39 = vadd.f32 1.0, %v3428_v24 }
 0x3f7   : > { %3429 = vrcp.f32 %v2516_v39 }
 0x404   : > { %v4574_v21 = vpop.eup %3429 }
 0x465   : > { %v2527_v62 = vpop.permute.xlu0 %2526 }
 0x466   : > { %v2529_v5 = vmul.f32 %v4574_v21, %v2527_v62  ;;  %v1518_v62 = vld [vmem:[#allocation6 + $0x8] sm:$0xf] }
 0x468   : > { %2531 = vrot.lane.b32.xlu0 %v2529_v5, %s3705_s12 }
 0x46c   : > { %1529 = vbcast.lane.b32.xlu0 %v1527_v49, 256 }
 0x470   : > { %1593 = vbcast.lane.b32.xlu0 %v1591_v13, 256 }
 0x474   : > { %1543 = vbcast.lane.b32.xlu0 %v1541_v35, 256  ;;  %v1934_v35 = vrot.slane %v4111_v58, %v4004_v48  ;;  %v2524_v58 = vmul.f32 %v4574_v21, %v4479_v53 }
 0x478   : > { %1550 = vbcast.lane.b32.xlu0 %v5084_v7, 256  ;;  %v1519_v7 = vld [vmem:[#allocation6 + $0xc] sm:$0xf] }
 0x47c   : > { %1557 = vbcast.lane.b32.xlu0 %v5085_v15, 256 }
 0x480   : > { %1564 = vbcast.lane.b32.xlu0 %v5086_v14, 256 }
 0x484   : > { %1571 = vbcast.lane.b32.xlu0 %v5087_v31, 256  ;;  %v1520_v31 = vld [vmem:[#allocation6 + $0x10] sm:$0xf] }
 0x488   : > { %1578 = vbcast.lane.b32.xlu0 %v5088_v42, 256 }
 0x48c   : > { %1936 = vbcast.lane.b32.xlu0 %v1934_v35, 256 }
 0x490   : > { %2000 = vbcast.lane.b32.xlu0 %v1998_v52, 256 }
 0x494   : > { %1950 = vbcast.lane.b32.xlu0 %v5089_v32, 256  ;;  %v1521_v32 = vld [vmem:[#allocation6 + $0x14] sm:$0xf] }
 0x498   : > { %1957 = vbcast.lane.b32.xlu0 %v5090_v47, 256 }
 0x49c   : > { %1769 = vbcast.lane.b32.xlu0 %v1767_v28, 256  ;;  %v5103_v28 = vrot.slane %v4116_v61, %v4061_v29 }
 0x4a0   : > { %1964 = vbcast.lane.b32.xlu0 %v5091_v3, 256 }
 0x4a4   : > { %1783 = vbcast.lane.b32.xlu0 %v5092_v12, 256  ;;  %v1522_v12 = vld [vmem:[#allocation6 + $0x18] sm:$0xf] }
 0x4a8   : > { %2035 = vbcast.lane.b32.xlu0 %v5093_v44, 256 }
 0x4ac   : > { %2183 = vbcast.lane.b32.xlu0 %v5094_v34, 256 }
 0x4b0   : > { %1978 = vbcast.lane.b32.xlu0 %v5095_v56, 256  ;;  %v2077_v56 = vrot.slane %v4531_v8, %v4235_v20  ;;  %v5106_v8 = vrot.slane %v4167_v45, %v4051_v23  ;;  %v5107_v23 = vrot.slane %v4167_v45, %v4061_v29 }
 0x4b4   : > { %2190 = vbcast.lane.b32.xlu0 %v5096_v60, 256  ;;  %v1523_v60 = vld [vmem:[#allocation6 + $0x1c] sm:$0xf] }
 0x4b8   : > { %1985 = vbcast.lane.b32.xlu0 %v5097_v59, 256 }
 0x4bc   : > { %2197 = vbcast.lane.b32.xlu0 %v5098_v18, 256  ;;  %v5105_v18 = vrot.slane %v4116_v61, %v4071_v33  ;;  %v2101_v61 = vcombine.high %v4547_v46, %v4547_v46 }
 0x4c0   : > { %2204 = vbcast.lane.b32.xlu0 %v5099_v57, 256 }
 0x4c4   : > { %2211 = vbcast.lane.b32.xlu0 %v5100_v25, 256 }
 0x4c8   : > { %2218 = vbcast.lane.b32.xlu0 %v5101_v2, 256 }
 0x4da   : > { %v2532_v6 = vpop.permute.xlu0 %2531 }
 0x4db   : > { %v4647_v51 = vadd.f32 %v2532_v6, %v2524_v58 }
 0x4dd   : > { %3431 = vtanh.f32 %v4647_v51 }
 0x4de   : > { %v1530_v41 = vpop.permute.xlu0 %1529 }
 0x4df   : > { %v1580_v30 = vmul.f32 %v1530_v41, %v1516_v22  ;;  %v2054_v41 = vcombine.high %v4523_v1, %v4523_v1  ;;  %v5108_v1 = vrot.slane %v4167_v45, %v4071_v33 }
 0x4e2   : > { %v1594_v63 = vpop.permute.xlu0 %1593 }
 0x4e3   : > { %v1736_v24 = vmul.f32 %v1699_v16, %v1594_v63 }
 0x4e5   : > { %v4652_v39 = vadd.f32 %v1736_v24, %v1580_v30 }
 0x4e6   : > { %v1544_v5 = vpop.permute.xlu0 %1543 }
 0x4e7   : > { %1754 = vst.msk [vmem:[#allocation6] sm:$0xf] %vm933_vm8, %v4652_v39  ;;  %v1582_v53 = vmul.f32 %v1544_v5, %v1518_v62  ;;  %v2118_v5 = vrot.slane %v2101_v61, %v4004_v48 }
 0x4e9   : > { %v4657_v49 = vadd.f32 %v4506_v11, %v1582_v53  ;;  %v5102_v11 = vrot.slane %v4167_v45, %v4032_v10  ;;  %v2068_v53 = vrot.slane %v2054_v41, %v4235_v20 }
 0x4ea   : > { %v3432_v13 = vpop.eup %3431  ;;  %v1551_v15 = vpop.permute.xlu0 %1550 }
 0x4eb   : > { %1756 = vst.msk [vmem:[#allocation6 + $0x8] sm:$0xf] %vm933_vm8, %v4657_v49  ;;  %v1583_v55 = vmul.f32 %v1551_v15, %v1519_v7  ;;  %2537 = vrot.lane.b32.xlu1 %v3432_v13, %s3705_s12  ;;  %v2029_v13 = vpop.permute.xlu1 %2028 }
 0x4ed   : > { %v4663_v14 = vadd.f32 %v4514_v54, %v1583_v55 }
 0x4ee   : > { %v1558_v42 = vpop.permute.xlu0 %1557  ;;  %v1923_v58 = vld [vmem:[#allocation6] sm:$0xf] }
 0x4ef   : > { %1757 = vst.msk [vmem:[#allocation6 + $0xc] sm:$0xf] %vm933_vm8, %v4663_v14  ;;  %v1584_v35 = vmul.f32 %v1558_v42, %v1520_v31  ;;  %1790 = vbcast.lane.b32.xlu1 %v5102_v11, 256  ;;  %v2146_v31 = vmul.f32 %v2118_v5, %v4560_v43 }
 0x4f1   : > { %v4671_v52 = vadd.f32 %v4520_v0, %v1584_v35  ;;  %v5104_v0 = vrot.slane %v4167_v45, %v4042_v17  ;;  %v2099_v17 = vcombine.high %v2077_v56, %v2077_v56  ;;  %v5109_v35 = vrot.slane %v4197_v26, %v4071_v33 }
 0x4f2   : > { %v1565_v47 = vpop.permute.xlu0 %1564  ;;  %v1925_v62 = vld [vmem:[#allocation6 + $0x8] sm:$0xf] }
 0x4f3   : > { %1758 = vst.msk [vmem:[#allocation6 + $0x10] sm:$0xf] %vm933_vm8, %v4671_v52  ;;  %v1585_v54 = vmul.f32 %v1565_v47, %v1521_v32  ;;  %2042 = vbcast.lane.b32.xlu1 %v5103_v28, 256  ;;  %v2114_v2 = vrot.slane %v2099_v17, %v4004_v48  ;;  %v2070_v28 = vcombine.high %v2068_v53, %v2068_v53 }
 0x4f5   : > { %v4679_v3 = vadd.f32 %v4526_v36, %v1585_v54  ;;  %v2145_v46 = vmul.f32 %v2114_v2, %v4556_v40  ;;  %v4726_v40 = vrot.slane %v2068_v53, %v4235_v20  ;;  %v1972_v54 = vpop.permute.xlu1 %1971 }
 0x4f6   : > { %v1572_v44 = vpop.permute.xlu0 %1571  ;;  %v1926_v55 = vld [vmem:[#allocation6 + $0xc] sm:$0xf] }
 0x4f7   : > { %1759 = vst.msk [vmem:[#allocation6 + $0x14] sm:$0xf] %vm933_vm8, %v4679_v3  ;;  %v1586_v10 = vmul.f32 %v1572_v44, %v1522_v12  ;;  %1797 = vbcast.lane.b32.xlu1 %v5104_v0, 256  ;;  %v2122_v47 = vrot.slane %v4726_v40, %v4004_v48 }
 0x4f9   : > { %v4687_v34 = vadd.f32 %v4535_v50, %v1586_v10  ;;  %v2106_v50 = vrot.slane %v2077_v56, %v4004_v48  ;;  %v2147_v0 = vmul.f32 %v2122_v47, %v2029_v13 }
 0x4fa   : > { %v1579_v59 = vpop.permute.xlu0 %1578  ;;  %v1927_v44 = vld [vmem:[#allocation6 + $0x10] sm:$0xf] }
 0x4fb   : > { %1760 = vst.msk [vmem:[#allocation6 + $0x18] sm:$0xf] %vm933_vm8, %v4687_v34  ;;  %v1587_v36 = vmul.f32 %v1579_v59, %v1523_v60  ;;  %2049 = vbcast.lane.b32.xlu1 %v5105_v18, 256  ;;  %v4742_v60 = vrot.slane %v2070_v28, %v4235_v20 }
 0x4fd   : > { %v4697_v57 = vadd.f32 %v4544_v38, %v1587_v36  ;;  %v1835_v38 = vsel %vm933_vm8, %v4563_v27, 0.0  ;;  %v2177_v36 = vpop.permute.xlu1 %2176  ;;  %v2126_v2 = vrot.slane %v4742_v60, %v4004_v48 }
 0x4fe   : > { %v1937_v25 = vpop.permute.xlu0 %1936  ;;  %v1836_v30 = vrot.slane %v1835_v38, 4 }
 0x4ff   : > { %1761 = vst.msk [vmem:[#allocation6 + $0x1c] sm:$0xf] %vm933_vm8, %v4697_v57  ;;  %1804 = vbcast.lane.b32.xlu1 %v5106_v8, 256  ;;  %v1987_v16 = vmul.f32 %v1937_v25, %v1923_v58  ;;  %v1928_v58 = vld [vmem:[#allocation6 + $0x14] sm:$0xf] }
 0x500   : > { %v1837_v7 = vadd.f32 %v1836_v30, %v1835_v38 }
 0x502   : > { %v2001_v6 = vpop.permute.xlu0 %2000  ;;  %v1838_v11 = vrot.slane %v1837_v7, 2 }
 0x503   : > { %v2143_v22 = vmul.f32 %v2106_v50, %v2001_v6  ;;  %1811 = vbcast.lane.b32.xlu1 %v5107_v23, 256 }
 0x504   : > { %v1839_v26 = vadd.f32 %v1838_v11, %v1837_v7 }
 0x505   : > { %v2151_v63 = vadd.f32 %v2143_v22, %v1987_v16 }
 0x506   : > { %v1951_v24 = vpop.permute.xlu0 %1950  ;;  %v1840_v17 = vrot.slane %v1839_v26, 1 }
 0x507   : > { %2161 = vst.msk [vmem:[#allocation6] sm:$0xf] %vm933_vm8, %v2151_v63  ;;  %v1989_v27 = vmul.f32 %v1951_v24, %v1925_v62  ;;  %1818 = vbcast.lane.b32.xlu1 %v5108_v1, 256 }
 0x508   : > { %v1841_v20 = vadd.f32 %v1840_v17, %v1839_v26 }
 0x509   : > { %v4722_v29 = vadd.f32 %v2145_v46, %v1989_v27 }
 0x50a   : > { %v1958_v15 = vpop.permute.xlu0 %1957  ;;  %v1885_v46 = vmul.f32 0.25, %v1841_v20 }
 0x50b   : > { %v1990_v42 = vmul.f32 %v1958_v15, %v1926_v55  ;;  %2225 = vbcast.lane.b32.xlu1 %v5109_v35, 256  ;;  %2163 = vst.msk [vmem:[#allocation6 + $0x8] sm:$0xf] %vm933_vm8, %v4722_v29 }
 0x50d   : > { %v4733_v45 = vadd.f32 %v2146_v31, %v1990_v42 }
 0x50e   : > { %v1770_v32 = vpop.permute.xlu0 %1769 }
 0x50f   : > { %v1820_v43 = vmul.f32 %v1770_v32, %v4652_v39  ;;  %2164 = vst.msk [vmem:[#allocation6 + $0xc] sm:$0xf] %vm933_vm8, %v4733_v45  ;;  %v2227_v39 = vmul.f32 %v2177_v36, %v2151_v63  ;;  %v1992_v63 = vmul.f32 %v1972_v54, %v1928_v58 }
 0x511   : > { %v1828_v33 = vsel %vm933_vm8, %v1820_v43, 0.0  ;;  %v2235_v38 = vsel %vm933_vm8, %v2227_v39, 0.0 }
 0x512   : > { %v1829_v12 = vrot.slane %v1828_v33, 4  ;;  %v1965_v10 = vpop.permute.xlu0 %1964 }
 0x513   : > { %v1991_v56 = vmul.f32 %v1965_v10, %v1927_v44 }
 0x514   : > { %v1830_v59 = vadd.f32 %v1829_v12, %v1828_v33 }
 0x515   : > { %v2155_v18 = vadd.f32 %v2147_v0, %v1991_v56 }
 0x516   : > { %v1831_v25 = vrot.slane %v1830_v59, 2  ;;  %v1784_v8 = vpop.permute.xlu0 %1783 }
 0x517   : > { %v1822_v50 = vmul.f32 %v1784_v8, %v4657_v49  ;;  %2165 = vst.msk [vmem:[#allocation6 + $0x10] sm:$0xf] %vm933_vm8, %v2155_v18  ;;  %v2236_v49 = vrot.slane %v2235_v38, 4 }
 0x518   : > { %v1832_v61 = vadd.f32 %v1831_v25, %v1830_v59 }
 0x519   : > { %v1842_v6 = vsel %vm933_vm8, %v1822_v50, 0.0  ;;  %v2237_v15 = vadd.f32 %v2236_v49, %v2235_v38 }
 0x51a   : > { %v1833_v41 = vrot.slane %v1832_v61, 1  ;;  %v1843_v16 = vrot.slane %v1842_v6, 4  ;;  %v2036_v22 = vpop.permute.xlu0 %2035 }
 0x51b   : > { %v2148_v23 = vmul.f32 %v2126_v2, %v2036_v22  ;;  %v2238_v47 = vrot.slane %v2237_v15, 2 }
 0x51c   : > { %v1834_v30 = vadd.f32 %v1833_v41, %v1832_v61  ;;  %v1844_v24 = vadd.f32 %v1843_v16, %v1842_v6 }
 0x51d   : > { %v2156_v62 = vadd.f32 %v2148_v23, %v1992_v63  ;;  %v2239_v12 = vadd.f32 %v2238_v47, %v2237_v15 }
 0x51e   : > { %v1884_v5 = vmul.f32 0.25, %v1834_v30  ;;  %v1845_v53 = vrot.slane %v1844_v24, 2  ;;  %v2184_v27 = vpop.permute.xlu0 %2183 }
 0x51f   : > { %v2228_v1 = vmul.f32 %v2184_v27, %v4554_v37  ;;  %2166 = vst.msk [vmem:[#allocation6 + $0x14] sm:$0xf] %vm933_vm8, %v2156_v62  ;;  %v2240_v36 = vrot.slane %v2239_v12, 1 }
 0x520   : > { %v1900_v13 = vsel %vm1080_vm9, %v1885_v46, %v1884_v5  ;;  %v1846_v7 = vadd.f32 %v1845_v53, %v1844_v24 }
 0x521   : > { %v2242_v55 = vsel %vm933_vm8, %v2228_v1, 0.0 }
 0x522   : > { %v1847_v31 = vrot.slane %v1846_v7, 1  ;;  %v2243_v42 = vrot.slane %v2242_v55, 4  ;;  %v4754_v35 = vpop.permute.xlu0 %1978 }
 0x524   : > { %v1848_v11 = vadd.f32 %v1847_v31, %v1846_v7  ;;  %v2244_v32 = vadd.f32 %v2243_v42, %v2242_v55 }
 0x526   : > { %v1886_v54 = vmul.f32 0.25, %v1848_v11  ;;  %v2245_v43 = vrot.slane %v2244_v32, 2  ;;  %v2191_v28 = vpop.permute.xlu0 %2190 }
 0x527   : > { %v2229_v37 = vmul.f32 %v2191_v28, %v4722_v29  ;;  %v2241_v29 = vadd.f32 %v2240_v36, %v2239_v12 }
 0x528   : > { %v4758_v33 = vsel %vm1082_vm10, %v1886_v54, %v1900_v13  ;;  %v2246_v26 = vadd.f32 %v2245_v43, %v2244_v32 }
 0x529   : > { %v2249_v44 = vsel %vm933_vm8, %v2229_v37, 0.0  ;;  %v2291_v22 = vmul.f32 0.25, %v2241_v29 }
 0x52a   : > { %v2250_v10 = vrot.slane %v2249_v44, 4  ;;  %v4761_v0 = vpop.permute.xlu0 %1985  ;;  %v2247_v56 = vrot.slane %v2246_v26, 1 }
 0x52c   : > { %v2251_v59 = vadd.f32 %v2250_v10, %v2249_v44  ;;  %v2248_v25 = vadd.f32 %v2247_v56, %v2246_v26 }
 0x52e   : > { %v2252_v17 = vrot.slane %v2251_v59, 2  ;;  %v2198_v39 = vpop.permute.xlu0 %2197  ;;  %v2292_v20 = vmul.f32 0.25, %v2248_v25  ;;  %v1929_v25 = vld [vmem:[#allocation6 + $0x18] sm:$0xf] }
 0x52f   : > { %v2230_v8 = vmul.f32 %v2198_v39, %v4733_v45 }
 0x530   : > { %v2253_v50 = vadd.f32 %v2252_v17, %v2251_v59  ;;  %v2307_v45 = vsel %vm1080_vm9, %v2292_v20, %v2291_v22  ;;  %v2100_v59 = vcombine.high %v4726_v40, %v4726_v40 }
 0x531   : > { %v2256_v2 = vsel %vm933_vm8, %v2230_v8, 0.0 }
 0x532   : > { %v2254_v61 = vrot.slane %v2253_v50, 1  ;;  %v2257_v58 = vrot.slane %v2256_v2, 4  ;;  %v2205_v6 = vpop.permute.xlu0 %2204  ;;  %v2130_v17 = vrot.slane %v2100_v59, %v4004_v48 }
 0x533   : > { %v2231_v38 = vmul.f32 %v2205_v6, %v2155_v18 }
 0x534   : > { %v2255_v41 = vadd.f32 %v2254_v61, %v2253_v50  ;;  %v2258_v16 = vadd.f32 %v2257_v58, %v2256_v2  ;;  %v1993_v50 = vmul.f32 %v4754_v35, %v1929_v25  ;;  %v2102_v2 = vcombine.high %v4742_v60, %v4742_v60  ;;  %v1930_v35 = vld [vmem:[#allocation6 + $0x1c] sm:$0xf] }
 0x535   : > { %v2263_v23 = vsel %vm933_vm8, %v2231_v38, 0.0  ;;  %v1994_v60 = vmul.f32 %v4761_v0, %v1930_v35 }
 0x536   : > { %v2293_v63 = vmul.f32 0.25, %v2255_v41  ;;  %v2259_v30 = vrot.slane %v2258_v16, 2  ;;  %v2264_v24 = vrot.slane %v2263_v23, 4  ;;  %v2212_v49 = vpop.permute.xlu0 %2211  ;;  %v2134_v20 = vrot.slane %v2102_v2, %v4004_v48 }
 0x537   : > { %v2232_v46 = vmul.f32 %v2212_v49, %v2156_v62 }
 0x538   : > { %v2308_v5 = vsel %vm1082_vm10, %v2293_v63, %v2307_v45  ;;  %v2260_v53 = vadd.f32 %v2259_v30, %v2258_v16  ;;  %v2265_v27 = vadd.f32 %v2264_v24, %v2263_v23 }
 0x539   : > { %v2270_v1 = vsel %vm933_vm8, %v2232_v46, 0.0 }
 0x53a   : > { %v2261_v13 = vrot.slane %v2260_v53, 1  ;;  %v2266_v18 = vrot.slane %v2265_v27, 2  ;;  %v2271_v7 = vrot.slane %v2270_v1, 4  ;;  %v2219_v58 = vpop.permute.xlu0 %2218 }
 0x53c   : > { %v2262_v15 = vadd.f32 %v2261_v13, %v2260_v53  ;;  %v2267_v55 = vadd.f32 %v2266_v18, %v2265_v27  ;;  %v2272_v31 = vadd.f32 %v2271_v7, %v2270_v1 }
 0x53e   : > { %v2294_v42 = vmul.f32 0.25, %v2262_v15  ;;  %v2268_v11 = vrot.slane %v2267_v55, 1  ;;  %v2273_v32 = vrot.slane %v2272_v31, 2 }
 0x540   : > { %v2309_v47 = vsel %vm1084_vm11, %v2294_v42, %v2308_v5  ;;  %v2269_v54 = vadd.f32 %v2268_v11, %v2267_v55  ;;  %v2274_v43 = vadd.f32 %v2273_v32, %v2272_v31 }
 0x542   : > { %v2295_v62 = vmul.f32 0.25, %v2269_v54  ;;  %v2275_v28 = vrot.slane %v2274_v43, 1 }
 0x544   : > { %v2310_v37 = vsel %vm1086_vm12, %v2295_v62, %v2309_v47  ;;  %v2276_v26 = vadd.f32 %v2275_v28, %v2274_v43 }
 0x546   : > { %v2296_v12 = vmul.f32 0.25, %v2276_v26 }
 0x548   : > { %v4772_v44 = vsel %vm1088_vm13, %v2296_v12, %v2310_v37 }
 0x55d   : > { %v2538_v10 = vpop.permute.xlu1 %2537 }
 0x55e   : > { %v2540_v56 = vmul.f32 %v4574_v21, %v2538_v10 }
 0x560   : > { %2542 = vrot.lane.b32.xlu0 %v2540_v56, %s3708_s7 }
 0x561   : > { %v1791_v36 = vpop.permute.xlu1 %1790 }
 0x562   : > { %v1823_v39 = vmul.f32 %v1791_v36, %v4663_v14 }
 0x564   : > { %v1849_v21 = vsel %vm933_vm8, %v1823_v39, 0.0 }
 0x565   : > { %v2043_v8 = vpop.permute.xlu1 %2042  ;;  %v1850_v14 = vrot.slane %v1849_v21, 4 }
 0x566   : > { %v2149_v29 = vmul.f32 %v2130_v17, %v2043_v8 }
 0x567   : > { %v1851_v63 = vadd.f32 %v1850_v14, %v1849_v21 }
 0x568   : > { %v2157_v61 = vadd.f32 %v2149_v29, %v1993_v50 }
 0x569   : > { %v1798_v40 = vpop.permute.xlu1 %1797  ;;  %v1852_v48 = vrot.slane %v1851_v63, 2 }
 0x56a   : > { %2167 = vst.msk [vmem:[#allocation6 + $0x18] sm:$0xf] %vm933_vm8, %v2157_v61  ;;  %v1824_v6 = vmul.f32 %v1798_v40, %v4671_v52  ;;  %v2233_v38 = vmul.f32 %v2219_v58, %v2157_v61 }
 0x56b   : > { %v1853_v18 = vadd.f32 %v1852_v48, %v1851_v63 }
 0x56c   : > { %v1856_v41 = vsel %vm933_vm8, %v1824_v6, 0.0  ;;  %v2277_v30 = vsel %vm933_vm8, %v2233_v38, 0.0 }
 0x56d   : > { %v1857_v16 = vrot.slane %v1856_v41, 4  ;;  %v2050_v22 = vpop.permute.xlu1 %2049  ;;  %v2278_v46 = vrot.slane %v2277_v30, 4  ;;  %v1854_v47 = vrot.slane %v1853_v18, 1 }
 0x56e   : > { %v2150_v23 = vmul.f32 %v2134_v20, %v2050_v22 }
 0x56f   : > { %v1858_v24 = vadd.f32 %v1857_v16, %v1856_v41  ;;  %v2279_v13 = vadd.f32 %v2278_v46, %v2277_v30  ;;  %v1855_v59 = vadd.f32 %v1854_v47, %v1853_v18  ;;  %v3460_v18 = vld [vmem:[%s5082_s25] sm:$0xff] }
 0x570   : > { %v2158_v49 = vadd.f32 %v2150_v23, %v1994_v60 }
 0x571   : > { %v1805_v45 = vpop.permute.xlu1 %1804  ;;  %v1859_v5 = vrot.slane %v1858_v24, 2  ;;  %v1887_v21 = vmul.f32 0.25, %v1855_v59 }
 0x572   : > { %v1825_v52 = vmul.f32 %v1805_v45, %v4679_v3  ;;  %2168 = vst.msk [vmem:[#allocation6 + $0x1c] sm:$0xf] %vm933_vm8, %v2158_v49  ;;  %v2280_v3 = vrot.slane %v2279_v13, 2 }
 0x573   : > { %v1860_v15 = vadd.f32 %v1859_v5, %v1858_v24  ;;  %v1902_v16 = vsel %vm1084_vm11, %v1887_v21, %v4758_v33 }
 0x574   : > { %v1863_v53 = vsel %vm933_vm8, %v1825_v52, 0.0  ;;  %v2281_v10 = vadd.f32 %v2280_v3, %v2279_v13  ;;  %v3458_v13 = vld [vmem:[%s5082_s25 + $0x10] sm:$0xff] }
 0x575   : > { %v1864_v27 = vrot.slane %v1863_v53, 4  ;;  %v1812_v1 = vpop.permute.xlu1 %1811  ;;  %v1861_v62 = vrot.slane %v1860_v15, 1 }
 0x576   : > { %v1826_v0 = vmul.f32 %v1812_v1, %v4687_v34  ;;  %v2282_v2 = vrot.slane %v2281_v10, 1 }
 0x577   : > { %v1865_v7 = vadd.f32 %v1864_v27, %v1863_v53  ;;  %v1862_v39 = vadd.f32 %v1861_v62, %v1860_v15 }
 0x578   : > { %v1870_v55 = vsel %vm933_vm8, %v1826_v0, 0.0  ;;  %v2283_v41 = vadd.f32 %v2282_v2, %v2281_v10  ;;  %v3459_v0 = vld [vmem:[%s5082_s25 + $0x8] sm:$0xff] }
 0x579   : > { %v1866_v31 = vrot.slane %v1865_v7, 2  ;;  %v1871_v42 = vrot.slane %v1870_v55, 4  ;;  %v1819_v11 = vpop.permute.xlu1 %1818  ;;  %v1888_v6 = vmul.f32 0.25, %v1862_v39 }
 0x57a   : > { %v1827_v32 = vmul.f32 %v1819_v11, %v4697_v57 }
 0x57b   : > { %v1867_v54 = vadd.f32 %v1866_v31, %v1865_v7  ;;  %v1872_v43 = vadd.f32 %v1871_v42, %v1870_v55  ;;  %v1903_v23 = vsel %vm1086_vm12, %v1888_v6, %v1902_v16  ;;  %v2414_v55 = vadd.f32 %v4565_v19, %v4570_v9 }
 0x57c   : > { %v1877_v28 = vsel %vm933_vm8, %v1827_v32, 0.0 }
 0x57d   : > { %v1868_v37 = vrot.slane %v1867_v54, 1  ;;  %v1873_v26 = vrot.slane %v1872_v43, 2  ;;  %v1878_v34 = vrot.slane %v1877_v28, 4  ;;  %v2226_v12 = vpop.permute.xlu1 %2225 }
 0x57e   : > { %v2234_v56 = vmul.f32 %v2226_v12, %v2158_v49  ;;  %v2297_v49 = vmul.f32 0.25, %v2283_v41 }
 0x57f   : > { %v1874_v36 = vadd.f32 %v1873_v26, %v1872_v43  ;;  %v1879_v17 = vadd.f32 %v1878_v34, %v1877_v28  ;;  %v1869_v8 = vadd.f32 %v1868_v37, %v1867_v54 }
 0x580   : > { %v2284_v25 = vsel %vm933_vm8, %v2234_v56, 0.0  ;;  %v2312_v33 = vsel %vm1090_vm14, %v2297_v49, %v4772_v44  ;;  %v3457_v44 = vld [vmem:[%s5082_s25 + $0x18] sm:$0xff] }
 0x581   : > { %v1875_v57 = vrot.slane %v1874_v36, 1  ;;  %v1880_v50 = vrot.slane %v1879_v17, 2  ;;  %v2285_v29 = vrot.slane %v2284_v25, 4  ;;  %v1889_v20 = vmul.f32 0.25, %v1869_v8 }
 0x583   : > { %v1876_v61 = vadd.f32 %v1875_v57, %v1874_v36  ;;  %v1881_v40 = vadd.f32 %v1880_v50, %v1879_v17  ;;  %v2286_v58 = vadd.f32 %v2285_v29, %v2284_v25  ;;  %v1904_v63 = vsel %vm1088_vm13, %v1889_v20, %v1903_v23 }
 0x585   : > { %v1882_v14 = vrot.slane %v1881_v40, 1  ;;  %v2287_v38 = vrot.slane %v2286_v58, 2  ;;  %v1890_v35 = vmul.f32 0.25, %v1876_v61 }
 0x587   : > { %v1883_v22 = vadd.f32 %v1882_v14, %v1881_v40  ;;  %v2288_v60 = vadd.f32 %v2287_v38, %v2286_v58  ;;  %v1905_v45 = vsel %vm1090_vm14, %v1890_v35, %v1904_v63 }
 0x589   : > { %v1891_v30 = vmul.f32 0.25, %v1883_v22  ;;  %v2289_v24 = vrot.slane %v2288_v60, 1 }
 0x58b   : > { %v1906_v46 = vsel %vm1092_vm15, %v1891_v30, %v1905_v45  ;;  %v2290_v52 = vadd.f32 %v2289_v24, %v2288_v60 }
 0x58c   : > { %1909 = vst.msk [vmem:[#allocation4 + $0x10] sm:$0xff] %vm454_vm3, %v1906_v46 }
 0x58d   : > { %v2298_v48 = vmul.f32 0.25, %v2290_v52 }
 0x58f   : > { %v2313_v5 = vsel %vm1092_vm15, %v2298_v48, %v2312_v33 }
 0x590   : > { %2316 = vst.msk [vmem:[#allocation4 + $0x18] sm:$0xff] %vm454_vm3, %v2313_v5 }
 0x593   : > { %v2319_v53 = vld [vmem:[#allocation4 + $0x10] sm:$0xff] }
 0x594   : > { %3208 = vmatprep.mubr.msk.f32.mxu1 %vm454_vm3, %v2319_v53 }
 0x597   : > { %v2320_v27 = vld [vmem:[#allocation4 + $0x18] sm:$0xff] }
 0x598   : > { %3209 = vmatmul.mubr.msk.f32.gmra.mxu1 %vm454_vm3, %v2320_v27 }
 0x599   : > { %3230 = vmatprep.mubr.msk.f32.mxu1 %vm3707_vm6, %v3706_v4 }
 0x5d2   : > { %v2543_v1 = vpop.permute.xlu0 %2542 }
 0x5d3   : > { %2545 = vst.msk [vmem:[%s3957_s26] sm:$0xff] %vm2438_vm7, %v2543_v1  ;;  %3231 = vmatmul.mubr.msk.f32.vlgmr.msra.gmra.mxu1 %vm2438_vm7, %v2543_v1 }
 0x5d4   : > { %3245 = vmatpush3.msra.mxu1 %v3457_v44  ;;  %3252 = vmatprep.mubr.msk.f32.mxu1 %vm3707_vm6, %v3706_v4 }
 0x5d5   : > { %3246 = vmatprep.subr.mxu1 %v3706_v4 }
 0x5d6   : > { %3247 = vmatpush3.msra.mxu1 %v3458_v13 }
 0x5d7   : > { %3248 = vmatprep.subr.mxu1 %v3706_v4 }
 0x5d8   : > { %3249 = vmatpush3.msra.mxu1 %v3459_v0 }
 0x5d9   : > { %3250 = vmatprep.subr.mxu1 %v3706_v4 }
 0x5da   : > { %3251 = vmatpush3.msra.mxu1 %v3460_v18 }
 0x658   : > { %v3210_v7 = vpop.f32.mrf.mxu1 }
 0x659   : > { %v2424_v14 = vadd.f32 %v3210_v7, %v4570_v9 }
 0x65a   : > { %v2418_v15 = vpop.f32.mrf.mxu1 }
 0x65b   : > { %v2419_v56 = vadd.f32 %v4570_v9, %v2418_v15 }
 0x693   : > { %v2620_v31 = vpop.f32.mrf.mxu1 }
 0x694   : > { %v2624_v42 = vadd.f32 %v2620_v31, %v2414_v55 }
 0x695   : > { %v3232_v11 = vpop.f32.mrf.mxu1 }
 0x696   : > { %3433 = vtanh.f32 %v2624_v42  ;;  %v3126_v32 = vmul.f32 -1.442695, %v2624_v42 }
 0x698   : > { %3435 = vpow2.f32 %v3126_v32 }
 0x6a3   : > { %v3434_v3 = vpop.eup %3433 }
 0x6a4   : > { %2634 = vrot.lane.b32.xlu1 %v3434_v3, %s3705_s12 }
 0x6a5   : > { %v3436_v4 = vpop.eup %3435 }
 0x6a6   : > { %v2628_v47 = vadd.f32 1.0, %v3436_v4 }
 0x6a8   : > { %3437 = vrcp.f32 %v2628_v47 }
 0x6b5   : > { %v3438_v54 = vpop.eup %3437 }
 0x6b6   : > { %v2632_v19 = vmul.f32 %v3438_v54, %v4647_v51 }
 0x716   : > { %v2635_v43 = vpop.permute.xlu1 %2634 }
 0x717   : > { %v2637_v62 = vmul.f32 %v3438_v54, %v2635_v43 }
 0x719   : > { %2639 = vrot.lane.b32.xlu0 %v2637_v62, %s3705_s12 }
 0x78b   : > { %v2640_v28 = vpop.permute.xlu0 %2639 }
 0x78c   : > { %v2642_v37 = vadd.f32 %v2640_v28, %v2632_v19 }
 0x78e   : > { %3439 = vtanh.f32 %v2642_v37 }
 0x79b   : > { %v3440_v26 = vpop.eup %3439 }
 0x79c   : > { %2645 = vrot.lane.b32.xlu1 %v3440_v26, %s3705_s12 }
 0x80e   : > { %v2646_v34 = vpop.permute.xlu1 %2645 }
 0x80f   : > { %v2648_v12 = vmul.f32 %v3438_v54, %v2646_v34 }
 0x811   : > { %2650 = vrot.lane.b32.xlu0 %v2648_v12, %s3708_s7 }
 0x883   : > { %v2651_v10 = vpop.permute.xlu0 %2650 }
 0x884   : > { %3127 = vst.msk [vmem:[%s3957_s26 + $0x8] sm:$0xff] %vm2438_vm7, %v2651_v10  ;;  %3242 = vmatmul.mubr.msk.f32.vlgmr.msra.gmra.mxu0 %vm2438_vm7, %v2651_v10 }
 0x944   : > { %v2729_v59 = vpop.f32.mrf.mxu0 }
 0x945   : > { %v2733_v36 = vadd.f32 %v2729_v59, %v2419_v56 }
 0x946   : > { %v3243_v51 = vpop.f32.mrf.mxu0 }
 0x947   : > { %3441 = vtanh.f32 %v2733_v36  ;;  %v3129_v39 = vmul.f32 -1.442695, %v2733_v36 }
 0x949   : > { %3443 = vpow2.f32 %v3129_v39 }
 0x954   : > { %v3442_v17 = vpop.eup %3441 }
 0x955   : > { %2743 = vrot.lane.b32.xlu1 %v3442_v17, %s3705_s12 }
 0x956   : > { %v3444_v25 = vpop.eup %3443 }
 0x957   : > { %v2737_v8 = vadd.f32 1.0, %v3444_v25 }
 0x959   : > { %3445 = vrcp.f32 %v2737_v8 }
 0x966   : > { %v3446_v57 = vpop.eup %3445 }
 0x967   : > { %v2741_v2 = vmul.f32 %v3446_v57, %v2642_v37 }
 0x9c7   : > { %v2744_v50 = vpop.permute.xlu1 %2743 }
 0x9c8   : > { %v2746_v29 = vmul.f32 %v3446_v57, %v2744_v50 }
 0x9ca   : > { %2748 = vrot.lane.b32.xlu0 %v2746_v29, %s3705_s12 }
 0xa3c   : > { %v2749_v21 = vpop.permute.xlu0 %2748 }
 0xa3d   : > { %v2751_v61 = vadd.f32 %v2749_v21, %v2741_v2 }
 0xa3f   : > { %3447 = vtanh.f32 %v2751_v61 }
 0xa4c   : > { %v3448_v40 = vpop.eup %3447 }
 0xa4d   : > { %2754 = vrot.lane.b32.xlu1 %v3448_v40, %s3705_s12 }
 0xabf   : > { %v2755_v58 = vpop.permute.xlu1 %2754 }
 0xac0   : > { %v2757_v6 = vmul.f32 %v3446_v57, %v2755_v58 }
 0xac2   : > { %2759 = vrot.lane.b32.xlu0 %v2757_v6, %s3708_s7 }
 0xb34   : > { %v2760_v20 = vpop.permute.xlu0 %2759 }
 0xb35   : > { %3130 = vst.msk [vmem:[%s3957_s26 + $0x10] sm:$0xff] %vm2438_vm7, %v2760_v20  ;;  %3253 = vmatmul.mubr.msk.f32.vlgmr.msra.gmra.mxu1 %vm2438_vm7, %v2760_v20 }
 0xbf5   : > { %v2838_v38 = vpop.f32.mrf.mxu1 }
 0xbf6   : > { %v2842_v41 = vadd.f32 %v2838_v38, %v2424_v14 }
 0xbf7   : > { %v3254_v35 = vpop.f32.mrf.mxu1 }
 0xbf8   : > { %3449 = vtanh.f32 %v2842_v41  ;;  %v3132_v22 = vmul.f32 -1.442695, %v2842_v41 }
 0xbfa   : > { %3451 = vpow2.f32 %v3132_v22 }
 0xc05   : > { %v3450_v16 = vpop.eup %3449 }
 0xc06   : > { %2852 = vrot.lane.b32.xlu1 %v3450_v16, %s3705_s12 }
 0xc07   : > { %v3452_v60 = vpop.eup %3451 }
 0xc08   : > { %v2846_v23 = vadd.f32 1.0, %v3452_v60 }
 0xc0a   : > { %3453 = vrcp.f32 %v2846_v23 }
 0xc17   : > { %v3454_v63 = vpop.eup %3453 }
 0xc18   : > { %v2850_v9 = vmul.f32 %v3454_v63, %v2751_v61 }
 0xc78   : > { %v2853_v30 = vpop.permute.xlu1 %2852 }
 0xc79   : > { %v2855_v24 = vmul.f32 %v3454_v63, %v2853_v30 }
 0xc7b   : > { %2857 = vrot.lane.b32.xlu0 %v2855_v24, %s3705_s12 }
 0xced   : > { %v2858_v49 = vpop.permute.xlu0 %2857 }
 0xcee   : > { %v2860_v45 = vadd.f32 %v2858_v49, %v2850_v9 }
 0xcf0   : > { %3455 = vtanh.f32 %v2860_v45 }
 0xcfd   : > { %v3456_v46 = vpop.eup %3455 }
 0xcfe   : > { %2863 = vrot.lane.b32.xlu1 %v3456_v46, %s3705_s12  ;;  %s2923_s12 = sshll.u32 %s5039_s11, 4  ;;  %s4881_s11 = scalar_lea.hbm %s5113_s28, %s3139_s0  ;;  %s4872_s12 = int_to_ptr.vmem [resolvable:$true] %s2923_s12 }
 0xcff   : > { %s3515_s0 = scalar_lea.vmem %s4872_s12, 128 }
 0xd00   : > { %p3516_p5 = scmp.ne.s32.totalorder %s4872_s12, %s3515_s0 }
 0xd02   : > { %2875 = vrot.lane.b32.xlu1 %v2860_v45, %s3709_s23  ;;  %s5112_s23 = sld [smem:[#allocation30_spill]] }
 0xd08   : > { %p5116_p9 = scmp.ne.s32.totalorder %s5112_s23, 0 }
 0xd0a   : > { %p3517_p1 = pnand %p3516_p5, %p5116_p9 }
 0xd0c   : > { %p3518_p2 = pneg %p3517_p1 }
 0xd70   : > { %v2864_v52 = vpop.permute.xlu1 %2863 }
 0xd71   : > { %v2866_v48 = vmul.f32 %v3454_v63, %v2864_v52 }
 0xd73   : > { %2868 = vrot.lane.b32.xlu0 %v2866_v48, %s3708_s7  ;;  %s4870_s7 = scalar_lea.hbm %s5111_s9, %s3140_s13 }
 0xd74   : > { %v2876_v33 = vpop.permute.xlu1 %2875 }
 0xd75   : > { %2878 = vst.msk [vmem:[#allocation10] sm:$0xff] %vm2438_vm7, %v2876_v33  ;;  %2880 = vst.msk [vmem:[%s428_s27] sm:$0xff] %vm2438_vm7, %v2876_v33  ;;  %s4896_s27 = scalar_lea.sflag [#allocation18], %s2886_s20 }
 0xde5   : > { %v2869_v5 = vpop.permute.xlu0 %2868 }
 0xde6   : > { %3133 = vst.msk [vmem:[%s3957_s26 + $0x18] sm:$0xff] %vm2438_vm7, %v2869_v5  ;;  %2873 = vst.msk [vmem:[#allocation9] sm:$0xff] %vm2438_vm7, %v2869_v5  ;;  %s3710_s26 = smov [#allocation17]  }
 0xde7   : > { %2879 = vst.msk [vmem:[%s5114_s30] sm:$0xff] %vm2438_vm7, %v2869_v5  ;;  %s3519_s24 = sshll.u32 %s3710_s26, 4  ;;  %s3520_s24 = int_to_ptr.vmem [resolvable:$false] %s3519_s24 }
 0xde8   : > { %s3521_s8 = scalar_lea.vmem %s3520_s24, 256  ;;  %p3522_p4 = scmp.lt.s32.totalorder %s4872_s12, %s3520_s24 }
 0xde9   : > { %p3523_p6 = scmp.lt.s32.totalorder %s3521_s8, %s3515_s0 }
 0xdeb   : > { %p3524_p10 = por %p3523_p6, %p3522_p4 }
 0xded   : > { %p3525_p11 = pnand %p3524_p10, %p3518_p2 }
 0xdef   : > { %3528 = shalt.err (!%p3525_p11)
}
 0xdf0   : > { %s3529_s10 = scalar_lea.hbm %s4870_s7, 128  ;;  %s3533_s30 = scalar_lea.hbm %s5111_s9, 256 }
 0xdf1   : > { %p3530_p12 = scmp.ne.s32.totalorder %s4870_s7, %s3529_s10  ;;  %p3534_p3 = scmp.lt.s32.totalorder %s4870_s7, %s5111_s9 }
 0xdf2   : > { %p3535_p0 = scmp.lt.s32.totalorder %s3533_s30, %s3529_s10 }
 0xdf3   : > { %p3531_p13 = pnand %p3530_p12, %p5116_p9 }
 0xdf4   : > { %p3536_p8 = por %p3535_p0, %p3534_p3 }
 0xdf5   : > { %p3532_p7 = pneg %p3531_p13 }
 0xdf7   : > { %p3537_p5 = pnand %p3536_p8, %p3532_p7 }
 0xdf9   : > { %3540 = shalt.err (!%p3537_p5)
}
 0xdfa   : > { %s5117_s0 = sld [smem:[#allocation28_spill]]  ;;  %s2882_s26 = scalar_lea.sflag [#allocation13], %s3940_s21 }
 0xdfb   : > { %3262 = dma.vmem_to_hbm [thread:$0]  (%p5116_p9), %s4872_s12, 128, %s4870_s7, %s4896_s27  }
 0xdfc   : > { %s3541_s24 = scalar_lea.vmem %s4874_s5, 512  ;;  %s3711_s8 = smov [#allocation16]  }
 0xdfd   : > { %p3542_p1 = scmp.ne.s32.totalorder %s4874_s5, %s3541_s24  ;;  %s3545_s10 = sshll.u32 %s3711_s8, 4  ;;  %s3546_s10 = int_to_ptr.vmem [resolvable:$false] %s3545_s10 }
 0xdfe   : > { %s3547_s20 = scalar_lea.vmem %s3546_s10, 1024  ;;  %p3548_p10 = scmp.lt.s32.totalorder %s4874_s5, %s3546_s10 }
 0xdff   : > { %p3549_p11 = scmp.lt.s32.totalorder %s3547_s20, %s3541_s24 }
 0xe00   : > { %p5118_p2 = scmp.ne.s32.totalorder %s5117_s0, 0 }
 0xe01   : > { %p3550_p12 = por %p3549_p11, %p3548_p10 }
 0xe02   : > { %p3543_p4 = pnand %p3542_p1, %p5118_p2 }
 0xe04   : > { %p3544_p6 = pneg %p3543_p4 }
 0xe06   : > { %p3551_p13 = pnand %p3550_p12, %p3544_p6 }
 0xe08   : > { %3554 = shalt.err (!%p3551_p13)
}
 0xe09   : > { %s3555_s12 = scalar_lea.hbm %s4881_s11, 512  ;;  %s3559_s30 = scalar_lea.hbm %s5113_s28, 2048 }
 0xe0a   : > { %p3556_p7 = scmp.ne.s32.totalorder %s4881_s11, %s3555_s12  ;;  %p3560_p8 = scmp.lt.s32.totalorder %s4881_s11, %s5113_s28 }
 0xe0b   : > { %p3561_p5 = scmp.lt.s32.totalorder %s3559_s30, %s3555_s12 }
 0xe0c   : > { %p3557_p3 = pnand %p3556_p7, %p5118_p2 }
 0xe0d   : > { %p3562_p1 = por %p3561_p5, %p3560_p8 }
 0xe0e   : > { %p3558_p0 = pneg %p3557_p3 }
 0xe10   : > { %p3563_p4 = pnand %p3562_p1, %p3558_p0 }
 0xe12   : > { %3566 = shalt.err (!%p3563_p4)
}
 0xe13   : > { %s3712_s24 = smov 128   ;;  %s3713_s8 = smov 256  }
 0xe14   : > { %s3714_s10 = smov 8   ;;  %s3567_s20 = scalar_lea.vmem %s4894_s19, 128 }
 0xe15   : > { %3261 = dma.vmem_to_hbm [thread:$0]  (%p5118_p2), %s4874_s5, 512, %s4881_s11, %s2882_s26, %s3712_s24, %s3713_s8, %s3714_s10  }
 0xe16   : > { %p3568_p6 = scmp.ne.s32.totalorder %s4894_s19, %s3567_s20  ;;  %s3715_s12 = smov [#allocation19]  }
 0xe17   : > { %s3571_s7 = sshll.u32 %s3715_s12, 4  ;;  %s3572_s7 = int_to_ptr.vmem [resolvable:$false] %s3571_s7 }
 0xe18   : > { %p3569_p10 = pnand %p3568_p6, %p5116_p9  ;;  %s3573_s13 = scalar_lea.vmem %s3572_s7, 256 }
 0xe19   : > { %p3574_p12 = scmp.lt.s32.totalorder %s4894_s19, %s3572_s7  ;;  %p3575_p13 = scmp.lt.s32.totalorder %s3573_s13, %s3567_s20 }
 0xe1a   : > { %p3570_p11 = pneg %p3569_p10 }
 0xe1b   : > { %p3576_p7 = por %p3575_p13, %p3574_p12 }
 0xe1d   : > { %p3577_p3 = pnand %p3576_p7, %p3570_p11 }
 0xe1f   : > { %3580 = shalt.err (!%p3577_p3)
}
 0xe20   : > { %s3581_s21 = scalar_lea.hbm %s4892_s2, 128  ;;  %s3585_s0 = scalar_lea.hbm %s5115_s1, 256 }
 0xe21   : > { %p3582_p2 = scmp.ne.s32.totalorder %s4892_s2, %s3581_s21  ;;  %p3586_p5 = scmp.lt.s32.totalorder %s4892_s2, %s5115_s1 }
 0xe22   : > { %p3587_p1 = scmp.lt.s32.totalorder %s3585_s0, %s3581_s21 }
 0xe23   : > { %p3583_p0 = pnand %p3582_p2, %p5116_p9 }
 0xe24   : > { %p3588_p4 = por %p3587_p1, %p3586_p5 }
 0xe25   : > { %p3584_p8 = pneg %p3583_p0 }
 0xe27   : > { %p3589_p6 = pnand %p3588_p4, %p3584_p8 }
 0xe29   : > { %3592 = shalt.err (!%p3589_p6)
}
 0xe2a   : > { %3263 = dma.vmem_to_hbm [thread:$0]  (%p5116_p9), %s4894_s19, 128, %s4892_s2, %s4896_s27  }
 0xe2b PF: > { %s5119_s6 = sld [smem:[#allocation27_spill]] }
 0xe2c   : > { %s5120_s16 = sld [smem:[#allocation24_spill]] }
 0xe2d   : > { %s5121_s24 = sld [smem:[#allocation29_spill]] }
 0xe31   : > { %p3288_p10 = scmp.ge.s32.totalorder %s5119_s6, 2 }
 0xe32   : > { %s2948_s8 = sand.u32 1, %s5120_s16  }
 0xe33   : > { %p5122_p11 = scmp.ne.s32.totalorder %s5121_s24, 0  ;;  %s2949_s10 = scalar_lea.sflag [#allocation13], %s2948_s8 }
 0xe35   : > { %p3276_p12 = pnand %p3288_p10, %p5122_p11 }
 0xe37   : > { %p3277_p13 = pneg %p3276_p12 }
 0xe39   : > { %3646 = dma.done.wait (%p3277_p13), %s2949_s10, 512  }
 0xe3a   : > { %3648 = vsyncadd (%p3277_p13), %s2949_s10, 4294966784  ;;  %s5123_s20 = sadd.s32 4294967294, %s5119_s6   ;;  %s5124_s12 = sld [smem:[#allocation31_spill]] }
 0xe3b   : > { %s2957_s23 = sand.u32 1, %s5123_s20  }
 0xe3c   : > { %s2958_s2 = scalar_lea.sflag [#allocation18], %s2957_s23 }
 0xe40   : > { %p5125_p7 = scmp.ne.s32.totalorder %s5124_s12, 0 }
 0xe42   : > { %p3279_p3 = pnand %p3288_p10, %p5125_p7 }
 0xe44   : > { %p3280_p2 = pneg %p3279_p3 }
 0xe46   : > { %3650 = dma.done.wait (%p3280_p2), %s2958_s2, 256  }
 0xe47   : > { %3652 = vsyncadd (%p3280_p2), %s2958_s2, 4294967040  ;;  %s31_s23 = sadd.s32 1, %s5119_s6   ;;  %s5126_s19 = sld [smem:[#allocation26_spill]] }
 0xe48   : > { %p28_p9 = scmp.ge.s32.totalorder %s31_s23, 6   ;;  %s5127_s21 = sld [smem:[#allocation32_spill]] }
 0xe49   : > { %s5128_s27 = sld [smem:[#allocation33_spill]]  ;;  %s5129_s13 = smov %s3659_s14 }
 0xe4a   : > { %s5130_s14 = smov %s3663_s15  ;;  %s5131_s15 = smov %s3924_s4 }
 0xe4b   : > { %s5132_s16 = smov %s3671_s17  ;;  %s5133_s17 = smov %s3675_s18 }
 0xe4c   : > { %s5134_s18 = smov %s3929_s29  ;;  %s5135_s20 = smov %s3691_s22 }
 0xe4d   :  { %30 = sbr.rel (!%p28_p9) target bundleno = 23 (0x17), region = 152 }
 0xe4f   : > { %s5136_s22 = smov %s5128_s27 }
 0xe52   :  { %2972 = vsyncpa [#allocation12], 1 }
 0xe53   :  { %2974 = vsyncpa [#allocation12 + $0x1], 1 }
 0xe54   :  { %2975 = vsyncpa [#allocation15], 1 }
 0xe55   :  { %2976 = vsyncpa [#allocation13], 1 }
 0xe56   :  { %2978 = vsyncpa [#allocation13 + $0x1], 1 }
 0xe57   :  { %2979 = vsyncpa [#allocation18], 1 }
 0xe58   :  { %2981 = vsyncpa [#allocation18 + $0x1], 1 }

// kernel: tpu_custom_call.1
= control target key start
LH: loop header
LB: loop body
LE: loop exit
PB: predicated region body
PF: predicated region fallthrough
CT: control target
= control target key end

     0   :  { %s5004_s0 = inlined_call_operand.hbm [shape: f32[8,16,16], index: 0, kind: input, shape index: {}]   ;;  %s5005_s1 = inlined_call_operand.vmem [shape: f32[16,8], index: 1, kind: input, shape index: {}]   ;;  %s5006_s2 = inlined_call_operand.vmem [shape: f32[1,8], index: 2, kind: input, shape index: {}]   ;;  %s5007_s3 = inlined_call_operand.vmem [shape: f32[8,4], index: 3, kind: input, shape index: {}]   ;;  %s5008_s4 = inlined_call_operand.vmem [shape: f32[1,4], index: 4, kind: input, shape index: {}]   ;;  %s5009_s5 = inlined_call_operand.hbm [shape: f32[16,128], index: 5, kind: input, shape index: {}]   ;;  %s5010_s6 = inlined_call_operand.vmem [shape: f32[32,128], index: 6, kind: input, shape index: {}]   ;;  %s5011_s7 = inlined_call_operand.vmem [shape: f32[1,128], index: 7, kind: input, shape index: {}]   ;;  %s5012_s8 = inlined_call_operand.hbm [shape: f32[8,16,32], index: 8, kind: output, shape index: {0}]   ;;  %s5013_s9 = inlined_call_operand.hbm [shape: f32[16,32], index: 9, kind: output, shape index: {1}]   ;;  %s5014_s10 = inlined_call_operand.hbm [shape: f32[16,32], index: 10, kind: output, shape index: {2}]  }
   0x1   :  { %5040 = sst [smem:[#allocation34_spill]] %s5004_s0 }
   0x2   :  { %5041 = sst [smem:[#allocation35_spill]] %s5005_s1 }
   0x3   :  { %5042 = sst [smem:[#allocation36_spill]] %s5006_s2 }
   0x4   :  { %5043 = sst [smem:[#allocation37_spill]] %s5008_s4 }
   0x5   :  { %5044 = sst [smem:[#allocation38_spill]] %s5009_s5 }
   0x6   :  { %5045 = sst [smem:[#allocation39_spill]] %s5010_s6 }
   0x7   :  { %5046 = sst [smem:[#allocation40_spill]] %s5011_s7 }
   0x8   :  { %5047 = sst [smem:[#allocation41_spill]] %s5012_s8 }
   0x9   :  { %5048 = sst [smem:[#allocation42_spill]] %s5013_s9 }
   0xa   :  { %5049 = sst [smem:[#allocation43_spill]] %s5014_s10 }
   0xb   :  { %16 = vsyncpa [#allocation12], 0 }
   0xc   :  { %18 = vsyncpa [#allocation12 + $0x1], 0 }
   0xd   :  { %19 = vsyncpa [#allocation15], 0 }
   0xe   :  { %20 = vsyncpa [#allocation13], 0 }
   0xf   :  { %22 = vsyncpa [#allocation13 + $0x1], 0 }
  0x10   :  { %23 = vsyncpa [#allocation18], 0 }
  0x11   :  { %25 = vsyncpa [#allocation18 + $0x1], 0  ;;  %s3771_s13 = smov 0   ;;  %s3773_s14 = smov 0  }
  0x12   :  { %s3775_s15 = smov 0   ;;  %s3777_s16 = smov 0  }
  0x13   :  { %s3779_s17 = smov 0   ;;  %s3781_s18 = smov 0  }
  0x14   :  { %s3783_s19 = smov 0   ;;  %s3785_s20 = smov 0  }
  0x15   :  { %s3787_s21 = smov 0   ;;  %s3789_s22 = smov 0  }
  0x16   :  { %s3791_s23 = smov 0  }
  0x17 LB: > { %5050 = sst [smem:[#allocation24_spill]] %s3667_s16  ;;  %s3827_s24 = sadd.s32 4294967295, %s3695_s23   ;;  %s3695_s23 = sphi %s3791_s23, %s31_s23   ;;  %s3691_s22 = sphi %s3789_s22, %s5136_s22   ;;  %s3687_s21 = sphi %s3787_s21, %s5127_s21   ;;  %s3683_s20 = sphi %s3785_s20, %s5135_s20   ;;  %s3679_s19 = sphi %s3783_s19, %s5126_s19   ;;  %s3675_s18 = sphi %s3781_s18, %s5134_s18   ;;  %s3671_s17 = sphi %s3779_s17, %s5133_s17   ;;  %s3667_s16 = sphi %s3777_s16, %s5132_s16   ;;  %s3663_s15 = sphi %s3775_s15, %s5131_s15   ;;  %s3659_s14 = sphi %s3773_s14, %s5130_s14   ;;  %s3655_s13 = sphi %s3771_s13, %s5129_s13  }
  0x18   : > { %5051 = sst [smem:[#allocation25_spill]] %s3683_s20  ;;  %s5016_s25 = sadd.s32 4294967294, %s3695_s23  }
  0x19   : > { %5052 = sst [smem:[#allocation26_spill]] %s3687_s21  ;;  %p59_p0 = scmp.ne.s32.totalorder %s3675_s18, %s3671_s17 }
  0x1a   : > { %5053 = sst [smem:[#allocation27_spill]] %s3695_s23  ;;  %p60_p1 = scmp.eq.s32.totalorder %s3695_s23, 0 }
  0x1b   : > { %p65_p2 = scmp.ne.s32.totalorder %s3671_s17, %s3667_s16  ;;  %p5015_p3 = scmp.eq.s32.totalorder %s3827_s24, 0 }
  0x1c   : > { %p238_p4 = scmp.eq.s32.totalorder %s3827_s24, 3  ;;  %p3838_p5 = por %p60_p1, %p59_p0 }
  0x1d   : > { %p244_p6 = scmp.eq.s32.totalorder %s5016_s25, 3  ;;  %p3846_p7 = por %p5015_p3, %p65_p2 }
  0x1e   : > { %p3850_p8 = por %p238_p4, %p59_p0  ;;  %p263_p10 = scmp.ne.s32.totalorder %s3663_s15, %s3659_s14 }
  0x1f   : > { %s5055_s28 = scalar_select %p3846_p7, 1, 0 }
  0x20   : > { %s5056_s29 = scalar_select %p3850_p8, 1, 0 }
  0x21   : > { %p3854_p9 = por %p244_p6, %p65_p2  ;;  %p269_p11 = scmp.ne.s32.totalorder %s3659_s14, %s3655_s13 }
  0x22   : > { %5057 = sst [smem:[#allocation28_spill]] %s5056_s29  ;;  %p3094_p12 = scmp.ge.s32.totalorder %s3695_s23, 1 }
  0x23   : > { %s5058_s30 = scalar_select %p3854_p9, 1, 0 }
  0x24   : > { %p303_p13 = scmp.lt.s32.totalorder %s3695_s23, 5  ;;  %p3865_p1 = por %p263_p10, %p238_p4 }
  0x25   : > { %5059 = sst [smem:[#allocation29_spill]] %s5058_s30  ;;  %p3869_p3 = por %p269_p11, %p244_p6 }
  0x26   : > { %s5060_s12 = scalar_select %p3865_p1, 1, 0 }
  0x27   : > { %s5062_s25 = scalar_select %p3869_p3, 1, 0 }
  0x28   : > { %5061 = sst [smem:[#allocation30_spill]] %s5060_s12  ;;  %p3873_p0 = pnand %p3094_p12, %p303_p13 }
  0x29   : > { %5063 = sst [smem:[#allocation31_spill]] %s5062_s25  ;;  %s3697_s11 = smov [#allocation14]  }
  0x2a   : > { %p3267_p2 = pneg %p3873_p0  ;;  %s327_s30 = sshll.u32 %s3697_s11, 4  ;;  %s328_s30 = int_to_ptr.vmem [resolvable:$true] %s327_s30 }
  0x2b   : > { %p5065_p9 = scmp.eq.s32.totalorder %s3827_s24, 0  ;;  %p3286_p4 = scmp.lt.s32.totalorder %s3695_s23, 4 }
  0x2c   : > { %s3472_s25 = scalar_lea.vmem %s328_s30, 256  ;;  %p3480_p13 = scmp.lt.s32.totalorder %s328_s30, %s328_s30 }
  0x2d   : > { %p3881_p8 = pnand %p3267_p2, %p5065_p9  ;;  %p3473_p10 = scmp.ne.s32.totalorder %s328_s30, %s3472_s25 }
  0x2e   : > { %p3481_p3 = scmp.lt.s32.totalorder %s3472_s25, %s3472_s25 }
  0x2f   : > { %p3463_p6 = pneg %p3881_p8 }
  0x30   : > { %p3482_p1 = por %p3481_p3, %p3480_p13 }
  0x31   : > { %p3475_p11 = pnand %p3473_p10, %p3463_p6 }
  0x33   : > { %p3476_p12 = pneg %p3475_p11 }
  0x35   : > { %p3483_p7 = pnand %p3482_p1, %p3476_p12 }
  0x37   : > { %3486 = shalt.err (!%p3483_p7)
}
  0x38   : > { %s5031_s11 = smov 128   ;;  %s5032_s16 = smov 8  }
  0x39   : > { %s5067_s5 = sld [smem:[#allocation38_spill]]  ;;  %p3900_p3 = pnand %p3286_p4, %p3838_p5 }
  0x3a   : > { %s43_s8 = sadd.s32 1, %s3691_s22  ;;  %s40_s12 = sadd.s32 1, %s3687_s21 }
  0x3b   : > { %p41_p7 = scmp.ge.s32.totalorder %s40_s12, 2  ;;  %s347_s9 = sand.u32 1, %s3675_s18  }
  0x3c   : > { %s3097_s20 = sshll.u32 %s347_s9, 5  ;;  %s3144_s29 = sshll.u32 %s3687_s21, 3 }
  0x3d   : > { %s5138_s12 = smov (%p41_p7, %s40_s12), 0  ;;  %s5140_s8 = smov (!%p41_p7, %s43_s8), %s3691_s22 }
  0x3e   : > { %5069 = sst [smem:[#allocation32_spill]] %s5138_s12  ;;  %s47_s27 = ssub.s32 %s3687_s21, %s5138_s12 }
  0x3f   : > { %3270 = dma.hbm_to_vmem [thread:$0]  (!%p3881_p8), %s5067_s5, 256, %s328_s30, [#allocation15], %s5031_s11, %s5031_s11, %s5032_s16  }
  0x40   : > { %p45_p8 = scmp.ge.s32.totalorder %s5140_s8, 2  ;;  %s357_s30 = sadd.s32 %s3691_s22, %s3144_s29 }
  0x41   : > { %s351_s13 = scalar_lea.vmem [#allocation11], %s3097_s20  ;;  %s3100_s11 = sshll.u32 %s357_s30, 7 }
  0x42   : > { %s360_s25 = sshll.u32 %s351_s13, 4  ;;  %s5142_s8 = smov (%p45_p8, %s5140_s8), 0  ;;  %s361_s25 = int_to_ptr.vmem [resolvable:$true] %s360_s25 }
  0x43   : > { %5070 = sst [smem:[#allocation33_spill]] %s5142_s8  ;;  %s48_s16 = ssub.s32 %s3691_s22, %s5142_s8 }
  0x44   : > { %s5071_s0 = sld [smem:[#allocation34_spill]]  ;;  %s49_s6 = sor.u32 %s48_s16, %s47_s27 }
  0x45   : > { %p251_p5 = scmp.eq.s32.totalorder %s48_s16, 0  ;;  %p50_p9 = scmp.eq.s32.totalorder %s49_s6, 0 }
  0x46   : > { %s5072_s12 = sadd.s32 1, %s3663_s15  ;;  %s5073_s21 = sadd.s32 1, %s3675_s18 }
  0x47   : > { %s3924_s4 = scalar_select %p251_p5, %s3663_s15, %s5072_s12  }
  0x48   : > { %s3929_s29 = scalar_select %p50_p9, %s3675_s18, %s5073_s21  }
  0x49   : > { %s348_s20 = scalar_lea.sflag [#allocation12], %s347_s9  ;;  %p3489_p1 = pneg %p3900_p3 }
  0x4a   : > { %s359_s7 = scalar_lea.hbm %s5071_s0, %s3100_s11  ;;  %s3500_s13 = scalar_lea.vmem %s361_s25, 512 }
  0x4b   : > { %p3501_p2 = scmp.ne.s32.totalorder %s361_s25, %s3500_s13  ;;  %s3700_s30 = smov [#allocation11]  }
  0x4c   : > { %s3505_s8 = sshll.u32 %s3700_s30, 4  ;;  %s3506_s8 = int_to_ptr.vmem [resolvable:$false] %s3505_s8 }
  0x4d   : > { %p3503_p4 = pnand %p3501_p2, %p3489_p1  ;;  %s3507_s5 = scalar_lea.vmem %s3506_s8, 1024 }
  0x4e   : > { %p3508_p10 = scmp.lt.s32.totalorder %s361_s25, %s3506_s8  ;;  %p3509_p11 = scmp.lt.s32.totalorder %s3507_s5, %s3500_s13 }
  0x4f   : > { %p3504_p6 = pneg %p3503_p4 }
  0x50   : > { %p3510_p12 = por %p3509_p11, %p3508_p10 }
  0x52   : > { %p3511_p13 = pnand %p3510_p12, %p3504_p6 }
  0x54   : > { %3514 = shalt.err (!%p3511_p13)
}
  0x55   : > { %s3701_s6 = smov 256   ;;  %s5074_s16 = smov 8  }
  0x56   : > { %s5075_s9 = smov 128   ;;  %372 = sbr.rel (%p3873_p0) target bundleno = 3627 (0xe2b), region = 52 }
  0x57   : > { %3274 = dma.hbm_to_vmem [thread:$0]  (!%p3900_p3), %s359_s7, 512, %s361_s25, %s348_s20, %s3701_s6, %s5075_s9, %s5074_s16  }
  0x58   : > { %s3940_s21 = sand.u32 (!%p3873_p0), 1, %s3671_s17   ;;  %p5076_p7 = scmp.ne.s32.totalorder (!%p3873_p0), %s5055_s28, 0 }
  0x59   : > { %s3102_s8 = sshll.u32 (!%p3873_p0), %s3940_s21, 5  ;;  %s375_s23 = scalar_lea.sflag (!%p3873_p0), [#allocation12], %s3940_s21 }
  0x5a   : > { %s3944_s12 = scalar_lea.vmem (!%p3873_p0), [#allocation11], %s3102_s8 }
  0x5b   : > { %3638 = dma.done.wait (%p5076_p7), %s375_s23, 512  }
  0x5c   : > { %3640 = vsyncadd (%p5076_p7), %s375_s23, 4294966784  ;;  %p5077_p3 = scmp.eq.s32.totalorder %s3827_s24, 0 }
  0x5e   : > { %3642 = dma.done.wait (%p5077_p3), [#allocation15], 256   ;;  %p5078_p0 = pmov %p5077_p3 }
  0x5f   : > { %s419_s7 = sand.u32 1, %s3659_s14   ;;  %s3957_s26 = scalar_lea.vmem [#allocation16], %s3102_s8 }
  0x60   : > { %3644 = vsyncadd (%p5078_p0), [#allocation15], 4294967040  ;;  %s3955_s10 = sshll.u32 %s419_s7, 3  ;;  %p3107_p8 = scmp.ne.s32.totalorder %s3679_s19, 0 }
  0x61   : > { %s5039_s11 = scalar_lea.vmem [#allocation17], %s3955_s10  ;;  %s428_s27 = scalar_lea.vmem [#allocation19], %s3955_s10 }
  0x62   : > { %434 = sbr.rel (%p3107_p8) target bundleno = 110 (0x6e), region = 64 }
  0x67   : > { %vm435_vm0 = vcmask 125952   ;;  %vm444_vm1 = vcmask 31744   ;;  %v3702_v0 = vmov 0.0   ;;  %v3703_v1 = vmov -inf  }
  0x68   : > { %436 = vst.msk [vmem:[#allocation6] sm:$0xf] %vm435_vm0, %v3702_v0  ;;  %437 = vst.msk [vmem:[#allocation6 + $0x4] sm:$0xf] %vm435_vm0, %v3702_v0  ;;  %vm447_vm2 = vcmask 261120  }
  0x69   : > { %438 = vst.msk [vmem:[#allocation6 + $0x8] sm:$0xf] %vm435_vm0, %v3702_v0  ;;  %439 = vst.msk [vmem:[#allocation6 + $0xc] sm:$0xf] %vm435_vm0, %v3702_v0 }
  0x6a   : > { %440 = vst.msk [vmem:[#allocation6 + $0x10] sm:$0xf] %vm435_vm0, %v3702_v0  ;;  %441 = vst.msk [vmem:[#allocation6 + $0x14] sm:$0xf] %vm435_vm0, %v3702_v0 }
  0x6b   : > { %442 = vst.msk [vmem:[#allocation6 + $0x18] sm:$0xf] %vm435_vm0, %v3702_v0  ;;  %443 = vst.msk [vmem:[#allocation6 + $0x1c] sm:$0xf] %vm435_vm0, %v3702_v0 }
  0x6c   : > { %445 = vst.msk [vmem:[#allocation7] sm:$0xff] %vm444_vm1, %v3702_v0  ;;  %446 = vst.msk [vmem:[#allocation8] sm:$0xff] %vm444_vm1, %v3703_v1 }
  0x6d   : > { %448 = vst.msk [vmem:[#allocation9] sm:$0xff] %vm447_vm2, %v3702_v0  ;;  %449 = vst.msk [vmem:[#allocation10] sm:$0xff] %vm447_vm2, %v3702_v0 }
  0x6e PF: > { %s5079_s1 = sld [smem:[#allocation35_spill]]  ;;  %v450_v4 = vld [vmem:[%s3944_s12] sm:$0xff]  ;;  %vm454_vm3 = vcmask 130048   ;;  %v451_v5 = vld [vmem:[%s3944_s12 + $0x8] sm:$0xff]  ;;  %v452_v6 = vld [vmem:[%s3944_s12 + $0x10] sm:$0xff]  ;;  %vm581_vm4 = vcmask 64512   ;;  %v704_v42 = vlaneseq }
  0x6f   : > { %455 = vst.msk [vmem:[#allocation2] sm:$0xff] %vm454_vm3, %v450_v4  ;;  %v453_v7 = vld [vmem:[%s3944_s12 + $0x18] sm:$0xff]  ;;  %456 = vst.msk [vmem:[#allocation2 + $0x8] sm:$0xff] %vm454_vm3, %v451_v5  ;;  %v573_v12 = vld [vmem:[%s5007_s3] sm:$0xff]  ;;  %s5080_s2 = sld [smem:[#allocation36_spill]]  ;;  %vm679_vm5 = vcmask 31744  }
  0x70   : > { %457 = vst.msk [vmem:[#allocation2 + $0x10] sm:$0xff] %vm454_vm3, %v452_v6  ;;  %458 = vst.msk [vmem:[#allocation2 + $0x18] sm:$0xff] %vm454_vm3, %v453_v7  ;;  %3193 = vmatprep.subr.mxu1 %v573_v12  ;;  %s5081_s23 = sld [smem:[#allocation37_spill]]  ;;  %v4001_v46 = vshrl.u32 %v704_v42, 7  ;;  %s3705_s12 = smov 32   ;;  %vm3707_vm6 = vmmov 0  }
  0x71   : > { %3194 = vmatpush3.msra.mxu1 %v573_v12  ;;  %s5082_s25 = sld [smem:[#allocation39_spill]]  ;;  %vm2438_vm7 = vcmask 261120   ;;  %vm933_vm8 = vcmask 125952   ;;  %vm1080_vm9 = vcmask 1041409   ;;  %vm1082_vm10 = vcmask 1042434   ;;  %s3708_s7 = smov 64  }
  0x72   : > { %v4004_v48 = vsub.s32 0, %v4001_v46  ;;  %v4013_v57 = vsub.s32 1, %v4001_v46  ;;  %vm1084_vm11 = vcmask 1043459   ;;  %vm1086_vm12 = vcmask 1044484   ;;  %s5110_s8 = sld [smem:[#allocation25_spill]]  ;;  %s3145_s28 = sshll.u32 %s3679_s19, 3 }
  0x73   : > { %v685_v35 = vld [vmem:[#allocation8] sm:$0xff]  ;;  %v693_v62 = vld [vmem:[#allocation7] sm:$0xff]  ;;  %vm1088_vm13 = vcmask 1045509   ;;  %vm1090_vm14 = vcmask 1046534   ;;  %vm1092_vm15 = vcmask 1047559   ;;  %s2886_s20 = sand.u32 1, %s3827_s24  }
  0x74   : > { %v464_v2 = vld [vmem:[%s5079_s1 + $0x8] sm:$0xff]  ;;  %v463_v3 = vld [vmem:[%s5079_s1] sm:$0xff]  ;;  %s2907_s5 = sshll.u32 %s3957_s26, 4  ;;  %s5111_s9 = sld [smem:[#allocation42_spill]]  ;;  %s4874_s5 = int_to_ptr.vmem [resolvable:$true] %s2907_s5 }
  0x75   : > { %3183 = vmatprep.subr.mxu0 %v464_v2  ;;  %v3108_v13 = vld [vmem:[%s5080_s2] ss:$0 sm:$0xff]  ;;  %s2936_s19 = sshll.u32 %s428_s27, 4  ;;  %s5115_s1 = sld [smem:[#allocation43_spill]]  ;;  %s4894_s19 = int_to_ptr.vmem [resolvable:$true] %s2936_s19 }
  0x76   : > { %3184 = vmatpush3.msra.mxu0 %v464_v2  ;;  %v3976_v8 = vld [vmem:[#allocation2] sm:$0xff]  ;;  %v3980_v9 = vld [vmem:[#allocation2 + $0x8] sm:$0xff]  ;;  %v4021_v2 = vsub.s32 2, %v4001_v46 }
  0x77   : > { %3185 = vmatprep.subr.mxu0 %v463_v3  ;;  %3187 = vmatprep.mubr.msk.f32.mxu0 %vm454_vm3, %v3976_v8  ;;  %v461_v10 = vld [vmem:[#allocation2 + $0x10] sm:$0xff]  ;;  %v462_v11 = vld [vmem:[#allocation2 + $0x18] sm:$0xff]  ;;  %v3113_v26 = vld [vmem:[%s5081_s23] ss:$0 sm:$0xff]  ;;  %s5083_s23 = sld [smem:[#allocation40_spill]] }
  0x78   : > { %3186 = vmatpush3.msra.mxu0 %v463_v3  ;;  %s3140_s13 = sshll.u32 %s5110_s8, 7  ;;  %s2904_s30 = sadd.s32 %s5110_s8, %s3145_s28 }
  0x79   : > { %3188 = vmatmul.mubr.msk.f32.vlgmr.msra.gmra.mxu0 %vm454_vm3, %v3980_v9  ;;  %s3139_s0 = sshll.u32 %s2904_s30, 7  ;;  %s5113_s28 = sld [smem:[#allocation41_spill]] }
  0x7a   : > { %3190 = vmatprep.mubr.msk.f32.mxu0 %vm454_vm3, %v461_v10  ;;  %v4032_v10 = vsub.s32 3, %v4001_v46  ;;  %s5114_s30 = scalar_lea.vmem [#allocation17], %s3955_s10 }
  0x7b   : > { %s4892_s2 = scalar_lea.hbm %s5115_s1, %s3140_s13 }
  0x7d   : > { %3191 = vmatmul.mubr.msk.f32.gmra.mxu0 %vm454_vm3, %v462_v11 }
 0x139   : > { %v3189_v14 = vpop.f32.mrf.mxu0 }
 0x13a   : > { %v556_v15 = vadd.f32 %v3189_v14, %v3108_v13 }
 0x13b   : > { %v550_v16 = vpop.f32.mrf.mxu0 }
 0x13c   : > { %v551_v17 = vadd.f32 %v3108_v13, %v550_v16 }
 0x13d   : > { %v3192_v18 = vpop.f32.mrf.mxu0 }
 0x13e   : > { %3393 = vtanh.f32 %v551_v17  ;;  %v566_v19 = vadd.f32 %v3192_v18, %v3108_v13  ;;  %v4042_v17 = vsub.s32 4, %v4001_v46 }
 0x13f   : > { %3395 = vtanh.f32 %v556_v15  ;;  %v560_v20 = vpop.f32.mrf.mxu0 }
 0x140   : > { %v561_v21 = vadd.f32 %v3108_v13, %v560_v20  ;;  %3397 = vtanh.f32 %v566_v19 }
 0x142   : > { %3399 = vtanh.f32 %v561_v21 }
 0x14b   : > { %v3394_v22 = vpop.eup %3393 }
 0x14c   : > { %v3396_v23 = vpop.eup %3395  ;;  %3195 = vmatprep.mubr.msk.f32.mxu1 %vm581_vm4, %v3394_v22 }
 0x14d   : > { %3196 = vmatmul.mubr.msk.f32.vlgmr.msra.gmra.mxu1 %vm581_vm4, %v3396_v23  ;;  %v3398_v24 = vpop.eup %3397  ;;  %v4051_v23 = vsub.s32 5, %v4001_v46 }
 0x14f   : > { %v3400_v25 = vpop.eup %3399 }
 0x150   : > { %3198 = vmatprep.mubr.msk.f32.mxu1 %vm581_vm4, %v3400_v25 }
 0x151   : > { %3199 = vmatmul.mubr.msk.f32.gmra.mxu1 %vm581_vm4, %v3398_v24 }
 0x20d   : > { %v3197_v27 = vpop.f32.mrf.mxu1 }
 0x20e   : > { %v666_v28 = vadd.f32 %v3197_v27, %v3113_v26 }
 0x20f   : > { %v660_v29 = vpop.f32.mrf.mxu1 }
 0x210   : > { %681 = vst.msk [vmem:[#allocation3 + $0x8] sm:$0xff] %vm679_vm5, %v666_v28  ;;  %v661_v30 = vadd.f32 %v3113_v26, %v660_v29  ;;  %v4061_v29 = vsub.s32 6, %v4001_v46 }
 0x211   : > { %v3200_v31 = vpop.f32.mrf.mxu1 }
 0x212   : > { %680 = vst.msk [vmem:[#allocation3] sm:$0xff] %vm679_vm5, %v661_v30  ;;  %v676_v32 = vadd.f32 %v3200_v31, %v3113_v26 }
 0x213   : > { %v670_v33 = vpop.f32.mrf.mxu1 }
 0x214   : > { %683 = vst.msk [vmem:[#allocation3 + $0x18] sm:$0xff] %vm679_vm5, %v676_v32  ;;  %v671_v34 = vadd.f32 %v3113_v26, %v670_v33  ;;  %v4071_v33 = vsub.s32 7, %v4001_v46 }
 0x216   : > { %682 = vst.msk [vmem:[#allocation3 + $0x10] sm:$0xff] %vm679_vm5, %v671_v34 }
 0x217   : > { %v1097_v43 = vld [vmem:[#allocation3 + $0x8] sm:$0xff] }
 0x219   : > { %v684_v36 = vld [vmem:[#allocation3] sm:$0xff] }
 0x21a   : > { %v686_v37 = vmax.f32 %v685_v35, %v684_v36 }
 0x21b   : > { %v1911_v5 = vld [vmem:[#allocation3 + $0x18] sm:$0xff] }
 0x21c   : > { %v687_v38 = vsub.f32 %v685_v35, %v686_v37  ;;  %v690_v39 = vsub.f32 %v684_v36, %v686_v37  ;;  %931 = vst.msk [vmem:[#allocation8] sm:$0xff] %vm679_vm5, %v686_v37 }
 0x21d   : > { %v1504_v50 = vld [vmem:[#allocation3 + $0x10] sm:$0xff] }
 0x21e   : > { %v688_v40 = vmul.f32 1.442695, %v687_v38  ;;  %v691_v41 = vmul.f32 1.442695, %v690_v39 }
 0x220   : > { %3401 = vpow2.f32 %v688_v40 }
 0x221   : > { %3403 = vpow2.f32 %v691_v41 }
 0x223   : > { %v1098_v44 = vld [vmem:[#allocation8] sm:$0xff] }
 0x224   : > { %v1099_v45 = vmax.f32 %v1098_v44, %v1097_v43 }
 0x226   : > { %1345 = vst.msk [vmem:[#allocation8] sm:$0xff] %vm679_vm5, %v1099_v45  ;;  %v1100_v47 = vsub.f32 %v1098_v44, %v1099_v45  ;;  %v1103_v49 = vsub.f32 %v1097_v43, %v1099_v45 }
 0x228   : > { %v1101_v52 = vmul.f32 1.442695, %v1100_v47  ;;  %v1104_v58 = vmul.f32 1.442695, %v1103_v49 }
 0x22a   : > { %3405 = vpow2.f32 %v1101_v52 }
 0x22b   : > { %3407 = vpow2.f32 %v1104_v58 }
 0x22d   : > { %v4006_v51 = vpop.eup %3401  ;;  %v1505_v53 = vld [vmem:[#allocation8] sm:$0xff] }
 0x22e   : > { %v4008_v54 = vpop.eup %3403  ;;  %v1506_v55 = vmax.f32 %v1505_v53, %v1504_v50  ;;  %v707_v56 = vrot.slane %v4006_v51, %v4004_v48  ;;  %v714_v1 = vrot.slane %v4006_v51, %v4013_v57  ;;  %v694_v4 = vmul.f32 %v4006_v51, %v693_v62 }
 0x22f   : > { %v771_v59 = vrot.slane %v4008_v54, %v4004_v48  ;;  %v778_v3 = vrot.slane %v4008_v54, %v4013_v57  ;;  %v721_v7 = vrot.slane %v4006_v51, %v4021_v2  ;;  %v785_v12 = vrot.slane %v4008_v54, %v4021_v2 }
 0x230   : > { %v1507_v60 = vsub.f32 %v1505_v53, %v1506_v55  ;;  %v1510_v61 = vsub.f32 %v1504_v50, %v1506_v55  ;;  %1752 = vst.msk [vmem:[#allocation8] sm:$0xff] %vm679_vm5, %v1506_v55  ;;  %709 = vbcast.lane.b32.xlu0 %v707_v56, 256  ;;  %v4027_v6 = vadd.f32 %v4008_v54, %v694_v4 }
 0x231   : > { %773 = vbcast.lane.b32.xlu1 %v771_v59, 256  ;;  %v728_v16 = vrot.slane %v4006_v51, %v4032_v10  ;;  %v792_v18 = vrot.slane %v4008_v54, %v4032_v10  ;;  %v735_v22 = vrot.slane %v4006_v51, %v4042_v17  ;;  %v799_v25 = vrot.slane %v4008_v54, %v4042_v17 }
 0x232   : > { %v1508_v63 = vmul.f32 1.442695, %v1507_v60  ;;  %v1511_v0 = vmul.f32 1.442695, %v1510_v61  ;;  %932 = vst.msk [vmem:[#allocation7] sm:$0xff] %vm679_vm5, %v4027_v6  ;;  %v742_v32 = vrot.slane %v4006_v51, %v4051_v23  ;;  %v806_v36 = vrot.slane %v4008_v54, %v4051_v23 }
 0x233   : > { %v749_v44 = vrot.slane %v4006_v51, %v4061_v29  ;;  %v813_v45 = vrot.slane %v4008_v54, %v4061_v29  ;;  %v756_v55 = vrot.slane %v4006_v51, %v4071_v33  ;;  %v820_v59 = vrot.slane %v4008_v54, %v4071_v33 }
 0x234   : > { %3409 = vpow2.f32 %v1508_v63  ;;  %716 = vbcast.lane.b32.xlu0 %v714_v1, 256 }
 0x235   : > { %3411 = vpow2.f32 %v1511_v0  ;;  %780 = vbcast.lane.b32.xlu1 %v778_v3, 256 }
 0x237   : > { %v1912_v11 = vld [vmem:[#allocation8] sm:$0xff]  ;;  %v4046_v21 = vpop.eup %3405 }
 0x238   : > { %v1913_v13 = vmax.f32 %v1912_v11, %v1911_v5  ;;  %723 = vbcast.lane.b32.xlu0 %v721_v7, 256  ;;  %v4056_v27 = vpop.eup %3407  ;;  %v1120_v4 = vrot.slane %v4046_v21, %v4004_v48  ;;  %v1127_v7 = vrot.slane %v4046_v21, %v4013_v57 }
 0x239   : > { %787 = vbcast.lane.b32.xlu1 %v785_v12, 256  ;;  %v1106_v24 = vld [vmem:[#allocation7] sm:$0xff] }
 0x23a   : > { %v1914_v14 = vsub.f32 %v1912_v11, %v1913_v13  ;;  %v1917_v15 = vsub.f32 %v1911_v5, %v1913_v13  ;;  %2159 = vst.msk [vmem:[#allocation8] sm:$0xff] %vm679_vm5, %v1913_v13  ;;  %v1107_v26 = vmul.f32 %v4046_v21, %v1106_v24 }
 0x23c   : > { %v1915_v19 = vmul.f32 1.442695, %v1914_v14  ;;  %v1918_v20 = vmul.f32 1.442695, %v1917_v15  ;;  %730 = vbcast.lane.b32.xlu0 %v728_v16, 256  ;;  %v4064_v30 = vadd.f32 %v4056_v27, %v1107_v26  ;;  %v1184_v16 = vrot.slane %v4056_v27, %v4004_v48 }
 0x23d   : > { %794 = vbcast.lane.b32.xlu1 %v792_v18, 256  ;;  %v1191_v18 = vrot.slane %v4056_v27, %v4013_v57 }
 0x23e   : > { %3413 = vpow2.f32 %v1915_v19  ;;  %1346 = vst.msk [vmem:[#allocation7] sm:$0xff] %vm679_vm5, %v4064_v30 }
 0x23f   : > { %3415 = vpow2.f32 %v1918_v20 }
 0x240   : > { %737 = vbcast.lane.b32.xlu0 %v735_v22, 256  ;;  %v1134_v22 = vrot.slane %v4046_v21, %v4021_v2 }
 0x241   : > { %v4058_v28 = vpop.eup %3409  ;;  %801 = vbcast.lane.b32.xlu1 %v799_v25, 256  ;;  %v1198_v25 = vrot.slane %v4056_v27, %v4021_v2 }
 0x242   : > { %v4066_v31 = vpop.eup %3411  ;;  %v1534_v34 = vrot.slane %v4058_v28, %v4013_v57  ;;  %v1541_v35 = vrot.slane %v4058_v28, %v4021_v2 }
 0x243   : > { %v1598_v37 = vrot.slane %v4066_v31, %v4013_v57  ;;  %v1605_v38 = vrot.slane %v4066_v31, %v4021_v2  ;;  %v1612_v39 = vrot.slane %v4066_v31, %v4032_v10  ;;  %v1619_v40 = vrot.slane %v4066_v31, %v4042_v17 }
 0x244   : > { %744 = vbcast.lane.b32.xlu0 %v742_v32, 256  ;;  %v1626_v41 = vrot.slane %v4066_v31, %v4051_v23  ;;  %v1633_v42 = vrot.slane %v4066_v31, %v4061_v29  ;;  %v1640_v43 = vrot.slane %v4066_v31, %v4071_v33 }
 0x245   : > { %808 = vbcast.lane.b32.xlu1 %v806_v36, 256  ;;  %v1513_v56 = vld [vmem:[#allocation7] sm:$0xff]  ;;  %v1141_v36 = vrot.slane %v4046_v21, %v4032_v10 }
 0x246   : > { %v1514_v60 = vmul.f32 %v4058_v28, %v1513_v56 }
 0x248   : > { %751 = vbcast.lane.b32.xlu0 %v749_v44, 256  ;;  %v1515_v3 = vadd.f32 %v4066_v31, %v1514_v60  ;;  %v1205_v44 = vrot.slane %v4056_v27, %v4032_v10  ;;  %v1148_v60 = vrot.slane %v4046_v21, %v4042_v17 }
 0x249   : > { %815 = vbcast.lane.b32.xlu1 %v813_v45, 256 }
 0x24a   : > { %3417 = vrcp.f32 %v1515_v3  ;;  %1753 = vst.msk [vmem:[#allocation7] sm:$0xff] %vm679_vm5, %v1515_v3 }
 0x24b   : > { %v4111_v58 = vpop.eup %3413 }
 0x24c   : > { %v4116_v61 = vpop.eup %3415  ;;  %758 = vbcast.lane.b32.xlu0 %v756_v55, 256  ;;  %v1941_v62 = vrot.slane %v4111_v58, %v4013_v57  ;;  %v1969_v63 = vrot.slane %v4111_v58, %v4051_v23 }
 0x24d   : > { %822 = vbcast.lane.b32.xlu1 %v820_v59, 256  ;;  %v2005_v0 = vrot.slane %v4116_v61, %v4013_v57  ;;  %v2012_v54 = vrot.slane %v4116_v61, %v4021_v2  ;;  %v2019_v1 = vrot.slane %v4116_v61, %v4032_v10  ;;  %v2026_v5 = vrot.slane %v4116_v61, %v4042_v17  ;;  %v697_v59 = vld [vmem:[#allocation6 + $0x4] sm:$0xf] }
 0x250   : > { %1122 = vbcast.lane.b32.xlu0 %v1120_v4, 256 }
 0x251   : > { %1129 = vbcast.lane.b32.xlu1 %v1127_v7, 256  ;;  %v1920_v24 = vld [vmem:[#allocation7] sm:$0xff]  ;;  %v1212_v7 = vrot.slane %v4056_v27, %v4042_v17 }
 0x252   : > { %v1921_v26 = vmul.f32 %v4111_v58, %v1920_v24  ;;  %v1162_v24 = vrot.slane %v4046_v21, %v4061_v29 }
 0x254   : > { %1186 = vbcast.lane.b32.xlu0 %v1184_v16, 256  ;;  %v1922_v32 = vadd.f32 %v4116_v61, %v1921_v26 }
 0x255   : > { %1193 = vbcast.lane.b32.xlu1 %v1191_v18, 256  ;;  %v1219_v18 = vrot.slane %v4056_v27, %v4051_v23 }
 0x256   : > { %3419 = vrcp.f32 %v1922_v32  ;;  %2160 = vst.msk [vmem:[#allocation7] sm:$0xff] %vm679_vm5, %v1922_v32  ;;  %v1169_v32 = vrot.slane %v4046_v21, %v4071_v33 }
 0x257   : > { %v4167_v45 = vpop.eup %3417  ;;  %3421 = vrcp.f32 %v4027_v6 }
 0x258   : > { %1136 = vbcast.lane.b32.xlu0 %v1134_v22, 256  ;;  %v1774_v55 = vrot.slane %v4167_v45, %v4013_v57  ;;  %v1155_v22 = vrot.slane %v4046_v21, %v4051_v23  ;;  %3423 = vrcp.f32 %v4064_v30 }
 0x259   : > { %1200 = vbcast.lane.b32.xlu1 %v1198_v25, 256  ;;  %v1226_v25 = vrot.slane %v4056_v27, %v4061_v29 }
 0x25c   : > { %1143 = vbcast.lane.b32.xlu0 %v1141_v36, 256 }
 0x25d   : > { %1207 = vbcast.lane.b32.xlu1 %v1205_v44, 256 }
 0x260   : > { %1150 = vbcast.lane.b32.xlu0 %v1148_v60, 256 }
 0x261   : > { %1214 = vbcast.lane.b32.xlu1 %v1212_v7, 256 }
 0x263   : > { %v4197_v26 = vpop.eup %3419 }
 0x264   : > { %1221 = vbcast.lane.b32.xlu0 %v1219_v18, 256  ;;  %v3422_v30 = vpop.eup %3421 }
 0x265   : > { %1157 = vbcast.lane.b32.xlu1 %v1155_v22, 256  ;;  %v954_v16 = vrot.slane %v3422_v30, %v4013_v57  ;;  %v961_v6 = vrot.slane %v3422_v30, %v4021_v2  ;;  %v3424_v4 = vpop.eup %3423  ;;  %v968_v20 = vrot.slane %v3422_v30, %v4032_v10  ;;  %v975_v3 = vrot.slane %v3422_v30, %v4042_v17 }
 0x266   : > { %v1367_v21 = vrot.slane %v3424_v4, %v4013_v57 }
 0x268   : > { %1164 = vbcast.lane.b32.xlu0 %v1162_v24, 256  ;;  %v1233_v24 = vrot.slane %v4056_v27, %v4071_v33  ;;  %v1374_v27 = vrot.slane %v3424_v4, %v4021_v2 }
 0x269   : > { %1228 = vbcast.lane.b32.xlu1 %v1226_v25, 256  ;;  %v947_v25 = vrot.slane %v3422_v30, %v4004_v48 }
 0x26c   : > { %1171 = vbcast.lane.b32.xlu0 %v1169_v32, 256  ;;  %v982_v32 = vrot.slane %v3422_v30, %v4051_v23 }
 0x26d   : > { %1235 = vbcast.lane.b32.xlu1 %v1233_v24, 256  ;;  %v989_v24 = vrot.slane %v3422_v30, %v4061_v29 }
 0x270   : > { %949 = vbcast.lane.b32.xlu0 %v947_v25, 256  ;;  %v1402_v25 = vrot.slane %v3424_v4, %v4061_v29 }
 0x271   : > { %956 = vbcast.lane.b32.xlu1 %v954_v16, 256  ;;  %v1381_v16 = vrot.slane %v3424_v4, %v4032_v10 }
 0x274   : > { %963 = vbcast.lane.b32.xlu0 %v961_v6, 256  ;;  %v1360_v6 = vrot.slane %v3424_v4, %v4004_v48 }
 0x275   : > { %970 = vbcast.lane.b32.xlu1 %v968_v20, 256  ;;  %v1388_v20 = vrot.slane %v3424_v4, %v4042_v17 }
 0x278   : > { %1369 = vbcast.lane.b32.xlu0 %v1367_v21, 256  ;;  %v996_v21 = vrot.slane %v3422_v30, %v4071_v33  ;;  %v2322_v30 = vld [vmem:[#allocation14 + $0x8] sm:$0xff] }
 0x279   : > { %977 = vbcast.lane.b32.xlu1 %v975_v3, 256  ;;  %v1395_v3 = vrot.slane %v3424_v4, %v4051_v23  ;;  %3201 = vmatprep.subr.mxu1 %v2322_v30 }
 0x27a   : > { %3202 = vmatpush3.msra.mxu1 %v2322_v30 }
 0x27c   : > { %1376 = vbcast.lane.b32.xlu0 %v1374_v27, 256  ;;  %v1409_v27 = vrot.slane %v3424_v4, %v4071_v33  ;;  %v3706_v4 = vmov 0.0  }
 0x27d   : > { %984 = vbcast.lane.b32.xlu1 %v982_v32, 256  ;;  %v3704_v32 = vmov 1966171168   ;;  %3211 = vmatprep.subr.mxu0 %v3706_v4 }
 0x27e   : > { %3219 = vmatprep.mubr.msk.f32.mxu0 %vm3707_vm6, %v3706_v4 }
 0x280   : > { %1383 = vbcast.lane.b32.xlu0 %v1381_v16, 256  ;;  %v828_v16 = vunpack.c.l.s4 %v3704_v32 }
 0x281   : > { %991 = vbcast.lane.b32.xlu1 %v989_v24, 256  ;;  %v2432_v24 = vld [vmem:[#allocation10] sm:$0xff] }
 0x282   : > { %v829_v19 = vunpack.c.0.s8 %v828_v16 }
 0x284   : > { %1390 = vbcast.lane.b32.xlu0 %v1388_v20, 256  ;;  %v4235_v20 = vsub.s32 %v829_v19, %v4001_v46  ;;  %v4249_v46 = vld [vmem:[%s5082_s25 + $0x18] sm:$0xff] }
 0x285   : > { %1362 = vbcast.lane.b32.xlu1 %v1360_v6, 256  ;;  %v2321_v6 = vld [vmem:[#allocation14] sm:$0xff]  ;;  %3212 = vmatpush3.msra.mxu0 %v4249_v46 }
 0x286   : > { %3203 = vmatprep.subr.mxu1 %v2321_v6  ;;  %3213 = vmatprep.subr.mxu0 %v3706_v4 }
 0x287   : > { %3204 = vmatpush3.msra.mxu1 %v2321_v6 }
 0x288   : > { %1397 = vbcast.lane.b32.xlu0 %v1395_v3, 256  ;;  %v833_v3 = vrot.slane %v3976_v8, %v4235_v20  ;;  %3222 = vmatprep.subr.mxu1 %v3706_v4 }
 0x289   : > { %998 = vbcast.lane.b32.xlu1 %v996_v21, 256 }
 0x28a   : > { %v849_v19 = vrot.slane %v833_v3, %v4235_v20  ;;  %v841_v21 = vcombine.high %v833_v3, %v833_v3 }
 0x28c   : > { %1404 = vbcast.lane.b32.xlu0 %v1402_v25, 256  ;;  %v4273_v25 = vld [vmem:[%s5082_s25] sm:$0xff]  ;;  %v878_v32 = vrot.slane %v849_v19, %v4004_v48  ;;  %v863_v16 = vrot.slane %v841_v21, %v4235_v20  ;;  %v871_v22 = vcombine.high %v849_v19, %v849_v19 }
 0x28d   : > { %1411 = vbcast.lane.b32.xlu1 %v1409_v27, 256  ;;  %v2431_v27 = vld [vmem:[#allocation9] sm:$0xff] }
 0x28e   : > { %v882_v21 = vrot.slane %v863_v16, %v4004_v48  ;;  %v886_v19 = vrot.slane %v871_v22, %v4004_v48  ;;  %v873_v18 = vcombine.high %v863_v16, %v863_v16 }
 0x290   : > { %v890_v16 = vrot.slane %v873_v18, %v4004_v48  ;;  %v700_v18 = vld [vmem:[#allocation6 + $0x10] sm:$0xf] }
 0x291   : > { %2521 = vrot.lane.b32.xlu1 %v2432_v24, %s3705_s12 }
 0x295   : > { %1536 = vbcast.lane.b32.xlu1 %v1534_v34, 256  ;;  %v4254_v34 = vld [vmem:[%s5082_s25 + $0x10] sm:$0xff] }
 0x296   : > { %3214 = vmatpush3.msra.mxu0 %v4254_v34 }
 0x297   : > { %3215 = vmatprep.subr.mxu0 %v3706_v4 }
 0x299   : > { %1600 = vbcast.lane.b32.xlu1 %v1598_v37, 256  ;;  %v4263_v37 = vld [vmem:[%s5082_s25 + $0x8] sm:$0xff] }
 0x29a   : > { %3216 = vmatpush3.msra.mxu0 %v4263_v37 }
 0x29b   : > { %3217 = vmatprep.subr.mxu0 %v3706_v4 }
 0x29c   : > { %3218 = vmatpush3.msra.mxu0 %v4273_v25 }
 0x29d   : > { %1607 = vbcast.lane.b32.xlu1 %v1605_v38, 256  ;;  %v696_v38 = vld [vmem:[#allocation6] sm:$0xf]  ;;  %3220 = vmatmul.mubr.msk.f32.vlgmr.msra.gmra.mxu0 %vm2438_vm7, %v2431_v27 }
 0x29e   : > { %3233 = vmatprep.subr.mxu0 %v3706_v4  ;;  %3241 = vmatprep.mubr.msk.f32.mxu0 %vm3707_vm6, %v3706_v4 }
 0x29f   : > { %3234 = vmatpush3.msra.mxu0 %v4249_v46 }
 0x2a0   : > { %3235 = vmatprep.subr.mxu0 %v3706_v4 }
 0x2a1   : > { %1614 = vbcast.lane.b32.xlu1 %v1612_v39, 256  ;;  %v826_v39 = vcombine.high %v3976_v8, %v3976_v8  ;;  %3236 = vmatpush3.msra.mxu0 %v4254_v34 }
 0x2a2   : > { %v710_v24 = vpop.permute.xlu0 %709  ;;  %3237 = vmatprep.subr.mxu0 %v3706_v4 }
 0x2a3   : > { %v774_v30 = vpop.permute.xlu1 %773  ;;  %v760_v6 = vmul.f32 %v710_v24, %v696_v38  ;;  %3238 = vmatpush3.msra.mxu0 %v4263_v37 }
 0x2a4   : > { %v915_v3 = vmul.f32 %v878_v32, %v774_v30  ;;  %v698_v30 = vld [vmem:[#allocation6 + $0x8] sm:$0xf]  ;;  %3239 = vmatprep.subr.mxu0 %v3706_v4 }
 0x2a5   : > { %1621 = vbcast.lane.b32.xlu1 %v1619_v40, 256  ;;  %v840_v40 = vrot.slane %v826_v39, %v4235_v20  ;;  %3240 = vmatpush3.msra.mxu0 %v4273_v25 }
 0x2a6   : > { %v4298_v27 = vadd.f32 %v915_v3, %v760_v6  ;;  %v717_v38 = vpop.permute.xlu0 %716 }
 0x2a7   : > { %v781_v32 = vpop.permute.xlu1 %780  ;;  %v761_v24 = vmul.f32 %v717_v38, %v697_v59  ;;  %v856_v39 = vrot.slane %v840_v40, %v4235_v20 }
 0x2a8   : > { %934 = vst.msk [vmem:[#allocation6] sm:$0xf] %vm933_vm8, %v4298_v27  ;;  %v916_v8 = vmul.f32 %v882_v21, %v781_v32  ;;  %v699_v21 = vld [vmem:[#allocation6 + $0xc] sm:$0xf]  ;;  %v842_v32 = vcombine.high %v840_v40, %v840_v40 }
 0x2a9   : > { %1628 = vbcast.lane.b32.xlu1 %v1626_v41, 256 }
 0x2aa   : > { %v4311_v59 = vadd.f32 %v916_v8, %v761_v24  ;;  %v724_v6 = vpop.permute.xlu0 %723 }
 0x2ab   : > { %v788_v3 = vpop.permute.xlu1 %787  ;;  %v762_v38 = vmul.f32 %v724_v6, %v698_v30  ;;  %v870_v6 = vrot.slane %v842_v32, %v4235_v20 }
 0x2ac   : > { %935 = vst.msk [vmem:[#allocation6 + $0x4] sm:$0xf] %vm933_vm8, %v4311_v59  ;;  %v917_v22 = vmul.f32 %v886_v19, %v788_v3  ;;  %v894_v19 = vrot.slane %v856_v39, %v4004_v48 }
 0x2ad   : > { %1635 = vbcast.lane.b32.xlu1 %v1633_v42, 256 }
 0x2ae   : > { %v4320_v41 = vadd.f32 %v917_v22, %v762_v38  ;;  %v731_v24 = vpop.permute.xlu0 %730 }
 0x2af   : > { %v795_v8 = vpop.permute.xlu1 %794  ;;  %v763_v7 = vmul.f32 %v731_v24, %v699_v21  ;;  %v701_v21 = vld [vmem:[#allocation6 + $0x14] sm:$0xf]  ;;  %v872_v24 = vcombine.high %v856_v39, %v856_v39  ;;  %v1247_v39 = vrot.slane %v3980_v9, %v4235_v20 }
 0x2b0   : > { %936 = vst.msk [vmem:[#allocation6 + $0x8] sm:$0xf] %vm933_vm8, %v4320_v41  ;;  %v918_v30 = vmul.f32 %v890_v16, %v795_v8  ;;  %v898_v16 = vrot.slane %v870_v6, %v4004_v48 }
 0x2b1   : > { %1642 = vbcast.lane.b32.xlu1 %v1640_v43, 256 }
 0x2b2   : > { %v4329_v40 = vadd.f32 %v918_v30, %v763_v7  ;;  %v738_v42 = vpop.permute.xlu0 %737 }
 0x2b3   : > { %v802_v3 = vpop.permute.xlu1 %801  ;;  %v764_v38 = vmul.f32 %v738_v42, %v700_v18  ;;  %v902_v18 = vrot.slane %v872_v24, %v4004_v48  ;;  %v874_v42 = vcombine.high %v870_v6, %v870_v6  ;;  %v703_v24 = vld [vmem:[#allocation6 + $0x1c] sm:$0xf]  ;;  %v1255_v6 = vcombine.high %v1247_v39, %v1247_v39 }
 0x2b4   : > { %937 = vst.msk [vmem:[#allocation6 + $0xc] sm:$0xf] %vm933_vm8, %v4329_v40  ;;  %v919_v22 = vmul.f32 %v894_v19, %v802_v3  ;;  %v702_v19 = vld [vmem:[#allocation6 + $0x18] sm:$0xf] }
 0x2b5   : > { %1943 = vbcast.lane.b32.xlu1 %v1941_v62, 256 }
 0x2b6   : > { %v4337_v32 = vadd.f32 %v919_v22, %v764_v38  ;;  %v745_v43 = vpop.permute.xlu0 %744 }
 0x2b7   : > { %v809_v7 = vpop.permute.xlu1 %808  ;;  %v765_v8 = vmul.f32 %v745_v43, %v701_v21  ;;  %v906_v21 = vrot.slane %v874_v42, %v4004_v48 }
 0x2b8   : > { %938 = vst.msk [vmem:[#allocation6 + $0x10] sm:$0xf] %vm933_vm8, %v4337_v32  ;;  %v920_v30 = vmul.f32 %v898_v16, %v809_v7 }
 0x2b9   : > { %2007 = vbcast.lane.b32.xlu1 %v2005_v0, 256 }
 0x2ba   : > { %v4347_v62 = vadd.f32 %v920_v30, %v765_v8  ;;  %v752_v3 = vpop.permute.xlu0 %751  ;;  %v1263_v30 = vrot.slane %v1247_v39, %v4235_v20 }
 0x2bb   : > { %v816_v38 = vpop.permute.xlu1 %815  ;;  %v766_v22 = vmul.f32 %v752_v3, %v702_v19 }
 0x2bc   : > { %939 = vst.msk [vmem:[#allocation6 + $0x14] sm:$0xf] %vm933_vm8, %v4347_v62  ;;  %v921_v16 = vmul.f32 %v902_v18, %v816_v38  ;;  %v1277_v18 = vrot.slane %v1255_v6, %v4235_v20  ;;  %v1292_v38 = vrot.slane %v1263_v30, %v4004_v48 }
 0x2bd   : > { %2014 = vbcast.lane.b32.xlu1 %v2012_v54, 256 }
 0x2be   : > { %v4355_v43 = vadd.f32 %v921_v16, %v766_v22  ;;  %v759_v0 = vpop.permute.xlu0 %758  ;;  %v1285_v22 = vcombine.high %v1263_v30, %v1263_v30  ;;  %v1296_v39 = vrot.slane %v1277_v18, %v4004_v48  ;;  %v1240_v16 = vcombine.high %v3980_v9, %v3980_v9 }
 0x2bf   : > { %v823_v7 = vpop.permute.xlu1 %822  ;;  %v767_v8 = vmul.f32 %v759_v0, %v703_v24  ;;  %v1110_v24 = vld [vmem:[#allocation6 + $0x4] sm:$0xf]  ;;  %v1287_v60 = vcombine.high %v1277_v18, %v1277_v18 }
 0x2c0   : > { %940 = vst.msk [vmem:[#allocation6 + $0x18] sm:$0xf] %vm933_vm8, %v4355_v43  ;;  %v922_v19 = vmul.f32 %v906_v21, %v823_v7  ;;  %v1254_v15 = vrot.slane %v1240_v16, %v4235_v20 }
 0x2c1   : > { %2021 = vbcast.lane.b32.xlu1 %v2019_v1, 256  ;;  %v1109_v1 = vld [vmem:[#allocation6] sm:$0xf]  ;;  %v1304_v18 = vrot.slane %v1287_v60, %v4004_v48 }
 0x2c2   : > { %v4364_v42 = vadd.f32 %v922_v19, %v767_v8  ;;  %v1123_v54 = vpop.permute.xlu0 %1122  ;;  %v1300_v8 = vrot.slane %v1285_v22, %v4004_v48  ;;  %v1270_v22 = vrot.slane %v1254_v15, %v4235_v20 }
 0x2c3   : > { %v1130_v3 = vpop.permute.xlu1 %1129  ;;  %v1173_v6 = vmul.f32 %v1123_v54, %v1109_v1 }
 0x2c4   : > { %941 = vst.msk [vmem:[#allocation6 + $0x1c] sm:$0xf] %vm933_vm8, %v4364_v42  ;;  %v1174_v30 = vmul.f32 %v1130_v3, %v1110_v24  ;;  %v2174_v24 = vrot.slane %v4197_v26, %v4004_v48 }
 0x2c5   : > { %1776 = vbcast.lane.b32.xlu1 %v1774_v55, 256  ;;  %v1111_v55 = vld [vmem:[#allocation6 + $0x8] sm:$0xf] }
 0x2c6   : > { %v1187_v21 = vpop.permute.xlu0 %1186 }
 0x2c7   : > { %v1194_v0 = vpop.permute.xlu1 %1193  ;;  %v1329_v7 = vmul.f32 %v1292_v38, %v1187_v21  ;;  %v1256_v38 = vcombine.high %v1254_v15, %v1254_v15  ;;  %v1308_v15 = vrot.slane %v1270_v22, %v4004_v48 }
 0x2c8   : > { %v1330_v19 = vmul.f32 %v1296_v39, %v1194_v0  ;;  %v1113_v0 = vld [vmem:[#allocation6 + $0x10] sm:$0xf] }
 0x2c9   : > { %2028 = vbcast.lane.b32.xlu1 %v2026_v5, 256  ;;  %v4380_v9 = vadd.f32 %v1329_v7, %v1173_v6  ;;  %v1112_v5 = vld [vmem:[#allocation6 + $0xc] sm:$0xf]  ;;  %v1284_v60 = vrot.slane %v1256_v38, %v4235_v20 }
 0x2ca   : > { %v1137_v44 = vpop.permute.xlu0 %1136  ;;  %v4382_v14 = vadd.f32 %v1330_v19, %v1174_v30 }
 0x2cb   : > { %v1201_v54 = vpop.permute.xlu1 %1200  ;;  %v1175_v1 = vmul.f32 %v1137_v44, %v1111_v55  ;;  %1347 = vst.msk [vmem:[#allocation6] sm:$0xf] %vm933_vm8, %v4380_v9  ;;  %v1312_v19 = vrot.slane %v1284_v60, %v4004_v48 }
 0x2cc   : > { %v1331_v3 = vmul.f32 %v1300_v8, %v1201_v54  ;;  %1348 = vst.msk [vmem:[#allocation6 + $0x4] sm:$0xf] %vm933_vm8, %v4382_v14  ;;  %v1286_v54 = vcombine.high %v1270_v22, %v1270_v22 }
 0x2cd   : > { %1971 = vbcast.lane.b32.xlu1 %v1969_v63, 256 }
 0x2ce   : > { %v1144_v39 = vpop.permute.xlu0 %1143  ;;  %v4393_v16 = vadd.f32 %v1331_v3, %v1175_v1 }
 0x2cf   : > { %v1208_v44 = vpop.permute.xlu1 %1207  ;;  %v1176_v21 = vmul.f32 %v1144_v39, %v1112_v5 }
 0x2d0   : > { %v1332_v6 = vmul.f32 %v1304_v18, %v1208_v44  ;;  %1349 = vst.msk [vmem:[#allocation6 + $0x8] sm:$0xf] %vm933_vm8, %v4393_v16  ;;  %v1114_v18 = vld [vmem:[#allocation6 + $0x14] sm:$0xf]  ;;  %v1316_v44 = vrot.slane %v1286_v54, %v4004_v48 }
 0x2d1   : > { %2176 = vbcast.lane.b32.xlu1 %v2174_v24, 256  ;;  %v1115_v24 = vld [vmem:[#allocation6 + $0x18] sm:$0xf] }
 0x2d2   : > { %v1151_v63 = vpop.permute.xlu0 %1150  ;;  %v4401_v7 = vadd.f32 %v1332_v6, %v1176_v21  ;;  %v1288_v21 = vcombine.high %v1284_v60, %v1284_v60 }
 0x2d3   : > { %v1215_v8 = vpop.permute.xlu1 %1214  ;;  %v1177_v30 = vmul.f32 %v1151_v63, %v1113_v0 }
 0x2d4   : > { %v1333_v55 = vmul.f32 %v1308_v15, %v1215_v8  ;;  %1350 = vst.msk [vmem:[#allocation6 + $0xc] sm:$0xf] %vm933_vm8, %v4401_v7  ;;  %v1320_v8 = vrot.slane %v1288_v21, %v4004_v48 }
 0x2d6   : > { %v1222_v1 = vpop.permute.xlu0 %1221  ;;  %v4406_v38 = vadd.f32 %v1333_v55, %v1177_v30  ;;  %v4416_v30 = vld [vmem:[#allocation2 + $0x10] sm:$0xff] }
 0x2d7   : > { %v1158_v3 = vpop.permute.xlu1 %1157  ;;  %v1334_v5 = vmul.f32 %v1312_v19, %v1222_v1  ;;  %v1116_v19 = vld [vmem:[#allocation6 + $0x1c] sm:$0xf] }
 0x2d8   : > { %v1178_v39 = vmul.f32 %v1158_v3, %v1114_v18  ;;  %1351 = vst.msk [vmem:[#allocation6 + $0x10] sm:$0xf] %vm933_vm8, %v4406_v38  ;;  %v1654_v18 = vrot.slane %v4416_v30, %v4235_v20 }
 0x2da   : > { %v1165_v6 = vpop.permute.xlu0 %1164  ;;  %v4411_v15 = vadd.f32 %v1334_v5, %v1178_v39 }
 0x2db   : > { %v1229_v22 = vpop.permute.xlu1 %1228  ;;  %v1179_v0 = vmul.f32 %v1165_v6, %v1115_v24  ;;  %v1662_v6 = vcombine.high %v1654_v18, %v1654_v18 }
 0x2dc   : > { %v1335_v63 = vmul.f32 %v1316_v44, %v1229_v22  ;;  %1352 = vst.msk [vmem:[#allocation6 + $0x14] sm:$0xf] %vm933_vm8, %v4411_v15 }
 0x2de   : > { %v1172_v55 = vpop.permute.xlu0 %1171  ;;  %v4418_v60 = vadd.f32 %v1335_v63, %v1179_v0 }
 0x2df   : > { %v1236_v54 = vpop.permute.xlu1 %1235  ;;  %v1180_v1 = vmul.f32 %v1172_v55, %v1116_v19 }
 0x2e0   : > { %v1336_v3 = vmul.f32 %v1320_v8, %v1236_v54  ;;  %1353 = vst.msk [vmem:[#allocation6 + $0x18] sm:$0xf] %vm933_vm8, %v4418_v60 }
 0x2e2   : > { %v950_v5 = vpop.permute.xlu0 %949  ;;  %v4424_v39 = vadd.f32 %v1336_v3, %v1180_v1 }
 0x2e3   : > { %v957_v44 = vpop.permute.xlu1 %956  ;;  %v1000_v21 = vmul.f32 %v950_v5, %v4298_v27  ;;  %v4435_v27 = vrot.slane %v1662_v6, %v4235_v20 }
 0x2e4   : > { %v1001_v24 = vmul.f32 %v957_v44, %v4311_v59  ;;  %1354 = vst.msk [vmem:[#allocation6 + $0x1c] sm:$0xf] %vm933_vm8, %v4424_v39 }
 0x2e5   : > { %v1008_v22 = vsel %vm933_vm8, %v1000_v21, 0.0  ;;  %v1703_v6 = vrot.slane %v4435_v27, %v4004_v48 }
 0x2e6   : > { %v1015_v0 = vsel %vm933_vm8, %v1001_v24, 0.0  ;;  %v1009_v63 = vrot.slane %v1008_v22, 4  ;;  %v964_v8 = vpop.permute.xlu0 %963 }
 0x2e7   : > { %v1016_v19 = vrot.slane %v1015_v0, 4  ;;  %v971_v55 = vpop.permute.xlu1 %970  ;;  %v1002_v54 = vmul.f32 %v964_v8, %v4320_v41 }
 0x2e8   : > { %v1010_v1 = vadd.f32 %v1009_v63, %v1008_v22  ;;  %v1003_v3 = vmul.f32 %v971_v55, %v4329_v40  ;;  %v4445_v55 = vrot.slane %v1654_v18, %v4235_v20 }
 0x2e9   : > { %v1017_v59 = vadd.f32 %v1016_v19, %v1015_v0  ;;  %v1022_v5 = vsel %vm933_vm8, %v1002_v54, 0.0 }
 0x2ea   : > { %v1011_v44 = vrot.slane %v1010_v1, 2  ;;  %v1029_v21 = vsel %vm933_vm8, %v1003_v3, 0.0  ;;  %v1023_v36 = vrot.slane %v1022_v5, 4  ;;  %v1370_v24 = vpop.permute.xlu0 %1369  ;;  %v1692_v49 = vcombine.high %v4445_v55, %v4445_v55 }
 0x2eb   : > { %v1018_v13 = vrot.slane %v1017_v59, 2  ;;  %v1030_v56 = vrot.slane %v1029_v21, 4  ;;  %v978_v12 = vpop.permute.xlu1 %977  ;;  %v1414_v41 = vmul.f32 %v1370_v24, %v4382_v14 }
 0x2ec   : > { %v1012_v22 = vadd.f32 %v1011_v44, %v1010_v1  ;;  %v1024_v63 = vadd.f32 %v1023_v36, %v1022_v5  ;;  %v1004_v40 = vmul.f32 %v978_v12, %v4337_v32 }
 0x2ed   : > { %v1019_v0 = vadd.f32 %v1018_v13, %v1017_v59  ;;  %v1031_v8 = vadd.f32 %v1030_v56, %v1029_v21  ;;  %v1428_v19 = vsel %vm933_vm8, %v1414_v41, 0.0 }
 0x2ee   : > { %v1013_v54 = vrot.slane %v1012_v22, 1  ;;  %v1025_v3 = vrot.slane %v1024_v63, 2  ;;  %v1036_v14 = vsel %vm933_vm8, %v1004_v40, 0.0  ;;  %v1429_v1 = vrot.slane %v1428_v19, 4  ;;  %v1377_v36 = vpop.permute.xlu0 %1376 }
 0x2ef   : > { %v1020_v5 = vrot.slane %v1019_v0, 1  ;;  %v1032_v12 = vrot.slane %v1031_v8, 2  ;;  %v1037_v32 = vrot.slane %v1036_v14, 4  ;;  %v985_v44 = vpop.permute.xlu1 %984  ;;  %v1415_v13 = vmul.f32 %v1377_v36, %v4393_v16 }
 0x2f0   : > { %v1014_v56 = vadd.f32 %v1013_v54, %v1012_v22  ;;  %v1026_v59 = vadd.f32 %v1025_v3, %v1024_v63  ;;  %v1430_v21 = vadd.f32 %v1429_v1, %v1428_v19  ;;  %v1005_v24 = vmul.f32 %v985_v44, %v4347_v62 }
 0x2f1   : > { %v1021_v18 = vadd.f32 %v1020_v5, %v1019_v0  ;;  %v1033_v41 = vadd.f32 %v1032_v12, %v1031_v8  ;;  %v1038_v11 = vadd.f32 %v1037_v32, %v1036_v14  ;;  %v1435_v51 = vsel %vm933_vm8, %v1415_v13, 0.0 }
 0x2f2   : > { %v1064_v53 = vmul.f32 0.25, %v1014_v56  ;;  %v1027_v40 = vrot.slane %v1026_v59, 1  ;;  %v1043_v52 = vsel %vm933_vm8, %v1005_v24, 0.0  ;;  %v1384_v50 = vpop.permute.xlu0 %1383  ;;  %v1431_v0 = vrot.slane %v1430_v21, 2 }
 0x2f3   : > { %v1065_v16 = vmul.f32 0.25, %v1021_v18  ;;  %v1034_v22 = vrot.slane %v1033_v41, 1  ;;  %v1039_v63 = vrot.slane %v1038_v11, 2  ;;  %v1044_v19 = vrot.slane %v1043_v52, 4  ;;  %v992_v54 = vpop.permute.xlu1 %991 }
 0x2f4   : > { %v1028_v62 = vadd.f32 %v1027_v40, %v1026_v59  ;;  %v1436_v8 = vrot.slane %v1435_v51, 4  ;;  %v1006_v3 = vmul.f32 %v992_v54, %v4355_v43  ;;  %v1647_v56 = vcombine.high %v4416_v30, %v4416_v30 }
 0x2f5   : > { %v1081_v14 = vsel %vm1080_vm9, %v1065_v16, %v1064_v53  ;;  %v1035_v1 = vadd.f32 %v1034_v22, %v1033_v41  ;;  %v1040_v36 = vadd.f32 %v1039_v63, %v1038_v11  ;;  %v1045_v5 = vadd.f32 %v1044_v19, %v1043_v52 }
 0x2f6   : > { %v1066_v12 = vmul.f32 0.25, %v1028_v62  ;;  %v1437_v32 = vadd.f32 %v1436_v8, %v1435_v51  ;;  %v1050_v44 = vsel %vm933_vm8, %v1006_v3, 0.0  ;;  %v1391_v13 = vpop.permute.xlu0 %1390  ;;  %v1432_v53 = vadd.f32 %v1431_v0, %v1430_v21 }
 0x2f7   : > { %v1067_v24 = vmul.f32 0.25, %v1035_v1  ;;  %v1041_v59 = vrot.slane %v1040_v36, 1  ;;  %v1046_v18 = vrot.slane %v1045_v5, 2  ;;  %v1051_v40 = vrot.slane %v1050_v44, 4  ;;  %v1363_v47 = vpop.permute.xlu1 %1362 }
 0x2f8   : > { %v1083_v43 = vsel %vm1082_vm10, %v1066_v12, %v1081_v14  ;;  %v1416_v11 = vmul.f32 %v1384_v50, %v4401_v7  ;;  %v1694_v52 = vcombine.high %v4435_v27, %v4435_v27  ;;  %v1438_v63 = vrot.slane %v1437_v32, 2 }
 0x2f9   : > { %v1042_v51 = vadd.f32 %v1041_v59, %v1040_v36  ;;  %v1085_v41 = vsel %vm1084_vm11, %v1067_v24, %v1083_v43  ;;  %v1047_v16 = vadd.f32 %v1046_v18, %v1045_v5  ;;  %v1052_v22 = vadd.f32 %v1051_v40, %v1050_v44 }
 0x2fa   : > { %v1442_v30 = vsel %vm933_vm8, %v1416_v11, 0.0  ;;  %v1417_v19 = vmul.f32 %v1391_v13, %v4406_v38  ;;  %v1398_v54 = vpop.permute.xlu0 %1397  ;;  %v4467_v62 = vrot.slane %v1647_v56, %v4235_v20  ;;  %v1433_v3 = vrot.slane %v1432_v53, 1 }
 0x2fb   : > { %v1068_v21 = vmul.f32 0.25, %v1042_v51  ;;  %v1048_v50 = vrot.slane %v1047_v16, 1  ;;  %v1053_v7 = vrot.slane %v1052_v22, 2  ;;  %v1443_v0 = vrot.slane %v1442_v30, 4  ;;  %v999_v8 = vpop.permute.xlu1 %998 }
 0x2fc   : > { %v1449_v14 = vsel %vm933_vm8, %v1417_v19, 0.0  ;;  %v1413_v1 = vmul.f32 %v1363_v47, %v4380_v9  ;;  %v1418_v36 = vmul.f32 %v1398_v54, %v4411_v15  ;;  %v1439_v13 = vadd.f32 %v1438_v63, %v1437_v32 }
 0x2fd   : > { %v1087_v5 = vsel %vm1086_vm12, %v1068_v21, %v1085_v41  ;;  %v1049_v12 = vadd.f32 %v1048_v50, %v1047_v16  ;;  %v1054_v38 = vadd.f32 %v1053_v7, %v1052_v22  ;;  %v1444_v44 = vadd.f32 %v1443_v0, %v1442_v30 }
 0x2fe   : > { %v1450_v56 = vrot.slane %v1449_v14, 4  ;;  %v1421_v24 = vsel %vm933_vm8, %v1413_v1, 0.0  ;;  %v1456_v59 = vsel %vm933_vm8, %v1418_v36, 0.0  ;;  %v1405_v51 = vpop.permute.xlu0 %1404  ;;  %v1434_v47 = vadd.f32 %v1433_v3, %v1432_v53 }
 0x2ff   : > { %v1069_v18 = vmul.f32 0.25, %v1049_v12  ;;  %v1055_v40 = vrot.slane %v1054_v38, 1  ;;  %v1445_v43 = vrot.slane %v1444_v44, 2  ;;  %v1422_v11 = vrot.slane %v1421_v24, 4  ;;  %v1412_v19 = vpop.permute.xlu1 %1411 }
 0x300   : > { %v1451_v9 = vadd.f32 %v1450_v56, %v1449_v14  ;;  %v1457_v15 = vrot.slane %v1456_v59, 4  ;;  %v1007_v41 = vmul.f32 %v999_v8, %v4364_v42  ;;  %v1419_v50 = vmul.f32 %v1405_v51, %v4418_v60 }
 0x301   : > { %v1089_v16 = vsel %vm1088_vm13, %v1069_v18, %v1087_v5  ;;  %v1056_v22 = vadd.f32 %v1055_v40, %v1054_v38  ;;  %v1446_v32 = vadd.f32 %v1445_v43, %v1444_v44  ;;  %v1423_v63 = vadd.f32 %v1422_v11, %v1421_v24 }
 0x302   : > { %v1452_v30 = vrot.slane %v1451_v9, 2  ;;  %v1458_v54 = vadd.f32 %v1457_v15, %v1456_v59  ;;  %v1057_v21 = vsel %vm933_vm8, %v1007_v41, 0.0  ;;  %v1440_v7 = vrot.slane %v1439_v13, 1 }
 0x303   : > { %v1070_v0 = vmul.f32 0.25, %v1056_v22  ;;  %v1424_v1 = vrot.slane %v1423_v63, 2  ;;  %v1058_v36 = vrot.slane %v1057_v21, 4  ;;  %v4479_v53 = vpop.permute.xlu1 %2521  ;;  %v1463_v42 = vsel %vm933_vm8, %v1419_v50, 0.0 }
 0x304   : > { %v1453_v3 = vadd.f32 %v1452_v30, %v1451_v9  ;;  %v1459_v14 = vrot.slane %v1458_v54, 2  ;;  %v1420_v8 = vmul.f32 %v1412_v19, %v4424_v39  ;;  %v1447_v12 = vrot.slane %v1446_v32, 1 }
 0x305   : > { %v1091_v5 = vsel %vm1090_vm14, %v1070_v0, %v1089_v16  ;;  %v1425_v38 = vadd.f32 %v1424_v1, %v1423_v63  ;;  %v1059_v44 = vadd.f32 %v1058_v36, %v1057_v21  ;;  %v1464_v60 = vrot.slane %v1463_v42, 4  ;;  %v1517_v1 = vld [vmem:[#allocation6 + $0x4] sm:$0xf] }
 0x306   : > { %v1454_v56 = vrot.slane %v1453_v3, 1  ;;  %v1460_v24 = vadd.f32 %v1459_v14, %v1458_v54  ;;  %v1470_v59 = vsel %vm933_vm8, %v1420_v8, 0.0  ;;  %v1707_v39 = vrot.slane %v1692_v49, %v4004_v48 }
 0x307   : > { %v1426_v18 = vrot.slane %v1425_v38, 1  ;;  %v1060_v40 = vrot.slane %v1059_v44, 2  ;;  %v1471_v43 = vrot.slane %v1470_v59, 4  ;;  %v1537_v11 = vpop.permute.xlu1 %1536  ;;  %v1441_v51 = vadd.f32 %v1440_v7, %v1439_v13 }
 0x308   : > { %v1461_v19 = vrot.slane %v1460_v24, 1  ;;  %v1465_v9 = vadd.f32 %v1464_v60, %v1463_v42  ;;  %v1711_v15 = vrot.slane %v1694_v52, %v4004_v48  ;;  %v1448_v41 = vadd.f32 %v1447_v12, %v1446_v32 }
 0x309   : > { %v1427_v16 = vadd.f32 %v1426_v18, %v1425_v38  ;;  %v1061_v22 = vadd.f32 %v1060_v40, %v1059_v44  ;;  %v1472_v63 = vadd.f32 %v1471_v43, %v1470_v59  ;;  %v1478_v30 = vmul.f32 0.25, %v1434_v47 }
 0x30a   : > { %v1455_v54 = vadd.f32 %v1454_v56, %v1453_v3  ;;  %v1466_v21 = vrot.slane %v1465_v9, 2  ;;  %v1677_v50 = vrot.slane %v4467_v62, %v4235_v20  ;;  %v1462_v49 = vadd.f32 %v1461_v19, %v1460_v24 }
 0x30b   : > { %v1477_v0 = vmul.f32 0.25, %v1427_v16  ;;  %v1062_v13 = vrot.slane %v1061_v22, 1  ;;  %v1473_v7 = vrot.slane %v1472_v63, 2  ;;  %v1601_v36 = vpop.permute.xlu1 %1600  ;;  %v1479_v14 = vmul.f32 0.25, %v1441_v51 }
 0x30c   : > { %v1467_v42 = vadd.f32 %v1466_v21, %v1465_v9  ;;  %v1581_v8 = vmul.f32 %v1537_v11, %v1517_v1  ;;  %v1737_v52 = vmul.f32 %v1703_v6, %v1601_v36  ;;  %v1480_v32 = vmul.f32 0.25, %v1448_v41  ;;  %v4523_v1 = vld [vmem:[#allocation2 + $0x18] sm:$0xff] }
 0x30d   : > { %v1493_v47 = vsel %vm1080_vm9, %v1478_v30, %v1477_v0  ;;  %v1063_v3 = vadd.f32 %v1062_v13, %v1061_v22  ;;  %v1474_v12 = vadd.f32 %v1473_v7, %v1472_v63  ;;  %v1481_v38 = vmul.f32 0.25, %v1455_v54 }
 0x30e   : > { %v1494_v44 = vsel %vm1082_vm10, %v1479_v14, %v1493_v47  ;;  %v1468_v56 = vrot.slane %v1467_v42, 1  ;;  %v4500_v24 = vadd.f32 %v1737_v52, %v1581_v8  ;;  %v1482_v60 = vmul.f32 0.25, %v1462_v49 }
 0x30f   : > { %v1495_v59 = vsel %vm1084_vm11, %v1480_v32, %v1494_v44  ;;  %v1071_v18 = vmul.f32 0.25, %v1063_v3  ;;  %v1475_v40 = vrot.slane %v1474_v12, 1  ;;  %v1608_v43 = vpop.permute.xlu1 %1607  ;;  %v1663_v51 = vcombine.high %v4467_v62, %v4467_v62 }
 0x310   : > { %v1496_v27 = vsel %vm1086_vm12, %v1481_v38, %v1495_v59  ;;  %v1469_v6 = vadd.f32 %v1468_v56, %v1467_v42  ;;  %1755 = vst.msk [vmem:[#allocation6 + $0x4] sm:$0xf] %vm933_vm8, %v4500_v24  ;;  %v4506_v11 = vmul.f32 %v1707_v39, %v1608_v43  ;;  %v1715_v39 = vrot.slane %v1677_v50, %v4004_v48 }
 0x311   : > { %v1093_v19 = vsel %vm1092_vm15, %v1071_v18, %v1091_v5  ;;  %v1476_v9 = vadd.f32 %v1475_v40, %v1474_v12  ;;  %v1497_v16 = vsel %vm1088_vm13, %v1482_v60, %v1496_v27  ;;  %v1691_v21 = vrot.slane %v1663_v51, %v4235_v20 }
 0x312   : > { %1095 = vst.msk [vmem:[#allocation4] sm:$0xff] %vm454_vm3, %v1093_v19  ;;  %v1483_v41 = vmul.f32 0.25, %v1469_v6  ;;  %v1693_v13 = vcombine.high %v1677_v50, %v1677_v50  ;;  %v4531_v8 = vrot.slane %v4523_v1, %v4235_v20 }
 0x313   : > { %v1484_v22 = vmul.f32 0.25, %v1476_v9  ;;  %v1615_v63 = vpop.permute.xlu1 %1614  ;;  %v1719_v49 = vrot.slane %v1691_v21, %v4004_v48  ;;  %v1695_v42 = vcombine.high %v1691_v21, %v1691_v21  ;;  %v4570_v9 = vld [vmem:[%s5083_s23] ss:$0 sm:$0xff]  ;;  %s3709_s23 = smov 96  }
 0x314   : > { %v1498_v30 = vsel %vm1090_vm14, %v1483_v41, %v1497_v16  ;;  %v4514_v54 = vmul.f32 %v1711_v15, %v1615_v63  ;;  %v1723_v14 = vrot.slane %v1693_v13, %v4004_v48  ;;  %v2069_v3 = vcombine.high %v4531_v8, %v4531_v8 }
 0x315   : > { %v1499_v62 = vsel %vm1092_vm15, %v1484_v22, %v1498_v30  ;;  %v1727_v47 = vrot.slane %v1695_v42, %v4004_v48  ;;  %v1591_v13 = vrot.slane %v4066_v31, %v4004_v48  ;;  %v5087_v31 = vrot.slane %v4058_v28, %v4061_v29 }
 0x316   : > { %1502 = vst.msk [vmem:[#allocation4 + $0x8] sm:$0xff] %vm454_vm3, %v1499_v62  ;;  %v5088_v42 = vrot.slane %v4058_v28, %v4071_v33 }
 0x317   : > { %v1622_v5 = vpop.permute.xlu1 %1621  ;;  %v1924_v56 = vld [vmem:[#allocation6 + $0x4] sm:$0xf] }
 0x318   : > { %v4520_v0 = vmul.f32 %v1715_v39, %v1622_v5 }
 0x319   : > { %v2317_v7 = vld [vmem:[#allocation4] sm:$0xff] }
 0x31a   : > { %3205 = vmatprep.mubr.msk.f32.mxu1 %vm454_vm3, %v2317_v7  ;;  %v5084_v7 = vrot.slane %v4058_v28, %v4032_v10 }
 0x31b   : > { %v1629_v15 = vpop.permute.xlu1 %1628 }
 0x31c   : > { %v4526_v36 = vmul.f32 %v1719_v49, %v1629_v15  ;;  %v1527_v49 = vrot.slane %v4058_v28, %v4004_v48  ;;  %v5085_v15 = vrot.slane %v4058_v28, %v4042_v17 }
 0x31d   : > { %v2318_v52 = vld [vmem:[#allocation4 + $0x8] sm:$0xff] }
 0x31e   : > { %3206 = vmatmul.mubr.msk.f32.vlgmr.msra.gmra.mxu1 %vm454_vm3, %v2318_v52  ;;  %v1998_v52 = vrot.slane %v4116_v61, %v4004_v48 }
 0x31f   : > { %v1636_v32 = vpop.permute.xlu1 %1635  ;;  %3223 = vmatpush3.msra.mxu1 %v4249_v46  ;;  %v4547_v46 = vrot.slane %v2069_v3, %v4235_v20  ;;  %v5091_v3 = vrot.slane %v4111_v58, %v4042_v17 }
 0x320   : > { %v4535_v50 = vmul.f32 %v1723_v14, %v1636_v32  ;;  %3224 = vmatprep.subr.mxu1 %v3706_v4  ;;  %v5086_v14 = vrot.slane %v4058_v28, %v4051_v23  ;;  %v5089_v32 = vrot.slane %v4111_v58, %v4021_v2  ;;  %v1767_v28 = vrot.slane %v4167_v45, %v4004_v48 }
 0x321   : > { %3225 = vmatpush3.msra.mxu1 %v4254_v34  ;;  %v2110_v34 = vrot.slane %v4547_v46, %v4004_v48 }
 0x322   : > { %3226 = vmatprep.subr.mxu1 %v3706_v4 }
 0x323   : > { %v1643_v12 = vpop.permute.xlu1 %1642  ;;  %3227 = vmatpush3.msra.mxu1 %v4263_v37 }
 0x324   : > { %v4544_v38 = vmul.f32 %v1727_v47, %v1643_v12  ;;  %3228 = vmatprep.subr.mxu1 %v3706_v4  ;;  %v5090_v47 = vrot.slane %v4111_v58, %v4032_v10  ;;  %v5092_v12 = vrot.slane %v4167_v45, %v4021_v2 }
 0x325   : > { %3229 = vmatpush3.msra.mxu1 %v4273_v25 }
 0x326   : > { %3244 = vmatprep.subr.mxu1 %v3706_v4 }
 0x327   : > { %v1944_v44 = vpop.permute.xlu1 %1943 }
 0x328   : > { %v1988_v59 = vmul.f32 %v1944_v44, %v1924_v56  ;;  %v5093_v44 = vrot.slane %v4116_v61, %v4051_v23  ;;  %v5095_v56 = vrot.slane %v4111_v58, %v4061_v29 }
 0x32b   : > { %v2008_v60 = vpop.permute.xlu1 %2007 }
 0x32c   : > { %v2144_v18 = vmul.f32 %v2110_v34, %v2008_v60  ;;  %v5094_v34 = vrot.slane %v4197_v26, %v4013_v57  ;;  %v5096_v60 = vrot.slane %v4197_v26, %v4021_v2  ;;  %v5099_v57 = vrot.slane %v4197_v26, %v4042_v17 }
 0x32d   : > { %v5101_v2 = vrot.slane %v4197_v26, %v4061_v29 }
 0x32e   : > { %v4554_v37 = vadd.f32 %v2144_v18, %v1988_v59  ;;  %v5097_v59 = vrot.slane %v4111_v58, %v4071_v33  ;;  %v5098_v18 = vrot.slane %v4197_v26, %v4032_v10 }
 0x32f   : > { %v4556_v40 = vpop.permute.xlu1 %2014 }
 0x330   : > { %2162 = vst.msk [vmem:[#allocation6 + $0x4] sm:$0xf] %vm933_vm8, %v4554_v37 }
 0x333   : > { %v4560_v43 = vpop.permute.xlu1 %2021 }
 0x337   : > { %v1777_v25 = vpop.permute.xlu1 %1776 }
 0x338   : > { %v4563_v27 = vmul.f32 %v1777_v25, %v4500_v24  ;;  %v5100_v25 = vrot.slane %v4197_v26, %v4051_v23 }
 0x35d   : > { %v2508_v6 = vpop.f32.mrf.mxu0 }
 0x35f   : > { %v3221_v51 = vpop.f32.mrf.mxu0 }
 0x3de   : > { %v4565_v19 = vpop.f32.mrf.mxu1 }
 0x3e0   : > { %v2408_v41 = vpop.f32.mrf.mxu1 }
 0x3e1   : > { %v2409_v16 = vadd.f32 %v4570_v9, %v2408_v41 }
 0x3e3   : > { %v2512_v22 = vadd.f32 %v2508_v6, %v2409_v16  ;;  %v1699_v16 = vrot.slane %v4445_v55, %v4004_v48 }
 0x3e5   : > { %3425 = vtanh.f32 %v2512_v22  ;;  %v3124_v30 = vmul.f32 -1.442695, %v2512_v22  ;;  %v1516_v22 = vld [vmem:[#allocation6] sm:$0xf] }
 0x3e7   : > { %3427 = vpow2.f32 %v3124_v30 }
 0x3f2   : > { %v3426_v63 = vpop.eup %3425 }
 0x3f3   : > { %2526 = vrot.lane.b32.xlu0 %v3426_v63, %s3705_s12 }
 0x3f4   : > { %v3428_v24 = vpop.eup %3427 }
 0x3f5   : > { %v2516_v39 = vadd.f32 1.0, %v3428_v24 }
 0x3f7   : > { %3429 = vrcp.f32 %v2516_v39 }
 0x404   : > { %v4574_v21 = vpop.eup %3429 }
 0x465   : > { %v2527_v62 = vpop.permute.xlu0 %2526 }
 0x466   : > { %v2529_v5 = vmul.f32 %v4574_v21, %v2527_v62  ;;  %v1518_v62 = vld [vmem:[#allocation6 + $0x8] sm:$0xf] }
 0x468   : > { %2531 = vrot.lane.b32.xlu0 %v2529_v5, %s3705_s12 }
 0x46c   : > { %1529 = vbcast.lane.b32.xlu0 %v1527_v49, 256 }
 0x470   : > { %1593 = vbcast.lane.b32.xlu0 %v1591_v13, 256 }
 0x474   : > { %1543 = vbcast.lane.b32.xlu0 %v1541_v35, 256  ;;  %v1934_v35 = vrot.slane %v4111_v58, %v4004_v48  ;;  %v2524_v58 = vmul.f32 %v4574_v21, %v4479_v53 }
 0x478   : > { %1550 = vbcast.lane.b32.xlu0 %v5084_v7, 256  ;;  %v1519_v7 = vld [vmem:[#allocation6 + $0xc] sm:$0xf] }
 0x47c   : > { %1557 = vbcast.lane.b32.xlu0 %v5085_v15, 256 }
 0x480   : > { %1564 = vbcast.lane.b32.xlu0 %v5086_v14, 256 }
 0x484   : > { %1571 = vbcast.lane.b32.xlu0 %v5087_v31, 256  ;;  %v1520_v31 = vld [vmem:[#allocation6 + $0x10] sm:$0xf] }
 0x488   : > { %1578 = vbcast.lane.b32.xlu0 %v5088_v42, 256 }
 0x48c   : > { %1936 = vbcast.lane.b32.xlu0 %v1934_v35, 256 }
 0x490   : > { %2000 = vbcast.lane.b32.xlu0 %v1998_v52, 256 }
 0x494   : > { %1950 = vbcast.lane.b32.xlu0 %v5089_v32, 256  ;;  %v1521_v32 = vld [vmem:[#allocation6 + $0x14] sm:$0xf] }
 0x498   : > { %1957 = vbcast.lane.b32.xlu0 %v5090_v47, 256 }
 0x49c   : > { %1769 = vbcast.lane.b32.xlu0 %v1767_v28, 256  ;;  %v5103_v28 = vrot.slane %v4116_v61, %v4061_v29 }
 0x4a0   : > { %1964 = vbcast.lane.b32.xlu0 %v5091_v3, 256 }
 0x4a4   : > { %1783 = vbcast.lane.b32.xlu0 %v5092_v12, 256  ;;  %v1522_v12 = vld [vmem:[#allocation6 + $0x18] sm:$0xf] }
 0x4a8   : > { %2035 = vbcast.lane.b32.xlu0 %v5093_v44, 256 }
 0x4ac   : > { %2183 = vbcast.lane.b32.xlu0 %v5094_v34, 256 }
 0x4b0   : > { %1978 = vbcast.lane.b32.xlu0 %v5095_v56, 256  ;;  %v2077_v56 = vrot.slane %v4531_v8, %v4235_v20  ;;  %v5106_v8 = vrot.slane %v4167_v45, %v4051_v23  ;;  %v5107_v23 = vrot.slane %v4167_v45, %v4061_v29 }
 0x4b4   : > { %2190 = vbcast.lane.b32.xlu0 %v5096_v60, 256  ;;  %v1523_v60 = vld [vmem:[#allocation6 + $0x1c] sm:$0xf] }
 0x4b8   : > { %1985 = vbcast.lane.b32.xlu0 %v5097_v59, 256 }
 0x4bc   : > { %2197 = vbcast.lane.b32.xlu0 %v5098_v18, 256  ;;  %v5105_v18 = vrot.slane %v4116_v61, %v4071_v33  ;;  %v2101_v61 = vcombine.high %v4547_v46, %v4547_v46 }
 0x4c0   : > { %2204 = vbcast.lane.b32.xlu0 %v5099_v57, 256 }
 0x4c4   : > { %2211 = vbcast.lane.b32.xlu0 %v5100_v25, 256 }
 0x4c8   : > { %2218 = vbcast.lane.b32.xlu0 %v5101_v2, 256 }
 0x4da   : > { %v2532_v6 = vpop.permute.xlu0 %2531 }
 0x4db   : > { %v4647_v51 = vadd.f32 %v2532_v6, %v2524_v58 }
 0x4dd   : > { %3431 = vtanh.f32 %v4647_v51 }
 0x4de   : > { %v1530_v41 = vpop.permute.xlu0 %1529 }
 0x4df   : > { %v1580_v30 = vmul.f32 %v1530_v41, %v1516_v22  ;;  %v2054_v41 = vcombine.high %v4523_v1, %v4523_v1  ;;  %v5108_v1 = vrot.slane %v4167_v45, %v4071_v33 }
 0x4e2   : > { %v1594_v63 = vpop.permute.xlu0 %1593 }
 0x4e3   : > { %v1736_v24 = vmul.f32 %v1699_v16, %v1594_v63 }
 0x4e5   : > { %v4652_v39 = vadd.f32 %v1736_v24, %v1580_v30 }
 0x4e6   : > { %v1544_v5 = vpop.permute.xlu0 %1543 }
 0x4e7   : > { %1754 = vst.msk [vmem:[#allocation6] sm:$0xf] %vm933_vm8, %v4652_v39  ;;  %v1582_v53 = vmul.f32 %v1544_v5, %v1518_v62  ;;  %v2118_v5 = vrot.slane %v2101_v61, %v4004_v48 }
 0x4e9   : > { %v4657_v49 = vadd.f32 %v4506_v11, %v1582_v53  ;;  %v5102_v11 = vrot.slane %v4167_v45, %v4032_v10  ;;  %v2068_v53 = vrot.slane %v2054_v41, %v4235_v20 }
 0x4ea   : > { %v3432_v13 = vpop.eup %3431  ;;  %v1551_v15 = vpop.permute.xlu0 %1550 }
 0x4eb   : > { %1756 = vst.msk [vmem:[#allocation6 + $0x8] sm:$0xf] %vm933_vm8, %v4657_v49  ;;  %v1583_v55 = vmul.f32 %v1551_v15, %v1519_v7  ;;  %2537 = vrot.lane.b32.xlu1 %v3432_v13, %s3705_s12  ;;  %v2029_v13 = vpop.permute.xlu1 %2028 }
 0x4ed   : > { %v4663_v14 = vadd.f32 %v4514_v54, %v1583_v55 }
 0x4ee   : > { %v1558_v42 = vpop.permute.xlu0 %1557  ;;  %v1923_v58 = vld [vmem:[#allocation6] sm:$0xf] }
 0x4ef   : > { %1757 = vst.msk [vmem:[#allocation6 + $0xc] sm:$0xf] %vm933_vm8, %v4663_v14  ;;  %v1584_v35 = vmul.f32 %v1558_v42, %v1520_v31  ;;  %1790 = vbcast.lane.b32.xlu1 %v5102_v11, 256  ;;  %v2146_v31 = vmul.f32 %v2118_v5, %v4560_v43 }
 0x4f1   : > { %v4671_v52 = vadd.f32 %v4520_v0, %v1584_v35  ;;  %v5104_v0 = vrot.slane %v4167_v45, %v4042_v17  ;;  %v2099_v17 = vcombine.high %v2077_v56, %v2077_v56  ;;  %v5109_v35 = vrot.slane %v4197_v26, %v4071_v33 }
 0x4f2   : > { %v1565_v47 = vpop.permute.xlu0 %1564  ;;  %v1925_v62 = vld [vmem:[#allocation6 + $0x8] sm:$0xf] }
 0x4f3   : > { %1758 = vst.msk [vmem:[#allocation6 + $0x10] sm:$0xf] %vm933_vm8, %v4671_v52  ;;  %v1585_v54 = vmul.f32 %v1565_v47, %v1521_v32  ;;  %2042 = vbcast.lane.b32.xlu1 %v5103_v28, 256  ;;  %v2114_v2 = vrot.slane %v2099_v17, %v4004_v48  ;;  %v2070_v28 = vcombine.high %v2068_v53, %v2068_v53 }
 0x4f5   : > { %v4679_v3 = vadd.f32 %v4526_v36, %v1585_v54  ;;  %v2145_v46 = vmul.f32 %v2114_v2, %v4556_v40  ;;  %v4726_v40 = vrot.slane %v2068_v53, %v4235_v20  ;;  %v1972_v54 = vpop.permute.xlu1 %1971 }
 0x4f6   : > { %v1572_v44 = vpop.permute.xlu0 %1571  ;;  %v1926_v55 = vld [vmem:[#allocation6 + $0xc] sm:$0xf] }
 0x4f7   : > { %1759 = vst.msk [vmem:[#allocation6 + $0x14] sm:$0xf] %vm933_vm8, %v4679_v3  ;;  %v1586_v10 = vmul.f32 %v1572_v44, %v1522_v12  ;;  %1797 = vbcast.lane.b32.xlu1 %v5104_v0, 256  ;;  %v2122_v47 = vrot.slane %v4726_v40, %v4004_v48 }
 0x4f9   : > { %v4687_v34 = vadd.f32 %v4535_v50, %v1586_v10  ;;  %v2106_v50 = vrot.slane %v2077_v56, %v4004_v48  ;;  %v2147_v0 = vmul.f32 %v2122_v47, %v2029_v13 }
 0x4fa   : > { %v1579_v59 = vpop.permute.xlu0 %1578  ;;  %v1927_v44 = vld [vmem:[#allocation6 + $0x10] sm:$0xf] }
 0x4fb   : > { %1760 = vst.msk [vmem:[#allocation6 + $0x18] sm:$0xf] %vm933_vm8, %v4687_v34  ;;  %v1587_v36 = vmul.f32 %v1579_v59, %v1523_v60  ;;  %2049 = vbcast.lane.b32.xlu1 %v5105_v18, 256  ;;  %v4742_v60 = vrot.slane %v2070_v28, %v4235_v20 }
 0x4fd   : > { %v4697_v57 = vadd.f32 %v4544_v38, %v1587_v36  ;;  %v1835_v38 = vsel %vm933_vm8, %v4563_v27, 0.0  ;;  %v2177_v36 = vpop.permute.xlu1 %2176  ;;  %v2126_v2 = vrot.slane %v4742_v60, %v4004_v48 }
 0x4fe   : > { %v1937_v25 = vpop.permute.xlu0 %1936  ;;  %v1836_v30 = vrot.slane %v1835_v38, 4 }
 0x4ff   : > { %1761 = vst.msk [vmem:[#allocation6 + $0x1c] sm:$0xf] %vm933_vm8, %v4697_v57  ;;  %1804 = vbcast.lane.b32.xlu1 %v5106_v8, 256  ;;  %v1987_v16 = vmul.f32 %v1937_v25, %v1923_v58  ;;  %v1928_v58 = vld [vmem:[#allocation6 + $0x14] sm:$0xf] }
 0x500   : > { %v1837_v7 = vadd.f32 %v1836_v30, %v1835_v38 }
 0x502   : > { %v2001_v6 = vpop.permute.xlu0 %2000  ;;  %v1838_v11 = vrot.slane %v1837_v7, 2 }
 0x503   : > { %v2143_v22 = vmul.f32 %v2106_v50, %v2001_v6  ;;  %1811 = vbcast.lane.b32.xlu1 %v5107_v23, 256 }
 0x504   : > { %v1839_v26 = vadd.f32 %v1838_v11, %v1837_v7 }
 0x505   : > { %v2151_v63 = vadd.f32 %v2143_v22, %v1987_v16 }
 0x506   : > { %v1951_v24 = vpop.permute.xlu0 %1950  ;;  %v1840_v17 = vrot.slane %v1839_v26, 1 }
 0x507   : > { %2161 = vst.msk [vmem:[#allocation6] sm:$0xf] %vm933_vm8, %v2151_v63  ;;  %v1989_v27 = vmul.f32 %v1951_v24, %v1925_v62  ;;  %1818 = vbcast.lane.b32.xlu1 %v5108_v1, 256 }
 0x508   : > { %v1841_v20 = vadd.f32 %v1840_v17, %v1839_v26 }
 0x509   : > { %v4722_v29 = vadd.f32 %v2145_v46, %v1989_v27 }
 0x50a   : > { %v1958_v15 = vpop.permute.xlu0 %1957  ;;  %v1885_v46 = vmul.f32 0.25, %v1841_v20 }
 0x50b   : > { %v1990_v42 = vmul.f32 %v1958_v15, %v1926_v55  ;;  %2225 = vbcast.lane.b32.xlu1 %v5109_v35, 256  ;;  %2163 = vst.msk [vmem:[#allocation6 + $0x8] sm:$0xf] %vm933_vm8, %v4722_v29 }
 0x50d   : > { %v4733_v45 = vadd.f32 %v2146_v31, %v1990_v42 }
 0x50e   : > { %v1770_v32 = vpop.permute.xlu0 %1769 }
 0x50f   : > { %v1820_v43 = vmul.f32 %v1770_v32, %v4652_v39  ;;  %2164 = vst.msk [vmem:[#allocation6 + $0xc] sm:$0xf] %vm933_vm8, %v4733_v45  ;;  %v2227_v39 = vmul.f32 %v2177_v36, %v2151_v63  ;;  %v1992_v63 = vmul.f32 %v1972_v54, %v1928_v58 }
 0x511   : > { %v1828_v33 = vsel %vm933_vm8, %v1820_v43, 0.0  ;;  %v2235_v38 = vsel %vm933_vm8, %v2227_v39, 0.0 }
 0x512   : > { %v1829_v12 = vrot.slane %v1828_v33, 4  ;;  %v1965_v10 = vpop.permute.xlu0 %1964 }
 0x513   : > { %v1991_v56 = vmul.f32 %v1965_v10, %v1927_v44 }
 0x514   : > { %v1830_v59 = vadd.f32 %v1829_v12, %v1828_v33 }
 0x515   : > { %v2155_v18 = vadd.f32 %v2147_v0, %v1991_v56 }
 0x516   : > { %v1831_v25 = vrot.slane %v1830_v59, 2  ;;  %v1784_v8 = vpop.permute.xlu0 %1783 }
 0x517   : > { %v1822_v50 = vmul.f32 %v1784_v8, %v4657_v49  ;;  %2165 = vst.msk [vmem:[#allocation6 + $0x10] sm:$0xf] %vm933_vm8, %v2155_v18  ;;  %v2236_v49 = vrot.slane %v2235_v38, 4 }
 0x518   : > { %v1832_v61 = vadd.f32 %v1831_v25, %v1830_v59 }
 0x519   : > { %v1842_v6 = vsel %vm933_vm8, %v1822_v50, 0.0  ;;  %v2237_v15 = vadd.f32 %v2236_v49, %v2235_v38 }
 0x51a   : > { %v1833_v41 = vrot.slane %v1832_v61, 1  ;;  %v1843_v16 = vrot.slane %v1842_v6, 4  ;;  %v2036_v22 = vpop.permute.xlu0 %2035 }
 0x51b   : > { %v2148_v23 = vmul.f32 %v2126_v2, %v2036_v22  ;;  %v2238_v47 = vrot.slane %v2237_v15, 2 }
 0x51c   : > { %v1834_v30 = vadd.f32 %v1833_v41, %v1832_v61  ;;  %v1844_v24 = vadd.f32 %v1843_v16, %v1842_v6 }
 0x51d   : > { %v2156_v62 = vadd.f32 %v2148_v23, %v1992_v63  ;;  %v2239_v12 = vadd.f32 %v2238_v47, %v2237_v15 }
 0x51e   : > { %v1884_v5 = vmul.f32 0.25, %v1834_v30  ;;  %v1845_v53 = vrot.slane %v1844_v24, 2  ;;  %v2184_v27 = vpop.permute.xlu0 %2183 }
 0x51f   : > { %v2228_v1 = vmul.f32 %v2184_v27, %v4554_v37  ;;  %2166 = vst.msk [vmem:[#allocation6 + $0x14] sm:$0xf] %vm933_vm8, %v2156_v62  ;;  %v2240_v36 = vrot.slane %v2239_v12, 1 }
 0x520   : > { %v1900_v13 = vsel %vm1080_vm9, %v1885_v46, %v1884_v5  ;;  %v1846_v7 = vadd.f32 %v1845_v53, %v1844_v24 }
 0x521   : > { %v2242_v55 = vsel %vm933_vm8, %v2228_v1, 0.0 }
 0x522   : > { %v1847_v31 = vrot.slane %v1846_v7, 1  ;;  %v2243_v42 = vrot.slane %v2242_v55, 4  ;;  %v4754_v35 = vpop.permute.xlu0 %1978 }
 0x524   : > { %v1848_v11 = vadd.f32 %v1847_v31, %v1846_v7  ;;  %v2244_v32 = vadd.f32 %v2243_v42, %v2242_v55 }
 0x526   : > { %v1886_v54 = vmul.f32 0.25, %v1848_v11  ;;  %v2245_v43 = vrot.slane %v2244_v32, 2  ;;  %v2191_v28 = vpop.permute.xlu0 %2190 }
 0x527   : > { %v2229_v37 = vmul.f32 %v2191_v28, %v4722_v29  ;;  %v2241_v29 = vadd.f32 %v2240_v36, %v2239_v12 }
 0x528   : > { %v4758_v33 = vsel %vm1082_vm10, %v1886_v54, %v1900_v13  ;;  %v2246_v26 = vadd.f32 %v2245_v43, %v2244_v32 }
 0x529   : > { %v2249_v44 = vsel %vm933_vm8, %v2229_v37, 0.0  ;;  %v2291_v22 = vmul.f32 0.25, %v2241_v29 }
 0x52a   : > { %v2250_v10 = vrot.slane %v2249_v44, 4  ;;  %v4761_v0 = vpop.permute.xlu0 %1985  ;;  %v2247_v56 = vrot.slane %v2246_v26, 1 }
 0x52c   : > { %v2251_v59 = vadd.f32 %v2250_v10, %v2249_v44  ;;  %v2248_v25 = vadd.f32 %v2247_v56, %v2246_v26 }
 0x52e   : > { %v2252_v17 = vrot.slane %v2251_v59, 2  ;;  %v2198_v39 = vpop.permute.xlu0 %2197  ;;  %v2292_v20 = vmul.f32 0.25, %v2248_v25  ;;  %v1929_v25 = vld [vmem:[#allocation6 + $0x18] sm:$0xf] }
 0x52f   : > { %v2230_v8 = vmul.f32 %v2198_v39, %v4733_v45 }
 0x530   : > { %v2253_v50 = vadd.f32 %v2252_v17, %v2251_v59  ;;  %v2307_v45 = vsel %vm1080_vm9, %v2292_v20, %v2291_v22  ;;  %v2100_v59 = vcombine.high %v4726_v40, %v4726_v40 }
 0x531   : > { %v2256_v2 = vsel %vm933_vm8, %v2230_v8, 0.0 }
 0x532   : > { %v2254_v61 = vrot.slane %v2253_v50, 1  ;;  %v2257_v58 = vrot.slane %v2256_v2, 4  ;;  %v2205_v6 = vpop.permute.xlu0 %2204  ;;  %v2130_v17 = vrot.slane %v2100_v59, %v4004_v48 }
 0x533   : > { %v2231_v38 = vmul.f32 %v2205_v6, %v2155_v18 }
 0x534   : > { %v2255_v41 = vadd.f32 %v2254_v61, %v2253_v50  ;;  %v2258_v16 = vadd.f32 %v2257_v58, %v2256_v2  ;;  %v1993_v50 = vmul.f32 %v4754_v35, %v1929_v25  ;;  %v2102_v2 = vcombine.high %v4742_v60, %v4742_v60  ;;  %v1930_v35 = vld [vmem:[#allocation6 + $0x1c] sm:$0xf] }
 0x535   : > { %v2263_v23 = vsel %vm933_vm8, %v2231_v38, 0.0  ;;  %v1994_v60 = vmul.f32 %v4761_v0, %v1930_v35 }
 0x536   : > { %v2293_v63 = vmul.f32 0.25, %v2255_v41  ;;  %v2259_v30 = vrot.slane %v2258_v16, 2  ;;  %v2264_v24 = vrot.slane %v2263_v23, 4  ;;  %v2212_v49 = vpop.permute.xlu0 %2211  ;;  %v2134_v20 = vrot.slane %v2102_v2, %v4004_v48 }
 0x537   : > { %v2232_v46 = vmul.f32 %v2212_v49, %v2156_v62 }
 0x538   : > { %v2308_v5 = vsel %vm1082_vm10, %v2293_v63, %v2307_v45  ;;  %v2260_v53 = vadd.f32 %v2259_v30, %v2258_v16  ;;  %v2265_v27 = vadd.f32 %v2264_v24, %v2263_v23 }
 0x539   : > { %v2270_v1 = vsel %vm933_vm8, %v2232_v46, 0.0 }
 0x53a   : > { %v2261_v13 = vrot.slane %v2260_v53, 1  ;;  %v2266_v18 = vrot.slane %v2265_v27, 2  ;;  %v2271_v7 = vrot.slane %v2270_v1, 4  ;;  %v2219_v58 = vpop.permute.xlu0 %2218 }
 0x53c   : > { %v2262_v15 = vadd.f32 %v2261_v13, %v2260_v53  ;;  %v2267_v55 = vadd.f32 %v2266_v18, %v2265_v27  ;;  %v2272_v31 = vadd.f32 %v2271_v7, %v2270_v1 }
 0x53e   : > { %v2294_v42 = vmul.f32 0.25, %v2262_v15  ;;  %v2268_v11 = vrot.slane %v2267_v55, 1  ;;  %v2273_v32 = vrot.slane %v2272_v31, 2 }
 0x540   : > { %v2309_v47 = vsel %vm1084_vm11, %v2294_v42, %v2308_v5  ;;  %v2269_v54 = vadd.f32 %v2268_v11, %v2267_v55  ;;  %v2274_v43 = vadd.f32 %v2273_v32, %v2272_v31 }
 0x542   : > { %v2295_v62 = vmul.f32 0.25, %v2269_v54  ;;  %v2275_v28 = vrot.slane %v2274_v43, 1 }
 0x544   : > { %v2310_v37 = vsel %vm1086_vm12, %v2295_v62, %v2309_v47  ;;  %v2276_v26 = vadd.f32 %v2275_v28, %v2274_v43 }
 0x546   : > { %v2296_v12 = vmul.f32 0.25, %v2276_v26 }
 0x548   : > { %v4772_v44 = vsel %vm1088_vm13, %v2296_v12, %v2310_v37 }
 0x55d   : > { %v2538_v10 = vpop.permute.xlu1 %2537 }
 0x55e   : > { %v2540_v56 = vmul.f32 %v4574_v21, %v2538_v10 }
 0x560   : > { %2542 = vrot.lane.b32.xlu0 %v2540_v56, %s3708_s7 }
 0x561   : > { %v1791_v36 = vpop.permute.xlu1 %1790 }
 0x562   : > { %v1823_v39 = vmul.f32 %v1791_v36, %v4663_v14 }
 0x564   : > { %v1849_v21 = vsel %vm933_vm8, %v1823_v39, 0.0 }
 0x565   : > { %v2043_v8 = vpop.permute.xlu1 %2042  ;;  %v1850_v14 = vrot.slane %v1849_v21, 4 }
 0x566   : > { %v2149_v29 = vmul.f32 %v2130_v17, %v2043_v8 }
 0x567   : > { %v1851_v63 = vadd.f32 %v1850_v14, %v1849_v21 }
 0x568   : > { %v2157_v61 = vadd.f32 %v2149_v29, %v1993_v50 }
 0x569   : > { %v1798_v40 = vpop.permute.xlu1 %1797  ;;  %v1852_v48 = vrot.slane %v1851_v63, 2 }
 0x56a   : > { %2167 = vst.msk [vmem:[#allocation6 + $0x18] sm:$0xf] %vm933_vm8, %v2157_v61  ;;  %v1824_v6 = vmul.f32 %v1798_v40, %v4671_v52  ;;  %v2233_v38 = vmul.f32 %v2219_v58, %v2157_v61 }
 0x56b   : > { %v1853_v18 = vadd.f32 %v1852_v48, %v1851_v63 }
 0x56c   : > { %v1856_v41 = vsel %vm933_vm8, %v1824_v6, 0.0  ;;  %v2277_v30 = vsel %vm933_vm8, %v2233_v38, 0.0 }
 0x56d   : > { %v1857_v16 = vrot.slane %v1856_v41, 4  ;;  %v2050_v22 = vpop.permute.xlu1 %2049  ;;  %v2278_v46 = vrot.slane %v2277_v30, 4  ;;  %v1854_v47 = vrot.slane %v1853_v18, 1 }
 0x56e   : > { %v2150_v23 = vmul.f32 %v2134_v20, %v2050_v22 }
 0x56f   : > { %v1858_v24 = vadd.f32 %v1857_v16, %v1856_v41  ;;  %v2279_v13 = vadd.f32 %v2278_v46, %v2277_v30  ;;  %v1855_v59 = vadd.f32 %v1854_v47, %v1853_v18  ;;  %v3460_v18 = vld [vmem:[%s5082_s25] sm:$0xff] }
 0x570   : > { %v2158_v49 = vadd.f32 %v2150_v23, %v1994_v60 }
 0x571   : > { %v1805_v45 = vpop.permute.xlu1 %1804  ;;  %v1859_v5 = vrot.slane %v1858_v24, 2  ;;  %v1887_v21 = vmul.f32 0.25, %v1855_v59 }
 0x572   : > { %v1825_v52 = vmul.f32 %v1805_v45, %v4679_v3  ;;  %2168 = vst.msk [vmem:[#allocation6 + $0x1c] sm:$0xf] %vm933_vm8, %v2158_v49  ;;  %v2280_v3 = vrot.slane %v2279_v13, 2 }
 0x573   : > { %v1860_v15 = vadd.f32 %v1859_v5, %v1858_v24  ;;  %v1902_v16 = vsel %vm1084_vm11, %v1887_v21, %v4758_v33 }
 0x574   : > { %v1863_v53 = vsel %vm933_vm8, %v1825_v52, 0.0  ;;  %v2281_v10 = vadd.f32 %v2280_v3, %v2279_v13  ;;  %v3458_v13 = vld [vmem:[%s5082_s25 + $0x10] sm:$0xff] }
 0x575   : > { %v1864_v27 = vrot.slane %v1863_v53, 4  ;;  %v1812_v1 = vpop.permute.xlu1 %1811  ;;  %v1861_v62 = vrot.slane %v1860_v15, 1 }
 0x576   : > { %v1826_v0 = vmul.f32 %v1812_v1, %v4687_v34  ;;  %v2282_v2 = vrot.slane %v2281_v10, 1 }
 0x577   : > { %v1865_v7 = vadd.f32 %v1864_v27, %v1863_v53  ;;  %v1862_v39 = vadd.f32 %v1861_v62, %v1860_v15 }
 0x578   : > { %v1870_v55 = vsel %vm933_vm8, %v1826_v0, 0.0  ;;  %v2283_v41 = vadd.f32 %v2282_v2, %v2281_v10  ;;  %v3459_v0 = vld [vmem:[%s5082_s25 + $0x8] sm:$0xff] }
 0x579   : > { %v1866_v31 = vrot.slane %v1865_v7, 2  ;;  %v1871_v42 = vrot.slane %v1870_v55, 4  ;;  %v1819_v11 = vpop.permute.xlu1 %1818  ;;  %v1888_v6 = vmul.f32 0.25, %v1862_v39 }
 0x57a   : > { %v1827_v32 = vmul.f32 %v1819_v11, %v4697_v57 }
 0x57b   : > { %v1867_v54 = vadd.f32 %v1866_v31, %v1865_v7  ;;  %v1872_v43 = vadd.f32 %v1871_v42, %v1870_v55  ;;  %v1903_v23 = vsel %vm1086_vm12, %v1888_v6, %v1902_v16  ;;  %v2414_v55 = vadd.f32 %v4565_v19, %v4570_v9 }
 0x57c   : > { %v1877_v28 = vsel %vm933_vm8, %v1827_v32, 0.0 }
 0x57d   : > { %v1868_v37 = vrot.slane %v1867_v54, 1  ;;  %v1873_v26 = vrot.slane %v1872_v43, 2  ;;  %v1878_v34 = vrot.slane %v1877_v28, 4  ;;  %v2226_v12 = vpop.permute.xlu1 %2225 }
 0x57e   : > { %v2234_v56 = vmul.f32 %v2226_v12, %v2158_v49  ;;  %v2297_v49 = vmul.f32 0.25, %v2283_v41 }
 0x57f   : > { %v1874_v36 = vadd.f32 %v1873_v26, %v1872_v43  ;;  %v1879_v17 = vadd.f32 %v1878_v34, %v1877_v28  ;;  %v1869_v8 = vadd.f32 %v1868_v37, %v1867_v54 }
 0x580   : > { %v2284_v25 = vsel %vm933_vm8, %v2234_v56, 0.0  ;;  %v2312_v33 = vsel %vm1090_vm14, %v2297_v49, %v4772_v44  ;;  %v3457_v44 = vld [vmem:[%s5082_s25 + $0x18] sm:$0xff] }
 0x581   : > { %v1875_v57 = vrot.slane %v1874_v36, 1  ;;  %v1880_v50 = vrot.slane %v1879_v17, 2  ;;  %v2285_v29 = vrot.slane %v2284_v25, 4  ;;  %v1889_v20 = vmul.f32 0.25, %v1869_v8 }
 0x583   : > { %v1876_v61 = vadd.f32 %v1875_v57, %v1874_v36  ;;  %v1881_v40 = vadd.f32 %v1880_v50, %v1879_v17  ;;  %v2286_v58 = vadd.f32 %v2285_v29, %v2284_v25  ;;  %v1904_v63 = vsel %vm1088_vm13, %v1889_v20, %v1903_v23 }
 0x585   : > { %v1882_v14 = vrot.slane %v1881_v40, 1  ;;  %v2287_v38 = vrot.slane %v2286_v58, 2  ;;  %v1890_v35 = vmul.f32 0.25, %v1876_v61 }
 0x587   : > { %v1883_v22 = vadd.f32 %v1882_v14, %v1881_v40  ;;  %v2288_v60 = vadd.f32 %v2287_v38, %v2286_v58  ;;  %v1905_v45 = vsel %vm1090_vm14, %v1890_v35, %v1904_v63 }
 0x589   : > { %v1891_v30 = vmul.f32 0.25, %v1883_v22  ;;  %v2289_v24 = vrot.slane %v2288_v60, 1 }
 0x58b   : > { %v1906_v46 = vsel %vm1092_vm15, %v1891_v30, %v1905_v45  ;;  %v2290_v52 = vadd.f32 %v2289_v24, %v2288_v60 }
 0x58c   : > { %1909 = vst.msk [vmem:[#allocation4 + $0x10] sm:$0xff] %vm454_vm3, %v1906_v46 }
 0x58d   : > { %v2298_v48 = vmul.f32 0.25, %v2290_v52 }
 0x58f   : > { %v2313_v5 = vsel %vm1092_vm15, %v2298_v48, %v2312_v33 }
 0x590   : > { %2316 = vst.msk [vmem:[#allocation4 + $0x18] sm:$0xff] %vm454_vm3, %v2313_v5 }
 0x593   : > { %v2319_v53 = vld [vmem:[#allocation4 + $0x10] sm:$0xff] }
 0x594   : > { %3208 = vmatprep.mubr.msk.f32.mxu1 %vm454_vm3, %v2319_v53 }
 0x597   : > { %v2320_v27 = vld [vmem:[#allocation4 + $0x18] sm:$0xff] }
 0x598   : > { %3209 = vmatmul.mubr.msk.f32.gmra.mxu1 %vm454_vm3, %v2320_v27 }
 0x599   : > { %3230 = vmatprep.mubr.msk.f32.mxu1 %vm3707_vm6, %v3706_v4 }
 0x5d2   : > { %v2543_v1 = vpop.permute.xlu0 %2542 }
 0x5d3   : > { %2545 = vst.msk [vmem:[%s3957_s26] sm:$0xff] %vm2438_vm7, %v2543_v1  ;;  %3231 = vmatmul.mubr.msk.f32.vlgmr.msra.gmra.mxu1 %vm2438_vm7, %v2543_v1 }
 0x5d4   : > { %3245 = vmatpush3.msra.mxu1 %v3457_v44  ;;  %3252 = vmatprep.mubr.msk.f32.mxu1 %vm3707_vm6, %v3706_v4 }
 0x5d5   : > { %3246 = vmatprep.subr.mxu1 %v3706_v4 }
 0x5d6   : > { %3247 = vmatpush3.msra.mxu1 %v3458_v13 }
 0x5d7   : > { %3248 = vmatprep.subr.mxu1 %v3706_v4 }
 0x5d8   : > { %3249 = vmatpush3.msra.mxu1 %v3459_v0 }
 0x5d9   : > { %3250 = vmatprep.subr.mxu1 %v3706_v4 }
 0x5da   : > { %3251 = vmatpush3.msra.mxu1 %v3460_v18 }
 0x658   : > { %v3210_v7 = vpop.f32.mrf.mxu1 }
 0x659   : > { %v2424_v14 = vadd.f32 %v3210_v7, %v4570_v9 }
 0x65a   : > { %v2418_v15 = vpop.f32.mrf.mxu1 }
 0x65b   : > { %v2419_v56 = vadd.f32 %v4570_v9, %v2418_v15 }
 0x693   : > { %v2620_v31 = vpop.f32.mrf.mxu1 }
 0x694   : > { %v2624_v42 = vadd.f32 %v2620_v31, %v2414_v55 }
 0x695   : > { %v3232_v11 = vpop.f32.mrf.mxu1 }
 0x696   : > { %3433 = vtanh.f32 %v2624_v42  ;;  %v3126_v32 = vmul.f32 -1.442695, %v2624_v42 }
 0x698   : > { %3435 = vpow2.f32 %v3126_v32 }
 0x6a3   : > { %v3434_v3 = vpop.eup %3433 }
 0x6a4   : > { %2634 = vrot.lane.b32.xlu1 %v3434_v3, %s3705_s12 }
 0x6a5   : > { %v3436_v4 = vpop.eup %3435 }
 0x6a6   : > { %v2628_v47 = vadd.f32 1.0, %v3436_v4 }
 0x6a8   : > { %3437 = vrcp.f32 %v2628_v47 }
 0x6b5   : > { %v3438_v54 = vpop.eup %3437 }
 0x6b6   : > { %v2632_v19 = vmul.f32 %v3438_v54, %v4647_v51 }
 0x716   : > { %v2635_v43 = vpop.permute.xlu1 %2634 }
 0x717   : > { %v2637_v62 = vmul.f32 %v3438_v54, %v2635_v43 }
 0x719   : > { %2639 = vrot.lane.b32.xlu0 %v2637_v62, %s3705_s12 }
 0x78b   : > { %v2640_v28 = vpop.permute.xlu0 %2639 }
 0x78c   : > { %v2642_v37 = vadd.f32 %v2640_v28, %v2632_v19 }
 0x78e   : > { %3439 = vtanh.f32 %v2642_v37 }
 0x79b   : > { %v3440_v26 = vpop.eup %3439 }
 0x79c   : > { %2645 = vrot.lane.b32.xlu1 %v3440_v26, %s3705_s12 }
 0x80e   : > { %v2646_v34 = vpop.permute.xlu1 %2645 }
 0x80f   : > { %v2648_v12 = vmul.f32 %v3438_v54, %v2646_v34 }
 0x811   : > { %2650 = vrot.lane.b32.xlu0 %v2648_v12, %s3708_s7 }
 0x883   : > { %v2651_v10 = vpop.permute.xlu0 %2650 }
 0x884   : > { %3127 = vst.msk [vmem:[%s3957_s26 + $0x8] sm:$0xff] %vm2438_vm7, %v2651_v10  ;;  %3242 = vmatmul.mubr.msk.f32.vlgmr.msra.gmra.mxu0 %vm2438_vm7, %v2651_v10 }
 0x944   : > { %v2729_v59 = vpop.f32.mrf.mxu0 }
 0x945   : > { %v2733_v36 = vadd.f32 %v2729_v59, %v2419_v56 }
 0x946   : > { %v3243_v51 = vpop.f32.mrf.mxu0 }
 0x947   : > { %3441 = vtanh.f32 %v2733_v36  ;;  %v3129_v39 = vmul.f32 -1.442695, %v2733_v36 }
 0x949   : > { %3443 = vpow2.f32 %v3129_v39 }
 0x954   : > { %v3442_v17 = vpop.eup %3441 }
 0x955   : > { %2743 = vrot.lane.b32.xlu1 %v3442_v17, %s3705_s12 }
 0x956   : > { %v3444_v25 = vpop.eup %3443 }
 0x957   : > { %v2737_v8 = vadd.f32 1.0, %v3444_v25 }
 0x959   : > { %3445 = vrcp.f32 %v2737_v8 }
 0x966   : > { %v3446_v57 = vpop.eup %3445 }
 0x967   : > { %v2741_v2 = vmul.f32 %v3446_v57, %v2642_v37 }
 0x9c7   : > { %v2744_v50 = vpop.permute.xlu1 %2743 }
 0x9c8   : > { %v2746_v29 = vmul.f32 %v3446_v57, %v2744_v50 }
 0x9ca   : > { %2748 = vrot.lane.b32.xlu0 %v2746_v29, %s3705_s12 }
 0xa3c   : > { %v2749_v21 = vpop.permute.xlu0 %2748 }
 0xa3d   : > { %v2751_v61 = vadd.f32 %v2749_v21, %v2741_v2 }
 0xa3f   : > { %3447 = vtanh.f32 %v2751_v61 }
 0xa4c   : > { %v3448_v40 = vpop.eup %3447 }
 0xa4d   : > { %2754 = vrot.lane.b32.xlu1 %v3448_v40, %s3705_s12 }
 0xabf   : > { %v2755_v58 = vpop.permute.xlu1 %2754 }
 0xac0   : > { %v2757_v6 = vmul.f32 %v3446_v57, %v2755_v58 }
 0xac2   : > { %2759 = vrot.lane.b32.xlu0 %v2757_v6, %s3708_s7 }
 0xb34   : > { %v2760_v20 = vpop.permute.xlu0 %2759 }
 0xb35   : > { %3130 = vst.msk [vmem:[%s3957_s26 + $0x10] sm:$0xff] %vm2438_vm7, %v2760_v20  ;;  %3253 = vmatmul.mubr.msk.f32.vlgmr.msra.gmra.mxu1 %vm2438_vm7, %v2760_v20 }
 0xbf5   : > { %v2838_v38 = vpop.f32.mrf.mxu1 }
 0xbf6   : > { %v2842_v41 = vadd.f32 %v2838_v38, %v2424_v14 }
 0xbf7   : > { %v3254_v35 = vpop.f32.mrf.mxu1 }
 0xbf8   : > { %3449 = vtanh.f32 %v2842_v41  ;;  %v3132_v22 = vmul.f32 -1.442695, %v2842_v41 }
 0xbfa   : > { %3451 = vpow2.f32 %v3132_v22 }
 0xc05   : > { %v3450_v16 = vpop.eup %3449 }
 0xc06   : > { %2852 = vrot.lane.b32.xlu1 %v3450_v16, %s3705_s12 }
 0xc07   : > { %v3452_v60 = vpop.eup %3451 }
 0xc08   : > { %v2846_v23 = vadd.f32 1.0, %v3452_v60 }
 0xc0a   : > { %3453 = vrcp.f32 %v2846_v23 }
 0xc17   : > { %v3454_v63 = vpop.eup %3453 }
 0xc18   : > { %v2850_v9 = vmul.f32 %v3454_v63, %v2751_v61 }
 0xc78   : > { %v2853_v30 = vpop.permute.xlu1 %2852 }
 0xc79   : > { %v2855_v24 = vmul.f32 %v3454_v63, %v2853_v30 }
 0xc7b   : > { %2857 = vrot.lane.b32.xlu0 %v2855_v24, %s3705_s12 }
 0xced   : > { %v2858_v49 = vpop.permute.xlu0 %2857 }
 0xcee   : > { %v2860_v45 = vadd.f32 %v2858_v49, %v2850_v9 }
 0xcf0   : > { %3455 = vtanh.f32 %v2860_v45 }
 0xcfd   : > { %v3456_v46 = vpop.eup %3455 }
 0xcfe   : > { %2863 = vrot.lane.b32.xlu1 %v3456_v46, %s3705_s12  ;;  %s2923_s12 = sshll.u32 %s5039_s11, 4  ;;  %s4881_s11 = scalar_lea.hbm %s5113_s28, %s3139_s0  ;;  %s4872_s12 = int_to_ptr.vmem [resolvable:$true] %s2923_s12 }
 0xcff   : > { %s3515_s0 = scalar_lea.vmem %s4872_s12, 128 }
 0xd00   : > { %p3516_p5 = scmp.ne.s32.totalorder %s4872_s12, %s3515_s0 }
 0xd02   : > { %2875 = vrot.lane.b32.xlu1 %v2860_v45, %s3709_s23  ;;  %s5112_s23 = sld [smem:[#allocation30_spill]] }
 0xd08   : > { %p5116_p9 = scmp.ne.s32.totalorder %s5112_s23, 0 }
 0xd0a   : > { %p3517_p1 = pnand %p3516_p5, %p5116_p9 }
 0xd0c   : > { %p3518_p2 = pneg %p3517_p1 }
 0xd70   : > { %v2864_v52 = vpop.permute.xlu1 %2863 }
 0xd71   : > { %v2866_v48 = vmul.f32 %v3454_v63, %v2864_v52 }
 0xd73   : > { %2868 = vrot.lane.b32.xlu0 %v2866_v48, %s3708_s7  ;;  %s4870_s7 = scalar_lea.hbm %s5111_s9, %s3140_s13 }
 0xd74   : > { %v2876_v33 = vpop.permute.xlu1 %2875 }
 0xd75   : > { %2878 = vst.msk [vmem:[#allocation10] sm:$0xff] %vm2438_vm7, %v2876_v33  ;;  %2880 = vst.msk [vmem:[%s428_s27] sm:$0xff] %vm2438_vm7, %v2876_v33  ;;  %s4896_s27 = scalar_lea.sflag [#allocation18], %s2886_s20 }
 0xde5   : > { %v2869_v5 = vpop.permute.xlu0 %2868 }
 0xde6   : > { %3133 = vst.msk [vmem:[%s3957_s26 + $0x18] sm:$0xff] %vm2438_vm7, %v2869_v5  ;;  %2873 = vst.msk [vmem:[#allocation9] sm:$0xff] %vm2438_vm7, %v2869_v5  ;;  %s3710_s26 = smov [#allocation17]  }
 0xde7   : > { %2879 = vst.msk [vmem:[%s5114_s30] sm:$0xff] %vm2438_vm7, %v2869_v5  ;;  %s3519_s24 = sshll.u32 %s3710_s26, 4  ;;  %s3520_s24 = int_to_ptr.vmem [resolvable:$false] %s3519_s24 }
 0xde8   : > { %s3521_s8 = scalar_lea.vmem %s3520_s24, 256  ;;  %p3522_p4 = scmp.lt.s32.totalorder %s4872_s12, %s3520_s24 }
 0xde9   : > { %p3523_p6 = scmp.lt.s32.totalorder %s3521_s8, %s3515_s0 }
 0xdeb   : > { %p3524_p10 = por %p3523_p6, %p3522_p4 }
 0xded   : > { %p3525_p11 = pnand %p3524_p10, %p3518_p2 }
 0xdef   : > { %3528 = shalt.err (!%p3525_p11)
}
 0xdf0   : > { %s3529_s10 = scalar_lea.hbm %s4870_s7, 128  ;;  %s3533_s30 = scalar_lea.hbm %s5111_s9, 256 }
 0xdf1   : > { %p3530_p12 = scmp.ne.s32.totalorder %s4870_s7, %s3529_s10  ;;  %p3534_p3 = scmp.lt.s32.totalorder %s4870_s7, %s5111_s9 }
 0xdf2   : > { %p3535_p0 = scmp.lt.s32.totalorder %s3533_s30, %s3529_s10 }
 0xdf3   : > { %p3531_p13 = pnand %p3530_p12, %p5116_p9 }
 0xdf4   : > { %p3536_p8 = por %p3535_p0, %p3534_p3 }
 0xdf5   : > { %p3532_p7 = pneg %p3531_p13 }
 0xdf7   : > { %p3537_p5 = pnand %p3536_p8, %p3532_p7 }
 0xdf9   : > { %3540 = shalt.err (!%p3537_p5)
}
 0xdfa   : > { %s5117_s0 = sld [smem:[#allocation28_spill]]  ;;  %s2882_s26 = scalar_lea.sflag [#allocation13], %s3940_s21 }
 0xdfb   : > { %3262 = dma.vmem_to_hbm [thread:$0]  (%p5116_p9), %s4872_s12, 128, %s4870_s7, %s4896_s27  }
 0xdfc   : > { %s3541_s24 = scalar_lea.vmem %s4874_s5, 512  ;;  %s3711_s8 = smov [#allocation16]  }
 0xdfd   : > { %p3542_p1 = scmp.ne.s32.totalorder %s4874_s5, %s3541_s24  ;;  %s3545_s10 = sshll.u32 %s3711_s8, 4  ;;  %s3546_s10 = int_to_ptr.vmem [resolvable:$false] %s3545_s10 }
 0xdfe   : > { %s3547_s20 = scalar_lea.vmem %s3546_s10, 1024  ;;  %p3548_p10 = scmp.lt.s32.totalorder %s4874_s5, %s3546_s10 }
 0xdff   : > { %p3549_p11 = scmp.lt.s32.totalorder %s3547_s20, %s3541_s24 }
 0xe00   : > { %p5118_p2 = scmp.ne.s32.totalorder %s5117_s0, 0 }
 0xe01   : > { %p3550_p12 = por %p3549_p11, %p3548_p10 }
 0xe02   : > { %p3543_p4 = pnand %p3542_p1, %p5118_p2 }
 0xe04   : > { %p3544_p6 = pneg %p3543_p4 }
 0xe06   : > { %p3551_p13 = pnand %p3550_p12, %p3544_p6 }
 0xe08   : > { %3554 = shalt.err (!%p3551_p13)
}
 0xe09   : > { %s3555_s12 = scalar_lea.hbm %s4881_s11, 512  ;;  %s3559_s30 = scalar_lea.hbm %s5113_s28, 2048 }
 0xe0a   : > { %p3556_p7 = scmp.ne.s32.totalorder %s4881_s11, %s3555_s12  ;;  %p3560_p8 = scmp.lt.s32.totalorder %s4881_s11, %s5113_s28 }
 0xe0b   : > { %p3561_p5 = scmp.lt.s32.totalorder %s3559_s30, %s3555_s12 }
 0xe0c   : > { %p3557_p3 = pnand %p3556_p7, %p5118_p2 }
 0xe0d   : > { %p3562_p1 = por %p3561_p5, %p3560_p8 }
 0xe0e   : > { %p3558_p0 = pneg %p3557_p3 }
 0xe10   : > { %p3563_p4 = pnand %p3562_p1, %p3558_p0 }
 0xe12   : > { %3566 = shalt.err (!%p3563_p4)
}
 0xe13   : > { %s3712_s24 = smov 128   ;;  %s3713_s8 = smov 256  }
 0xe14   : > { %s3714_s10 = smov 8   ;;  %s3567_s20 = scalar_lea.vmem %s4894_s19, 128 }
 0xe15   : > { %3261 = dma.vmem_to_hbm [thread:$0]  (%p5118_p2), %s4874_s5, 512, %s4881_s11, %s2882_s26, %s3712_s24, %s3713_s8, %s3714_s10  }
 0xe16   : > { %p3568_p6 = scmp.ne.s32.totalorder %s4894_s19, %s3567_s20  ;;  %s3715_s12 = smov [#allocation19]  }
 0xe17   : > { %s3571_s7 = sshll.u32 %s3715_s12, 4  ;;  %s3572_s7 = int_to_ptr.vmem [resolvable:$false] %s3571_s7 }
 0xe18   : > { %p3569_p10 = pnand %p3568_p6, %p5116_p9  ;;  %s3573_s13 = scalar_lea.vmem %s3572_s7, 256 }
 0xe19   : > { %p3574_p12 = scmp.lt.s32.totalorder %s4894_s19, %s3572_s7  ;;  %p3575_p13 = scmp.lt.s32.totalorder %s3573_s13, %s3567_s20 }
 0xe1a   : > { %p3570_p11 = pneg %p3569_p10 }
 0xe1b   : > { %p3576_p7 = por %p3575_p13, %p3574_p12 }
 0xe1d   : > { %p3577_p3 = pnand %p3576_p7, %p3570_p11 }
 0xe1f   : > { %3580 = shalt.err (!%p3577_p3)
}
 0xe20   : > { %s3581_s21 = scalar_lea.hbm %s4892_s2, 128  ;;  %s3585_s0 = scalar_lea.hbm %s5115_s1, 256 }
 0xe21   : > { %p3582_p2 = scmp.ne.s32.totalorder %s4892_s2, %s3581_s21  ;;  %p3586_p5 = scmp.lt.s32.totalorder %s4892_s2, %s5115_s1 }
 0xe22   : > { %p3587_p1 = scmp.lt.s32.totalorder %s3585_s0, %s3581_s21 }
 0xe23   : > { %p3583_p0 = pnand %p3582_p2, %p5116_p9 }
 0xe24   : > { %p3588_p4 = por %p3587_p1, %p3586_p5 }
 0xe25   : > { %p3584_p8 = pneg %p3583_p0 }
 0xe27   : > { %p3589_p6 = pnand %p3588_p4, %p3584_p8 }
 0xe29   : > { %3592 = shalt.err (!%p3589_p6)
}
 0xe2a   : > { %3263 = dma.vmem_to_hbm [thread:$0]  (%p5116_p9), %s4894_s19, 128, %s4892_s2, %s4896_s27  }
 0xe2b PF: > { %s5119_s6 = sld [smem:[#allocation27_spill]] }
 0xe2c   : > { %s5120_s16 = sld [smem:[#allocation24_spill]] }
 0xe2d   : > { %s5121_s24 = sld [smem:[#allocation29_spill]] }
 0xe31   : > { %p3288_p10 = scmp.ge.s32.totalorder %s5119_s6, 2 }
 0xe32   : > { %s2948_s8 = sand.u32 1, %s5120_s16  }
 0xe33   : > { %p5122_p11 = scmp.ne.s32.totalorder %s5121_s24, 0  ;;  %s2949_s10 = scalar_lea.sflag [#allocation13], %s2948_s8 }
 0xe35   : > { %p3276_p12 = pnand %p3288_p10, %p5122_p11 }
 0xe37   : > { %p3277_p13 = pneg %p3276_p12 }
 0xe39   : > { %3646 = dma.done.wait (%p3277_p13), %s2949_s10, 512  }
 0xe3a   : > { %3648 = vsyncadd (%p3277_p13), %s2949_s10, 4294966784  ;;  %s5123_s20 = sadd.s32 4294967294, %s5119_s6   ;;  %s5124_s12 = sld [smem:[#allocation31_spill]] }
 0xe3b   : > { %s2957_s23 = sand.u32 1, %s5123_s20  }
 0xe3c   : > { %s2958_s2 = scalar_lea.sflag [#allocation18], %s2957_s23 }
 0xe40   : > { %p5125_p7 = scmp.ne.s32.totalorder %s5124_s12, 0 }
 0xe42   : > { %p3279_p3 = pnand %p3288_p10, %p5125_p7 }
 0xe44   : > { %p3280_p2 = pneg %p3279_p3 }
 0xe46   : > { %3650 = dma.done.wait (%p3280_p2), %s2958_s2, 256  }
 0xe47   : > { %3652 = vsyncadd (%p3280_p2), %s2958_s2, 4294967040  ;;  %s31_s23 = sadd.s32 1, %s5119_s6   ;;  %s5126_s19 = sld [smem:[#allocation26_spill]] }
 0xe48   : > { %p28_p9 = scmp.ge.s32.totalorder %s31_s23, 6   ;;  %s5127_s21 = sld [smem:[#allocation32_spill]] }
 0xe49   : > { %s5128_s27 = sld [smem:[#allocation33_spill]]  ;;  %s5129_s13 = smov %s3659_s14 }
 0xe4a   : > { %s5130_s14 = smov %s3663_s15  ;;  %s5131_s15 = smov %s3924_s4 }
 0xe4b   : > { %s5132_s16 = smov %s3671_s17  ;;  %s5133_s17 = smov %s3675_s18 }
 0xe4c   : > { %s5134_s18 = smov %s3929_s29  ;;  %s5135_s20 = smov %s3691_s22 }
 0xe4d   :  { %30 = sbr.rel (!%p28_p9) target bundleno = 23 (0x17), region = 152 }
 0xe4f   : > { %s5136_s22 = smov %s5128_s27 }
 0xe52   :  { %2972 = vsyncpa [#allocation12], 1 }
 0xe53   :  { %2974 = vsyncpa [#allocation12 + $0x1], 1 }
 0xe54   :  { %2975 = vsyncpa [#allocation15], 1 }
 0xe55   :  { %2976 = vsyncpa [#allocation13], 1 }
 0xe56   :  { %2978 = vsyncpa [#allocation13 + $0x1], 1 }
 0xe57   :  { %2979 = vsyncpa [#allocation18], 1 }
 0xe58   :  { %2981 = vsyncpa [#allocation18 + $0x1], 1 }

</bundles_post_ra>
